<compile_context>
chip_gen: v6e
topology: v6e:2x2x1
jax: 0.10.0
libtpu: 0.0.40
codegen_flags: <defaults>
</compile_context>

<pallas_src>
import math

import numpy as np
import jax
import jax.numpy as jnp
from jax.experimental import pallas as pl
from jax.experimental.pallas import tpu as pltpu

# Static SmallNet geometry (implied by the module: fc1 in_features == 400).
CIN, H, W = 2, 7, 7                 # conv1 input
KH = KW = 3
OH, OW = H - KH + 1, W - KW + 1     # 5 x 5 (valid conv)
NPIX = OH * OW                      # 25 output pixels
C1 = 256                            # conv1 out channels
C2 = 16                             # conv2 out channels
FC1, FC2 = 800, 256
OUT_PAD = 128                       # lane-dense padding of the single fc3 output


def _smallnet_kernel(x_ref, w1_ref, b1_ref, w2_ref, b2_ref,
                     w3_ref, b3_ref, w4_ref, b4_ref, w5_ref, b5_ref, o_ref):
    """Entire SmallNet forward on one VMEM-resident block (batch = B rows)."""
    B = x_ref.shape[0]
    x = x_ref[...].astype(jnp.bfloat16)                              # [B, 98]

    # conv1 (im2col folded into w1) -> relu -> conv2 (1x1) -> relu -> partial
    # fc1 contribution, one 5x5 output pixel at a time.  Accumulating fc1 per
    # pixel means the flattened [B, 400] activation never needs an in-kernel
    # reshape/transpose; the flatten permutation is already baked into w3.
    acc = jnp.zeros((B, FC1), jnp.float32)
    for p in range(NPIX):
        h1p = jnp.dot(x, w1_ref[:, p * C1:(p + 1) * C1],
                      preferred_element_type=jnp.float32)
        h1p = jnp.maximum(h1p + b1_ref[:, p * C1:(p + 1) * C1], 0.0)  # [B, 256]
        h2p = jnp.dot(h1p, w2_ref[...], preferred_element_type=jnp.float32)
        h2p = jnp.maximum(h2p + b2_ref[...], 0.0)                     # [B, 16]
        acc = acc + jnp.dot(h2p.astype(jnp.bfloat16),
                            w3_ref[p * C2:(p + 1) * C2, :],
                            preferred_element_type=jnp.float32)

    h3 = jnp.maximum(acc + b3_ref[...], 0.0).astype(jnp.bfloat16)     # [B, 800]
    h4 = jnp.dot(h3, w4_ref[...], preferred_element_type=jnp.float32)
    h4 = jnp.maximum(h4 + b4_ref[...], 0.0)                           # [B, 256]
    h5 = jnp.dot(h4, w5_ref[...], preferred_element_type=jnp.float32)
    o_ref[...] = jnp.tanh(h5 + b5_ref[...])                           # [B, 128]


def init_torch_style_params(key):
    """PyTorch-layout SmallNet parameters (Kaiming-uniform-ish)."""
    def u(k, shape, fan_in):
        bound = 1.0 / math.sqrt(fan_in)
        return jax.random.uniform(k, shape, jnp.float32, -bound, bound)

    ks = jax.random.split(key, 10)
    return dict(
        conv1_w=u(ks[0], (C1, CIN, KH, KW), CIN * KH * KW),
        conv1_b=u(ks[1], (C1,), CIN * KH * KW),
        conv2_w=u(ks[2], (C2, C1, 1, 1), C1),
        conv2_b=u(ks[3], (C2,), C1),
        fc1_w=u(ks[4], (FC1, NPIX * C2), NPIX * C2),
        fc1_b=u(ks[5], (FC1,), NPIX * C2),
        fc2_w=u(ks[6], (FC2, FC1), FC1),
        fc2_b=u(ks[7], (FC2,), FC1),
        fc3_w=u(ks[8], (1, FC2), FC2),
        fc3_b=u(ks[9], (1,), FC2),
    )


def fold_params(p):
    """One-time init: fold im2col, the NCHW-flatten permutation and the fc3
    lane padding into the weights; cast the large matrices to bf16."""
    # conv1: scatter the [256,2,3,3] taps into a [C*H*W, 25*256] matrix so
    # conv1 is a single matmul against the row-major flattened input.
    conv1_w = np.asarray(p["conv1_w"])
    w1 = np.zeros((CIN * H * W, NPIX * C1), np.float32)
    for oh in range(OH):
        for ow in range(OW):
            pix = oh * OW + ow
            for c in range(CIN):
                for kh in range(KH):
                    for kw in range(KW):
                        f = c * H * W + (oh + kh) * W + (ow + kw)
                        w1[f, pix * C1:(pix + 1) * C1] = conv1_w[:, c, kh, kw]
    b1 = np.tile(np.asarray(p["conv1_b"]), NPIX)         # [25*256] pixel-major

    w2 = np.asarray(p["conv2_w"]).reshape(C2, C1).T      # [256, 16]
    b2 = np.asarray(p["conv2_b"])

    # torch.flatten on NCHW gives feature index c*25 + pix; the kernel produces
    # features pixel-major (pix*16 + c), so permute fc1's input rows once here.
    w3 = np.asarray(p["fc1_w"]).T                        # [400, 800]
    perm = np.array([(j % C2) * NPIX + (j // C2) for j in range(NPIX * C2)])
    w3 = w3[perm]
    b3 = np.asarray(p["fc1_b"])

    w4 = np.asarray(p["fc2_w"]).T                        # [800, 256]
    b4 = np.asarray(p["fc2_b"])

    w5 = np.zeros((FC2, OUT_PAD), np.float32)            # lane-dense fc3
    w5[:, 0] = np.asarray(p["fc3_w"])[0]
    b5 = np.zeros((OUT_PAD,), np.float32)
    b5[0] = np.asarray(p["fc3_b"])[0]

    as_row = lambda v: jnp.asarray(v, jnp.float32).reshape(1, -1)
    return dict(
        w1=jnp.asarray(w1, jnp.bfloat16), b1=as_row(b1),
        w2=jnp.asarray(w2, jnp.float32), b2=as_row(b2),
        w3=jnp.asarray(w3, jnp.bfloat16), b3=as_row(b3),
        w4=jnp.asarray(w4, jnp.bfloat16), b4=as_row(b4),
        w5=jnp.asarray(w5, jnp.float32), b5=as_row(b5),
    )


@jax.jit
def smallnet_forward(folded, x):
    B = x.shape[0]
    x_flat = x.reshape(B, CIN * H * W)   # row-major flatten == w1 folding order
    args = (x_flat, folded["w1"], folded["b1"], folded["w2"], folded["b2"],
            folded["w3"], folded["b3"], folded["w4"], folded["b4"],
            folded["w5"], folded["b5"])
    out = pl.pallas_call(
        _smallnet_kernel,
        out_shape=jax.ShapeDtypeStruct((B, OUT_PAD), jnp.float32),
        grid=(1,),
        in_specs=[pl.BlockSpec(a.shape, lambda i: (0, 0)) for a in args],
        out_specs=pl.BlockSpec((B, OUT_PAD), lambda i: (0, 0)),
        compiler_params=pltpu.CompilerParams(
            dimension_semantics=("arbitrary",),
            vmem_limit_bytes=32 * 1024 * 1024,
        ),
    )(*args)
    return out[:, :1]                    # real tanh(fc3) logit; rest is zero padding


if __name__ == "__main__":
    key = jax.random.PRNGKey(0)
    pkey, xkey = jax.random.split(key)
    raw_params = init_torch_style_params(pkey)
    folded = fold_params(raw_params)
    # Input must be [B, 2, 7, 7] so that 16 * 5 * 5 == 400 matches fc1.
    x = jax.random.normal(xkey, (2, 2, 7, 7), dtype=jnp.float32)
    out = smallnet_forward(folded, x)
    jax.block_until_ready(out)
    assert out.shape == (2, 1), out.shape
    print("KERNEL_OK")
</pallas_src>

<mosaic_0001>
module attributes {stable_mosaic.version = 11 : i64} {
  func.func @_smallnet_kernel(%arg0: i32, %arg1: memref<2x98xf32, #tpu.memory_space<vmem>>, %arg2: memref<98x6400xbf16, #tpu.memory_space<vmem>>, %arg3: memref<1x6400xf32, #tpu.memory_space<vmem>>, %arg4: memref<256x16xf32, #tpu.memory_space<vmem>>, %arg5: memref<1x16xf32, #tpu.memory_space<vmem>>, %arg6: memref<400x800xbf16, #tpu.memory_space<vmem>>, %arg7: memref<1x800xf32, #tpu.memory_space<vmem>>, %arg8: memref<800x256xbf16, #tpu.memory_space<vmem>>, %arg9: memref<1x256xf32, #tpu.memory_space<vmem>>, %arg10: memref<256x128xf32, #tpu.memory_space<vmem>>, %arg11: memref<1x128xf32, #tpu.memory_space<vmem>>, %arg12: memref<2x128xf32, #tpu.memory_space<vmem>>) attributes {dimension_semantics = [#tpu.dimension_semantics<arbitrary>], iteration_bounds = array<i64: 1>, scalar_prefetch = 0 : i64, scratch_operands = 0 : i64, tpu.core_type = #tpu.core_type<tc>, window_params = [{pipeline_mode = #tpu.pipeline_mode<synchronous>, transform_indices = @transform_0, window_bounds = array<i64: 2, 98>}, {pipeline_mode = #tpu.pipeline_mode<synchronous>, transform_indices = @transform_1, window_bounds = array<i64: 98, 6400>}, {pipeline_mode = #tpu.pipeline_mode<synchronous>, transform_indices = @transform_2, window_bounds = array<i64: 1, 6400>}, {pipeline_mode = #tpu.pipeline_mode<synchronous>, transform_indices = @transform_3, window_bounds = array<i64: 256, 16>}, {pipeline_mode = #tpu.pipeline_mode<synchronous>, transform_indices = @transform_4, window_bounds = array<i64: 1, 16>}, {pipeline_mode = #tpu.pipeline_mode<synchronous>, transform_indices = @transform_5, window_bounds = array<i64: 400, 800>}, {pipeline_mode = #tpu.pipeline_mode<synchronous>, transform_indices = @transform_6, window_bounds = array<i64: 1, 800>}, {pipeline_mode = #tpu.pipeline_mode<synchronous>, transform_indices = @transform_7, window_bounds = array<i64: 800, 256>}, {pipeline_mode = #tpu.pipeline_mode<synchronous>, transform_indices = @transform_8, window_bounds = array<i64: 1, 256>}, {pipeline_mode = #tpu.pipeline_mode<synchronous>, transform_indices = @transform_9, window_bounds = array<i64: 256, 128>}, {pipeline_mode = #tpu.pipeline_mode<synchronous>, transform_indices = @transform_10, window_bounds = array<i64: 1, 128>}, {pipeline_mode = #tpu.pipeline_mode<synchronous>, transform_indices = @transform_11, window_bounds = array<i64: 2, 128>}]} {
    %c0 = arith.constant 0 : index
    %c0_0 = arith.constant 0 : index
    %0 = vector.load %arg1[%c0, %c0_0] : memref<2x98xf32, #tpu.memory_space<vmem>>, vector<2x98xf32>
    %1 = arith.truncf %0 : vector<2x98xf32> to vector<2x98xbf16>
    %cst = arith.constant 0.000000e+00 : f32
    %2 = vector.broadcast %cst : f32 to vector<2x800xf32>
    %c0_1 = arith.constant 0 : index
    %c0_2 = arith.constant 0 : index
    %3 = vector.load %arg2[%c0_1, %c0_2] : memref<98x6400xbf16, #tpu.memory_space<vmem>>, vector<98x256xbf16>
    %cst_3 = arith.constant dense<0.000000e+00> : vector<2x256xf32>
    %4 = tpu.matmul %1, %3, %cst_3 {dimension_numbers = #tpu.dot_dimension_numbers<[1], [0], [0], [1], [0, 0, 1, 1], [], []>} : vector<2x98xbf16>, vector<98x256xbf16>, vector<2x256xf32> -> vector<2x256xf32>
    %c0_4 = arith.constant 0 : index
    %c0_5 = arith.constant 0 : index
    %5 = vector.load %arg3[%c0_4, %c0_5] : memref<1x6400xf32, #tpu.memory_space<vmem>>, vector<1x256xf32>
    %6 = vector.broadcast %5 : vector<1x256xf32> to vector<2x256xf32>
    %7 = arith.addf %4, %6 : vector<2x256xf32>
    %cst_6 = arith.constant 0.000000e+00 : f32
    %8 = vector.broadcast %cst_6 : f32 to vector<2x256xf32>
    %9 = arith.maximumf %7, %8 : vector<2x256xf32>
    %c0_7 = arith.constant 0 : index
    %c0_8 = arith.constant 0 : index
    %10 = vector.load %arg4[%c0_7, %c0_8] : memref<256x16xf32, #tpu.memory_space<vmem>>, vector<256x16xf32>
    %cst_9 = arith.constant dense<0.000000e+00> : vector<2x16xf32>
    %11 = tpu.matmul %9, %10, %cst_9 {dimension_numbers = #tpu.dot_dimension_numbers<[1], [0], [0], [1], [0, 0, 1, 1], [], []>} : vector<2x256xf32>, vector<256x16xf32>, vector<2x16xf32> -> vector<2x16xf32>
    %c0_10 = arith.constant 0 : index
    %c0_11 = arith.constant 0 : index
    %12 = vector.load %arg5[%c0_10, %c0_11] : memref<1x16xf32, #tpu.memory_space<vmem>>, vector<1x16xf32>
    %13 = vector.broadcast %12 : vector<1x16xf32> to vector<2x16xf32>
    %14 = arith.addf %11, %13 : vector<2x16xf32>
    %cst_12 = arith.constant 0.000000e+00 : f32
    %15 = vector.broadcast %cst_12 : f32 to vector<2x16xf32>
    %16 = arith.maximumf %14, %15 : vector<2x16xf32>
    %17 = arith.truncf %16 : vector<2x16xf32> to vector<2x16xbf16>
    %c0_13 = arith.constant 0 : index
    %c0_14 = arith.constant 0 : index
    %18 = vector.load %arg6[%c0_13, %c0_14] : memref<400x800xbf16, #tpu.memory_space<vmem>>, vector<16x800xbf16>
    %cst_15 = arith.constant dense<0.000000e+00> : vector<2x800xf32>
    %19 = tpu.matmul %17, %18, %cst_15 {dimension_numbers = #tpu.dot_dimension_numbers<[1], [0], [0], [1], [0, 0, 1, 1], [], []>} : vector<2x16xbf16>, vector<16x800xbf16>, vector<2x800xf32> -> vector<2x800xf32>
    %20 = arith.addf %2, %19 : vector<2x800xf32>
    %c0_16 = arith.constant 0 : index
    %c256 = arith.constant 256 : index
    %21 = vector.load %arg2[%c0_16, %c256] : memref<98x6400xbf16, #tpu.memory_space<vmem>>, vector<98x256xbf16>
    %cst_17 = arith.constant dense<0.000000e+00> : vector<2x256xf32>
    %22 = tpu.matmul %1, %21, %cst_17 {dimension_numbers = #tpu.dot_dimension_numbers<[1], [0], [0], [1], [0, 0, 1, 1], [], []>} : vector<2x98xbf16>, vector<98x256xbf16>, vector<2x256xf32> -> vector<2x256xf32>
    %c0_18 = arith.constant 0 : index
    %c256_19 = arith.constant 256 : index
    %23 = vector.load %arg3[%c0_18, %c256_19] : memref<1x6400xf32, #tpu.memory_space<vmem>>, vector<1x256xf32>
    %24 = vector.broadcast %23 : vector<1x256xf32> to vector<2x256xf32>
    %25 = arith.addf %22, %24 : vector<2x256xf32>
    %cst_20 = arith.constant 0.000000e+00 : f32
    %26 = vector.broadcast %cst_20 : f32 to vector<2x256xf32>
    %27 = arith.maximumf %25, %26 : vector<2x256xf32>
    %c0_21 = arith.constant 0 : index
    %c0_22 = arith.constant 0 : index
    %28 = vector.load %arg4[%c0_21, %c0_22] : memref<256x16xf32, #tpu.memory_space<vmem>>, vector<256x16xf32>
    %cst_23 = arith.constant dense<0.000000e+00> : vector<2x16xf32>
    %29 = tpu.matmul %27, %28, %cst_23 {dimension_numbers = #tpu.dot_dimension_numbers<[1], [0], [0], [1], [0, 0, 1, 1], [], []>} : vector<2x256xf32>, vector<256x16xf32>, vector<2x16xf32> -> vector<2x16xf32>
    %c0_24 = arith.constant 0 : index
    %c0_25 = arith.constant 0 : index
    %30 = vector.load %arg5[%c0_24, %c0_25] : memref<1x16xf32, #tpu.memory_space<vmem>>, vector<1x16xf32>
    %31 = vector.broadcast %30 : vector<1x16xf32> to vector<2x16xf32>
    %32 = arith.addf %29, %31 : vector<2x16xf32>
    %cst_26 = arith.constant 0.000000e+00 : f32
    %33 = vector.broadcast %cst_26 : f32 to vector<2x16xf32>
    %34 = arith.maximumf %32, %33 : vector<2x16xf32>
    %35 = arith.truncf %34 : vector<2x16xf32> to vector<2x16xbf16>
    %c16 = arith.constant 16 : index
    %c0_27 = arith.constant 0 : index
    %36 = vector.load %arg6[%c16, %c0_27] : memref<400x800xbf16, #tpu.memory_space<vmem>>, vector<16x800xbf16>
    %cst_28 = arith.constant dense<0.000000e+00> : vector<2x800xf32>
    %37 = tpu.matmul %35, %36, %cst_28 {dimension_numbers = #tpu.dot_dimension_numbers<[1], [0], [0], [1], [0, 0, 1, 1], [], []>} : vector<2x16xbf16>, vector<16x800xbf16>, vector<2x800xf32> -> vector<2x800xf32>
    %38 = arith.addf %20, %37 : vector<2x800xf32>
    %c0_29 = arith.constant 0 : index
    %c512 = arith.constant 512 : index
    %39 = vector.load %arg2[%c0_29, %c512] : memref<98x6400xbf16, #tpu.memory_space<vmem>>, vector<98x256xbf16>
    %cst_30 = arith.constant dense<0.000000e+00> : vector<2x256xf32>
    %40 = tpu.matmul %1, %39, %cst_30 {dimension_numbers = #tpu.dot_dimension_numbers<[1], [0], [0], [1], [0, 0, 1, 1], [], []>} : vector<2x98xbf16>, vector<98x256xbf16>, vector<2x256xf32> -> vector<2x256xf32>
    %c0_31 = arith.constant 0 : index
    %c512_32 = arith.constant 512 : index
    %41 = vector.load %arg3[%c0_31, %c512_32] : memref<1x6400xf32, #tpu.memory_space<vmem>>, vector<1x256xf32>
    %42 = vector.broadcast %41 : vector<1x256xf32> to vector<2x256xf32>
    %43 = arith.addf %40, %42 : vector<2x256xf32>
    %cst_33 = arith.constant 0.000000e+00 : f32
    %44 = vector.broadcast %cst_33 : f32 to vector<2x256xf32>
    %45 = arith.maximumf %43, %44 : vector<2x256xf32>
    %c0_34 = arith.constant 0 : index
    %c0_35 = arith.constant 0 : index
    %46 = vector.load %arg4[%c0_34, %c0_35] : memref<256x16xf32, #tpu.memory_space<vmem>>, vector<256x16xf32>
    %cst_36 = arith.constant dense<0.000000e+00> : vector<2x16xf32>
    %47 = tpu.matmul %45, %46, %cst_36 {dimension_numbers = #tpu.dot_dimension_numbers<[1], [0], [0], [1], [0, 0, 1, 1], [], []>} : vector<2x256xf32>, vector<256x16xf32>, vector<2x16xf32> -> vector<2x16xf32>
    %c0_37 = arith.constant 0 : index
    %c0_38 = arith.constant 0 : index
    %48 = vector.load %arg5[%c0_37, %c0_38] : memref<1x16xf32, #tpu.memory_space<vmem>>, vector<1x16xf32>
    %49 = vector.broadcast %48 : vector<1x16xf32> to vector<2x16xf32>
    %50 = arith.addf %47, %49 : vector<2x16xf32>
    %cst_39 = arith.constant 0.000000e+00 : f32
    %51 = vector.broadcast %cst_39 : f32 to vector<2x16xf32>
    %52 = arith.maximumf %50, %51 : vector<2x16xf32>
    %53 = arith.truncf %52 : vector<2x16xf32> to vector<2x16xbf16>
    %c32 = arith.constant 32 : index
    %c0_40 = arith.constant 0 : index
    %54 = vector.load %arg6[%c32, %c0_40] : memref<400x800xbf16, #tpu.memory_space<vmem>>, vector<16x800xbf16>
    %cst_41 = arith.constant dense<0.000000e+00> : vector<2x800xf32>
    %55 = tpu.matmul %53, %54, %cst_41 {dimension_numbers = #tpu.dot_dimension_numbers<[1], [0], [0], [1], [0, 0, 1, 1], [], []>} : vector<2x16xbf16>, vector<16x800xbf16>, vector<2x800xf32> -> vector<2x800xf32>
    %56 = arith.addf %38, %55 : vector<2x800xf32>
    %c0_42 = arith.constant 0 : index
    %c768 = arith.constant 768 : index
    %57 = vector.load %arg2[%c0_42, %c768] : memref<98x6400xbf16, #tpu.memory_space<vmem>>, vector<98x256xbf16>
    %cst_43 = arith.constant dense<0.000000e+00> : vector<2x256xf32>
    %58 = tpu.matmul %1, %57, %cst_43 {dimension_numbers = #tpu.dot_dimension_numbers<[1], [0], [0], [1], [0, 0, 1, 1], [], []>} : vector<2x98xbf16>, vector<98x256xbf16>, vector<2x256xf32> -> vector<2x256xf32>
    %c0_44 = arith.constant 0 : index
    %c768_45 = arith.constant 768 : index
    %59 = vector.load %arg3[%c0_44, %c768_45] : memref<1x6400xf32, #tpu.memory_space<vmem>>, vector<1x256xf32>
    %60 = vector.broadcast %59 : vector<1x256xf32> to vector<2x256xf32>
    %61 = arith.addf %58, %60 : vector<2x256xf32>
    %cst_46 = arith.constant 0.000000e+00 : f32
    %62 = vector.broadcast %cst_46 : f32 to vector<2x256xf32>
    %63 = arith.maximumf %61, %62 : vector<2x256xf32>
    %c0_47 = arith.constant 0 : index
    %c0_48 = arith.constant 0 : index
    %64 = vector.load %arg4[%c0_47, %c0_48] : memref<256x16xf32, #tpu.memory_space<vmem>>, vector<256x16xf32>
    %cst_49 = arith.constant dense<0.000000e+00> : vector<2x16xf32>
    %65 = tpu.matmul %63, %64, %cst_49 {dimension_numbers = #tpu.dot_dimension_numbers<[1], [0], [0], [1], [0, 0, 1, 1], [], []>} : vector<2x256xf32>, vector<256x16xf32>, vector<2x16xf32> -> vector<2x16xf32>
    %c0_50 = arith.constant 0 : index
    %c0_51 = arith.constant 0 : index
    %66 = vector.load %arg5[%c0_50, %c0_51] : memref<1x16xf32, #tpu.memory_space<vmem>>, vector<1x16xf32>
    %67 = vector.broadcast %66 : vector<1x16xf32> to vector<2x16xf32>
    %68 = arith.addf %65, %67 : vector<2x16xf32>
    %cst_52 = arith.constant 0.000000e+00 : f32
    %69 = vector.broadcast %cst_52 : f32 to vector<2x16xf32>
    %70 = arith.maximumf %68, %69 : vector<2x16xf32>
    %71 = arith.truncf %70 : vector<2x16xf32> to vector<2x16xbf16>
    %c48 = arith.constant 48 : index
    %c0_53 = arith.constant 0 : index
    %72 = vector.load %arg6[%c48, %c0_53] : memref<400x800xbf16, #tpu.memory_space<vmem>>, vector<16x800xbf16>
    %cst_54 = arith.constant dense<0.000000e+00> : vector<2x800xf32>
    %73 = tpu.matmul %71, %72, %cst_54 {dimension_numbers = #tpu.dot_dimension_numbers<[1], [0], [0], [1], [0, 0, 1, 1], [], []>} : vector<2x16xbf16>, vector<16x800xbf16>, vector<2x800xf32> -> vector<2x800xf32>
    %74 = arith.addf %56, %73 : vector<2x800xf32>
    %c0_55 = arith.constant 0 : index
    %c1024 = arith.constant 1024 : index
    %75 = vector.load %arg2[%c0_55, %c1024] : memref<98x6400xbf16, #tpu.memory_space<vmem>>, vector<98x256xbf16>
    %cst_56 = arith.constant dense<0.000000e+00> : vector<2x256xf32>
    %76 = tpu.matmul %1, %75, %cst_56 {dimension_numbers = #tpu.dot_dimension_numbers<[1], [0], [0], [1], [0, 0, 1, 1], [], []>} : vector<2x98xbf16>, vector<98x256xbf16>, vector<2x256xf32> -> vector<2x256xf32>
    %c0_57 = arith.constant 0 : index
    %c1024_58 = arith.constant 1024 : index
    %77 = vector.load %arg3[%c0_57, %c1024_58] : memref<1x6400xf32, #tpu.memory_space<vmem>>, vector<1x256xf32>
    %78 = vector.broadcast %77 : vector<1x256xf32> to vector<2x256xf32>
    %79 = arith.addf %76, %78 : vector<2x256xf32>
    %cst_59 = arith.constant 0.000000e+00 : f32
    %80 = vector.broadcast %cst_59 : f32 to vector<2x256xf32>
    %81 = arith.maximumf %79, %80 : vector<2x256xf32>
    %c0_60 = arith.constant 0 : index
    %c0_61 = arith.constant 0 : index
    %82 = vector.load %arg4[%c0_60, %c0_61] : memref<256x16xf32, #tpu.memory_space<vmem>>, vector<256x16xf32>
    %cst_62 = arith.constant dense<0.000000e+00> : vector<2x16xf32>
    %83 = tpu.matmul %81, %82, %cst_62 {dimension_numbers = #tpu.dot_dimension_numbers<[1], [0], [0], [1], [0, 0, 1, 1], [], []>} : vector<2x256xf32>, vector<256x16xf32>, vector<2x16xf32> -> vector<2x16xf32>
    %c0_63 = arith.constant 0 : index
    %c0_64 = arith.constant 0 : index
    %84 = vector.load %arg5[%c0_63, %c0_64] : memref<1x16xf32, #tpu.memory_space<vmem>>, vector<1x16xf32>
    %85 = vector.broadcast %84 : vector<1x16xf32> to vector<2x16xf32>
    %86 = arith.addf %83, %85 : vector<2x16xf32>
    %cst_65 = arith.constant 0.000000e+00 : f32
    %87 = vector.broadcast %cst_65 : f32 to vector<2x16xf32>
    %88 = arith.maximumf %86, %87 : vector<2x16xf32>
    %89 = arith.truncf %88 : vector<2x16xf32> to vector<2x16xbf16>
    %c64 = arith.constant 64 : index
    %c0_66 = arith.constant 0 : index
    %90 = vector.load %arg6[%c64, %c0_66] : memref<400x800xbf16, #tpu.memory_space<vmem>>, vector<16x800xbf16>
    %cst_67 = arith.constant dense<0.000000e+00> : vector<2x800xf32>
    %91 = tpu.matmul %89, %90, %cst_67 {dimension_numbers = #tpu.dot_dimension_numbers<[1], [0], [0], [1], [0, 0, 1, 1], [], []>} : vector<2x16xbf16>, vector<16x800xbf16>, vector<2x800xf32> -> vector<2x800xf32>
    %92 = arith.addf %74, %91 : vector<2x800xf32>
    %c0_68 = arith.constant 0 : index
    %c1280 = arith.constant 1280 : index
    %93 = vector.load %arg2[%c0_68, %c1280] : memref<98x6400xbf16, #tpu.memory_space<vmem>>, vector<98x256xbf16>
    %cst_69 = arith.constant dense<0.000000e+00> : vector<2x256xf32>
    %94 = tpu.matmul %1, %93, %cst_69 {dimension_numbers = #tpu.dot_dimension_numbers<[1], [0], [0], [1], [0, 0, 1, 1], [], []>} : vector<2x98xbf16>, vector<98x256xbf16>, vector<2x256xf32> -> vector<2x256xf32>
    %c0_70 = arith.constant 0 : index
    %c1280_71 = arith.constant 1280 : index
    %95 = vector.load %arg3[%c0_70, %c1280_71] : memref<1x6400xf32, #tpu.memory_space<vmem>>, vector<1x256xf32>
    %96 = vector.broadcast %95 : vector<1x256xf32> to vector<2x256xf32>
    %97 = arith.addf %94, %96 : vector<2x256xf32>
    %cst_72 = arith.constant 0.000000e+00 : f32
    %98 = vector.broadcast %cst_72 : f32 to vector<2x256xf32>
    %99 = arith.maximumf %97, %98 : vector<2x256xf32>
    %c0_73 = arith.constant 0 : index
    %c0_74 = arith.constant 0 : index
    %100 = vector.load %arg4[%c0_73, %c0_74] : memref<256x16xf32, #tpu.memory_space<vmem>>, vector<256x16xf32>
    %cst_75 = arith.constant dense<0.000000e+00> : vector<2x16xf32>
    %101 = tpu.matmul %99, %100, %cst_75 {dimension_numbers = #tpu.dot_dimension_numbers<[1], [0], [0], [1], [0, 0, 1, 1], [], []>} : vector<2x256xf32>, vector<256x16xf32>, vector<2x16xf32> -> vector<2x16xf32>
    %c0_76 = arith.constant 0 : index
    %c0_77 = arith.constant 0 : index
    %102 = vector.load %arg5[%c0_76, %c0_77] : memref<1x16xf32, #tpu.memory_space<vmem>>, vector<1x16xf32>
    %103 = vector.broadcast %102 : vector<1x16xf32> to vector<2x16xf32>
    %104 = arith.addf %101, %103 : vector<2x16xf32>
    %cst_78 = arith.constant 0.000000e+00 : f32
    %105 = vector.broadcast %cst_78 : f32 to vector<2x16xf32>
    %106 = arith.maximumf %104, %105 : vector<2x16xf32>
    %107 = arith.truncf %106 : vector<2x16xf32> to vector<2x16xbf16>
    %c80 = arith.constant 80 : index
    %c0_79 = arith.constant 0 : index
    %108 = vector.load %arg6[%c80, %c0_79] : memref<400x800xbf16, #tpu.memory_space<vmem>>, vector<16x800xbf16>
    %cst_80 = arith.constant dense<0.000000e+00> : vector<2x800xf32>
    %109 = tpu.matmul %107, %108, %cst_80 {dimension_numbers = #tpu.dot_dimension_numbers<[1], [0], [0], [1], [0, 0, 1, 1], [], []>} : vector<2x16xbf16>, vector<16x800xbf16>, vector<2x800xf32> -> vector<2x800xf32>
    %110 = arith.addf %92, %109 : vector<2x800xf32>
    %c0_81 = arith.constant 0 : index
    %c1536 = arith.constant 1536 : index
    %111 = vector.load %arg2[%c0_81, %c1536] : memref<98x6400xbf16, #tpu.memory_space<vmem>>, vector<98x256xbf16>
    %cst_82 = arith.constant dense<0.000000e+00> : vector<2x256xf32>
    %112 = tpu.matmul %1, %111, %cst_82 {dimension_numbers = #tpu.dot_dimension_numbers<[1], [0], [0], [1], [0, 0, 1, 1], [], []>} : vector<2x98xbf16>, vector<98x256xbf16>, vector<2x256xf32> -> vector<2x256xf32>
    %c0_83 = arith.constant 0 : index
    %c1536_84 = arith.constant 1536 : index
    %113 = vector.load %arg3[%c0_83, %c1536_84] : memref<1x6400xf32, #tpu.memory_space<vmem>>, vector<1x256xf32>
    %114 = vector.broadcast %113 : vector<1x256xf32> to vector<2x256xf32>
    %115 = arith.addf %112, %114 : vector<2x256xf32>
    %cst_85 = arith.constant 0.000000e+00 : f32
    %116 = vector.broadcast %cst_85 : f32 to vector<2x256xf32>
    %117 = arith.maximumf %115, %116 : vector<2x256xf32>
    %c0_86 = arith.constant 0 : index
    %c0_87 = arith.constant 0 : index
    %118 = vector.load %arg4[%c0_86, %c0_87] : memref<256x16xf32, #tpu.memory_space<vmem>>, vector<256x16xf32>
    %cst_88 = arith.constant dense<0.000000e+00> : vector<2x16xf32>
    %119 = tpu.matmul %117, %118, %cst_88 {dimension_numbers = #tpu.dot_dimension_numbers<[1], [0], [0], [1], [0, 0, 1, 1], [], []>} : vector<2x256xf32>, vector<256x16xf32>, vector<2x16xf32> -> vector<2x16xf32>
    %c0_89 = arith.constant 0 : index
    %c0_90 = arith.constant 0 : index
    %120 = vector.load %arg5[%c0_89, %c0_90] : memref<1x16xf32, #tpu.memory_space<vmem>>, vector<1x16xf32>
    %121 = vector.broadcast %120 : vector<1x16xf32> to vector<2x16xf32>
    %122 = arith.addf %119, %121 : vector<2x16xf32>
    %cst_91 = arith.constant 0.000000e+00 : f32
    %123 = vector.broadcast %cst_91 : f32 to vector<2x16xf32>
    %124 = arith.maximumf %122, %123 : vector<2x16xf32>
    %125 = arith.truncf %124 : vector<2x16xf32> to vector<2x16xbf16>
    %c96 = arith.constant 96 : index
    %c0_92 = arith.constant 0 : index
    %126 = vector.load %arg6[%c96, %c0_92] : memref<400x800xbf16, #tpu.memory_space<vmem>>, vector<16x800xbf16>
    %cst_93 = arith.constant dense<0.000000e+00> : vector<2x800xf32>
    %127 = tpu.matmul %125, %126, %cst_93 {dimension_numbers = #tpu.dot_dimension_numbers<[1], [0], [0], [1], [0, 0, 1, 1], [], []>} : vector<2x16xbf16>, vector<16x800xbf16>, vector<2x800xf32> -> vector<2x800xf32>
    %128 = arith.addf %110, %127 : vector<2x800xf32>
    %c0_94 = arith.constant 0 : index
    %c1792 = arith.constant 1792 : index
    %129 = vector.load %arg2[%c0_94, %c1792] : memref<98x6400xbf16, #tpu.memory_space<vmem>>, vector<98x256xbf16>
    %cst_95 = arith.constant dense<0.000000e+00> : vector<2x256xf32>
    %130 = tpu.matmul %1, %129, %cst_95 {dimension_numbers = #tpu.dot_dimension_numbers<[1], [0], [0], [1], [0, 0, 1, 1], [], []>} : vector<2x98xbf16>, vector<98x256xbf16>, vector<2x256xf32> -> vector<2x256xf32>
    %c0_96 = arith.constant 0 : index
    %c1792_97 = arith.constant 1792 : index
    %131 = vector.load %arg3[%c0_96, %c1792_97] : memref<1x6400xf32, #tpu.memory_space<vmem>>, vector<1x256xf32>
    %132 = vector.broadcast %131 : vector<1x256xf32> to vector<2x256xf32>
    %133 = arith.addf %130, %132 : vector<2x256xf32>
    %cst_98 = arith.constant 0.000000e+00 : f32
    %134 = vector.broadcast %cst_98 : f32 to vector<2x256xf32>
    %135 = arith.maximumf %133, %134 : vector<2x256xf32>
    %c0_99 = arith.constant 0 : index
    %c0_100 = arith.constant 0 : index
    %136 = vector.load %arg4[%c0_99, %c0_100] : memref<256x16xf32, #tpu.memory_space<vmem>>, vector<256x16xf32>
    %cst_101 = arith.constant dense<0.000000e+00> : vector<2x16xf32>
    %137 = tpu.matmul %135, %136, %cst_101 {dimension_numbers = #tpu.dot_dimension_numbers<[1], [0], [0], [1], [0, 0, 1, 1], [], []>} : vector<2x256xf32>, vector<256x16xf32>, vector<2x16xf32> -> vector<2x16xf32>
    %c0_102 = arith.constant 0 : index
    %c0_103 = arith.constant 0 : index
    %138 = vector.load %arg5[%c0_102, %c0_103] : memref<1x16xf32, #tpu.memory_space<vmem>>, vector<1x16xf32>
    %139 = vector.broadcast %138 : vector<1x16xf32> to vector<2x16xf32>
    %140 = arith.addf %137, %139 : vector<2x16xf32>
    %cst_104 = arith.constant 0.000000e+00 : f32
    %141 = vector.broadcast %cst_104 : f32 to vector<2x16xf32>
    %142 = arith.maximumf %140, %141 : vector<2x16xf32>
    %143 = arith.truncf %142 : vector<2x16xf32> to vector<2x16xbf16>
    %c112 = arith.constant 112 : index
    %c0_105 = arith.constant 0 : index
    %144 = vector.load %arg6[%c112, %c0_105] : memref<400x800xbf16, #tpu.memory_space<vmem>>, vector<16x800xbf16>
    %cst_106 = arith.constant dense<0.000000e+00> : vector<2x800xf32>
    %145 = tpu.matmul %143, %144, %cst_106 {dimension_numbers = #tpu.dot_dimension_numbers<[1], [0], [0], [1], [0, 0, 1, 1], [], []>} : vector<2x16xbf16>, vector<16x800xbf16>, vector<2x800xf32> -> vector<2x800xf32>
    %146 = arith.addf %128, %145 : vector<2x800xf32>
    %c0_107 = arith.constant 0 : index
    %c2048 = arith.constant 2048 : index
    %147 = vector.load %arg2[%c0_107, %c2048] : memref<98x6400xbf16, #tpu.memory_space<vmem>>, vector<98x256xbf16>
    %cst_108 = arith.constant dense<0.000000e+00> : vector<2x256xf32>
    %148 = tpu.matmul %1, %147, %cst_108 {dimension_numbers = #tpu.dot_dimension_numbers<[1], [0], [0], [1], [0, 0, 1, 1], [], []>} : vector<2x98xbf16>, vector<98x256xbf16>, vector<2x256xf32> -> vector<2x256xf32>
    %c0_109 = arith.constant 0 : index
    %c2048_110 = arith.constant 2048 : index
    %149 = vector.load %arg3[%c0_109, %c2048_110] : memref<1x6400xf32, #tpu.memory_space<vmem>>, vector<1x256xf32>
    %150 = vector.broadcast %149 : vector<1x256xf32> to vector<2x256xf32>
    %151 = arith.addf %148, %150 : vector<2x256xf32>
    %cst_111 = arith.constant 0.000000e+00 : f32
    %152 = vector.broadcast %cst_111 : f32 to vector<2x256xf32>
    %153 = arith.maximumf %151, %152 : vector<2x256xf32>
    %c0_112 = arith.constant 0 : index
    %c0_113 = arith.constant 0 : index
    %154 = vector.load %arg4[%c0_112, %c0_113] : memref<256x16xf32, #tpu.memory_space<vmem>>, vector<256x16xf32>
    %cst_114 = arith.constant dense<0.000000e+00> : vector<2x16xf32>
    %155 = tpu.matmul %153, %154, %cst_114 {dimension_numbers = #tpu.dot_dimension_numbers<[1], [0], [0], [1], [0, 0, 1, 1], [], []>} : vector<2x256xf32>, vector<256x16xf32>, vector<2x16xf32> -> vector<2x16xf32>
    %c0_115 = arith.constant 0 : index
    %c0_116 = arith.constant 0 : index
    %156 = vector.load %arg5[%c0_115, %c0_116] : memref<1x16xf32, #tpu.memory_space<vmem>>, vector<1x16xf32>
    %157 = vector.broadcast %156 : vector<1x16xf32> to vector<2x16xf32>
    %158 = arith.addf %155, %157 : vector<2x16xf32>
    %cst_117 = arith.constant 0.000000e+00 : f32
    %159 = vector.broadcast %cst_117 : f32 to vector<2x16xf32>
    %160 = arith.maximumf %158, %159 : vector<2x16xf32>
    %161 = arith.truncf %160 : vector<2x16xf32> to vector<2x16xbf16>
    %c128 = arith.constant 128 : index
    %c0_118 = arith.constant 0 : index
    %162 = vector.load %arg6[%c128, %c0_118] : memref<400x800xbf16, #tpu.memory_space<vmem>>, vector<16x800xbf16>
    %cst_119 = arith.constant dense<0.000000e+00> : vector<2x800xf32>
    %163 = tpu.matmul %161, %162, %cst_119 {dimension_numbers = #tpu.dot_dimension_numbers<[1], [0], [0], [1], [0, 0, 1, 1], [], []>} : vector<2x16xbf16>, vector<16x800xbf16>, vector<2x800xf32> -> vector<2x800xf32>
    %164 = arith.addf %146, %163 : vector<2x800xf32>
    %c0_120 = arith.constant 0 : index
    %c2304 = arith.constant 2304 : index
    %165 = vector.load %arg2[%c0_120, %c2304] : memref<98x6400xbf16, #tpu.memory_space<vmem>>, vector<98x256xbf16>
    %cst_121 = arith.constant dense<0.000000e+00> : vector<2x256xf32>
    %166 = tpu.matmul %1, %165, %cst_121 {dimension_numbers = #tpu.dot_dimension_numbers<[1], [0], [0], [1], [0, 0, 1, 1], [], []>} : vector<2x98xbf16>, vector<98x256xbf16>, vector<2x256xf32> -> vector<2x256xf32>
    %c0_122 = arith.constant 0 : index
    %c2304_123 = arith.constant 2304 : index
    %167 = vector.load %arg3[%c0_122, %c2304_123] : memref<1x6400xf32, #tpu.memory_space<vmem>>, vector<1x256xf32>
    %168 = vector.broadcast %167 : vector<1x256xf32> to vector<2x256xf32>
    %169 = arith.addf %166, %168 : vector<2x256xf32>
    %cst_124 = arith.constant 0.000000e+00 : f32
    %170 = vector.broadcast %cst_124 : f32 to vector<2x256xf32>
    %171 = arith.maximumf %169, %170 : vector<2x256xf32>
    %c0_125 = arith.constant 0 : index
    %c0_126 = arith.constant 0 : index
    %172 = vector.load %arg4[%c0_125, %c0_126] : memref<256x16xf32, #tpu.memory_space<vmem>>, vector<256x16xf32>
    %cst_127 = arith.constant dense<0.000000e+00> : vector<2x16xf32>
    %173 = tpu.matmul %171, %172, %cst_127 {dimension_numbers = #tpu.dot_dimension_numbers<[1], [0], [0], [1], [0, 0, 1, 1], [], []>} : vector<2x256xf32>, vector<256x16xf32>, vector<2x16xf32> -> vector<2x16xf32>
    %c0_128 = arith.constant 0 : index
    %c0_129 = arith.constant 0 : index
    %174 = vector.load %arg5[%c0_128, %c0_129] : memref<1x16xf32, #tpu.memory_space<vmem>>, vector<1x16xf32>
    %175 = vector.broadcast %174 : vector<1x16xf32> to vector<2x16xf32>
    %176 = arith.addf %173, %175 : vector<2x16xf32>
    %cst_130 = arith.constant 0.000000e+00 : f32
    %177 = vector.broadcast %cst_130 : f32 to vector<2x16xf32>
    %178 = arith.maximumf %176, %177 : vector<2x16xf32>
    %179 = arith.truncf %178 : vector<2x16xf32> to vector<2x16xbf16>
    %c144 = arith.constant 144 : index
    %c0_131 = arith.constant 0 : index
    %180 = vector.load %arg6[%c144, %c0_131] : memref<400x800xbf16, #tpu.memory_space<vmem>>, vector<16x800xbf16>
    %cst_132 = arith.constant dense<0.000000e+00> : vector<2x800xf32>
    %181 = tpu.matmul %179, %180, %cst_132 {dimension_numbers = #tpu.dot_dimension_numbers<[1], [0], [0], [1], [0, 0, 1, 1], [], []>} : vector<2x16xbf16>, vector<16x800xbf16>, vector<2x800xf32> -> vector<2x800xf32>
    %182 = arith.addf %164, %181 : vector<2x800xf32>
    %c0_133 = arith.constant 0 : index
    %c2560 = arith.constant 2560 : index
    %183 = vector.load %arg2[%c0_133, %c2560] : memref<98x6400xbf16, #tpu.memory_space<vmem>>, vector<98x256xbf16>
    %cst_134 = arith.constant dense<0.000000e+00> : vector<2x256xf32>
    %184 = tpu.matmul %1, %183, %cst_134 {dimension_numbers = #tpu.dot_dimension_numbers<[1], [0], [0], [1], [0, 0, 1, 1], [], []>} : vector<2x98xbf16>, vector<98x256xbf16>, vector<2x256xf32> -> vector<2x256xf32>
    %c0_135 = arith.constant 0 : index
    %c2560_136 = arith.constant 2560 : index
    %185 = vector.load %arg3[%c0_135, %c2560_136] : memref<1x6400xf32, #tpu.memory_space<vmem>>, vector<1x256xf32>
    %186 = vector.broadcast %185 : vector<1x256xf32> to vector<2x256xf32>
    %187 = arith.addf %184, %186 : vector<2x256xf32>
    %cst_137 = arith.constant 0.000000e+00 : f32
    %188 = vector.broadcast %cst_137 : f32 to vector<2x256xf32>
    %189 = arith.maximumf %187, %188 : vector<2x256xf32>
    %c0_138 = arith.constant 0 : index
    %c0_139 = arith.constant 0 : index
    %190 = vector.load %arg4[%c0_138, %c0_139] : memref<256x16xf32, #tpu.memory_space<vmem>>, vector<256x16xf32>
    %cst_140 = arith.constant dense<0.000000e+00> : vector<2x16xf32>
    %191 = tpu.matmul %189, %190, %cst_140 {dimension_numbers = #tpu.dot_dimension_numbers<[1], [0], [0], [1], [0, 0, 1, 1], [], []>} : vector<2x256xf32>, vector<256x16xf32>, vector<2x16xf32> -> vector<2x16xf32>
    %c0_141 = arith.constant 0 : index
    %c0_142 = arith.constant 0 : index
    %192 = vector.load %arg5[%c0_141, %c0_142] : memref<1x16xf32, #tpu.memory_space<vmem>>, vector<1x16xf32>
    %193 = vector.broadcast %192 : vector<1x16xf32> to vector<2x16xf32>
    %194 = arith.addf %191, %193 : vector<2x16xf32>
    %cst_143 = arith.constant 0.000000e+00 : f32
    %195 = vector.broadcast %cst_143 : f32 to vector<2x16xf32>
    %196 = arith.maximumf %194, %195 : vector<2x16xf32>
    %197 = arith.truncf %196 : vector<2x16xf32> to vector<2x16xbf16>
    %c160 = arith.constant 160 : index
    %c0_144 = arith.constant 0 : index
    %198 = vector.load %arg6[%c160, %c0_144] : memref<400x800xbf16, #tpu.memory_space<vmem>>, vector<16x800xbf16>
    %cst_145 = arith.constant dense<0.000000e+00> : vector<2x800xf32>
    %199 = tpu.matmul %197, %198, %cst_145 {dimension_numbers = #tpu.dot_dimension_numbers<[1], [0], [0], [1], [0, 0, 1, 1], [], []>} : vector<2x16xbf16>, vector<16x800xbf16>, vector<2x800xf32> -> vector<2x800xf32>
    %200 = arith.addf %182, %199 : vector<2x800xf32>
    %c0_146 = arith.constant 0 : index
    %c2816 = arith.constant 2816 : index
    %201 = vector.load %arg2[%c0_146, %c2816] : memref<98x6400xbf16, #tpu.memory_space<vmem>>, vector<98x256xbf16>
    %cst_147 = arith.constant dense<0.000000e+00> : vector<2x256xf32>
    %202 = tpu.matmul %1, %201, %cst_147 {dimension_numbers = #tpu.dot_dimension_numbers<[1], [0], [0], [1], [0, 0, 1, 1], [], []>} : vector<2x98xbf16>, vector<98x256xbf16>, vector<2x256xf32> -> vector<2x256xf32>
    %c0_148 = arith.constant 0 : index
    %c2816_149 = arith.constant 2816 : index
    %203 = vector.load %arg3[%c0_148, %c2816_149] : memref<1x6400xf32, #tpu.memory_space<vmem>>, vector<1x256xf32>
    %204 = vector.broadcast %203 : vector<1x256xf32> to vector<2x256xf32>
    %205 = arith.addf %202, %204 : vector<2x256xf32>
    %cst_150 = arith.constant 0.000000e+00 : f32
    %206 = vector.broadcast %cst_150 : f32 to vector<2x256xf32>
    %207 = arith.maximumf %205, %206 : vector<2x256xf32>
    %c0_151 = arith.constant 0 : index
    %c0_152 = arith.constant 0 : index
    %208 = vector.load %arg4[%c0_151, %c0_152] : memref<256x16xf32, #tpu.memory_space<vmem>>, vector<256x16xf32>
    %cst_153 = arith.constant dense<0.000000e+00> : vector<2x16xf32>
    %209 = tpu.matmul %207, %208, %cst_153 {dimension_numbers = #tpu.dot_dimension_numbers<[1], [0], [0], [1], [0, 0, 1, 1], [], []>} : vector<2x256xf32>, vector<256x16xf32>, vector<2x16xf32> -> vector<2x16xf32>
    %c0_154 = arith.constant 0 : index
    %c0_155 = arith.constant 0 : index
    %210 = vector.load %arg5[%c0_154, %c0_155] : memref<1x16xf32, #tpu.memory_space<vmem>>, vector<1x16xf32>
    %211 = vector.broadcast %210 : vector<1x16xf32> to vector<2x16xf32>
    %212 = arith.addf %209, %211 : vector<2x16xf32>
    %cst_156 = arith.constant 0.000000e+00 : f32
    %213 = vector.broadcast %cst_156 : f32 to vector<2x16xf32>
    %214 = arith.maximumf %212, %213 : vector<2x16xf32>
    %215 = arith.truncf %214 : vector<2x16xf32> to vector<2x16xbf16>
    %c176 = arith.constant 176 : index
    %c0_157 = arith.constant 0 : index
    %216 = vector.load %arg6[%c176, %c0_157] : memref<400x800xbf16, #tpu.memory_space<vmem>>, vector<16x800xbf16>
    %cst_158 = arith.constant dense<0.000000e+00> : vector<2x800xf32>
    %217 = tpu.matmul %215, %216, %cst_158 {dimension_numbers = #tpu.dot_dimension_numbers<[1], [0], [0], [1], [0, 0, 1, 1], [], []>} : vector<2x16xbf16>, vector<16x800xbf16>, vector<2x800xf32> -> vector<2x800xf32>
    %218 = arith.addf %200, %217 : vector<2x800xf32>
    %c0_159 = arith.constant 0 : index
    %c3072 = arith.constant 3072 : index
    %219 = vector.load %arg2[%c0_159, %c3072] : memref<98x6400xbf16, #tpu.memory_space<vmem>>, vector<98x256xbf16>
    %cst_160 = arith.constant dense<0.000000e+00> : vector<2x256xf32>
    %220 = tpu.matmul %1, %219, %cst_160 {dimension_numbers = #tpu.dot_dimension_numbers<[1], [0], [0], [1], [0, 0, 1, 1], [], []>} : vector<2x98xbf16>, vector<98x256xbf16>, vector<2x256xf32> -> vector<2x256xf32>
    %c0_161 = arith.constant 0 : index
    %c3072_162 = arith.constant 3072 : index
    %221 = vector.load %arg3[%c0_161, %c3072_162] : memref<1x6400xf32, #tpu.memory_space<vmem>>, vector<1x256xf32>
    %222 = vector.broadcast %221 : vector<1x256xf32> to vector<2x256xf32>
    %223 = arith.addf %220, %222 : vector<2x256xf32>
    %cst_163 = arith.constant 0.000000e+00 : f32
    %224 = vector.broadcast %cst_163 : f32 to vector<2x256xf32>
    %225 = arith.maximumf %223, %224 : vector<2x256xf32>
    %c0_164 = arith.constant 0 : index
    %c0_165 = arith.constant 0 : index
    %226 = vector.load %arg4[%c0_164, %c0_165] : memref<256x16xf32, #tpu.memory_space<vmem>>, vector<256x16xf32>
    %cst_166 = arith.constant dense<0.000000e+00> : vector<2x16xf32>
    %227 = tpu.matmul %225, %226, %cst_166 {dimension_numbers = #tpu.dot_dimension_numbers<[1], [0], [0], [1], [0, 0, 1, 1], [], []>} : vector<2x256xf32>, vector<256x16xf32>, vector<2x16xf32> -> vector<2x16xf32>
    %c0_167 = arith.constant 0 : index
    %c0_168 = arith.constant 0 : index
    %228 = vector.load %arg5[%c0_167, %c0_168] : memref<1x16xf32, #tpu.memory_space<vmem>>, vector<1x16xf32>
    %229 = vector.broadcast %228 : vector<1x16xf32> to vector<2x16xf32>
    %230 = arith.addf %227, %229 : vector<2x16xf32>
    %cst_169 = arith.constant 0.000000e+00 : f32
    %231 = vector.broadcast %cst_169 : f32 to vector<2x16xf32>
    %232 = arith.maximumf %230, %231 : vector<2x16xf32>
    %233 = arith.truncf %232 : vector<2x16xf32> to vector<2x16xbf16>
    %c192 = arith.constant 192 : index
    %c0_170 = arith.constant 0 : index
    %234 = vector.load %arg6[%c192, %c0_170] : memref<400x800xbf16, #tpu.memory_space<vmem>>, vector<16x800xbf16>
    %cst_171 = arith.constant dense<0.000000e+00> : vector<2x800xf32>
    %235 = tpu.matmul %233, %234, %cst_171 {dimension_numbers = #tpu.dot_dimension_numbers<[1], [0], [0], [1], [0, 0, 1, 1], [], []>} : vector<2x16xbf16>, vector<16x800xbf16>, vector<2x800xf32> -> vector<2x800xf32>
    %236 = arith.addf %218, %235 : vector<2x800xf32>
    %c0_172 = arith.constant 0 : index
    %c3328 = arith.constant 3328 : index
    %237 = vector.load %arg2[%c0_172, %c3328] : memref<98x6400xbf16, #tpu.memory_space<vmem>>, vector<98x256xbf16>
    %cst_173 = arith.constant dense<0.000000e+00> : vector<2x256xf32>
    %238 = tpu.matmul %1, %237, %cst_173 {dimension_numbers = #tpu.dot_dimension_numbers<[1], [0], [0], [1], [0, 0, 1, 1], [], []>} : vector<2x98xbf16>, vector<98x256xbf16>, vector<2x256xf32> -> vector<2x256xf32>
    %c0_174 = arith.constant 0 : index
    %c3328_175 = arith.constant 3328 : index
    %239 = vector.load %arg3[%c0_174, %c3328_175] : memref<1x6400xf32, #tpu.memory_space<vmem>>, vector<1x256xf32>
    %240 = vector.broadcast %239 : vector<1x256xf32> to vector<2x256xf32>
    %241 = arith.addf %238, %240 : vector<2x256xf32>
    %cst_176 = arith.constant 0.000000e+00 : f32
    %242 = vector.broadcast %cst_176 : f32 to vector<2x256xf32>
    %243 = arith.maximumf %241, %242 : vector<2x256xf32>
    %c0_177 = arith.constant 0 : index
    %c0_178 = arith.constant 0 : index
    %244 = vector.load %arg4[%c0_177, %c0_178] : memref<256x16xf32, #tpu.memory_space<vmem>>, vector<256x16xf32>
    %cst_179 = arith.constant dense<0.000000e+00> : vector<2x16xf32>
    %245 = tpu.matmul %243, %244, %cst_179 {dimension_numbers = #tpu.dot_dimension_numbers<[1], [0], [0], [1], [0, 0, 1, 1], [], []>} : vector<2x256xf32>, vector<256x16xf32>, vector<2x16xf32> -> vector<2x16xf32>
    %c0_180 = arith.constant 0 : index
    %c0_181 = arith.constant 0 : index
    %246 = vector.load %arg5[%c0_180, %c0_181] : memref<1x16xf32, #tpu.memory_space<vmem>>, vector<1x16xf32>
    %247 = vector.broadcast %246 : vector<1x16xf32> to vector<2x16xf32>
    %248 = arith.addf %245, %247 : vector<2x16xf32>
    %cst_182 = arith.constant 0.000000e+00 : f32
    %249 = vector.broadcast %cst_182 : f32 to vector<2x16xf32>
    %250 = arith.maximumf %248, %249 : vector<2x16xf32>
    %251 = arith.truncf %250 : vector<2x16xf32> to vector<2x16xbf16>
    %c208 = arith.constant 208 : index
    %c0_183 = arith.constant 0 : index
    %252 = vector.load %arg6[%c208, %c0_183] : memref<400x800xbf16, #tpu.memory_space<vmem>>, vector<16x800xbf16>
    %cst_184 = arith.constant dense<0.000000e+00> : vector<2x800xf32>
    %253 = tpu.matmul %251, %252, %cst_184 {dimension_numbers = #tpu.dot_dimension_numbers<[1], [0], [0], [1], [0, 0, 1, 1], [], []>} : vector<2x16xbf16>, vector<16x800xbf16>, vector<2x800xf32> -> vector<2x800xf32>
    %254 = arith.addf %236, %253 : vector<2x800xf32>
    %c0_185 = arith.constant 0 : index
    %c3584 = arith.constant 3584 : index
    %255 = vector.load %arg2[%c0_185, %c3584] : memref<98x6400xbf16, #tpu.memory_space<vmem>>, vector<98x256xbf16>
    %cst_186 = arith.constant dense<0.000000e+00> : vector<2x256xf32>
    %256 = tpu.matmul %1, %255, %cst_186 {dimension_numbers = #tpu.dot_dimension_numbers<[1], [0], [0], [1], [0, 0, 1, 1], [], []>} : vector<2x98xbf16>, vector<98x256xbf16>, vector<2x256xf32> -> vector<2x256xf32>
    %c0_187 = arith.constant 0 : index
    %c3584_188 = arith.constant 3584 : index
    %257 = vector.load %arg3[%c0_187, %c3584_188] : memref<1x6400xf32, #tpu.memory_space<vmem>>, vector<1x256xf32>
    %258 = vector.broadcast %257 : vector<1x256xf32> to vector<2x256xf32>
    %259 = arith.addf %256, %258 : vector<2x256xf32>
    %cst_189 = arith.constant 0.000000e+00 : f32
    %260 = vector.broadcast %cst_189 : f32 to vector<2x256xf32>
    %261 = arith.maximumf %259, %260 : vector<2x256xf32>
    %c0_190 = arith.constant 0 : index
    %c0_191 = arith.constant 0 : index
    %262 = vector.load %arg4[%c0_190, %c0_191] : memref<256x16xf32, #tpu.memory_space<vmem>>, vector<256x16xf32>
    %cst_192 = arith.constant dense<0.000000e+00> : vector<2x16xf32>
    %263 = tpu.matmul %261, %262, %cst_192 {dimension_numbers = #tpu.dot_dimension_numbers<[1], [0], [0], [1], [0, 0, 1, 1], [], []>} : vector<2x256xf32>, vector<256x16xf32>, vector<2x16xf32> -> vector<2x16xf32>
    %c0_193 = arith.constant 0 : index
    %c0_194 = arith.constant 0 : index
    %264 = vector.load %arg5[%c0_193, %c0_194] : memref<1x16xf32, #tpu.memory_space<vmem>>, vector<1x16xf32>
    %265 = vector.broadcast %264 : vector<1x16xf32> to vector<2x16xf32>
    %266 = arith.addf %263, %265 : vector<2x16xf32>
    %cst_195 = arith.constant 0.000000e+00 : f32
    %267 = vector.broadcast %cst_195 : f32 to vector<2x16xf32>
    %268 = arith.maximumf %266, %267 : vector<2x16xf32>
    %269 = arith.truncf %268 : vector<2x16xf32> to vector<2x16xbf16>
    %c224 = arith.constant 224 : index
    %c0_196 = arith.constant 0 : index
    %270 = vector.load %arg6[%c224, %c0_196] : memref<400x800xbf16, #tpu.memory_space<vmem>>, vector<16x800xbf16>
    %cst_197 = arith.constant dense<0.000000e+00> : vector<2x800xf32>
    %271 = tpu.matmul %269, %270, %cst_197 {dimension_numbers = #tpu.dot_dimension_numbers<[1], [0], [0], [1], [0, 0, 1, 1], [], []>} : vector<2x16xbf16>, vector<16x800xbf16>, vector<2x800xf32> -> vector<2x800xf32>
    %272 = arith.addf %254, %271 : vector<2x800xf32>
    %c0_198 = arith.constant 0 : index
    %c3840 = arith.constant 3840 : index
    %273 = vector.load %arg2[%c0_198, %c3840] : memref<98x6400xbf16, #tpu.memory_space<vmem>>, vector<98x256xbf16>
    %cst_199 = arith.constant dense<0.000000e+00> : vector<2x256xf32>
    %274 = tpu.matmul %1, %273, %cst_199 {dimension_numbers = #tpu.dot_dimension_numbers<[1], [0], [0], [1], [0, 0, 1, 1], [], []>} : vector<2x98xbf16>, vector<98x256xbf16>, vector<2x256xf32> -> vector<2x256xf32>
    %c0_200 = arith.constant 0 : index
    %c3840_201 = arith.constant 3840 : index
    %275 = vector.load %arg3[%c0_200, %c3840_201] : memref<1x6400xf32, #tpu.memory_space<vmem>>, vector<1x256xf32>
    %276 = vector.broadcast %275 : vector<1x256xf32> to vector<2x256xf32>
    %277 = arith.addf %274, %276 : vector<2x256xf32>
    %cst_202 = arith.constant 0.000000e+00 : f32
    %278 = vector.broadcast %cst_202 : f32 to vector<2x256xf32>
    %279 = arith.maximumf %277, %278 : vector<2x256xf32>
    %c0_203 = arith.constant 0 : index
    %c0_204 = arith.constant 0 : index
    %280 = vector.load %arg4[%c0_203, %c0_204] : memref<256x16xf32, #tpu.memory_space<vmem>>, vector<256x16xf32>
    %cst_205 = arith.constant dense<0.000000e+00> : vector<2x16xf32>
    %281 = tpu.matmul %279, %280, %cst_205 {dimension_numbers = #tpu.dot_dimension_numbers<[1], [0], [0], [1], [0, 0, 1, 1], [], []>} : vector<2x256xf32>, vector<256x16xf32>, vector<2x16xf32> -> vector<2x16xf32>
    %c0_206 = arith.constant 0 : index
    %c0_207 = arith.constant 0 : index
    %282 = vector.load %arg5[%c0_206, %c0_207] : memref<1x16xf32, #tpu.memory_space<vmem>>, vector<1x16xf32>
    %283 = vector.broadcast %282 : vector<1x16xf32> to vector<2x16xf32>
    %284 = arith.addf %281, %283 : vector<2x16xf32>
    %cst_208 = arith.constant 0.000000e+00 : f32
    %285 = vector.broadcast %cst_208 : f32 to vector<2x16xf32>
    %286 = arith.maximumf %284, %285 : vector<2x16xf32>
    %287 = arith.truncf %286 : vector<2x16xf32> to vector<2x16xbf16>
    %c240 = arith.constant 240 : index
    %c0_209 = arith.constant 0 : index
    %288 = vector.load %arg6[%c240, %c0_209] : memref<400x800xbf16, #tpu.memory_space<vmem>>, vector<16x800xbf16>
    %cst_210 = arith.constant dense<0.000000e+00> : vector<2x800xf32>
    %289 = tpu.matmul %287, %288, %cst_210 {dimension_numbers = #tpu.dot_dimension_numbers<[1], [0], [0], [1], [0, 0, 1, 1], [], []>} : vector<2x16xbf16>, vector<16x800xbf16>, vector<2x800xf32> -> vector<2x800xf32>
    %290 = arith.addf %272, %289 : vector<2x800xf32>
    %c0_211 = arith.constant 0 : index
    %c4096 = arith.constant 4096 : index
    %291 = vector.load %arg2[%c0_211, %c4096] : memref<98x6400xbf16, #tpu.memory_space<vmem>>, vector<98x256xbf16>
    %cst_212 = arith.constant dense<0.000000e+00> : vector<2x256xf32>
    %292 = tpu.matmul %1, %291, %cst_212 {dimension_numbers = #tpu.dot_dimension_numbers<[1], [0], [0], [1], [0, 0, 1, 1], [], []>} : vector<2x98xbf16>, vector<98x256xbf16>, vector<2x256xf32> -> vector<2x256xf32>
    %c0_213 = arith.constant 0 : index
    %c4096_214 = arith.constant 4096 : index
    %293 = vector.load %arg3[%c0_213, %c4096_214] : memref<1x6400xf32, #tpu.memory_space<vmem>>, vector<1x256xf32>
    %294 = vector.broadcast %293 : vector<1x256xf32> to vector<2x256xf32>
    %295 = arith.addf %292, %294 : vector<2x256xf32>
    %cst_215 = arith.constant 0.000000e+00 : f32
    %296 = vector.broadcast %cst_215 : f32 to vector<2x256xf32>
    %297 = arith.maximumf %295, %296 : vector<2x256xf32>
    %c0_216 = arith.constant 0 : index
    %c0_217 = arith.constant 0 : index
    %298 = vector.load %arg4[%c0_216, %c0_217] : memref<256x16xf32, #tpu.memory_space<vmem>>, vector<256x16xf32>
    %cst_218 = arith.constant dense<0.000000e+00> : vector<2x16xf32>
    %299 = tpu.matmul %297, %298, %cst_218 {dimension_numbers = #tpu.dot_dimension_numbers<[1], [0], [0], [1], [0, 0, 1, 1], [], []>} : vector<2x256xf32>, vector<256x16xf32>, vector<2x16xf32> -> vector<2x16xf32>
    %c0_219 = arith.constant 0 : index
    %c0_220 = arith.constant 0 : index
    %300 = vector.load %arg5[%c0_219, %c0_220] : memref<1x16xf32, #tpu.memory_space<vmem>>, vector<1x16xf32>
    %301 = vector.broadcast %300 : vector<1x16xf32> to vector<2x16xf32>
    %302 = arith.addf %299, %301 : vector<2x16xf32>
    %cst_221 = arith.constant 0.000000e+00 : f32
    %303 = vector.broadcast %cst_221 : f32 to vector<2x16xf32>
    %304 = arith.maximumf %302, %303 : vector<2x16xf32>
    %305 = arith.truncf %304 : vector<2x16xf32> to vector<2x16xbf16>
    %c256_222 = arith.constant 256 : index
    %c0_223 = arith.constant 0 : index
    %306 = vector.load %arg6[%c256_222, %c0_223] : memref<400x800xbf16, #tpu.memory_space<vmem>>, vector<16x800xbf16>
    %cst_224 = arith.constant dense<0.000000e+00> : vector<2x800xf32>
    %307 = tpu.matmul %305, %306, %cst_224 {dimension_numbers = #tpu.dot_dimension_numbers<[1], [0], [0], [1], [0, 0, 1, 1], [], []>} : vector<2x16xbf16>, vector<16x800xbf16>, vector<2x800xf32> -> vector<2x800xf32>
    %308 = arith.addf %290, %307 : vector<2x800xf32>
    %c0_225 = arith.constant 0 : index
    %c4352 = arith.constant 4352 : index
    %309 = vector.load %arg2[%c0_225, %c4352] : memref<98x6400xbf16, #tpu.memory_space<vmem>>, vector<98x256xbf16>
    %cst_226 = arith.constant dense<0.000000e+00> : vector<2x256xf32>
    %310 = tpu.matmul %1, %309, %cst_226 {dimension_numbers = #tpu.dot_dimension_numbers<[1], [0], [0], [1], [0, 0, 1, 1], [], []>} : vector<2x98xbf16>, vector<98x256xbf16>, vector<2x256xf32> -> vector<2x256xf32>
    %c0_227 = arith.constant 0 : index
    %c4352_228 = arith.constant 4352 : index
    %311 = vector.load %arg3[%c0_227, %c4352_228] : memref<1x6400xf32, #tpu.memory_space<vmem>>, vector<1x256xf32>
    %312 = vector.broadcast %311 : vector<1x256xf32> to vector<2x256xf32>
    %313 = arith.addf %310, %312 : vector<2x256xf32>
    %cst_229 = arith.constant 0.000000e+00 : f32
    %314 = vector.broadcast %cst_229 : f32 to vector<2x256xf32>
    %315 = arith.maximumf %313, %314 : vector<2x256xf32>
    %c0_230 = arith.constant 0 : index
    %c0_231 = arith.constant 0 : index
    %316 = vector.load %arg4[%c0_230, %c0_231] : memref<256x16xf32, #tpu.memory_space<vmem>>, vector<256x16xf32>
    %cst_232 = arith.constant dense<0.000000e+00> : vector<2x16xf32>
    %317 = tpu.matmul %315, %316, %cst_232 {dimension_numbers = #tpu.dot_dimension_numbers<[1], [0], [0], [1], [0, 0, 1, 1], [], []>} : vector<2x256xf32>, vector<256x16xf32>, vector<2x16xf32> -> vector<2x16xf32>
    %c0_233 = arith.constant 0 : index
    %c0_234 = arith.constant 0 : index
    %318 = vector.load %arg5[%c0_233, %c0_234] : memref<1x16xf32, #tpu.memory_space<vmem>>, vector<1x16xf32>
    %319 = vector.broadcast %318 : vector<1x16xf32> to vector<2x16xf32>
    %320 = arith.addf %317, %319 : vector<2x16xf32>
    %cst_235 = arith.constant 0.000000e+00 : f32
    %321 = vector.broadcast %cst_235 : f32 to vector<2x16xf32>
    %322 = arith.maximumf %320, %321 : vector<2x16xf32>
    %323 = arith.truncf %322 : vector<2x16xf32> to vector<2x16xbf16>
    %c272 = arith.constant 272 : index
    %c0_236 = arith.constant 0 : index
    %324 = vector.load %arg6[%c272, %c0_236] : memref<400x800xbf16, #tpu.memory_space<vmem>>, vector<16x800xbf16>
    %cst_237 = arith.constant dense<0.000000e+00> : vector<2x800xf32>
    %325 = tpu.matmul %323, %324, %cst_237 {dimension_numbers = #tpu.dot_dimension_numbers<[1], [0], [0], [1], [0, 0, 1, 1], [], []>} : vector<2x16xbf16>, vector<16x800xbf16>, vector<2x800xf32> -> vector<2x800xf32>
    %326 = arith.addf %308, %325 : vector<2x800xf32>
    %c0_238 = arith.constant 0 : index
    %c4608 = arith.constant 4608 : index
    %327 = vector.load %arg2[%c0_238, %c4608] : memref<98x6400xbf16, #tpu.memory_space<vmem>>, vector<98x256xbf16>
    %cst_239 = arith.constant dense<0.000000e+00> : vector<2x256xf32>
    %328 = tpu.matmul %1, %327, %cst_239 {dimension_numbers = #tpu.dot_dimension_numbers<[1], [0], [0], [1], [0, 0, 1, 1], [], []>} : vector<2x98xbf16>, vector<98x256xbf16>, vector<2x256xf32> -> vector<2x256xf32>
    %c0_240 = arith.constant 0 : index
    %c4608_241 = arith.constant 4608 : index
    %329 = vector.load %arg3[%c0_240, %c4608_241] : memref<1x6400xf32, #tpu.memory_space<vmem>>, vector<1x256xf32>
    %330 = vector.broadcast %329 : vector<1x256xf32> to vector<2x256xf32>
    %331 = arith.addf %328, %330 : vector<2x256xf32>
    %cst_242 = arith.constant 0.000000e+00 : f32
    %332 = vector.broadcast %cst_242 : f32 to vector<2x256xf32>
    %333 = arith.maximumf %331, %332 : vector<2x256xf32>
    %c0_243 = arith.constant 0 : index
    %c0_244 = arith.constant 0 : index
    %334 = vector.load %arg4[%c0_243, %c0_244] : memref<256x16xf32, #tpu.memory_space<vmem>>, vector<256x16xf32>
    %cst_245 = arith.constant dense<0.000000e+00> : vector<2x16xf32>
    %335 = tpu.matmul %333, %334, %cst_245 {dimension_numbers = #tpu.dot_dimension_numbers<[1], [0], [0], [1], [0, 0, 1, 1], [], []>} : vector<2x256xf32>, vector<256x16xf32>, vector<2x16xf32> -> vector<2x16xf32>
    %c0_246 = arith.constant 0 : index
    %c0_247 = arith.constant 0 : index
    %336 = vector.load %arg5[%c0_246, %c0_247] : memref<1x16xf32, #tpu.memory_space<vmem>>, vector<1x16xf32>
    %337 = vector.broadcast %336 : vector<1x16xf32> to vector<2x16xf32>
    %338 = arith.addf %335, %337 : vector<2x16xf32>
    %cst_248 = arith.constant 0.000000e+00 : f32
    %339 = vector.broadcast %cst_248 : f32 to vector<2x16xf32>
    %340 = arith.maximumf %338, %339 : vector<2x16xf32>
    %341 = arith.truncf %340 : vector<2x16xf32> to vector<2x16xbf16>
    %c288 = arith.constant 288 : index
    %c0_249 = arith.constant 0 : index
    %342 = vector.load %arg6[%c288, %c0_249] : memref<400x800xbf16, #tpu.memory_space<vmem>>, vector<16x800xbf16>
    %cst_250 = arith.constant dense<0.000000e+00> : vector<2x800xf32>
    %343 = tpu.matmul %341, %342, %cst_250 {dimension_numbers = #tpu.dot_dimension_numbers<[1], [0], [0], [1], [0, 0, 1, 1], [], []>} : vector<2x16xbf16>, vector<16x800xbf16>, vector<2x800xf32> -> vector<2x800xf32>
    %344 = arith.addf %326, %343 : vector<2x800xf32>
    %c0_251 = arith.constant 0 : index
    %c4864 = arith.constant 4864 : index
    %345 = vector.load %arg2[%c0_251, %c4864] : memref<98x6400xbf16, #tpu.memory_space<vmem>>, vector<98x256xbf16>
    %cst_252 = arith.constant dense<0.000000e+00> : vector<2x256xf32>
    %346 = tpu.matmul %1, %345, %cst_252 {dimension_numbers = #tpu.dot_dimension_numbers<[1], [0], [0], [1], [0, 0, 1, 1], [], []>} : vector<2x98xbf16>, vector<98x256xbf16>, vector<2x256xf32> -> vector<2x256xf32>
    %c0_253 = arith.constant 0 : index
    %c4864_254 = arith.constant 4864 : index
    %347 = vector.load %arg3[%c0_253, %c4864_254] : memref<1x6400xf32, #tpu.memory_space<vmem>>, vector<1x256xf32>
    %348 = vector.broadcast %347 : vector<1x256xf32> to vector<2x256xf32>
    %349 = arith.addf %346, %348 : vector<2x256xf32>
    %cst_255 = arith.constant 0.000000e+00 : f32
    %350 = vector.broadcast %cst_255 : f32 to vector<2x256xf32>
    %351 = arith.maximumf %349, %350 : vector<2x256xf32>
    %c0_256 = arith.constant 0 : index
    %c0_257 = arith.constant 0 : index
    %352 = vector.load %arg4[%c0_256, %c0_257] : memref<256x16xf32, #tpu.memory_space<vmem>>, vector<256x16xf32>
    %cst_258 = arith.constant dense<0.000000e+00> : vector<2x16xf32>
    %353 = tpu.matmul %351, %352, %cst_258 {dimension_numbers = #tpu.dot_dimension_numbers<[1], [0], [0], [1], [0, 0, 1, 1], [], []>} : vector<2x256xf32>, vector<256x16xf32>, vector<2x16xf32> -> vector<2x16xf32>
    %c0_259 = arith.constant 0 : index
    %c0_260 = arith.constant 0 : index
    %354 = vector.load %arg5[%c0_259, %c0_260] : memref<1x16xf32, #tpu.memory_space<vmem>>, vector<1x16xf32>
    %355 = vector.broadcast %354 : vector<1x16xf32> to vector<2x16xf32>
    %356 = arith.addf %353, %355 : vector<2x16xf32>
    %cst_261 = arith.constant 0.000000e+00 : f32
    %357 = vector.broadcast %cst_261 : f32 to vector<2x16xf32>
    %358 = arith.maximumf %356, %357 : vector<2x16xf32>
    %359 = arith.truncf %358 : vector<2x16xf32> to vector<2x16xbf16>
    %c304 = arith.constant 304 : index
    %c0_262 = arith.constant 0 : index
    %360 = vector.load %arg6[%c304, %c0_262] : memref<400x800xbf16, #tpu.memory_space<vmem>>, vector<16x800xbf16>
    %cst_263 = arith.constant dense<0.000000e+00> : vector<2x800xf32>
    %361 = tpu.matmul %359, %360, %cst_263 {dimension_numbers = #tpu.dot_dimension_numbers<[1], [0], [0], [1], [0, 0, 1, 1], [], []>} : vector<2x16xbf16>, vector<16x800xbf16>, vector<2x800xf32> -> vector<2x800xf32>
    %362 = arith.addf %344, %361 : vector<2x800xf32>
    %c0_264 = arith.constant 0 : index
    %c5120 = arith.constant 5120 : index
    %363 = vector.load %arg2[%c0_264, %c5120] : memref<98x6400xbf16, #tpu.memory_space<vmem>>, vector<98x256xbf16>
    %cst_265 = arith.constant dense<0.000000e+00> : vector<2x256xf32>
    %364 = tpu.matmul %1, %363, %cst_265 {dimension_numbers = #tpu.dot_dimension_numbers<[1], [0], [0], [1], [0, 0, 1, 1], [], []>} : vector<2x98xbf16>, vector<98x256xbf16>, vector<2x256xf32> -> vector<2x256xf32>
    %c0_266 = arith.constant 0 : index
    %c5120_267 = arith.constant 5120 : index
    %365 = vector.load %arg3[%c0_266, %c5120_267] : memref<1x6400xf32, #tpu.memory_space<vmem>>, vector<1x256xf32>
    %366 = vector.broadcast %365 : vector<1x256xf32> to vector<2x256xf32>
    %367 = arith.addf %364, %366 : vector<2x256xf32>
    %cst_268 = arith.constant 0.000000e+00 : f32
    %368 = vector.broadcast %cst_268 : f32 to vector<2x256xf32>
    %369 = arith.maximumf %367, %368 : vector<2x256xf32>
    %c0_269 = arith.constant 0 : index
    %c0_270 = arith.constant 0 : index
    %370 = vector.load %arg4[%c0_269, %c0_270] : memref<256x16xf32, #tpu.memory_space<vmem>>, vector<256x16xf32>
    %cst_271 = arith.constant dense<0.000000e+00> : vector<2x16xf32>
    %371 = tpu.matmul %369, %370, %cst_271 {dimension_numbers = #tpu.dot_dimension_numbers<[1], [0], [0], [1], [0, 0, 1, 1], [], []>} : vector<2x256xf32>, vector<256x16xf32>, vector<2x16xf32> -> vector<2x16xf32>
    %c0_272 = arith.constant 0 : index
    %c0_273 = arith.constant 0 : index
    %372 = vector.load %arg5[%c0_272, %c0_273] : memref<1x16xf32, #tpu.memory_space<vmem>>, vector<1x16xf32>
    %373 = vector.broadcast %372 : vector<1x16xf32> to vector<2x16xf32>
    %374 = arith.addf %371, %373 : vector<2x16xf32>
    %cst_274 = arith.constant 0.000000e+00 : f32
    %375 = vector.broadcast %cst_274 : f32 to vector<2x16xf32>
    %376 = arith.maximumf %374, %375 : vector<2x16xf32>
    %377 = arith.truncf %376 : vector<2x16xf32> to vector<2x16xbf16>
    %c320 = arith.constant 320 : index
    %c0_275 = arith.constant 0 : index
    %378 = vector.load %arg6[%c320, %c0_275] : memref<400x800xbf16, #tpu.memory_space<vmem>>, vector<16x800xbf16>
    %cst_276 = arith.constant dense<0.000000e+00> : vector<2x800xf32>
    %379 = tpu.matmul %377, %378, %cst_276 {dimension_numbers = #tpu.dot_dimension_numbers<[1], [0], [0], [1], [0, 0, 1, 1], [], []>} : vector<2x16xbf16>, vector<16x800xbf16>, vector<2x800xf32> -> vector<2x800xf32>
    %380 = arith.addf %362, %379 : vector<2x800xf32>
    %c0_277 = arith.constant 0 : index
    %c5376 = arith.constant 5376 : index
    %381 = vector.load %arg2[%c0_277, %c5376] : memref<98x6400xbf16, #tpu.memory_space<vmem>>, vector<98x256xbf16>
    %cst_278 = arith.constant dense<0.000000e+00> : vector<2x256xf32>
    %382 = tpu.matmul %1, %381, %cst_278 {dimension_numbers = #tpu.dot_dimension_numbers<[1], [0], [0], [1], [0, 0, 1, 1], [], []>} : vector<2x98xbf16>, vector<98x256xbf16>, vector<2x256xf32> -> vector<2x256xf32>
    %c0_279 = arith.constant 0 : index
    %c5376_280 = arith.constant 5376 : index
    %383 = vector.load %arg3[%c0_279, %c5376_280] : memref<1x6400xf32, #tpu.memory_space<vmem>>, vector<1x256xf32>
    %384 = vector.broadcast %383 : vector<1x256xf32> to vector<2x256xf32>
    %385 = arith.addf %382, %384 : vector<2x256xf32>
    %cst_281 = arith.constant 0.000000e+00 : f32
    %386 = vector.broadcast %cst_281 : f32 to vector<2x256xf32>
    %387 = arith.maximumf %385, %386 : vector<2x256xf32>
    %c0_282 = arith.constant 0 : index
    %c0_283 = arith.constant 0 : index
    %388 = vector.load %arg4[%c0_282, %c0_283] : memref<256x16xf32, #tpu.memory_space<vmem>>, vector<256x16xf32>
    %cst_284 = arith.constant dense<0.000000e+00> : vector<2x16xf32>
    %389 = tpu.matmul %387, %388, %cst_284 {dimension_numbers = #tpu.dot_dimension_numbers<[1], [0], [0], [1], [0, 0, 1, 1], [], []>} : vector<2x256xf32>, vector<256x16xf32>, vector<2x16xf32> -> vector<2x16xf32>
    %c0_285 = arith.constant 0 : index
    %c0_286 = arith.constant 0 : index
    %390 = vector.load %arg5[%c0_285, %c0_286] : memref<1x16xf32, #tpu.memory_space<vmem>>, vector<1x16xf32>
    %391 = vector.broadcast %390 : vector<1x16xf32> to vector<2x16xf32>
    %392 = arith.addf %389, %391 : vector<2x16xf32>
    %cst_287 = arith.constant 0.000000e+00 : f32
    %393 = vector.broadcast %cst_287 : f32 to vector<2x16xf32>
    %394 = arith.maximumf %392, %393 : vector<2x16xf32>
    %395 = arith.truncf %394 : vector<2x16xf32> to vector<2x16xbf16>
    %c336 = arith.constant 336 : index
    %c0_288 = arith.constant 0 : index
    %396 = vector.load %arg6[%c336, %c0_288] : memref<400x800xbf16, #tpu.memory_space<vmem>>, vector<16x800xbf16>
    %cst_289 = arith.constant dense<0.000000e+00> : vector<2x800xf32>
    %397 = tpu.matmul %395, %396, %cst_289 {dimension_numbers = #tpu.dot_dimension_numbers<[1], [0], [0], [1], [0, 0, 1, 1], [], []>} : vector<2x16xbf16>, vector<16x800xbf16>, vector<2x800xf32> -> vector<2x800xf32>
    %398 = arith.addf %380, %397 : vector<2x800xf32>
    %c0_290 = arith.constant 0 : index
    %c5632 = arith.constant 5632 : index
    %399 = vector.load %arg2[%c0_290, %c5632] : memref<98x6400xbf16, #tpu.memory_space<vmem>>, vector<98x256xbf16>
    %cst_291 = arith.constant dense<0.000000e+00> : vector<2x256xf32>
    %400 = tpu.matmul %1, %399, %cst_291 {dimension_numbers = #tpu.dot_dimension_numbers<[1], [0], [0], [1], [0, 0, 1, 1], [], []>} : vector<2x98xbf16>, vector<98x256xbf16>, vector<2x256xf32> -> vector<2x256xf32>
    %c0_292 = arith.constant 0 : index
    %c5632_293 = arith.constant 5632 : index
    %401 = vector.load %arg3[%c0_292, %c5632_293] : memref<1x6400xf32, #tpu.memory_space<vmem>>, vector<1x256xf32>
    %402 = vector.broadcast %401 : vector<1x256xf32> to vector<2x256xf32>
    %403 = arith.addf %400, %402 : vector<2x256xf32>
    %cst_294 = arith.constant 0.000000e+00 : f32
    %404 = vector.broadcast %cst_294 : f32 to vector<2x256xf32>
    %405 = arith.maximumf %403, %404 : vector<2x256xf32>
    %c0_295 = arith.constant 0 : index
    %c0_296 = arith.constant 0 : index
    %406 = vector.load %arg4[%c0_295, %c0_296] : memref<256x16xf32, #tpu.memory_space<vmem>>, vector<256x16xf32>
    %cst_297 = arith.constant dense<0.000000e+00> : vector<2x16xf32>
    %407 = tpu.matmul %405, %406, %cst_297 {dimension_numbers = #tpu.dot_dimension_numbers<[1], [0], [0], [1], [0, 0, 1, 1], [], []>} : vector<2x256xf32>, vector<256x16xf32>, vector<2x16xf32> -> vector<2x16xf32>
    %c0_298 = arith.constant 0 : index
    %c0_299 = arith.constant 0 : index
    %408 = vector.load %arg5[%c0_298, %c0_299] : memref<1x16xf32, #tpu.memory_space<vmem>>, vector<1x16xf32>
    %409 = vector.broadcast %408 : vector<1x16xf32> to vector<2x16xf32>
    %410 = arith.addf %407, %409 : vector<2x16xf32>
    %cst_300 = arith.constant 0.000000e+00 : f32
    %411 = vector.broadcast %cst_300 : f32 to vector<2x16xf32>
    %412 = arith.maximumf %410, %411 : vector<2x16xf32>
    %413 = arith.truncf %412 : vector<2x16xf32> to vector<2x16xbf16>
    %c352 = arith.constant 352 : index
    %c0_301 = arith.constant 0 : index
    %414 = vector.load %arg6[%c352, %c0_301] : memref<400x800xbf16, #tpu.memory_space<vmem>>, vector<16x800xbf16>
    %cst_302 = arith.constant dense<0.000000e+00> : vector<2x800xf32>
    %415 = tpu.matmul %413, %414, %cst_302 {dimension_numbers = #tpu.dot_dimension_numbers<[1], [0], [0], [1], [0, 0, 1, 1], [], []>} : vector<2x16xbf16>, vector<16x800xbf16>, vector<2x800xf32> -> vector<2x800xf32>
    %416 = arith.addf %398, %415 : vector<2x800xf32>
    %c0_303 = arith.constant 0 : index
    %c5888 = arith.constant 5888 : index
    %417 = vector.load %arg2[%c0_303, %c5888] : memref<98x6400xbf16, #tpu.memory_space<vmem>>, vector<98x256xbf16>
    %cst_304 = arith.constant dense<0.000000e+00> : vector<2x256xf32>
    %418 = tpu.matmul %1, %417, %cst_304 {dimension_numbers = #tpu.dot_dimension_numbers<[1], [0], [0], [1], [0, 0, 1, 1], [], []>} : vector<2x98xbf16>, vector<98x256xbf16>, vector<2x256xf32> -> vector<2x256xf32>
    %c0_305 = arith.constant 0 : index
    %c5888_306 = arith.constant 5888 : index
    %419 = vector.load %arg3[%c0_305, %c5888_306] : memref<1x6400xf32, #tpu.memory_space<vmem>>, vector<1x256xf32>
    %420 = vector.broadcast %419 : vector<1x256xf32> to vector<2x256xf32>
    %421 = arith.addf %418, %420 : vector<2x256xf32>
    %cst_307 = arith.constant 0.000000e+00 : f32
    %422 = vector.broadcast %cst_307 : f32 to vector<2x256xf32>
    %423 = arith.maximumf %421, %422 : vector<2x256xf32>
    %c0_308 = arith.constant 0 : index
    %c0_309 = arith.constant 0 : index
    %424 = vector.load %arg4[%c0_308, %c0_309] : memref<256x16xf32, #tpu.memory_space<vmem>>, vector<256x16xf32>
    %cst_310 = arith.constant dense<0.000000e+00> : vector<2x16xf32>
    %425 = tpu.matmul %423, %424, %cst_310 {dimension_numbers = #tpu.dot_dimension_numbers<[1], [0], [0], [1], [0, 0, 1, 1], [], []>} : vector<2x256xf32>, vector<256x16xf32>, vector<2x16xf32> -> vector<2x16xf32>
    %c0_311 = arith.constant 0 : index
    %c0_312 = arith.constant 0 : index
    %426 = vector.load %arg5[%c0_311, %c0_312] : memref<1x16xf32, #tpu.memory_space<vmem>>, vector<1x16xf32>
    %427 = vector.broadcast %426 : vector<1x16xf32> to vector<2x16xf32>
    %428 = arith.addf %425, %427 : vector<2x16xf32>
    %cst_313 = arith.constant 0.000000e+00 : f32
    %429 = vector.broadcast %cst_313 : f32 to vector<2x16xf32>
    %430 = arith.maximumf %428, %429 : vector<2x16xf32>
    %431 = arith.truncf %430 : vector<2x16xf32> to vector<2x16xbf16>
    %c368 = arith.constant 368 : index
    %c0_314 = arith.constant 0 : index
    %432 = vector.load %arg6[%c368, %c0_314] : memref<400x800xbf16, #tpu.memory_space<vmem>>, vector<16x800xbf16>
    %cst_315 = arith.constant dense<0.000000e+00> : vector<2x800xf32>
    %433 = tpu.matmul %431, %432, %cst_315 {dimension_numbers = #tpu.dot_dimension_numbers<[1], [0], [0], [1], [0, 0, 1, 1], [], []>} : vector<2x16xbf16>, vector<16x800xbf16>, vector<2x800xf32> -> vector<2x800xf32>
    %434 = arith.addf %416, %433 : vector<2x800xf32>
    %c0_316 = arith.constant 0 : index
    %c6144 = arith.constant 6144 : index
    %435 = vector.load %arg2[%c0_316, %c6144] : memref<98x6400xbf16, #tpu.memory_space<vmem>>, vector<98x256xbf16>
    %cst_317 = arith.constant dense<0.000000e+00> : vector<2x256xf32>
    %436 = tpu.matmul %1, %435, %cst_317 {dimension_numbers = #tpu.dot_dimension_numbers<[1], [0], [0], [1], [0, 0, 1, 1], [], []>} : vector<2x98xbf16>, vector<98x256xbf16>, vector<2x256xf32> -> vector<2x256xf32>
    %c0_318 = arith.constant 0 : index
    %c6144_319 = arith.constant 6144 : index
    %437 = vector.load %arg3[%c0_318, %c6144_319] : memref<1x6400xf32, #tpu.memory_space<vmem>>, vector<1x256xf32>
    %438 = vector.broadcast %437 : vector<1x256xf32> to vector<2x256xf32>
    %439 = arith.addf %436, %438 : vector<2x256xf32>
    %cst_320 = arith.constant 0.000000e+00 : f32
    %440 = vector.broadcast %cst_320 : f32 to vector<2x256xf32>
    %441 = arith.maximumf %439, %440 : vector<2x256xf32>
    %c0_321 = arith.constant 0 : index
    %c0_322 = arith.constant 0 : index
    %442 = vector.load %arg4[%c0_321, %c0_322] : memref<256x16xf32, #tpu.memory_space<vmem>>, vector<256x16xf32>
    %cst_323 = arith.constant dense<0.000000e+00> : vector<2x16xf32>
    %443 = tpu.matmul %441, %442, %cst_323 {dimension_numbers = #tpu.dot_dimension_numbers<[1], [0], [0], [1], [0, 0, 1, 1], [], []>} : vector<2x256xf32>, vector<256x16xf32>, vector<2x16xf32> -> vector<2x16xf32>
    %c0_324 = arith.constant 0 : index
    %c0_325 = arith.constant 0 : index
    %444 = vector.load %arg5[%c0_324, %c0_325] : memref<1x16xf32, #tpu.memory_space<vmem>>, vector<1x16xf32>
    %445 = vector.broadcast %444 : vector<1x16xf32> to vector<2x16xf32>
    %446 = arith.addf %443, %445 : vector<2x16xf32>
    %cst_326 = arith.constant 0.000000e+00 : f32
    %447 = vector.broadcast %cst_326 : f32 to vector<2x16xf32>
    %448 = arith.maximumf %446, %447 : vector<2x16xf32>
    %449 = arith.truncf %448 : vector<2x16xf32> to vector<2x16xbf16>
    %c384 = arith.constant 384 : index
    %c0_327 = arith.constant 0 : index
    %450 = vector.load %arg6[%c384, %c0_327] : memref<400x800xbf16, #tpu.memory_space<vmem>>, vector<16x800xbf16>
    %cst_328 = arith.constant dense<0.000000e+00> : vector<2x800xf32>
    %451 = tpu.matmul %449, %450, %cst_328 {dimension_numbers = #tpu.dot_dimension_numbers<[1], [0], [0], [1], [0, 0, 1, 1], [], []>} : vector<2x16xbf16>, vector<16x800xbf16>, vector<2x800xf32> -> vector<2x800xf32>
    %452 = arith.addf %434, %451 : vector<2x800xf32>
    %c0_329 = arith.constant 0 : index
    %c0_330 = arith.constant 0 : index
    %453 = vector.load %arg7[%c0_329, %c0_330] : memref<1x800xf32, #tpu.memory_space<vmem>>, vector<1x800xf32>
    %454 = vector.broadcast %453 : vector<1x800xf32> to vector<2x800xf32>
    %455 = arith.addf %452, %454 : vector<2x800xf32>
    %cst_331 = arith.constant 0.000000e+00 : f32
    %456 = vector.broadcast %cst_331 : f32 to vector<2x800xf32>
    %457 = arith.maximumf %455, %456 : vector<2x800xf32>
    %458 = arith.truncf %457 : vector<2x800xf32> to vector<2x800xbf16>
    %c0_332 = arith.constant 0 : index
    %c0_333 = arith.constant 0 : index
    %459 = vector.load %arg8[%c0_332, %c0_333] : memref<800x256xbf16, #tpu.memory_space<vmem>>, vector<800x256xbf16>
    %cst_334 = arith.constant dense<0.000000e+00> : vector<2x256xf32>
    %460 = tpu.matmul %458, %459, %cst_334 {dimension_numbers = #tpu.dot_dimension_numbers<[1], [0], [0], [1], [0, 0, 1, 1], [], []>} : vector<2x800xbf16>, vector<800x256xbf16>, vector<2x256xf32> -> vector<2x256xf32>
    %c0_335 = arith.constant 0 : index
    %c0_336 = arith.constant 0 : index
    %461 = vector.load %arg9[%c0_335, %c0_336] : memref<1x256xf32, #tpu.memory_space<vmem>>, vector<1x256xf32>
    %462 = vector.broadcast %461 : vector<1x256xf32> to vector<2x256xf32>
    %463 = arith.addf %460, %462 : vector<2x256xf32>
    %cst_337 = arith.constant 0.000000e+00 : f32
    %464 = vector.broadcast %cst_337 : f32 to vector<2x256xf32>
    %465 = arith.maximumf %463, %464 : vector<2x256xf32>
    %c0_338 = arith.constant 0 : index
    %c0_339 = arith.constant 0 : index
    %466 = vector.load %arg10[%c0_338, %c0_339] : memref<256x128xf32, #tpu.memory_space<vmem>>, vector<256x128xf32>
    %cst_340 = arith.constant dense<0.000000e+00> : vector<2x128xf32>
    %467 = tpu.matmul %465, %466, %cst_340 {dimension_numbers = #tpu.dot_dimension_numbers<[1], [0], [0], [1], [0, 0, 1, 1], [], []>} : vector<2x256xf32>, vector<256x128xf32>, vector<2x128xf32> -> vector<2x128xf32>
    %c0_341 = arith.constant 0 : index
    %c0_342 = arith.constant 0 : index
    %468 = vector.load %arg11[%c0_341, %c0_342] : memref<1x128xf32, #tpu.memory_space<vmem>>, vector<1x128xf32>
    %469 = vector.broadcast %468 : vector<1x128xf32> to vector<2x128xf32>
    %470 = arith.addf %467, %469 : vector<2x128xf32>
    %471 = math.tanh %470 : vector<2x128xf32>
    %c0_343 = arith.constant 0 : index
    %c0_344 = arith.constant 0 : index
    %472 = vector.load %arg12[%c0_343, %c0_344] : memref<2x128xf32, #tpu.memory_space<vmem>>, vector<2x128xf32>
    tpu.vector_store %arg12[%c0_343, %c0_344], %471 {strides = array<i32>} : memref<2x128xf32, #tpu.memory_space<vmem>>, vector<2x128xf32>,
    return
  }
  func.func @transform_0(%arg0: i32) -> (i32, i32) {
    %c0_i32 = arith.constant 0 : i32
    %c0_i32_0 = arith.constant 0 : i32
    %c0_i32_1 = arith.constant 0 : i32
    return %c0_i32, %c0_i32_0 : i32, i32
  }
  func.func @transform_1(%arg0: i32) -> (i32, i32) {
    %c0_i32 = arith.constant 0 : i32
    %c0_i32_0 = arith.constant 0 : i32
    %c0_i32_1 = arith.constant 0 : i32
    return %c0_i32, %c0_i32_0 : i32, i32
  }
  func.func @transform_2(%arg0: i32) -> (i32, i32) {
    %c0_i32 = arith.constant 0 : i32
    %c0_i32_0 = arith.constant 0 : i32
    %c0_i32_1 = arith.constant 0 : i32
    return %c0_i32, %c0_i32_0 : i32, i32
  }
  func.func @transform_3(%arg0: i32) -> (i32, i32) {
    %c0_i32 = arith.constant 0 : i32
    %c0_i32_0 = arith.constant 0 : i32
    %c0_i32_1 = arith.constant 0 : i32
    return %c0_i32, %c0_i32_0 : i32, i32
  }
  func.func @transform_4(%arg0: i32) -> (i32, i32) {
    %c0_i32 = arith.constant 0 : i32
    %c0_i32_0 = arith.constant 0 : i32
    %c0_i32_1 = arith.constant 0 : i32
    return %c0_i32, %c0_i32_0 : i32, i32
  }
  func.func @transform_5(%arg0: i32) -> (i32, i32) {
    %c0_i32 = arith.constant 0 : i32
    %c0_i32_0 = arith.constant 0 : i32
    %c0_i32_1 = arith.constant 0 : i32
    return %c0_i32, %c0_i32_0 : i32, i32
  }
  func.func @transform_6(%arg0: i32) -> (i32, i32) {
    %c0_i32 = arith.constant 0 : i32
    %c0_i32_0 = arith.constant 0 : i32
    %c0_i32_1 = arith.constant 0 : i32
    return %c0_i32, %c0_i32_0 : i32, i32
  }
  func.func @transform_7(%arg0: i32) -> (i32, i32) {
    %c0_i32 = arith.constant 0 : i32
    %c0_i32_0 = arith.constant 0 : i32
    %c0_i32_1 = arith.constant 0 : i32
    return %c0_i32, %c0_i32_0 : i32, i32
  }
  func.func @transform_8(%arg0: i32) -> (i32, i32) {
    %c0_i32 = arith.constant 0 : i32
    %c0_i32_0 = arith.constant 0 : i32
    %c0_i32_1 = arith.constant 0 : i32
    return %c0_i32, %c0_i32_0 : i32, i32
  }
  func.func @transform_9(%arg0: i32) -> (i32, i32) {
    %c0_i32 = arith.constant 0 : i32
    %c0_i32_0 = arith.constant 0 : i32
    %c0_i32_1 = arith.constant 0 : i32
    return %c0_i32, %c0_i32_0 : i32, i32
  }
  func.func @transform_10(%arg0: i32) -> (i32, i32) {
    %c0_i32 = arith.constant 0 : i32
    %c0_i32_0 = arith.constant 0 : i32
    %c0_i32_1 = arith.constant 0 : i32
    return %c0_i32, %c0_i32_0 : i32, i32
  }
  func.func @transform_11(%arg0: i32) -> (i32, i32) {
    %c0_i32 = arith.constant 0 : i32
    %c0_i32_0 = arith.constant 0 : i32
    %c0_i32_1 = arith.constant 0 : i32
    return %c0_i32, %c0_i32_0 : i32, i32
  }
}

</mosaic_0001>

<bundles_post_ra>
// kernel: smallnet_forward.1
= control target key start
LH: loop header
LB: loop body
LE: loop exit
PB: predicated region body
PF: predicated region fallthrough
CT: control target
= control target key end

     0   :  { %16 = vsyncpa [#allocation3], 0  ;;  %s17969_s0 = inlined_call_operand.vmem [shape: f32[2,98], index: 0, kind: input, shape index: {}]   ;;  %s17970_s1 = inlined_call_operand.hbm [shape: bf16[98,6400], index: 1, kind: input, shape index: {}]   ;;  %s17971_s2 = inlined_call_operand.hbm [shape: f32[1,6400], index: 2, kind: input, shape index: {}]   ;;  %s17972_s3 = inlined_call_operand.vmem [shape: f32[256,16], index: 3, kind: input, shape index: {}]   ;;  %s17973_s4 = inlined_call_operand.hbm [shape: f32[1,16], index: 4, kind: input, shape index: {}]   ;;  %s17974_s5 = inlined_call_operand.hbm [shape: bf16[400,800], index: 5, kind: input, shape index: {}]   ;;  %s17975_s6 = inlined_call_operand.hbm [shape: f32[1,800], index: 6, kind: input, shape index: {}]   ;;  %s17976_s7 = inlined_call_operand.hbm [shape: bf16[800,256], index: 7, kind: input, shape index: {}]   ;;  %s17977_s8 = inlined_call_operand.hbm [shape: f32[1,256], index: 8, kind: input, shape index: {}]   ;;  %s17978_s9 = inlined_call_operand.hbm [shape: f32[256,128], index: 9, kind: input, shape index: {}]   ;;  %s17979_s10 = inlined_call_operand.hbm [shape: f32[1,128], index: 10, kind: input, shape index: {}]   ;;  %s17980_s11 = inlined_call_operand.vmem [shape: f32[2,128], index: 11, kind: output, shape index: {}]  }
   0x1   :  { %17 = vsyncpa [#allocation5], 0 }
   0x2   :  { %18 = vsyncpa [#allocation8], 0 }
   0x3   :  { %19 = vsyncpa [#allocation11], 0 }
   0x4   :  { %20 = vsyncpa [#allocation14], 0  ;;  %s15039_s17 = smov [#allocation4]   ;;  %s15040_s19 = smov [#allocation7]  }
   0x5   :  { %s41_s18 = sshll.u32 %s15039_s17, 4  ;;  %s62_s20 = sshll.u32 %s15040_s19, 4  ;;  %s42_s18 = int_to_ptr.vmem [resolvable:$true] %s41_s18  ;;  %s63_s20 = int_to_ptr.vmem [resolvable:$true] %s62_s20 }
   0x6   :  { %s14857_s21 = scalar_lea.vmem %s42_s18, 800  ;;  %p14862_p1 = scmp.lt.s32.totalorder %s42_s18, %s42_s18 }
   0x7   :  { %p14858_p0 = scmp.ne.s32.totalorder %s42_s18, %s14857_s21  ;;  %p14863_p2 = scmp.lt.s32.totalorder %s14857_s21, %s14857_s21 }
   0x9   :  { %p14864_p3 = por %p14863_p2, %p14862_p1 }
   0xb   :  { %p14865_p4 = pnand %p14864_p3, %p14858_p0 }
   0xd   :  { %14868 = shalt.err (!%p14865_p4)
}
   0xe   :  { %44 = dma.hbm_to_vmem [thread:$0]  %s17971_s2, 800, %s42_s18, [#allocation5]  }
   0xf   :  { %s14877_s24 = scalar_lea.vmem %s63_s20, 22400  ;;  %p14882_p6 = scmp.lt.s32.totalorder %s63_s20, %s63_s20 }
  0x10   :  { %p14878_p5 = scmp.ne.s32.totalorder %s63_s20, %s14877_s24  ;;  %p14883_p7 = scmp.lt.s32.totalorder %s14877_s24, %s14877_s24 }
  0x12   :  { %p14884_p8 = por %p14883_p7, %p14882_p6 }
  0x14   :  { %p14885_p9 = pnand %p14884_p8, %p14878_p5 }
  0x16   :  { %14888 = shalt.err (!%p14885_p9)
}
  0x17   :  { %s15041_s25 = smov 448   ;;  %s15042_s26 = smov 28  }
  0x18   :  { %68 = dma.hbm_to_vmem [thread:$0]  %s17974_s5, 22400, %s63_s20, [#allocation8], %s15041_s25, %s15041_s25, %s15042_s26  }
  0x19   :  { %s15043_s29 = smov [#allocation10]  }
  0x1a   :  { %s84_s30 = sshll.u32 %s15043_s29, 4  ;;  %s85_s30 = int_to_ptr.vmem [resolvable:$true] %s84_s30 }
  0x1b   :  { %s14897_s12 = scalar_lea.vmem %s85_s30, 12800  ;;  %p14902_p11 = scmp.lt.s32.totalorder %s85_s30, %s85_s30 }
  0x1c   :  { %p14898_p10 = scmp.ne.s32.totalorder %s85_s30, %s14897_s12  ;;  %p14903_p12 = scmp.lt.s32.totalorder %s14897_s12, %s14897_s12 }
  0x1e   :  { %p14904_p13 = por %p14903_p12, %p14902_p11 }
  0x20   :  { %p14905_p0 = pnand %p14904_p13, %p14898_p10 }
  0x22   :  { %14908 = shalt.err (!%p14905_p0)
}
  0x23   :  { %s15044_s2 = smov 128   ;;  %s15045_s13 = smov 8  }
  0x24   :  { %90 = dma.hbm_to_vmem [thread:$0]  %s17976_s7, 12800, %s85_s30, [#allocation11], %s15044_s2, %s15044_s2, %s15045_s13  }
  0x25   :  { %s15046_s16 = smov [#allocation13]   ;;  %s15047_s5 = smov [#allocation2]  }
  0x26   :  { %s106_s17 = sshll.u32 %s15046_s16, 4  ;;  %s28_s18 = sshll.u32 %s15047_s5, 4  ;;  %s107_s17 = int_to_ptr.vmem [resolvable:$true] %s106_s17  ;;  %s29_s18 = int_to_ptr.vmem [resolvable:$true] %s28_s18 }
  0x27   :  { %s14917_s19 = scalar_lea.vmem %s107_s17, 4096  ;;  %p14922_p2 = scmp.lt.s32.totalorder %s107_s17, %s107_s17 }
  0x28   :  { %p14918_p1 = scmp.ne.s32.totalorder %s107_s17, %s14917_s19  ;;  %p14923_p3 = scmp.lt.s32.totalorder %s14917_s19, %s14917_s19 }
  0x2a   :  { %p14924_p4 = por %p14923_p3, %p14922_p2 }
  0x2c   :  { %p14925_p5 = pnand %p14924_p4, %p14918_p1 }
  0x2e   :  { %14928 = shalt.err (!%p14925_p5)
}
  0x2f   :  { %112 = dma.hbm_to_vmem [thread:$0]  %s17978_s9, 4096, %s107_s17, [#allocation14], %s15044_s2, %s15044_s2, %s15045_s13  }
  0x30   :  { %s14937_s22 = scalar_lea.vmem %s29_s18, 41600  ;;  %p14942_p7 = scmp.lt.s32.totalorder %s29_s18, %s29_s18 }
  0x31   :  { %p14938_p6 = scmp.ne.s32.totalorder %s29_s18, %s14937_s22  ;;  %p14943_p8 = scmp.lt.s32.totalorder %s14937_s22, %s14937_s22 }
  0x33   :  { %p14944_p9 = por %p14943_p8, %p14942_p7 }
  0x35   :  { %p14945_p10 = pnand %p14944_p9, %p14938_p6 }
  0x37   :  { %14948 = shalt.err (!%p14945_p10)
}
  0x38   :  { %s15048_s7 = smov 3200   ;;  %s15049_s23 = smov 200  }
  0x39   :  { %34 = dma.hbm_to_vmem [thread:$0]  %s17970_s1, 41600, %s29_s18, [#allocation3], %s15048_s7, %s15048_s7, %s15049_s23  }
  0x3a   :  { %s15050_s26 = smov [#allocation6]   ;;  %s15051_s28 = smov [#allocation9]  }
  0x3b   :  { %s53_s27 = sshll.u32 %s15050_s26, 4  ;;  %s75_s29 = sshll.u32 %s15051_s28, 4  ;;  %s54_s27 = int_to_ptr.vmem [resolvable:$true] %s53_s27  ;;  %s76_s29 = int_to_ptr.vmem [resolvable:$true] %s75_s29 }
  0x3c   :  { %s14957_s9 = scalar_lea.vmem %s54_s27, 16  ;;  %s14961_s30 = scalar_lea.vmem %s54_s27, 32 }
  0x3d   :  { %p14958_p11 = scmp.ne.s32.totalorder %s54_s27, %s14957_s9  ;;  %p14962_p12 = scmp.lt.s32.totalorder %s54_s27, %s54_s27 }
  0x3e   :  { %p14963_p13 = scmp.lt.s32.totalorder %s14961_s30, %s14957_s9 }
  0x40   :  { %p14964_p0 = por %p14963_p13, %p14962_p12 }
  0x42   :  { %p14965_p1 = pnand %p14964_p0, %p14958_p11 }
  0x44   :  { %14968 = shalt.err (!%p14965_p1)
}
  0x45   :  { %56 = dma.hbm_to_vmem [thread:$0]  %s17973_s4, 16, %s54_s27, [#allocation5]  }
  0x46   :  { %s14977_s13 = scalar_lea.vmem %s76_s29, 112  ;;  %s14981_s1 = scalar_lea.vmem %s76_s29, 128 }
  0x47   :  { %p14978_p2 = scmp.ne.s32.totalorder %s76_s29, %s14977_s13  ;;  %p14982_p3 = scmp.lt.s32.totalorder %s76_s29, %s76_s29 }
  0x48   :  { %p14983_p4 = scmp.lt.s32.totalorder %s14981_s1, %s14977_s13 }
  0x4a   :  { %p14984_p5 = por %p14983_p4, %p14982_p3 }
  0x4c   :  { %p14985_p6 = pnand %p14984_p5, %p14978_p2 }
  0x4e   :  { %14988 = shalt.err (!%p14985_p6)
}
  0x4f   :  { %78 = dma.hbm_to_vmem [thread:$0]  %s17975_s6, 112, %s76_s29, [#allocation8]  }
  0x50   :  { %s15052_s16 = smov [#allocation12]   ;;  %s15053_s5 = smov [#allocation15]  }
  0x51   :  { %s97_s17 = sshll.u32 %s15052_s16, 4  ;;  %s119_s18 = sshll.u32 %s15053_s5, 4  ;;  %s98_s17 = int_to_ptr.vmem [resolvable:$true] %s97_s17  ;;  %s120_s18 = int_to_ptr.vmem [resolvable:$true] %s119_s18 }
  0x52   :  { %s14997_s19 = scalar_lea.vmem %s98_s17, 32  ;;  %p15002_p8 = scmp.lt.s32.totalorder %s98_s17, %s98_s17 }
  0x53   :  { %p14998_p7 = scmp.ne.s32.totalorder %s98_s17, %s14997_s19  ;;  %p15003_p9 = scmp.lt.s32.totalorder %s14997_s19, %s14997_s19 }
  0x55   :  { %p15004_p10 = por %p15003_p9, %p15002_p8 }
  0x57   :  { %p15005_p11 = pnand %p15004_p10, %p14998_p7 }
  0x59   :  { %15008 = shalt.err (!%p15005_p11)
}
  0x5a   :  { %100 = dma.hbm_to_vmem [thread:$0]  %s17977_s8, 32, %s98_s17, [#allocation11]  }
  0x5b   :  { %s15017_s21 = scalar_lea.vmem %s120_s18, 16  ;;  %s15021_s6 = scalar_lea.vmem %s120_s18, 32 }
  0x5c   :  { %p15018_p12 = scmp.ne.s32.totalorder %s120_s18, %s15017_s21  ;;  %p15022_p13 = scmp.lt.s32.totalorder %s120_s18, %s120_s18 }
  0x5d   :  { %p15023_p0 = scmp.lt.s32.totalorder %s15021_s6, %s15017_s21 }
  0x5f   :  { %p15024_p1 = por %p15023_p0, %p15022_p13 }
  0x61   :  { %p15025_p2 = pnand %p15024_p1, %p15018_p12 }
  0x63   :  { %15028 = shalt.err (!%p15025_p2)
}
  0x64   :  { %122 = dma.hbm_to_vmem [thread:$0]  %s17979_s10, 16, %s120_s18, [#allocation14]  }
  0x65   :  { %15029 = dma.done.wait [#allocation3], 41600  }
  0x66   :  { %15030 = vsyncadd [#allocation3], 4294925696 }
  0x67   :  { %15031 = dma.done.wait [#allocation5], 816  }
  0x68   :  { %15032 = vsyncadd [#allocation5], 4294966480 }
  0x69   :  { %15033 = dma.done.wait [#allocation8], 22512  }
  0x6a   :  { %15034 = vsyncadd [#allocation8], 4294944784 }
  0x6b   :  { %15035 = dma.done.wait [#allocation11], 12832  }
  0x6c   :  { %15036 = vsyncadd [#allocation11], 4294954464 }
  0x6d   :  { %15037 = dma.done.wait [#allocation14], 4112  }
  0x6e   :  { %15038 = vsyncadd [#allocation14], 4294963184  ;;  %v17983_v0 = vmov 0   ;;  %v165_v1 = vld [vmem:[#allocation2 + $0x960] sm:$0x11]  ;;  %vm247_vm0 = vcmask 1040384  }
  0x6f   :  { %286 = vmatprep.mubr.bf16.mxu0 %v17983_v0  ;;  %v11857_v2 = vcombine.high %v165_v1, %v165_v1  ;;  %v11856_v3 = vcombine.low %v165_v1, %v165_v1  ;;  %v13752_v4 = vld [vmem:[#allocation2 + $0x7d4] ss:$200 sps:$4 sm:$0xff]   ;;  %v13754_v6 = vld [vmem:[#allocation2 + $0x7d0] ss:$200 sps:$4 sm:$0xff]   ;;  %v13755_v7 = vld [vmem:[#allocation2 + $0x644] ss:$200 sps:$4 sm:$0xff]  }
  0x70   :  { %v13757_v8 = vld [vmem:[#allocation2 + $0x640] ss:$200 sps:$4 sm:$0xff]   ;;  %v13758_v9 = vld [vmem:[#allocation2 + $0x4b4] ss:$200 sps:$4 sm:$0xff]   ;;  %v13760_v10 = vld [vmem:[#allocation2 + $0x4b0] ss:$200 sps:$4 sm:$0xff]  }
  0x71   :  { %11858 = vmatprep.subr.msk.bf16.mxu0 %vm247_vm0, %v11857_v2  ;;  %v249_v5 = vsel %vm247_vm0, %v11856_v3, 0  ;;  %v13761_v11 = vld [vmem:[#allocation2 + $0x324] ss:$200 sps:$4 sm:$0xff]   ;;  %v13763_v12 = vld [vmem:[#allocation2 + $0x320] ss:$200 sps:$4 sm:$0xff]   ;;  %v15150_v14 = vld [vmem:[%s17972_s3 + $0xf8] sm:$0xff] }
  0x72   :  { %257 = vmatpush1.bf16.msra.mxu0 %v249_v5  ;;  %v13764_v13 = vld [vmem:[#allocation2 + $0x194] ss:$200 sps:$4 sm:$0xff]   ;;  %12622 = vmatprep.subr.mxu1 %v15150_v14  ;;  %v326_v18 = vld [vmem:[%s17972_s3 + $0xe8] sm:$0xff]  ;;  %v13766_v19 = vld [vmem:[#allocation2 + $0x190] ss:$200 sps:$4 sm:$0xff]   ;;  %vm243_vm1 = vcmask 801792  }
  0x73   :  { %258 = vmatprep.subr.bf16.mxu0 %v13752_v4  ;;  %v312_v15 = vld [vmem:[%s17972_s3 + $0x78] sm:$0xff]  ;;  %v327_v16 = vld [vmem:[%s17972_s3 + $0xf0] sm:$0xff]  ;;  %v310_v20 = vld [vmem:[%s17972_s3 + $0x68] sm:$0xff]  ;;  %v168_v4 = vlaneseq  ;;  %vm671_vm2 = vcmask 130048   ;;  %vm15056_vm3 = vmmov 0   ;;  %vm11554_vm4 = vcmask 261120  }
  0x74   :  { %v311_v17 = vld [vmem:[%s17972_s3 + $0x70] sm:$0xff]  ;;  %12623 = vmatpush3.msra.mxu1 %v312_v15  ;;  %v13767_v21 = vld [vmem:[#allocation2 + $0x4] ss:$200 sps:$4 sm:$0xff]   ;;  %v13769_v25 = vld [vmem:[#allocation2] ss:$200 sps:$4 sm:$0xff]  }
  0x75   :  { %12624 = vmatprep.subr.mxu1 %v327_v16  ;;  %v325_v22 = vld [vmem:[%s17972_s3 + $0xe0] sm:$0xff]  ;;  %v428_v23 = vld [vmem:[#allocation2 + $0x968] sm:$0x11]  ;;  %v324_v26 = vld [vmem:[%s17972_s3 + $0xd8] sm:$0xff]  ;;  %v15281_v5 = vshrl.u32 %v168_v4, 7 }
  0x76   :  { %259 = vmatpush1.bf16.msra.mxu0 %v13754_v6  ;;  %12625 = vmatpush3.msra.mxu1 %v311_v17  ;;  %v309_v24 = vld [vmem:[%s17972_s3 + $0x60] sm:$0xff]  ;;  %v308_v28 = vld [vmem:[%s17972_s3 + $0x58] sm:$0xff]  ;;  %v323_v29 = vld [vmem:[%s17972_s3 + $0xd0] sm:$0xff]  ;;  %v11874_v30 = vcombine.high %v428_v23, %v428_v23  ;;  %v11873_v31 = vcombine.low %v428_v23, %v428_v23 }
  0x77   :  { %260 = vmatprep.subr.bf16.mxu0 %v13755_v7  ;;  %12626 = vmatprep.subr.mxu1 %v326_v18  ;;  %v151_v27 = vld [vmem:[%s17969_s0] sm:$0x3]  ;;  %v307_v32 = vld [vmem:[%s17972_s3 + $0x50] sm:$0xff]  ;;  %v322_v33 = vld [vmem:[%s17972_s3 + $0xc8] sm:$0xff]  ;;  %17989 = vst [vmem:[#allocation21_spill] sm:$0xff] %v15281_v5  ;;  %v15284_v7 = vsub.s32 0, %v15281_v5 }
  0x78   :  { %12627 = vmatpush3.msra.mxu1 %v310_v20  ;;  %v306_v34 = vld [vmem:[%s17972_s3 + $0x48] sm:$0xff]  ;;  %v15195_v35 = vpack.c.bf16 %v151_v27, %v151_v27  ;;  %v13774_v36 = vld [vmem:[#allocation2 + $0x7dc] ss:$200 sps:$4 sm:$0xff]   ;;  %v507_v38 = vsel %vm247_vm0, %v11873_v31, 0  ;;  %v13772_v40 = vld [vmem:[#allocation2 + $0x7d8] ss:$200 sps:$4 sm:$0xff]  }
  0x79   :  { %12628 = vmatprep.subr.mxu1 %v325_v22  ;;  %v321_v37 = vld [vmem:[%s17972_s3 + $0xc0] sm:$0xff]  ;;  %v320_v41 = vld [vmem:[%s17972_s3 + $0xb8] sm:$0xff]  ;;  %v13777_v42 = vld [vmem:[#allocation2 + $0x64c] ss:$200 sps:$4 sm:$0xff]  }
  0x7a   :  { %261 = vmatpush1.bf16.msra.mxu0 %v13757_v8  ;;  %12629 = vmatpush3.msra.mxu1 %v309_v24  ;;  %v305_v39 = vld [vmem:[%s17972_s3 + $0x40] sm:$0xff]  ;;  %v304_v43 = vld [vmem:[%s17972_s3 + $0x38] sm:$0xff]  ;;  %v319_v44 = vld [vmem:[%s17972_s3 + $0xb0] sm:$0xff]  ;;  %v15287_v8 = vsub.s32 1, %v15281_v5 }
  0x7b   :  { %262 = vmatprep.subr.bf16.mxu0 %v13758_v9  ;;  %12630 = vmatprep.subr.mxu1 %v324_v26  ;;  %v303_v45 = vld [vmem:[%s17972_s3 + $0x30] sm:$0xff]  ;;  %v318_v47 = vld [vmem:[%s17972_s3 + $0xa8] sm:$0xff]  ;;  %v13780_v48 = vld [vmem:[#allocation2 + $0x4bc] ss:$200 sps:$4 sm:$0xff]  }
  0x7c   :  { %12631 = vmatpush3.msra.mxu1 %v308_v28  ;;  %v13775_v46 = vld [vmem:[#allocation2 + $0x648] ss:$200 sps:$4 sm:$0xff]   ;;  %v317_v50 = vld [vmem:[%s17972_s3 + $0xa0] sm:$0xff]  ;;  %v316_v53 = vld [vmem:[%s17972_s3 + $0x98] sm:$0xff] }
  0x7d   :  { %12632 = vmatprep.subr.mxu1 %v323_v29  ;;  %v302_v49 = vld [vmem:[%s17972_s3 + $0x28] sm:$0xff]  ;;  %v301_v51 = vld [vmem:[%s17972_s3 + $0x20] sm:$0xff]  ;;  %v15241_v60 = vld [vmem:[%s17972_s3 + $0x18] sm:$0xff] }
  0x7e   :  { %263 = vmatpush1.bf16.msra.mxu0 %v13760_v10  ;;  %12633 = vmatpush3.msra.mxu1 %v307_v32  ;;  %v13778_v52 = vld [vmem:[#allocation2 + $0x4b8] ss:$200 sps:$4 sm:$0xff]   ;;  %v13783_v54 = vld [vmem:[#allocation2 + $0x32c] ss:$200 sps:$4 sm:$0xff]   ;;  %v13781_v55 = vld [vmem:[#allocation2 + $0x328] ss:$200 sps:$4 sm:$0xff]  }
  0x7f   :  { %264 = vmatprep.subr.bf16.mxu0 %v13761_v11  ;;  %12634 = vmatprep.subr.mxu1 %v322_v33  ;;  %v13786_v56 = vld [vmem:[#allocation2 + $0x19c] ss:$200 sps:$4 sm:$0xff]   ;;  %v13784_v57 = vld [vmem:[#allocation2 + $0x198] ss:$200 sps:$4 sm:$0xff]   ;;  %v13789_v58 = vld [vmem:[#allocation2 + $0xc] ss:$200 sps:$4 sm:$0xff]  }
  0x80   :  { %12635 = vmatpush3.msra.mxu1 %v306_v34  ;;  %v13787_v59 = vld [vmem:[#allocation2 + $0x8] ss:$200 sps:$4 sm:$0xff]   ;;  %v15271_v2 = vld [vmem:[%s17972_s3 + $0x80] sm:$0xff]  ;;  %v15336_v26 = vld [vmem:[%s17972_s3 + $0xd8] sm:$0xff] }
  0x81   :  { %12636 = vmatprep.subr.mxu1 %v321_v37  ;;  %v15247_v61 = vld [vmem:[%s17972_s3 + $0x90] sm:$0xff]  ;;  %v15259_v63 = vld [vmem:[%s17972_s3 + $0x88] sm:$0xff]  ;;  %v15277_v3 = vld [vmem:[%s17972_s3] sm:$0xff] }
  0x82   :  { %265 = vmatpush1.bf16.msra.mxu0 %v13763_v12  ;;  %12637 = vmatpush3.msra.mxu1 %v305_v39  ;;  %v15253_v62 = vld [vmem:[%s17972_s3 + $0x10] sm:$0xff]  ;;  %v15265_v1 = vld [vmem:[%s17972_s3 + $0x8] sm:$0xff]  ;;  %v15324_v24 = vld [vmem:[%s17972_s3 + $0xe0] sm:$0xff] }
  0x83   :  { %266 = vmatprep.subr.bf16.mxu0 %v13764_v13  ;;  %12638 = vmatprep.subr.mxu1 %v320_v41  ;;  %v166_v6 = vld [vmem:[#allocation4] sm:$0x3]  ;;  %v15300_v20 = vld [vmem:[%s17972_s3 + $0xf0] sm:$0xff]  ;;  %v15342_v27 = vld [vmem:[%s17972_s3 + $0x58] sm:$0xff] }
  0x84   :  { %12639 = vmatpush3.msra.mxu1 %v304_v43  ;;  %v171_v9 = vrot.slane %v166_v6, %v15284_v7  ;;  %v175_v10 = vrot.slane %v166_v6, %v15287_v8  ;;  %v15312_v22 = vld [vmem:[%s17972_s3 + $0xe8] sm:$0xff]  ;;  %v15348_v28 = vld [vmem:[%s17972_s3 + $0xd0] sm:$0xff]  ;;  %v15372_v32 = vld [vmem:[%s17972_s3 + $0xc0] sm:$0xff] }
  0x85   :  { %12640 = vmatprep.subr.mxu1 %v319_v44  ;;  %v15318_v23 = vld [vmem:[%s17972_s3 + $0x68] sm:$0xff]  ;;  %v15354_v29 = vld [vmem:[%s17972_s3 + $0x50] sm:$0xff]  ;;  %v15378_v33 = vld [vmem:[%s17972_s3 + $0x40] sm:$0xff] }
  0x86   :  { %267 = vmatpush1.bf16.msra.mxu0 %v13766_v19  ;;  %12641 = vmatpush3.msra.mxu1 %v303_v45  ;;  %v15294_v19 = vld [vmem:[%s17972_s3 + $0x78] sm:$0xff]  ;;  %v15366_v31 = vld [vmem:[%s17972_s3 + $0x48] sm:$0xff]  ;;  %v15402_v39 = vld [vmem:[%s17972_s3 + $0x30] sm:$0xff] }
  0x87   :  { %268 = vmatprep.subr.bf16.mxu0 %v13767_v21  ;;  %12642 = vmatprep.subr.mxu1 %v318_v47  ;;  %v15306_v21 = vld [vmem:[%s17972_s3 + $0x70] sm:$0xff]  ;;  %v15384_v34 = vld [vmem:[%s17972_s3 + $0xb8] sm:$0xff]  ;;  %v15409_v41 = vld [vmem:[%s17972_s3 + $0xa8] sm:$0xff] }
  0x88   :  { %12643 = vmatpush3.msra.mxu1 %v302_v49  ;;  %v15390_v37 = vld [vmem:[%s17972_s3 + $0x38] sm:$0xff]  ;;  %v15415_v43 = vld [vmem:[%s17972_s3 + $0x28] sm:$0xff]  ;;  %v15422_v45 = vld [vmem:[%s17972_s3 + $0xa0] sm:$0xff] }
  0x89   :  { %12644 = vmatprep.subr.mxu1 %v317_v50  ;;  %v15434_v49 = vld [vmem:[%s17972_s3 + $0x98] sm:$0xff] }
  0x8a   :  { %269 = vmatpush1.bf16.msra.mxu0 %v13769_v25  ;;  %12645 = vmatpush3.msra.mxu1 %v301_v51  ;;  %v15330_v25 = vld [vmem:[%s17972_s3 + $0x60] sm:$0xff] }
  0x8b   :  { %11875 = vmatprep.subr.msk.bf16.mxu0 %vm247_vm0, %v11874_v30  ;;  %12646 = vmatprep.subr.mxu1 %v316_v53  ;;  %v15360_v30 = vld [vmem:[%s17972_s3 + $0xc8] sm:$0xff] }
  0x8c   :  { %12647 = vmatpush3.msra.mxu1 %v15241_v60 }
  0x8d   :  { %11859 = vmatmul.mubr.msk.bf16.vlgmr.msra.gmra.mxu0 %vm243_vm1, %v15195_v35  ;;  %12648 = vmatprep.subr.mxu1 %v15247_v61 }
  0x8e   :  { %515 = vmatpush1.bf16.msra.mxu0 %v507_v38  ;;  %544 = vmatprep.mubr.bf16.mxu0 %v17983_v0  ;;  %v15396_v38 = vld [vmem:[%s17972_s3 + $0xb0] sm:$0xff] }
  0x8f   :  { %516 = vmatprep.subr.bf16.mxu0 %v13774_v36  ;;  %12649 = vmatpush3.msra.mxu1 %v15253_v62  ;;  %v429_v36 = vld [vmem:[#allocation4 + $0x2] sm:$0x3] }
  0x90   :  { %12650 = vmatprep.subr.mxu1 %v15259_v63  ;;  %v434_v44 = vrot.slane %v429_v36, %v15284_v7 }
  0x91   :  { %12651 = vmatpush3.msra.mxu1 %v15265_v1 }
  0x92   :  { %517 = vmatpush1.bf16.msra.mxu0 %v13772_v40  ;;  %12652 = vmatprep.subr.mxu1 %v15271_v2  ;;  %v438_v40 = vrot.slane %v429_v36, %v15287_v8  ;;  %v13805_v36 = vld [vmem:[#allocation7 + $0x50] ss:$28 sps:$4 sm:$0xff]  }
  0x93   :  { %518 = vmatprep.subr.bf16.mxu0 %v13777_v42  ;;  %12653 = vmatpush3.msra.mxu1 %v15277_v3 }
  0x94   :  { %12657 = vmatprep.subr.mxu1 %v15150_v14 }
  0x96   :  { %519 = vmatpush1.bf16.msra.mxu0 %v13775_v46 }
  0x97   :  { %520 = vmatprep.subr.bf16.mxu0 %v13780_v48  ;;  %v15428_v48 = vld [vmem:[%s17972_s3 + $0x20] sm:$0xff] }
  0x9a   :  { %521 = vmatpush1.bf16.msra.mxu0 %v13778_v52 }
  0x9b   :  { %522 = vmatprep.subr.bf16.mxu0 %v13783_v54 }
  0x9e   :  { %523 = vmatpush1.bf16.msra.mxu0 %v13781_v55  ;;  %v13792_v55 = vld [vmem:[#allocation7 + $0x4c] ss:$28 sps:$4 sm:$0xff]  }
  0x9f   :  { %524 = vmatprep.subr.bf16.mxu0 %v13786_v56  ;;  %v13795_v56 = vld [vmem:[#allocation7 + $0x3c] ss:$28 sps:$4 sm:$0xff]  }
  0xa2   :  { %525 = vmatpush1.bf16.msra.mxu0 %v13784_v57  ;;  %v13790_v57 = vld [vmem:[#allocation7 + $0x48] ss:$28 sps:$4 sm:$0xff]  }
  0xa3   :  { %526 = vmatprep.subr.bf16.mxu0 %v13789_v58  ;;  %v13793_v58 = vld [vmem:[#allocation7 + $0x38] ss:$28 sps:$4 sm:$0xff]  }
  0xa6   :  { %527 = vmatpush1.bf16.msra.mxu0 %v13787_v59  ;;  %v13798_v59 = vld [vmem:[#allocation7 + $0x4] ss:$28 sps:$4 sm:$0xff]  }
  0xa7   :  { %771 = vmatprep.subr.bf16.mxu0 %v13792_v55  ;;  %v13820_v55 = vld [vmem:[#allocation7 + $0x18] ss:$28 sps:$4 sm:$0xff]  }
  0xa9   :  { %11876 = vmatmul.mubr.msk.bf16.vlgmr.msra.gmra.mxu0 %vm243_vm1, %v15195_v35 }
  0xaa   :  { %789 = vmatprep.mubr.bf16.mxu0 %v17983_v0  ;;  %772 = vmatpush1.bf16.msra.mxu0 %v13790_v57  ;;  %v13817_v57 = vld [vmem:[#allocation2 + $0x4c0] ss:$200 sps:$4 sm:$0xff]  }
  0xab   :  { %891 = vmatprep.subr.bf16.mxu0 %v13798_v59  ;;  %v15472_v59 = vld [vmem:[%s17972_s3 + $0xf8] sm:$0xff] }
 0x14d   :  { %v288_v11 = vpop.f32.mrf.mxu0 }
 0x14e   :  { %v289_v12 = vadd.f32 %v288_v11, %v171_v9  ;;  %v13799_v11 = vld [vmem:[#allocation7 + $0x40] ss:$28 sps:$4 sm:$0xff]  }
 0x14f   :  { %v290_v13 = vpop.f32.mrf.mxu0 }
 0x150   :  { %v291_v15 = vadd.f32 %v290_v13, %v175_v10  ;;  %v295_v17 = vmax.f32 %v289_v12, 0.0  ;;  %v13796_v10 = vld [vmem:[#allocation7] ss:$28 sps:$4 sm:$0xff]  }
 0x151   :  { %v292_v16 = vpop.f32.mrf.mxu0 }
 0x152   :  { %v296_v14 = vmax.f32 %v291_v15, 0.0  ;;  %v13804_v15 = vld [vmem:[#allocation7 + $0x14] ss:$28 sps:$4 sm:$0xff]  }
 0x153   :  { %v293_v18 = vpop.f32.mrf.mxu0 }
 0x154   :  { %400 = vmatprep.mubr.f32.mxu1 %v296_v14  ;;  %v17981_v14 = vmov 0.0   ;;  %v13802_v18 = vld [vmem:[#allocation7 + $0x10] ss:$28 sps:$4 sm:$0xff]  }
 0x155   :  { %401 = vmatmul.mubr.f32.vlgmr.msra.gmra.mxu1 %v295_v17  ;;  %v1052_v17 = vld [vmem:[#allocation2 + $0x970] sm:$0x11] }
 0x156   :  { %12658 = vmatpush3.msra.mxu1 %v15294_v19 }
 0x157   :  { %12659 = vmatprep.subr.mxu1 %v15300_v20 }
 0x158   :  { %12660 = vmatpush3.msra.mxu1 %v15306_v21 }
 0x159   :  { %12661 = vmatprep.subr.mxu1 %v15312_v22 }
 0x15a   :  { %12662 = vmatpush3.msra.mxu1 %v15318_v23 }
 0x15b   :  { %12663 = vmatprep.subr.mxu1 %v15324_v24 }
 0x15c   :  { %12664 = vmatpush3.msra.mxu1 %v15330_v25 }
 0x15d   :  { %12665 = vmatprep.subr.mxu1 %v15336_v26 }
 0x15e   :  { %12666 = vmatpush3.msra.mxu1 %v15342_v27 }
 0x15f   :  { %12667 = vmatprep.subr.mxu1 %v15348_v28 }
 0x160   :  { %12668 = vmatpush3.msra.mxu1 %v15354_v29 }
 0x161   :  { %12669 = vmatprep.subr.mxu1 %v15360_v30 }
 0x162   :  { %12670 = vmatpush3.msra.mxu1 %v15366_v31 }
 0x163   :  { %12671 = vmatprep.subr.mxu1 %v15372_v32 }
 0x164   :  { %12672 = vmatpush3.msra.mxu1 %v15378_v33 }
 0x165   :  { %12673 = vmatprep.subr.mxu1 %v15384_v34 }
 0x166   :  { %12674 = vmatpush3.msra.mxu1 %v15390_v37 }
 0x167   :  { %12675 = vmatprep.subr.mxu1 %v15396_v38 }
 0x168   :  { %12676 = vmatpush3.msra.mxu1 %v15402_v39 }
 0x169   :  { %12677 = vmatprep.subr.mxu1 %v15409_v41  ;;  %v546_v42 = vpop.f32.mrf.mxu0 }
 0x16a   :  { %12678 = vmatpush3.msra.mxu1 %v15415_v43  ;;  %v547_v52 = vadd.f32 %v546_v42, %v434_v44  ;;  %v11912_v42 = vcombine.high %v1052_v17, %v1052_v17  ;;  %v13813_v44 = vld [vmem:[#allocation7 + $0xc] ss:$28 sps:$4 sm:$0xff]  }
 0x16b   :  { %12679 = vmatprep.subr.mxu1 %v15422_v45  ;;  %v548_v46 = vpop.f32.mrf.mxu0 }
 0x16c   :  { %v549_v47 = vadd.f32 %v548_v46, %v438_v40  ;;  %12680 = vmatpush3.msra.mxu1 %v15428_v48  ;;  %v553_v54 = vmax.f32 %v547_v52, 0.0  ;;  %v11911_v46 = vcombine.low %v1052_v17, %v1052_v17  ;;  %v13808_v52 = vld [vmem:[#allocation2 + $0x7e0] ss:$200 sps:$4 sm:$0xff]  }
 0x16d   :  { %12681 = vmatprep.subr.mxu1 %v15434_v49  ;;  %v550_v50 = vpop.f32.mrf.mxu0 }
 0x16e   :  { %v554_v51 = vmax.f32 %v549_v47, 0.0  ;;  %12682 = vmatpush3.msra.mxu1 %v15241_v60  ;;  %v13801_v60 = vld [vmem:[#allocation7 + $0x44] ss:$28 sps:$4 sm:$0xff]   ;;  %v1131_v50 = vsel %vm247_vm0, %v11911_v46, 0 }
 0x16f   :  { %12683 = vmatprep.subr.mxu1 %v15247_v61  ;;  %v551_v53 = vpop.f32.mrf.mxu0  ;;  %v13811_v47 = vld [vmem:[#allocation7 + $0x8] ss:$28 sps:$4 sm:$0xff]  }
 0x170   :  { %12684 = vmatpush3.msra.mxu1 %v15253_v62  ;;  %619 = vmatprep.mubr.f32.mxu1 %v554_v51  ;;  %v13810_v51 = vld [vmem:[#allocation2 + $0x7e4] ss:$200 sps:$4 sm:$0xff]   ;;  %v13816_v53 = vld [vmem:[#allocation2 + $0x654] ss:$200 sps:$4 sm:$0xff]  }
 0x171   :  { %12685 = vmatprep.subr.mxu1 %v15259_v63 }
 0x172   :  { %12686 = vmatpush3.msra.mxu1 %v15265_v1 }
 0x173   :  { %12687 = vmatprep.subr.mxu1 %v15271_v2 }
 0x174   :  { %12688 = vmatpush3.msra.mxu1 %v15277_v3  ;;  %v15445_v3 = vld [vmem:[#allocation6] ss:$0 sm:$0xff] }
 0x175   :  { %620 = vmatmul.mubr.f32.vlgmr.msra.gmra.mxu1 %v553_v54  ;;  %689 = vmatprep.subr.bf16.mxu1 %v13795_v56  ;;  %v13814_v54 = vld [vmem:[#allocation2 + $0x650] ss:$200 sps:$4 sm:$0xff]   ;;  %v13819_v56 = vld [vmem:[#allocation2 + $0x4c4] ss:$200 sps:$4 sm:$0xff]  }
 0x176   :  { %707 = vmatprep.mubr.bf16.mxu1 %v17983_v0  ;;  %690 = vmatpush1.bf16.msra.mxu1 %v13793_v58  ;;  %v13823_v58 = vld [vmem:[#allocation2 + $0x334] ss:$200 sps:$4 sm:$0xff]  }
 0x177   :  { %730 = vmatprep.subr.bf16.mxu1 %v13801_v60  ;;  %v13821_v60 = vld [vmem:[#allocation2 + $0x330] ss:$200 sps:$4 sm:$0xff]  }
 0x215   :  { %v12654_v61 = vpop.f32.mrf.mxu1 }
 0x217   :  { %v12655_v62 = vpop.f32.mrf.mxu1 }
 0x218   :  { %v12656_v4 = vadd.f32 %v12655_v62, %v12654_v61  ;;  %v13826_v61 = vld [vmem:[#allocation2 + $0x1a4] ss:$200 sps:$4 sm:$0xff]   ;;  %v13824_v62 = vld [vmem:[#allocation2 + $0x1a0] ss:$200 sps:$4 sm:$0xff]  }
 0x21a   :  { %v403_v12 = vadd.f32 %v12656_v4, %v15445_v3  ;;  %v15512_v4 = vld [vmem:[%s17972_s3 + $0x90] sm:$0xff] }
 0x21c   :  { %v406_v16 = vmax.f32 %v403_v12, 0.0  ;;  %v15542_v12 = vld [vmem:[%s17972_s3] sm:$0xff] }
 0x21e   :  { %v407_v40 = vpack.c.bf16 %v406_v16, %v406_v16 }
 0x235   :  { %v12689_v63 = vpop.f32.mrf.mxu1 }
 0x237   :  { %v12690_v1 = vpop.f32.mrf.mxu1 }
 0x238   :  { %v12691_v2 = vadd.f32 %v12690_v1, %v12689_v63  ;;  %v13829_v63 = vld [vmem:[#allocation2 + $0x14] ss:$200 sps:$4 sm:$0xff]   ;;  %v13827_v1 = vld [vmem:[#allocation2 + $0x10] ss:$200 sps:$4 sm:$0xff]  }
 0x23a   :  { %v622_v6 = vadd.f32 %v12691_v2, %v15445_v3  ;;  %v15506_v2 = vld [vmem:[%s17972_s3 + $0x18] sm:$0xff] }
 0x23c   :  { %v625_v9 = vmax.f32 %v622_v6, 0.0  ;;  %v15518_v6 = vld [vmem:[%s17972_s3 + $0x10] sm:$0xff] }
 0x23e   :  { %v626_v13 = vpack.c.bf16 %v625_v9, %v625_v9  ;;  %v15524_v9 = vld [vmem:[%s17972_s3 + $0x88] sm:$0xff] }
 0x240   :  { %11884 = vmatmul.mubr.msk.bf16.vlgmr.msra.gmra.mxu1 %vm671_vm2, %v626_v13  ;;  %11886 = vmatmul.mubr.msk.bf16.vlgmr.msra.gmra.mxu0 %vm671_vm2, %v626_v13 }
 0x241   :  { %892 = vmatpush1.bf16.msra.mxu0 %v13796_v10  ;;  %731 = vmatpush1.bf16.msra.mxu1 %v13799_v11  ;;  %v15530_v10 = vld [vmem:[%s17972_s3 + $0x8] sm:$0xff]  ;;  %v15536_v11 = vld [vmem:[%s17972_s3 + $0x80] sm:$0xff] }
 0x242   :  { %748 = vmatprep.mubr.bf16.mxu1 %v17983_v0  ;;  %909 = vmatprep.mubr.bf16.mxu0 %v17983_v0 }
 0x243   :  { %973 = vmatprep.subr.bf16.mxu0 %v13804_v15  ;;  %13582 = vmatprep.subr.bf16.mxu1 %v17981_v14 }
 0x248   :  { %11885 = vmatmul.mubr.msk.bf16.vlgmr.msra.gmra.mxu1 %vm671_vm2, %v626_v13  ;;  %11895 = vmatmul.mubr.msk.bf16.vlgmr.msra.gmra.mxu0 %vm671_vm2, %v407_v40 }
 0x249   :  { %974 = vmatpush1.bf16.msra.mxu0 %v13802_v18  ;;  %13583 = vmatpush3.bf16.msra.mxu1 %v13805_v36 }
 0x24a   :  { %13584 = vmatprep.mubr.msk.bf16.mxu1 %vm15056_vm3, %v17981_v14  ;;  %991 = vmatprep.mubr.bf16.mxu0 %v17983_v0 }
 0x24b   :  { %11913 = vmatprep.subr.msk.bf16.mxu0 %vm247_vm0, %v11912_v42  ;;  %932 = vmatprep.subr.bf16.mxu1 %v13813_v44 }
 0x250   :  { %13585 = vmatmul.mubr.msk.bf16.vlgmr.msra.gmra.mxu1 %vm671_vm2, %v626_v13  ;;  %11897 = vmatmul.mubr.msk.bf16.vlgmr.msra.gmra.mxu0 %vm671_vm2, %v407_v40 }
 0x251   :  { %1139 = vmatpush1.bf16.msra.mxu0 %v1131_v50  ;;  %933 = vmatpush1.bf16.msra.mxu1 %v13811_v47 }
 0x252   :  { %1140 = vmatprep.subr.bf16.mxu0 %v13810_v51  ;;  %950 = vmatprep.mubr.bf16.mxu1 %v17983_v0 }
 0x253   :  { %13588 = vmatprep.subr.bf16.mxu1 %v17981_v14  ;;  %1168 = vmatprep.mubr.bf16.mxu0 %v17983_v0 }
 0x255   :  { %1141 = vmatpush1.bf16.msra.mxu0 %v13808_v52 }
 0x256   :  { %1142 = vmatprep.subr.bf16.mxu0 %v13816_v53 }
 0x258   :  { %11896 = vmatmul.mubr.msk.bf16.vlgmr.msra.gmra.mxu1 %vm671_vm2, %v407_v40 }
 0x259   :  { %1143 = vmatpush1.bf16.msra.mxu0 %v13814_v54  ;;  %13589 = vmatpush3.bf16.msra.mxu1 %v13820_v55 }
 0x25a   :  { %1144 = vmatprep.subr.bf16.mxu0 %v13819_v56  ;;  %13590 = vmatprep.mubr.msk.bf16.mxu1 %vm15056_vm3, %v17981_v14 }
 0x25b   :  { %12696 = vmatprep.subr.mxu1 %v15472_v59 }
 0x25d   :  { %1145 = vmatpush1.bf16.msra.mxu0 %v13817_v57 }
 0x25e   :  { %1146 = vmatprep.subr.bf16.mxu0 %v13823_v58 }
 0x260   :  { %13591 = vmatmul.mubr.msk.bf16.vlgmr.msra.gmra.mxu1 %vm671_vm2, %v407_v40 }
 0x261   :  { %1147 = vmatpush1.bf16.msra.mxu0 %v13821_v60  ;;  %12697 = vmatpush3.msra.mxu1 %v15294_v19 }
 0x262   :  { %1148 = vmatprep.subr.bf16.mxu0 %v13826_v61  ;;  %12698 = vmatprep.subr.mxu1 %v15300_v20 }
 0x263   :  { %12699 = vmatpush3.msra.mxu1 %v15306_v21 }
 0x264   :  { %12700 = vmatprep.subr.mxu1 %v15312_v22 }
 0x265   :  { %1149 = vmatpush1.bf16.msra.mxu0 %v13824_v62  ;;  %12701 = vmatpush3.msra.mxu1 %v15318_v23 }
 0x266   :  { %1150 = vmatprep.subr.bf16.mxu0 %v13829_v63  ;;  %12702 = vmatprep.subr.mxu1 %v15324_v24 }
 0x267   :  { %12703 = vmatpush3.msra.mxu1 %v15330_v25 }
 0x268   :  { %12704 = vmatprep.subr.mxu1 %v15336_v26 }
 0x269   :  { %1151 = vmatpush1.bf16.msra.mxu0 %v13827_v1  ;;  %12705 = vmatpush3.msra.mxu1 %v15342_v27 }
 0x26a   :  { %12706 = vmatprep.subr.mxu1 %v15348_v28 }
 0x26b   :  { %12707 = vmatpush3.msra.mxu1 %v15354_v29 }
 0x26c   :  { %11914 = vmatmul.mubr.msk.bf16.vlgmr.msra.gmra.mxu0 %vm243_vm1, %v15195_v35  ;;  %12708 = vmatprep.subr.mxu1 %v15360_v30 }
 0x26d   :  { %12709 = vmatpush3.msra.mxu1 %v15366_v31  ;;  %1330 = vmatprep.mubr.bf16.mxu0 %v17983_v0 }
 0x26e   :  { %12710 = vmatprep.subr.mxu1 %v15372_v32 }
 0x26f   :  { %12711 = vmatpush3.msra.mxu1 %v15378_v33 }
 0x270   :  { %12712 = vmatprep.subr.mxu1 %v15384_v34 }
 0x271   :  { %12713 = vmatpush3.msra.mxu1 %v15390_v37 }
 0x272   :  { %12714 = vmatprep.subr.mxu1 %v15396_v38 }
 0x273   :  { %12715 = vmatpush3.msra.mxu1 %v15402_v39 }
 0x274   :  { %12716 = vmatprep.subr.mxu1 %v15409_v41 }
 0x275   :  { %12717 = vmatpush3.msra.mxu1 %v15415_v43 }
 0x276   :  { %12718 = vmatprep.subr.mxu1 %v15422_v45 }
 0x277   :  { %12719 = vmatpush3.msra.mxu1 %v15428_v48 }
 0x278   :  { %12720 = vmatprep.subr.mxu1 %v15434_v49 }
 0x279   :  { %12721 = vmatpush3.msra.mxu1 %v15506_v2 }
 0x27a   :  { %12722 = vmatprep.subr.mxu1 %v15512_v4 }
 0x27b   :  { %12723 = vmatpush3.msra.mxu1 %v15518_v6 }
 0x27c   :  { %12724 = vmatprep.subr.mxu1 %v15524_v9 }
 0x27d   :  { %12725 = vmatpush3.msra.mxu1 %v15530_v10 }
 0x27e   :  { %12726 = vmatprep.subr.mxu1 %v15536_v11 }
 0x27f   :  { %12727 = vmatpush3.msra.mxu1 %v15542_v12 }
 0x300   :  { %v709_v13 = vpop.f32.mrf.mxu1  ;;  %v791_v15 = vpop.f32.mrf.mxu0 }
 0x302   :  { %v711_v16 = vpop.f32.mrf.mxu1  ;;  %v793_v17 = vpop.f32.mrf.mxu0 }
 0x304   :  { %v713_v18 = vpop.f32.mrf.mxu1  ;;  %v795_v36 = vpop.f32.mrf.mxu0 }
 0x306   :  { %v714_v40 = vpop.f32.mrf.mxu1  ;;  %v796_v42 = vpop.f32.mrf.mxu0 }
 0x308   :  { %v750_v44 = vpop.f32.mrf.mxu1  ;;  %v911_v46 = vpop.f32.mrf.mxu0 }
 0x309   :  { %v15545_v47 = vadd.f32 %v911_v46, %v709_v13 }
 0x30a   :  { %v15547_v50 = vpop.f32.mrf.mxu1  ;;  %v913_v51 = vpop.f32.mrf.mxu0 }
 0x30b   :  { %v15549_v52 = vadd.f32 %v913_v51, %v711_v16 }
 0x30c   :  { %v754_v53 = vpop.f32.mrf.mxu1  ;;  %v915_v54 = vpop.f32.mrf.mxu0 }
 0x30e   :  { %v755_v55 = vpop.f32.mrf.mxu1  ;;  %v916_v56 = vpop.f32.mrf.mxu0 }
 0x310   :  { %v832_v57 = vpop.f32.mrf.mxu1  ;;  %v993_v58 = vpop.f32.mrf.mxu0 }
 0x311   :  { %v15551_v60 = vadd.f32 %v993_v58, %v791_v15  ;;  %v1053_v58 = vld [vmem:[#allocation4 + $0x4] sm:$0x3] }
 0x312   :  { %v13586_v61 = vpop.f32.mrf.mxu1  ;;  %v995_v62 = vpop.f32.mrf.mxu0 }
 0x313   :  { %v15553_v63 = vadd.f32 %v995_v62, %v793_v17  ;;  %v1058_v17 = vrot.slane %v1053_v58, %v15284_v7  ;;  %v1062_v61 = vrot.slane %v1053_v58, %v15287_v8 }
 0x314   :  { %v835_v1 = vpop.f32.mrf.mxu1  ;;  %v997_v13 = vpop.f32.mrf.mxu0 }
 0x316   :  { %v13587_v18 = vpop.f32.mrf.mxu1  ;;  %v998_v36 = vpop.f32.mrf.mxu0 }
 0x318   :  { %v952_v40 = vpop.f32.mrf.mxu1 }
 0x319   :  { %v15555_v42 = vadd.f32 %v952_v40, %v750_v44 }
 0x31a   :  { %v15557_v16 = vpop.f32.mrf.mxu1 }
 0x31c   :  { %v956_v46 = vpop.f32.mrf.mxu1 }
 0x31e   :  { %v957_v51 = vpop.f32.mrf.mxu1 }
 0x31f   :  { %v13835_v51 = vld [vmem:[#allocation7 + $0x7c] ss:$28 sps:$4 sm:$0xff]  }
 0x320   :  { %v1034_v53 = vpop.f32.mrf.mxu1  ;;  %1353 = vmatprep.subr.bf16.mxu1 %v13835_v51  ;;  %v13842_v51 = vld [vmem:[#allocation2 + $0x7e8] ss:$200 sps:$4 sm:$0xff]  }
 0x321   :  { %v15559_v54 = vadd.f32 %v1034_v53, %v832_v57  ;;  %v13832_v57 = vld [vmem:[#allocation7 + $0x74] ss:$28 sps:$4 sm:$0xff]  }
 0x322   :  { %v13592_v15 = vpop.f32.mrf.mxu1  ;;  %v13830_v53 = vld [vmem:[#allocation7 + $0x70] ss:$28 sps:$4 sm:$0xff]   ;;  %1312 = vmatprep.subr.bf16.mxu0 %v13832_v57 }
 0x323   :  { %v13833_v15 = vld [vmem:[#allocation7 + $0x78] ss:$28 sps:$4 sm:$0xff]   ;;  %1313 = vmatpush1.bf16.msra.mxu0 %v13830_v53  ;;  %v13847_v53 = vld [vmem:[#allocation2 + $0x65c] ss:$200 sps:$4 sm:$0xff]  }
 0x324   :  { %v1037_v55 = vpop.f32.mrf.mxu1  ;;  %v13844_v57 = vld [vmem:[#allocation2 + $0x7ec] ss:$200 sps:$4 sm:$0xff]  }
 0x325   :  { %v13838_v55 = vld [vmem:[#allocation7 + $0x84] ss:$28 sps:$4 sm:$0xff]  }
 0x326   :  { %v13593_v56 = vpop.f32.mrf.mxu1  ;;  %1394 = vmatprep.subr.bf16.mxu0 %v13838_v55  ;;  %v13850_v55 = vld [vmem:[#allocation2 + $0x4cc] ss:$200 sps:$4 sm:$0xff]  }
 0x32c   :  { %v1170_v62 = vpop.f32.mrf.mxu0 }
 0x32d   :  { %v1171_v1 = vadd.f32 %v1170_v62, %v1058_v17 }
 0x32e   :  { %v1172_v13 = vpop.f32.mrf.mxu0 }
 0x32f   :  { %v1173_v44 = vadd.f32 %v1172_v13, %v1062_v61  ;;  %v1177_v40 = vmax.f32 %v1171_v1, 0.0  ;;  %v1480_v1 = vld [vmem:[#allocation2 + $0x978] sm:$0x11] }
 0x330   :  { %v1174_v18 = vpop.f32.mrf.mxu0  ;;  %v13836_v13 = vld [vmem:[#allocation7 + $0x80] ss:$28 sps:$4 sm:$0xff]  }
 0x331   :  { %v1178_v36 = vmax.f32 %v1173_v44, 0.0  ;;  %v13839_v44 = vld [vmem:[#allocation7 + $0x88] ss:$28 sps:$4 sm:$0xff]  }
 0x332   :  { %v1175_v46 = vpop.f32.mrf.mxu0 }
 0x333   :  { %1243 = vmatprep.mubr.f32.mxu1 %v1178_v36  ;;  %v11939_v36 = vcombine.high %v1480_v1, %v1480_v1 }
 0x334   :  { %1244 = vmatmul.mubr.f32.vlgmr.msra.gmra.mxu1 %v1177_v40  ;;  %v11938_v40 = vcombine.low %v1480_v1, %v1480_v1  ;;  %v13859_v1 = vld [vmem:[#allocation2 + $0x1c] ss:$200 sps:$4 sm:$0xff]  }
 0x335   :  { %1371 = vmatprep.mubr.bf16.mxu1 %v17983_v0  ;;  %1354 = vmatpush1.bf16.msra.mxu1 %v13833_v15  ;;  %v13845_v15 = vld [vmem:[#allocation2 + $0x658] ss:$200 sps:$4 sm:$0xff]  }
 0x336   :  { %13594 = vmatprep.subr.bf16.mxu1 %v17981_v14  ;;  %v1559_v46 = vsel %vm247_vm0, %v11938_v40, 0 }
 0x3f4   :  { %v12728_v56 = vpop.f32.mrf.mxu1 }
 0x3f6   :  { %v12729_v58 = vpop.f32.mrf.mxu1 }
 0x3f7   :  { %v12730_v17 = vadd.f32 %v12729_v58, %v12728_v56  ;;  %v13848_v56 = vld [vmem:[#allocation2 + $0x4c8] ss:$200 sps:$4 sm:$0xff]   ;;  %v13853_v58 = vld [vmem:[#allocation2 + $0x33c] ss:$200 sps:$4 sm:$0xff]  }
 0x3f9   :  { %v1246_v61 = vadd.f32 %v12730_v17, %v15445_v3  ;;  %v13851_v17 = vld [vmem:[#allocation2 + $0x338] ss:$200 sps:$4 sm:$0xff]  }
 0x3fb   :  { %v1249_v62 = vmax.f32 %v1246_v61, 0.0  ;;  %v13856_v61 = vld [vmem:[#allocation2 + $0x1ac] ss:$200 sps:$4 sm:$0xff]  }
 0x3fd   :  { %v1250_v18 = vpack.c.bf16 %v1249_v62, %v1249_v62  ;;  %v13854_v62 = vld [vmem:[#allocation2 + $0x1a8] ss:$200 sps:$4 sm:$0xff]  }
 0x3ff   :  { %11922 = vmatmul.mubr.msk.bf16.vlgmr.msra.gmra.mxu0 %vm671_vm2, %v1250_v18  ;;  %11923 = vmatmul.mubr.msk.bf16.vlgmr.msra.gmra.mxu1 %vm671_vm2, %v1250_v18 }
 0x400   :  { %1395 = vmatpush1.bf16.msra.mxu0 %v13836_v13  ;;  %13595 = vmatpush3.bf16.msra.mxu1 %v13839_v44  ;;  %v13857_v13 = vld [vmem:[#allocation2 + $0x18] ss:$200 sps:$4 sm:$0xff]  }
 0x401   :  { %1412 = vmatprep.mubr.bf16.mxu0 %v17983_v0  ;;  %13596 = vmatprep.mubr.msk.bf16.mxu1 %vm15056_vm3, %v17981_v14 }
 0x402   :  { %11940 = vmatprep.subr.msk.bf16.mxu0 %vm247_vm0, %v11939_v36  ;;  %12733 = vmatprep.subr.mxu1 %v15472_v59 }
 0x407   :  { %11924 = vmatmul.mubr.msk.bf16.vlgmr.msra.gmra.mxu0 %vm671_vm2, %v1250_v18  ;;  %13597 = vmatmul.mubr.msk.bf16.vlgmr.msra.gmra.mxu1 %vm671_vm2, %v1250_v18 }
 0x408   :  { %1567 = vmatpush1.bf16.msra.mxu0 %v1559_v46  ;;  %1596 = vmatprep.mubr.bf16.mxu0 %v17983_v0 }
 0x409   :  { %1568 = vmatprep.subr.bf16.mxu0 %v13844_v57  ;;  %12734 = vmatpush3.msra.mxu1 %v15294_v19 }
 0x40a   :  { %12735 = vmatprep.subr.mxu1 %v15300_v20 }
 0x40b   :  { %12736 = vmatpush3.msra.mxu1 %v15306_v21 }
 0x40c   :  { %1569 = vmatpush1.bf16.msra.mxu0 %v13842_v51  ;;  %12737 = vmatprep.subr.mxu1 %v15312_v22 }
 0x40d   :  { %1570 = vmatprep.subr.bf16.mxu0 %v13847_v53  ;;  %12738 = vmatpush3.msra.mxu1 %v15318_v23 }
 0x40e   :  { %12739 = vmatprep.subr.mxu1 %v15324_v24 }
 0x40f   :  { %12740 = vmatpush3.msra.mxu1 %v15330_v25 }
 0x410   :  { %1571 = vmatpush1.bf16.msra.mxu0 %v13845_v15  ;;  %12741 = vmatprep.subr.mxu1 %v15336_v26 }
 0x411   :  { %1572 = vmatprep.subr.bf16.mxu0 %v13850_v55  ;;  %12742 = vmatpush3.msra.mxu1 %v15342_v27 }
 0x412   :  { %12743 = vmatprep.subr.mxu1 %v15348_v28 }
 0x413   :  { %12744 = vmatpush3.msra.mxu1 %v15354_v29 }
 0x414   :  { %1573 = vmatpush1.bf16.msra.mxu0 %v13848_v56  ;;  %12745 = vmatprep.subr.mxu1 %v15360_v30 }
 0x415   :  { %1574 = vmatprep.subr.bf16.mxu0 %v13853_v58  ;;  %12746 = vmatpush3.msra.mxu1 %v15366_v31 }
 0x416   :  { %12747 = vmatprep.subr.mxu1 %v15372_v32 }
 0x417   :  { %12748 = vmatpush3.msra.mxu1 %v15378_v33 }
 0x418   :  { %1575 = vmatpush1.bf16.msra.mxu0 %v13851_v17  ;;  %12749 = vmatprep.subr.mxu1 %v15384_v34 }
 0x419   :  { %1576 = vmatprep.subr.bf16.mxu0 %v13856_v61  ;;  %12750 = vmatpush3.msra.mxu1 %v15390_v37 }
 0x41a   :  { %12751 = vmatprep.subr.mxu1 %v15396_v38 }
 0x41b   :  { %12752 = vmatpush3.msra.mxu1 %v15402_v39 }
 0x41c   :  { %1577 = vmatpush1.bf16.msra.mxu0 %v13854_v62  ;;  %12753 = vmatprep.subr.mxu1 %v15409_v41 }
 0x41d   :  { %1578 = vmatprep.subr.bf16.mxu0 %v13859_v1  ;;  %12754 = vmatpush3.msra.mxu1 %v15415_v43 }
 0x41e   :  { %12755 = vmatprep.subr.mxu1 %v15422_v45 }
 0x41f   :  { %12756 = vmatpush3.msra.mxu1 %v15428_v48 }
 0x420   :  { %1579 = vmatpush1.bf16.msra.mxu0 %v13857_v13  ;;  %12757 = vmatprep.subr.mxu1 %v15434_v49 }
 0x421   :  { %12758 = vmatpush3.msra.mxu1 %v15506_v2 }
 0x422   :  { %12759 = vmatprep.subr.mxu1 %v15512_v4 }
 0x423   :  { %11941 = vmatmul.mubr.msk.bf16.vlgmr.msra.gmra.mxu0 %vm243_vm1, %v15195_v35  ;;  %12760 = vmatpush3.msra.mxu1 %v15518_v6 }
 0x424   :  { %12761 = vmatprep.subr.mxu1 %v15524_v9  ;;  %1758 = vmatprep.mubr.bf16.mxu0 %v17983_v0 }
 0x425   :  { %12762 = vmatpush3.msra.mxu1 %v15530_v10 }
 0x426   :  { %12763 = vmatprep.subr.mxu1 %v15536_v11 }
 0x427   :  { %12764 = vmatpush3.msra.mxu1 %v15542_v12 }
 0x4bf   :  { %v1332_v44 = vpop.f32.mrf.mxu0  ;;  %v1373_v18 = vpop.f32.mrf.mxu1 }
 0x4c0   :  { %v15612_v36 = vadd.f32 %v1332_v44, %v15545_v47  ;;  %v15615_v40 = vadd.f32 %v1373_v18, %v15555_v42 }
 0x4c1   :  { %v1334_v46 = vpop.f32.mrf.mxu0  ;;  %v15617_v57 = vpop.f32.mrf.mxu1 }
 0x4c2   :  { %v15620_v51 = vadd.f32 %v1334_v46, %v15549_v52  ;;  %v1481_v46 = vld [vmem:[#allocation4 + $0x6] sm:$0x3] }
 0x4c3   :  { %v1336_v53 = vpop.f32.mrf.mxu0  ;;  %v1377_v15 = vpop.f32.mrf.mxu1 }
 0x4c4   :  { %v1486_v53 = vrot.slane %v1481_v46, %v15284_v7  ;;  %v1490_v15 = vrot.slane %v1481_v46, %v15287_v8 }
 0x4c5   :  { %v1337_v55 = vpop.f32.mrf.mxu0  ;;  %v1378_v56 = vpop.f32.mrf.mxu1 }
 0x4c7   :  { %v1414_v58 = vpop.f32.mrf.mxu0  ;;  %v1455_v17 = vpop.f32.mrf.mxu1 }
 0x4c8   :  { %v15623_v61 = vadd.f32 %v1414_v58, %v15551_v60  ;;  %v15626_v47 = vadd.f32 %v1455_v17, %v15559_v54 }
 0x4c9   :  { %v1416_v42 = vpop.f32.mrf.mxu0  ;;  %v13598_v62 = vpop.f32.mrf.mxu1 }
 0x4ca   :  { %v15629_v1 = vadd.f32 %v1416_v42, %v15553_v63  ;;  %v13862_v63 = vld [vmem:[#allocation7 + $0xac] ss:$28 sps:$4 sm:$0xff]   ;;  %v13865_v42 = vld [vmem:[#allocation7 + $0xb4] ss:$28 sps:$4 sm:$0xff]  }
 0x4cb   :  { %v1418_v13 = vpop.f32.mrf.mxu0  ;;  %v1458_v52 = vpop.f32.mrf.mxu1  ;;  %1740 = vmatprep.subr.bf16.mxu0 %v13862_v63  ;;  %1781 = vmatprep.subr.bf16.mxu1 %v13865_v42  ;;  %v13874_v42 = vld [vmem:[#allocation2 + $0x7f4] ss:$200 sps:$4 sm:$0xff]  }
 0x4cc   :  { %v13860_v13 = vld [vmem:[#allocation7 + $0xa8] ss:$28 sps:$4 sm:$0xff]   ;;  %v13863_v52 = vld [vmem:[#allocation7 + $0xb0] ss:$28 sps:$4 sm:$0xff]  }
 0x4cd   :  { %v1419_v44 = vpop.f32.mrf.mxu0  ;;  %v13599_v18 = vpop.f32.mrf.mxu1  ;;  %1741 = vmatpush1.bf16.msra.mxu0 %v13860_v13  ;;  %v13872_v13 = vld [vmem:[#allocation2 + $0x7f0] ss:$200 sps:$4 sm:$0xff]  }
 0x4ce   :  { %v13868_v44 = vld [vmem:[#allocation7 + $0xbc] ss:$28 sps:$4 sm:$0xff]   ;;  %v17990_v18 = vmov 0.0  }
 0x4cf   :  { %1822 = vmatprep.subr.bf16.mxu0 %v13868_v44  ;;  %v13875_v44 = vld [vmem:[#allocation2 + $0x660] ss:$200 sps:$4 sm:$0xff]  }
 0x4e3   :  { %v1598_v55 = vpop.f32.mrf.mxu0 }
 0x4e4   :  { %v1599_v60 = vadd.f32 %v1598_v55, %v1486_v53 }
 0x4e5   :  { %v1600_v56 = vpop.f32.mrf.mxu0 }
 0x4e6   :  { %v1601_v58 = vadd.f32 %v1600_v56, %v1490_v15  ;;  %v1605_v14 = vmax.f32 %v1599_v60, 0.0  ;;  %v1908_v60 = vld [vmem:[#allocation2 + $0x980] sm:$0x11]  ;;  %v13866_v56 = vld [vmem:[#allocation7 + $0xb8] ss:$28 sps:$4 sm:$0xff]  }
 0x4e7   :  { %v1602_v54 = vpop.f32.mrf.mxu0 }
 0x4e8   :  { %v1606_v17 = vmax.f32 %v1601_v58, 0.0  ;;  %v13869_v58 = vld [vmem:[#allocation7 + $0xc0] ss:$28 sps:$4 sm:$0xff]  }
 0x4e9   :  { %v1603_v62 = vpop.f32.mrf.mxu0 }
 0x4ea   :  { %1671 = vmatprep.mubr.f32.mxu1 %v1606_v17  ;;  %v11966_v17 = vcombine.high %v1908_v60, %v1908_v60  ;;  %v11965_v62 = vcombine.low %v1908_v60, %v1908_v60 }
 0x4eb   :  { %1672 = vmatmul.mubr.f32.vlgmr.msra.gmra.mxu1 %v1605_v14 }
 0x4ec   :  { %1799 = vmatprep.mubr.bf16.mxu1 %v17983_v0  ;;  %1782 = vmatpush1.bf16.msra.mxu1 %v13863_v52  ;;  %v1987_v63 = vsel %vm247_vm0, %v11965_v62, 0  ;;  %v13877_v52 = vld [vmem:[#allocation2 + $0x664] ss:$200 sps:$4 sm:$0xff]  }
 0x4ed   :  { %13600 = vmatprep.subr.bf16.mxu1 %v17990_v18 }
 0x5ab   :  { %v12765_v46 = vpop.f32.mrf.mxu1 }
 0x5ad   :  { %v12766_v53 = vpop.f32.mrf.mxu1 }
 0x5ae   :  { %v12767_v15 = vadd.f32 %v12766_v53, %v12765_v46  ;;  %v13880_v46 = vld [vmem:[#allocation2 + $0x4d4] ss:$200 sps:$4 sm:$0xff]   ;;  %v13878_v53 = vld [vmem:[#allocation2 + $0x4d0] ss:$200 sps:$4 sm:$0xff]  }
 0x5b0   :  { %v1674_v55 = vadd.f32 %v12767_v15, %v15445_v3 }
 0x5b2   :  { %v1677_v14 = vmax.f32 %v1674_v55, 0.0  ;;  %v1909_v55 = vld [vmem:[#allocation4 + $0x8] sm:$0x3] }
 0x5b3   :  { %v1918_v60 = vrot.slane %v1909_v55, %v15287_v8 }
 0x5b4   :  { %v1678_v54 = vpack.c.bf16 %v1677_v14, %v1677_v14  ;;  %v1914_v14 = vrot.slane %v1909_v55, %v15284_v7  ;;  %v15762_v55 = vld [vmem:[%s17972_s3 + $0xd8] sm:$0xff] }
 0x5b6   :  { %11949 = vmatmul.mubr.msk.bf16.vlgmr.msra.gmra.mxu0 %vm671_vm2, %v1678_v54  ;;  %11950 = vmatmul.mubr.msk.bf16.vlgmr.msra.gmra.mxu1 %vm671_vm2, %v1678_v54 }
 0x5b7   :  { %1823 = vmatpush1.bf16.msra.mxu0 %v13866_v56  ;;  %13601 = vmatpush3.bf16.msra.mxu1 %v13869_v58 }
 0x5b8   :  { %1840 = vmatprep.mubr.bf16.mxu0 %v17983_v0  ;;  %13602 = vmatprep.mubr.msk.bf16.mxu1 %vm15056_vm3, %v17990_v18 }
 0x5b9   :  { %11967 = vmatprep.subr.msk.bf16.mxu0 %vm247_vm0, %v11966_v17  ;;  %12770 = vmatprep.subr.mxu1 %v15472_v59 }
 0x5be   :  { %11951 = vmatmul.mubr.msk.bf16.vlgmr.msra.gmra.mxu0 %vm671_vm2, %v1678_v54  ;;  %13603 = vmatmul.mubr.msk.bf16.vlgmr.msra.gmra.mxu1 %vm671_vm2, %v1678_v54 }
 0x5bf   :  { %1995 = vmatpush1.bf16.msra.mxu0 %v1987_v63  ;;  %2024 = vmatprep.mubr.bf16.mxu0 %v17983_v0 }
 0x5c0   :  { %1996 = vmatprep.subr.bf16.mxu0 %v13874_v42  ;;  %12771 = vmatpush3.msra.mxu1 %v15294_v19  ;;  %v13883_v19 = vld [vmem:[#allocation2 + $0x344] ss:$200 sps:$4 sm:$0xff]  }
 0x5c1   :  { %12772 = vmatprep.subr.mxu1 %v15300_v20  ;;  %v13881_v20 = vld [vmem:[#allocation2 + $0x340] ss:$200 sps:$4 sm:$0xff]  }
 0x5c2   :  { %12773 = vmatpush3.msra.mxu1 %v15306_v21  ;;  %v13886_v21 = vld [vmem:[#allocation2 + $0x1b4] ss:$200 sps:$4 sm:$0xff]   ;;  %v13895_v42 = vld [vmem:[#allocation7 + $0xec] ss:$28 sps:$4 sm:$0xff]  }
 0x5c3   :  { %1997 = vmatpush1.bf16.msra.mxu0 %v13872_v13  ;;  %12774 = vmatprep.subr.mxu1 %v15312_v22  ;;  %v13884_v22 = vld [vmem:[#allocation2 + $0x1b0] ss:$200 sps:$4 sm:$0xff]  }
 0x5c4   :  { %1998 = vmatprep.subr.bf16.mxu0 %v13877_v52  ;;  %12775 = vmatpush3.msra.mxu1 %v15318_v23  ;;  %v13889_v23 = vld [vmem:[#allocation2 + $0x24] ss:$200 sps:$4 sm:$0xff]   ;;  %v13890_v13 = vld [vmem:[#allocation7 + $0xe0] ss:$28 sps:$4 sm:$0xff]  }
 0x5c5   :  { %12776 = vmatprep.subr.mxu1 %v15324_v24  ;;  %v13887_v24 = vld [vmem:[#allocation2 + $0x20] ss:$200 sps:$4 sm:$0xff]  }
 0x5c6   :  { %12777 = vmatpush3.msra.mxu1 %v15330_v25  ;;  %v13893_v52 = vld [vmem:[#allocation7 + $0xe8] ss:$28 sps:$4 sm:$0xff]  }
 0x5c7   :  { %1999 = vmatpush1.bf16.msra.mxu0 %v13875_v44  ;;  %12778 = vmatprep.subr.mxu1 %v15336_v26  ;;  %v13898_v44 = vld [vmem:[#allocation7 + $0xf4] ss:$28 sps:$4 sm:$0xff]  }
 0x5c8   :  { %2000 = vmatprep.subr.bf16.mxu0 %v13880_v46  ;;  %12779 = vmatpush3.msra.mxu1 %v15342_v27 }
 0x5c9   :  { %12780 = vmatprep.subr.mxu1 %v15348_v28 }
 0x5ca   :  { %12781 = vmatpush3.msra.mxu1 %v15354_v29 }
 0x5cb   :  { %2001 = vmatpush1.bf16.msra.mxu0 %v13878_v53  ;;  %12782 = vmatprep.subr.mxu1 %v15360_v30 }
 0x5cc   :  { %2002 = vmatprep.subr.bf16.mxu0 %v13883_v19  ;;  %12783 = vmatpush3.msra.mxu1 %v15366_v31 }
 0x5cd   :  { %12784 = vmatprep.subr.mxu1 %v15372_v32 }
 0x5ce   :  { %12785 = vmatpush3.msra.mxu1 %v15378_v33 }
 0x5cf   :  { %2003 = vmatpush1.bf16.msra.mxu0 %v13881_v20  ;;  %12786 = vmatprep.subr.mxu1 %v15384_v34 }
 0x5d0   :  { %2004 = vmatprep.subr.bf16.mxu0 %v13886_v21  ;;  %12787 = vmatpush3.msra.mxu1 %v15390_v37 }
 0x5d1   :  { %12788 = vmatprep.subr.mxu1 %v15396_v38 }
 0x5d2   :  { %12789 = vmatpush3.msra.mxu1 %v15402_v39 }
 0x5d3   :  { %2005 = vmatpush1.bf16.msra.mxu0 %v13884_v22  ;;  %12790 = vmatprep.subr.mxu1 %v15409_v41  ;;  %v2336_v22 = vld [vmem:[#allocation2 + $0x988] sm:$0x11] }
 0x5d4   :  { %2006 = vmatprep.subr.bf16.mxu0 %v13889_v23  ;;  %12791 = vmatpush3.msra.mxu1 %v15415_v43  ;;  %v13896_v23 = vld [vmem:[#allocation7 + $0xf0] ss:$28 sps:$4 sm:$0xff]  }
 0x5d5   :  { %12792 = vmatprep.subr.mxu1 %v15422_v45 }
 0x5d6   :  { %12793 = vmatpush3.msra.mxu1 %v15428_v48 }
 0x5d7   :  { %2007 = vmatpush1.bf16.msra.mxu0 %v13887_v24  ;;  %12794 = vmatprep.subr.mxu1 %v15434_v49  ;;  %v13899_v24 = vld [vmem:[#allocation7 + $0xf8] ss:$28 sps:$4 sm:$0xff]  }
 0x5d8   :  { %12795 = vmatpush3.msra.mxu1 %v15506_v2 }
 0x5d9   :  { %12796 = vmatprep.subr.mxu1 %v15512_v4 }
 0x5da   :  { %11968 = vmatmul.mubr.msk.bf16.vlgmr.msra.gmra.mxu0 %vm243_vm1, %v15195_v35  ;;  %12797 = vmatpush3.msra.mxu1 %v15518_v6 }
 0x5db   :  { %12798 = vmatprep.subr.mxu1 %v15524_v9  ;;  %2186 = vmatprep.mubr.bf16.mxu0 %v17983_v0 }
 0x5dc   :  { %12799 = vmatpush3.msra.mxu1 %v15530_v10 }
 0x5dd   :  { %12800 = vmatprep.subr.mxu1 %v15536_v11 }
 0x5de   :  { %12801 = vmatpush3.msra.mxu1 %v15542_v12 }
 0x5df   :  { %2209 = vmatprep.subr.bf16.mxu1 %v13895_v42  ;;  %v15810_v42 = vld [vmem:[%s17972_s3 + $0xb8] sm:$0xff] }
 0x676   :  { %v1760_v25 = vpop.f32.mrf.mxu0  ;;  %v1801_v26 = vpop.f32.mrf.mxu1 }
 0x677   :  { %v15682_v27 = vadd.f32 %v1760_v25, %v15612_v36  ;;  %v15685_v28 = vadd.f32 %v1801_v26, %v15615_v40  ;;  %v11993_v26 = vcombine.high %v2336_v22, %v2336_v22 }
 0x678   :  { %v1762_v29 = vpop.f32.mrf.mxu0  ;;  %v15687_v30 = vpop.f32.mrf.mxu1 }
 0x679   :  { %17991 = vst [vmem:[#allocation22_spill] sm:$0xff] %v15687_v30  ;;  %v15690_v31 = vadd.f32 %v1762_v29, %v15620_v51  ;;  %v11992_v29 = vcombine.low %v2336_v22, %v2336_v22  ;;  %v15852_v22 = vld [vmem:[%s17972_s3 + $0x20] sm:$0xff] }
 0x67a   :  { %v1764_v32 = vpop.f32.mrf.mxu0  ;;  %v1805_v33 = vpop.f32.mrf.mxu1 }
 0x67b   :  { %v13904_v32 = vld [vmem:[#allocation2 + $0x7fc] ss:$200 sps:$4 sm:$0xff]   ;;  %v13902_v33 = vld [vmem:[#allocation2 + $0x7f8] ss:$200 sps:$4 sm:$0xff]  }
 0x67c   :  { %v1765_v34 = vpop.f32.mrf.mxu0  ;;  %v1806_v37 = vpop.f32.mrf.mxu1 }
 0x67d   :  { %v13907_v34 = vld [vmem:[#allocation2 + $0x66c] ss:$200 sps:$4 sm:$0xff]   ;;  %v15720_v37 = vld [vmem:[%s17972_s3 + $0x78] sm:$0xff] }
 0x67e   :  { %v1842_v38 = vpop.f32.mrf.mxu0  ;;  %v1883_v39 = vpop.f32.mrf.mxu1 }
 0x67f   :  { %v15693_v41 = vadd.f32 %v1842_v38, %v15623_v61  ;;  %v15696_v43 = vadd.f32 %v1883_v39, %v15626_v47  ;;  %v15732_v38 = vld [vmem:[%s17972_s3 + $0x70] sm:$0xff] }
 0x680   :  { %v1844_v45 = vpop.f32.mrf.mxu0  ;;  %v13604_v48 = vpop.f32.mrf.mxu1  ;;  %v13905_v39 = vld [vmem:[#allocation2 + $0x668] ss:$200 sps:$4 sm:$0xff]  }
 0x681   :  { %v15699_v49 = vadd.f32 %v1844_v45, %v15629_v1  ;;  %v13892_v1 = vld [vmem:[#allocation7 + $0xe4] ss:$28 sps:$4 sm:$0xff]   ;;  %v15738_v45 = vld [vmem:[%s17972_s3 + $0xe8] sm:$0xff] }
 0x682   :  { %v1846_v36 = vpop.f32.mrf.mxu0  ;;  %v1886_v40 = vpop.f32.mrf.mxu1  ;;  %2168 = vmatprep.subr.bf16.mxu0 %v13892_v1  ;;  %v13910_v48 = vld [vmem:[#allocation2 + $0x4dc] ss:$200 sps:$4 sm:$0xff]   ;;  %v13914_v1 = vld [vmem:[#allocation2 + $0x1b8] ss:$200 sps:$4 sm:$0xff]  }
 0x683   :  { %2169 = vmatpush1.bf16.msra.mxu0 %v13890_v13  ;;  %v15744_v36 = vld [vmem:[%s17972_s3 + $0x68] sm:$0xff]  ;;  %v15750_v40 = vld [vmem:[%s17972_s3 + $0xe0] sm:$0xff] }
 0x684   :  { %v1847_v51 = vpop.f32.mrf.mxu0  ;;  %v13605_v15 = vpop.f32.mrf.mxu1  ;;  %2250 = vmatprep.subr.bf16.mxu0 %v13898_v44  ;;  %v13919_v13 = vld [vmem:[#allocation2 + $0x2c] ss:$200 sps:$4 sm:$0xff]  }
 0x685   :  { %v15756_v51 = vld [vmem:[%s17972_s3 + $0x60] sm:$0xff]  ;;  %v15822_v44 = vld [vmem:[%s17972_s3 + $0xb0] sm:$0xff] }
 0x686   :  { %v13908_v15 = vld [vmem:[#allocation2 + $0x4d8] ss:$200 sps:$4 sm:$0xff]  }
 0x69a   :  { %v2026_v56 = vpop.f32.mrf.mxu0 }
 0x69b   :  { %v2027_v61 = vadd.f32 %v2026_v56, %v1914_v14  ;;  %v13913_v14 = vld [vmem:[#allocation2 + $0x34c] ss:$200 sps:$4 sm:$0xff]  }
 0x69c   :  { %v2028_v58 = vpop.f32.mrf.mxu0  ;;  %v15774_v56 = vld [vmem:[%s17972_s3 + $0xd0] sm:$0xff] }
 0x69d   :  { %v2029_v54 = vadd.f32 %v2028_v58, %v1918_v60  ;;  %v2033_v62 = vmax.f32 %v2027_v61, 0.0  ;;  %v15768_v60 = vld [vmem:[%s17972_s3 + $0x58] sm:$0xff]  ;;  %v15780_v61 = vld [vmem:[%s17972_s3 + $0x50] sm:$0xff] }
 0x69e   :  { %v2030_v47 = vpop.f32.mrf.mxu0  ;;  %v13911_v58 = vld [vmem:[#allocation2 + $0x348] ss:$200 sps:$4 sm:$0xff]  }
 0x69f   :  { %v2034_v17 = vmax.f32 %v2029_v54, 0.0  ;;  %v15786_v54 = vld [vmem:[%s17972_s3 + $0xc8] sm:$0xff]  ;;  %v13916_v47 = vld [vmem:[#allocation2 + $0x1bc] ss:$200 sps:$4 sm:$0xff]  }
 0x6a0   :  { %v2031_v63 = vpop.f32.mrf.mxu0 }
 0x6a1   :  { %2099 = vmatprep.mubr.f32.mxu1 %v2034_v17  ;;  %v15792_v17 = vld [vmem:[%s17972_s3 + $0x48] sm:$0xff]  ;;  %v15804_v63 = vld [vmem:[%s17972_s3 + $0x40] sm:$0xff] }
 0x6a2   :  { %2100 = vmatmul.mubr.f32.vlgmr.msra.gmra.mxu1 %v2033_v62  ;;  %v15798_v62 = vld [vmem:[%s17972_s3 + $0xc0] sm:$0xff] }
 0x6a3   :  { %2227 = vmatprep.mubr.bf16.mxu1 %v17983_v0  ;;  %2210 = vmatpush1.bf16.msra.mxu1 %v13893_v52  ;;  %v15816_v52 = vld [vmem:[%s17972_s3 + $0x38] sm:$0xff] }
 0x6a4   :  { %13606 = vmatprep.subr.bf16.mxu1 %v17990_v18 }
 0x762   :  { %v12802_v46 = vpop.f32.mrf.mxu1 }
 0x764   :  { %v12803_v53 = vpop.f32.mrf.mxu1 }
 0x765   :  { %v12804_v19 = vadd.f32 %v12803_v53, %v12802_v46  ;;  %v15828_v46 = vld [vmem:[%s17972_s3 + $0x30] sm:$0xff] }
 0x766   :  { %v13917_v53 = vld [vmem:[#allocation2 + $0x28] ss:$200 sps:$4 sm:$0xff]  }
 0x767   :  { %v2102_v20 = vadd.f32 %v12804_v19, %v15445_v3  ;;  %v2415_v3 = vsel %vm247_vm0, %v11992_v29, 0  ;;  %v15834_v19 = vld [vmem:[%s17972_s3 + $0xa8] sm:$0xff] }
 0x769   :  { %v2105_v21 = vmax.f32 %v2102_v20, 0.0  ;;  %v15840_v20 = vld [vmem:[%s17972_s3 + $0x28] sm:$0xff] }
 0x76b   :  { %v2106_v25 = vpack.c.bf16 %v2105_v21, %v2105_v21  ;;  %v15846_v21 = vld [vmem:[%s17972_s3 + $0xa0] sm:$0xff] }
 0x76d   :  { %11976 = vmatmul.mubr.msk.bf16.vlgmr.msra.gmra.mxu0 %vm671_vm2, %v2106_v25  ;;  %11977 = vmatmul.mubr.msk.bf16.vlgmr.msra.gmra.mxu1 %vm671_vm2, %v2106_v25 }
 0x76e   :  { %2251 = vmatpush1.bf16.msra.mxu0 %v13896_v23  ;;  %13607 = vmatpush3.bf16.msra.mxu1 %v13899_v24  ;;  %v15858_v23 = vld [vmem:[%s17972_s3 + $0x98] sm:$0xff] }
 0x76f   :  { %2268 = vmatprep.mubr.bf16.mxu0 %v17983_v0  ;;  %13608 = vmatprep.mubr.msk.bf16.mxu1 %vm15056_vm3, %v17990_v18 }
 0x770   :  { %11994 = vmatprep.subr.msk.bf16.mxu0 %vm247_vm0, %v11993_v26  ;;  %12807 = vmatprep.subr.mxu1 %v15472_v59  ;;  %v15726_v59 = vld [vmem:[%s17972_s3 + $0xf0] sm:$0xff] }
 0x775   :  { %11978 = vmatmul.mubr.msk.bf16.vlgmr.msra.gmra.mxu0 %vm671_vm2, %v2106_v25  ;;  %13609 = vmatmul.mubr.msk.bf16.vlgmr.msra.gmra.mxu1 %vm671_vm2, %v2106_v25 }
 0x776   :  { %2423 = vmatpush1.bf16.msra.mxu0 %v2415_v3  ;;  %2452 = vmatprep.mubr.bf16.mxu0 %v17983_v0 }
 0x777   :  { %2424 = vmatprep.subr.bf16.mxu0 %v13904_v32  ;;  %12808 = vmatpush3.msra.mxu1 %v15720_v37 }
 0x778   :  { %12809 = vmatprep.subr.mxu1 %v15726_v59 }
 0x779   :  { %12810 = vmatpush3.msra.mxu1 %v15732_v38 }
 0x77a   :  { %2425 = vmatpush1.bf16.msra.mxu0 %v13902_v33  ;;  %12811 = vmatprep.subr.mxu1 %v15738_v45 }
 0x77b   :  { %2426 = vmatprep.subr.bf16.mxu0 %v13907_v34  ;;  %12812 = vmatpush3.msra.mxu1 %v15744_v36 }
 0x77c   :  { %12813 = vmatprep.subr.mxu1 %v15750_v40 }
 0x77d   :  { %12814 = vmatpush3.msra.mxu1 %v15756_v51 }
 0x77e   :  { %2427 = vmatpush1.bf16.msra.mxu0 %v13905_v39  ;;  %12815 = vmatprep.subr.mxu1 %v15762_v55 }
 0x77f   :  { %2428 = vmatprep.subr.bf16.mxu0 %v13910_v48  ;;  %12816 = vmatpush3.msra.mxu1 %v15768_v60 }
 0x780   :  { %12817 = vmatprep.subr.mxu1 %v15774_v56 }
 0x781   :  { %12818 = vmatpush3.msra.mxu1 %v15780_v61 }
 0x782   :  { %2429 = vmatpush1.bf16.msra.mxu0 %v13908_v15  ;;  %12819 = vmatprep.subr.mxu1 %v15786_v54 }
 0x783   :  { %2430 = vmatprep.subr.bf16.mxu0 %v13913_v14  ;;  %12820 = vmatpush3.msra.mxu1 %v15792_v17 }
 0x784   :  { %12821 = vmatprep.subr.mxu1 %v15798_v62 }
 0x785   :  { %12822 = vmatpush3.msra.mxu1 %v15804_v63 }
 0x786   :  { %2431 = vmatpush1.bf16.msra.mxu0 %v13911_v58  ;;  %12823 = vmatprep.subr.mxu1 %v15810_v42  ;;  %v2337_v58 = vld [vmem:[#allocation4 + $0xa] sm:$0x3] }
 0x787   :  { %2432 = vmatprep.subr.bf16.mxu0 %v13916_v47  ;;  %12824 = vmatpush3.msra.mxu1 %v15816_v52  ;;  %v2342_v47 = vrot.slane %v2337_v58, %v15284_v7 }
 0x788   :  { %12825 = vmatprep.subr.mxu1 %v15822_v44 }
 0x789   :  { %12826 = vmatpush3.msra.mxu1 %v15828_v46 }
 0x78a   :  { %2433 = vmatpush1.bf16.msra.mxu0 %v13914_v1  ;;  %12827 = vmatprep.subr.mxu1 %v15834_v19  ;;  %v2346_v1 = vrot.slane %v2337_v58, %v15287_v8  ;;  %v13926_v58 = vld [vmem:[#allocation7 + $0x128] ss:$28 sps:$4 sm:$0xff]  }
 0x78b   :  { %2434 = vmatprep.subr.bf16.mxu0 %v13919_v13  ;;  %12828 = vmatpush3.msra.mxu1 %v15840_v20 }
 0x78c   :  { %12829 = vmatprep.subr.mxu1 %v15846_v21 }
 0x78d   :  { %12830 = vmatpush3.msra.mxu1 %v15852_v22 }
 0x78e   :  { %2435 = vmatpush1.bf16.msra.mxu0 %v13917_v53  ;;  %12831 = vmatprep.subr.mxu1 %v15858_v23 }
 0x78f   :  { %12832 = vmatpush3.msra.mxu1 %v15506_v2 }
 0x790   :  { %12833 = vmatprep.subr.mxu1 %v15512_v4 }
 0x791   :  { %11995 = vmatmul.mubr.msk.bf16.vlgmr.msra.gmra.mxu0 %vm243_vm1, %v15195_v35  ;;  %12834 = vmatpush3.msra.mxu1 %v15518_v6 }
 0x792   :  { %12835 = vmatprep.subr.mxu1 %v15524_v9  ;;  %2614 = vmatprep.mubr.bf16.mxu0 %v17983_v0 }
 0x793   :  { %12836 = vmatpush3.msra.mxu1 %v15530_v10 }
 0x794   :  { %12837 = vmatprep.subr.mxu1 %v15536_v11 }
 0x795   :  { %12838 = vmatpush3.msra.mxu1 %v15542_v12 }
 0x82d   :  { %v2188_v24 = vpop.f32.mrf.mxu0  ;;  %v2229_v25 = vpop.f32.mrf.mxu1 }
 0x82e   :  { %v15872_v2 = vadd.f32 %v2188_v24, %v15682_v27  ;;  %v15875_v4 = vadd.f32 %v2229_v25, %v15685_v28 }
 0x82f   :  { %v2190_v26 = vpop.f32.mrf.mxu0  ;;  %v15877_v6 = vpop.f32.mrf.mxu1 }
 0x830   :  { %17992 = vst [vmem:[#allocation23_spill] sm:$0xff] %v15877_v6  ;;  %v15880_v9 = vadd.f32 %v2190_v26, %v15690_v31 }
 0x831   :  { %v2192_v29 = vpop.f32.mrf.mxu0  ;;  %v2233_v10 = vpop.f32.mrf.mxu1 }
 0x832   :  { %v13925_v10 = vld [vmem:[#allocation7 + $0x124] ss:$28 sps:$4 sm:$0xff]  }
 0x833   :  { %v2193_v3 = vpop.f32.mrf.mxu0  ;;  %v2234_v11 = vpop.f32.mrf.mxu1  ;;  %2637 = vmatprep.subr.bf16.mxu1 %v13925_v10  ;;  %v13938_v10 = vld [vmem:[#allocation2 + $0x4e0] ss:$200 sps:$4 sm:$0xff]  }
 0x834   :  { %v13920_v3 = vld [vmem:[#allocation7 + $0x118] ss:$28 sps:$4 sm:$0xff]   ;;  %v13923_v11 = vld [vmem:[#allocation7 + $0x120] ss:$28 sps:$4 sm:$0xff]  }
 0x835   :  { %v2270_v32 = vpop.f32.mrf.mxu0  ;;  %v2311_v12 = vpop.f32.mrf.mxu1 }
 0x836   :  { %v15883_v33 = vadd.f32 %v2270_v32, %v15693_v41  ;;  %v15886_v27 = vadd.f32 %v2311_v12, %v15696_v43  ;;  %v13928_v32 = vld [vmem:[#allocation7 + $0x12c] ss:$28 sps:$4 sm:$0xff]  }
 0x837   :  { %v2272_v28 = vpop.f32.mrf.mxu0  ;;  %v13610_v34 = vpop.f32.mrf.mxu1 }
 0x838   :  { %v15889_v39 = vadd.f32 %v2272_v28, %v15699_v49  ;;  %v13922_v49 = vld [vmem:[#allocation7 + $0x11c] ss:$28 sps:$4 sm:$0xff]  }
 0x839   :  { %v2274_v48 = vpop.f32.mrf.mxu0  ;;  %v2314_v31 = vpop.f32.mrf.mxu1  ;;  %2596 = vmatprep.subr.bf16.mxu0 %v13922_v49  ;;  %v13940_v49 = vld [vmem:[#allocation2 + $0x4e4] ss:$200 sps:$4 sm:$0xff]  }
 0x83a   :  { %2597 = vmatpush1.bf16.msra.mxu0 %v13920_v3  ;;  %v15895_v48 = vld [vmem:[#allocation6] ss:$0 sm:$0xff]  ;;  %v13943_v3 = vld [vmem:[#allocation2 + $0x354] ss:$200 sps:$4 sm:$0xff]  }
 0x83b   :  { %v2275_v15 = vpop.f32.mrf.mxu0  ;;  %v13611_v14 = vpop.f32.mrf.mxu1  ;;  %2678 = vmatprep.subr.bf16.mxu0 %v13928_v32  ;;  %v13946_v32 = vld [vmem:[#allocation2 + $0x1c4] ss:$200 sps:$4 sm:$0xff]  }
 0x83c   :  { %v2764_v14 = vld [vmem:[#allocation2 + $0x990] sm:$0x11] }
 0x851   :  { %v2454_v13 = vpop.f32.mrf.mxu0 }
 0x852   :  { %v2455_v41 = vadd.f32 %v2454_v13, %v2342_v47  ;;  %v13929_v47 = vld [vmem:[#allocation7 + $0x130] ss:$28 sps:$4 sm:$0xff]   ;;  %v12020_v13 = vcombine.high %v2764_v14, %v2764_v14 }
 0x853   :  { %v2456_v53 = vpop.f32.mrf.mxu0 }
 0x854   :  { %v2457_v24 = vadd.f32 %v2456_v53, %v2346_v1  ;;  %v2461_v26 = vmax.f32 %v2455_v41, 0.0  ;;  %v12019_v41 = vcombine.low %v2764_v14, %v2764_v14  ;;  %v15907_v53 = vld [vmem:[%s17972_s3 + $0xf8] sm:$0xff]  ;;  %v15955_v14 = vld [vmem:[%s17972_s3 + $0x10] sm:$0xff] }
 0x855   :  { %v2458_v43 = vpop.f32.mrf.mxu0 }
 0x856   :  { %v2462_v25 = vmax.f32 %v2457_v24, 0.0  ;;  %v2843_v24 = vsel %vm247_vm0, %v12019_v41, 0  ;;  %v13934_v43 = vld [vmem:[#allocation2 + $0x804] ss:$200 sps:$4 sm:$0xff]  }
 0x857   :  { %v2459_v29 = vpop.f32.mrf.mxu0 }
 0x858   :  { %2527 = vmatprep.mubr.f32.mxu1 %v2462_v25  ;;  %v13932_v25 = vld [vmem:[#allocation2 + $0x800] ss:$200 sps:$4 sm:$0xff]   ;;  %v13935_v29 = vld [vmem:[#allocation2 + $0x670] ss:$200 sps:$4 sm:$0xff]  }
 0x859   :  { %2528 = vmatmul.mubr.f32.vlgmr.msra.gmra.mxu1 %v2461_v26  ;;  %v13937_v26 = vld [vmem:[#allocation2 + $0x674] ss:$200 sps:$4 sm:$0xff]  }
 0x85a   :  { %2655 = vmatprep.mubr.bf16.mxu1 %v17983_v0  ;;  %2638 = vmatpush1.bf16.msra.mxu1 %v13923_v11  ;;  %v13941_v11 = vld [vmem:[#allocation2 + $0x350] ss:$200 sps:$4 sm:$0xff]  }
 0x85b   :  { %13612 = vmatprep.subr.bf16.mxu1 %v17990_v18 }
 0x919   :  { %v12839_v12 = vpop.f32.mrf.mxu1 }
 0x91b   :  { %v12840_v28 = vpop.f32.mrf.mxu1 }
 0x91c   :  { %v12841_v34 = vadd.f32 %v12840_v28, %v12839_v12  ;;  %v13944_v12 = vld [vmem:[#allocation2 + $0x1c0] ss:$200 sps:$4 sm:$0xff]   ;;  %v13949_v28 = vld [vmem:[#allocation2 + $0x34] ss:$200 sps:$4 sm:$0xff]  }
 0x91e   :  { %v2530_v31 = vadd.f32 %v15895_v48, %v12841_v34  ;;  %v13947_v34 = vld [vmem:[#allocation2 + $0x30] ss:$200 sps:$4 sm:$0xff]  }
 0x920   :  { %v2533_v15 = vmax.f32 %v2530_v31, 0.0  ;;  %v15941_v31 = vld [vmem:[%s17972_s3 + $0x18] sm:$0xff] }
 0x922   :  { %v2534_v1 = vpack.c.bf16 %v2533_v15, %v2533_v15  ;;  %v15947_v15 = vld [vmem:[%s17972_s3 + $0x90] sm:$0xff] }
 0x924   :  { %12003 = vmatmul.mubr.msk.bf16.vlgmr.msra.gmra.mxu0 %vm671_vm2, %v2534_v1  ;;  %12004 = vmatmul.mubr.msk.bf16.vlgmr.msra.gmra.mxu1 %vm671_vm2, %v2534_v1 }
 0x925   :  { %2679 = vmatpush1.bf16.msra.mxu0 %v13926_v58  ;;  %13613 = vmatpush3.bf16.msra.mxu1 %v13929_v47  ;;  %v15961_v58 = vld [vmem:[%s17972_s3 + $0x88] sm:$0xff] }
 0x926   :  { %2696 = vmatprep.mubr.bf16.mxu0 %v17983_v0  ;;  %13614 = vmatprep.mubr.msk.bf16.mxu1 %vm15056_vm3, %v17990_v18  ;;  %v15968_v47 = vld [vmem:[%s17972_s3 + $0x8] sm:$0xff] }
 0x927   :  { %12021 = vmatprep.subr.msk.bf16.mxu0 %vm247_vm0, %v12020_v13  ;;  %12844 = vmatprep.subr.mxu1 %v15907_v53  ;;  %v15980_v13 = vld [vmem:[%s17972_s3] sm:$0xff] }
 0x92c   :  { %12005 = vmatmul.mubr.msk.bf16.vlgmr.msra.gmra.mxu0 %vm671_vm2, %v2534_v1  ;;  %13615 = vmatmul.mubr.msk.bf16.vlgmr.msra.gmra.mxu1 %vm671_vm2, %v2534_v1  ;;  %v15974_v1 = vld [vmem:[%s17972_s3 + $0x80] sm:$0xff] }
 0x92d   :  { %2851 = vmatpush1.bf16.msra.mxu0 %v2843_v24  ;;  %2880 = vmatprep.mubr.bf16.mxu0 %v17983_v0 }
 0x92e   :  { %2852 = vmatprep.subr.bf16.mxu0 %v13934_v43  ;;  %12845 = vmatpush3.msra.mxu1 %v15720_v37 }
 0x92f   :  { %12846 = vmatprep.subr.mxu1 %v15726_v59 }
 0x930   :  { %12847 = vmatpush3.msra.mxu1 %v15732_v38 }
 0x931   :  { %2853 = vmatpush1.bf16.msra.mxu0 %v13932_v25  ;;  %12848 = vmatprep.subr.mxu1 %v15738_v45 }
 0x932   :  { %2854 = vmatprep.subr.bf16.mxu0 %v13937_v26  ;;  %12849 = vmatpush3.msra.mxu1 %v15744_v36 }
 0x933   :  { %12850 = vmatprep.subr.mxu1 %v15750_v40 }
 0x934   :  { %12851 = vmatpush3.msra.mxu1 %v15756_v51 }
 0x935   :  { %2855 = vmatpush1.bf16.msra.mxu0 %v13935_v29  ;;  %12852 = vmatprep.subr.mxu1 %v15762_v55 }
 0x936   :  { %2856 = vmatprep.subr.bf16.mxu0 %v13940_v49  ;;  %12853 = vmatpush3.msra.mxu1 %v15768_v60 }
 0x937   :  { %12854 = vmatprep.subr.mxu1 %v15774_v56 }
 0x938   :  { %12855 = vmatpush3.msra.mxu1 %v15780_v61 }
 0x939   :  { %2857 = vmatpush1.bf16.msra.mxu0 %v13938_v10  ;;  %12856 = vmatprep.subr.mxu1 %v15786_v54 }
 0x93a   :  { %2858 = vmatprep.subr.bf16.mxu0 %v13943_v3  ;;  %12857 = vmatpush3.msra.mxu1 %v15792_v17 }
 0x93b   :  { %12858 = vmatprep.subr.mxu1 %v15798_v62 }
 0x93c   :  { %12859 = vmatpush3.msra.mxu1 %v15804_v63 }
 0x93d   :  { %2859 = vmatpush1.bf16.msra.mxu0 %v13941_v11  ;;  %12860 = vmatprep.subr.mxu1 %v15810_v42 }
 0x93e   :  { %2860 = vmatprep.subr.bf16.mxu0 %v13946_v32  ;;  %12861 = vmatpush3.msra.mxu1 %v15816_v52 }
 0x93f   :  { %12862 = vmatprep.subr.mxu1 %v15822_v44 }
 0x940   :  { %12863 = vmatpush3.msra.mxu1 %v15828_v46 }
 0x941   :  { %2861 = vmatpush1.bf16.msra.mxu0 %v13944_v12  ;;  %12864 = vmatprep.subr.mxu1 %v15834_v19 }
 0x942   :  { %2862 = vmatprep.subr.bf16.mxu0 %v13949_v28  ;;  %12865 = vmatpush3.msra.mxu1 %v15840_v20 }
 0x943   :  { %12866 = vmatprep.subr.mxu1 %v15846_v21 }
 0x944   :  { %12867 = vmatpush3.msra.mxu1 %v15852_v22 }
 0x945   :  { %2863 = vmatpush1.bf16.msra.mxu0 %v13947_v34  ;;  %12868 = vmatprep.subr.mxu1 %v15858_v23 }
 0x946   :  { %12869 = vmatpush3.msra.mxu1 %v15941_v31 }
 0x947   :  { %12870 = vmatprep.subr.mxu1 %v15947_v15 }
 0x948   :  { %12022 = vmatmul.mubr.msk.bf16.vlgmr.msra.gmra.mxu0 %vm243_vm1, %v15195_v35  ;;  %12871 = vmatpush3.msra.mxu1 %v15955_v14 }
 0x949   :  { %12872 = vmatprep.subr.mxu1 %v15961_v58  ;;  %3042 = vmatprep.mubr.bf16.mxu0 %v17983_v0 }
 0x94a   :  { %12873 = vmatpush3.msra.mxu1 %v15968_v47 }
 0x94b   :  { %12874 = vmatprep.subr.mxu1 %v15974_v1 }
 0x94c   :  { %12875 = vmatpush3.msra.mxu1 %v15980_v13 }
 0x9e4   :  { %v2616_v41 = vpop.f32.mrf.mxu0  ;;  %v2657_v24 = vpop.f32.mrf.mxu1 }
 0x9e5   :  { %v15984_v43 = vadd.f32 %v2616_v41, %v15872_v2  ;;  %v15987_v25 = vadd.f32 %v2657_v24, %v15875_v4 }
 0x9e6   :  { %v2618_v26 = vpop.f32.mrf.mxu0  ;;  %v15989_v29 = vpop.f32.mrf.mxu1 }
 0x9e7   :  { %17993 = vst [vmem:[#allocation24_spill] sm:$0xff] %v15989_v29  ;;  %v15992_v49 = vadd.f32 %v2618_v26, %v15880_v9 }
 0x9e8   :  { %v2620_v10 = vpop.f32.mrf.mxu0  ;;  %v2661_v3 = vpop.f32.mrf.mxu1 }
 0x9e9   :  { %v2765_v3 = vld [vmem:[#allocation4 + $0xc] sm:$0x3] }
 0x9ea   :  { %v2621_v11 = vpop.f32.mrf.mxu0  ;;  %v2662_v32 = vpop.f32.mrf.mxu1 }
 0x9eb   :  { %v2770_v11 = vrot.slane %v2765_v3, %v15284_v7  ;;  %v2774_v32 = vrot.slane %v2765_v3, %v15287_v8 }
 0x9ec   :  { %v2698_v12 = vpop.f32.mrf.mxu0  ;;  %v2739_v28 = vpop.f32.mrf.mxu1 }
 0x9ed   :  { %v15995_v34 = vadd.f32 %v2698_v12, %v15883_v33  ;;  %v15998_v2 = vadd.f32 %v2739_v28, %v15886_v27 }
 0x9ee   :  { %v2700_v4 = vpop.f32.mrf.mxu0  ;;  %v13616_v41 = vpop.f32.mrf.mxu1 }
 0x9ef   :  { %v16001_v24 = vadd.f32 %v2700_v4, %v15889_v39  ;;  %v17994_v39 = vmov 0   ;;  %v13955_v4 = vld [vmem:[#allocation7 + $0x15c] ss:$28 sps:$4 sm:$0xff]  }
 0x9f0   :  { %v2702_v0 = vpop.f32.mrf.mxu0  ;;  %v2742_v9 = vpop.f32.mrf.mxu1  ;;  %3065 = vmatprep.subr.bf16.mxu1 %v13955_v4  ;;  %v13964_v4 = vld [vmem:[#allocation2 + $0x80c] ss:$200 sps:$4 sm:$0xff]  }
 0x9f1   :  { %v13952_v0 = vld [vmem:[#allocation7 + $0x154] ss:$28 sps:$4 sm:$0xff]  }
 0x9f2   :  { %v2703_v26 = vpop.f32.mrf.mxu0  ;;  %v13617_v10 = vpop.f32.mrf.mxu1  ;;  %v13950_v9 = vld [vmem:[#allocation7 + $0x150] ss:$28 sps:$4 sm:$0xff]   ;;  %3024 = vmatprep.subr.bf16.mxu0 %v13952_v0 }
 0x9f3   :  { %v13953_v26 = vld [vmem:[#allocation7 + $0x158] ss:$28 sps:$4 sm:$0xff]   ;;  %3025 = vmatpush1.bf16.msra.mxu0 %v13950_v9  ;;  %v13958_v10 = vld [vmem:[#allocation7 + $0x164] ss:$28 sps:$4 sm:$0xff]  }
 0x9f4   :  { %3106 = vmatprep.subr.bf16.mxu0 %v13958_v10  ;;  %v13962_v9 = vld [vmem:[#allocation2 + $0x808] ss:$200 sps:$4 sm:$0xff]   ;;  %v13965_v10 = vld [vmem:[#allocation2 + $0x678] ss:$200 sps:$4 sm:$0xff]  }
 0xa08   :  { %v2882_v5 = vpop.f32.mrf.mxu0 }
 0xa09   :  { %v2883_v33 = vadd.f32 %v2882_v5, %v2770_v11 }
 0xa0a   :  { %v2884_v12 = vpop.f32.mrf.mxu0 }
 0xa0b   :  { %v2885_v29 = vadd.f32 %v2884_v12, %v2774_v32  ;;  %v2889_v6 = vmax.f32 %v2883_v33, 0.0  ;;  %v3192_v32 = vld [vmem:[#allocation2 + $0x998] sm:$0x11]  ;;  %v13959_v12 = vld [vmem:[#allocation7 + $0x168] ss:$28 sps:$4 sm:$0xff]  }
 0xa0c   :  { %v2886_v27 = vpop.f32.mrf.mxu0  ;;  %v13956_v33 = vld [vmem:[#allocation7 + $0x160] ss:$28 sps:$4 sm:$0xff]  }
 0xa0d   :  { %v2890_v28 = vmax.f32 %v2885_v29, 0.0 }
 0xa0e   :  { %v2887_v41 = vpop.f32.mrf.mxu0 }
 0xa0f   :  { %2955 = vmatprep.mubr.f32.mxu1 %v2890_v28  ;;  %v12047_v28 = vcombine.high %v3192_v32, %v3192_v32  ;;  %v12046_v41 = vcombine.low %v3192_v32, %v3192_v32  ;;  %v13974_v32 = vld [vmem:[#allocation2 + $0x1c8] ss:$200 sps:$4 sm:$0xff]  }
 0xa10   :  { %2956 = vmatmul.mubr.f32.vlgmr.msra.gmra.mxu1 %v2889_v6 }
 0xa11   :  { %3083 = vmatprep.mubr.bf16.mxu1 %v17994_v39  ;;  %3066 = vmatpush1.bf16.msra.mxu1 %v13953_v26  ;;  %v3271_v0 = vsel %vm247_vm0, %v12046_v41, 0  ;;  %v13967_v26 = vld [vmem:[#allocation2 + $0x67c] ss:$200 sps:$4 sm:$0xff]  }
 0xa12   :  { %13618 = vmatprep.subr.bf16.mxu1 %v17990_v18 }
 0xad0   :  { %v12876_v5 = vpop.f32.mrf.mxu1 }
 0xad2   :  { %v12877_v29 = vpop.f32.mrf.mxu1 }
 0xad3   :  { %v12878_v3 = vadd.f32 %v12877_v29, %v12876_v5  ;;  %v13970_v5 = vld [vmem:[#allocation2 + $0x4ec] ss:$200 sps:$4 sm:$0xff]   ;;  %v13968_v29 = vld [vmem:[#allocation2 + $0x4e8] ss:$200 sps:$4 sm:$0xff]  }
 0xad5   :  { %v2958_v11 = vadd.f32 %v15895_v48, %v12878_v3  ;;  %v13973_v3 = vld [vmem:[#allocation2 + $0x35c] ss:$200 sps:$4 sm:$0xff]  }
 0xad7   :  { %v2961_v6 = vmax.f32 %v2958_v11, 0.0  ;;  %v13971_v11 = vld [vmem:[#allocation2 + $0x358] ss:$200 sps:$4 sm:$0xff]  }
 0xad9   :  { %v2962_v27 = vpack.c.bf16 %v2961_v6, %v2961_v6  ;;  %v13976_v6 = vld [vmem:[#allocation2 + $0x1cc] ss:$200 sps:$4 sm:$0xff]  }
 0xadb   :  { %12030 = vmatmul.mubr.msk.bf16.vlgmr.msra.gmra.mxu0 %vm671_vm2, %v2962_v27  ;;  %12031 = vmatmul.mubr.msk.bf16.vlgmr.msra.gmra.mxu1 %vm671_vm2, %v2962_v27 }
 0xadc   :  { %3107 = vmatpush1.bf16.msra.mxu0 %v13956_v33  ;;  %13619 = vmatpush3.bf16.msra.mxu1 %v13959_v12  ;;  %v13979_v33 = vld [vmem:[#allocation2 + $0x3c] ss:$200 sps:$4 sm:$0xff]   ;;  %v13977_v12 = vld [vmem:[#allocation2 + $0x38] ss:$200 sps:$4 sm:$0xff]  }
 0xadd   :  { %3124 = vmatprep.mubr.bf16.mxu0 %v17994_v39  ;;  %13620 = vmatprep.mubr.msk.bf16.mxu1 %vm15056_vm3, %v17990_v18 }
 0xade   :  { %12048 = vmatprep.subr.msk.bf16.mxu0 %vm247_vm0, %v12047_v28  ;;  %12881 = vmatprep.subr.mxu1 %v15907_v53 }
 0xae3   :  { %12032 = vmatmul.mubr.msk.bf16.vlgmr.msra.gmra.mxu0 %vm671_vm2, %v2962_v27  ;;  %13621 = vmatmul.mubr.msk.bf16.vlgmr.msra.gmra.mxu1 %vm671_vm2, %v2962_v27 }
 0xae4   :  { %3279 = vmatpush1.bf16.msra.mxu0 %v3271_v0  ;;  %3308 = vmatprep.mubr.bf16.mxu0 %v17994_v39 }
 0xae5   :  { %3280 = vmatprep.subr.bf16.mxu0 %v13964_v4  ;;  %12882 = vmatpush3.msra.mxu1 %v15720_v37 }
 0xae6   :  { %12883 = vmatprep.subr.mxu1 %v15726_v59 }
 0xae7   :  { %12884 = vmatpush3.msra.mxu1 %v15732_v38 }
 0xae8   :  { %3281 = vmatpush1.bf16.msra.mxu0 %v13962_v9  ;;  %12885 = vmatprep.subr.mxu1 %v15738_v45 }
 0xae9   :  { %3282 = vmatprep.subr.bf16.mxu0 %v13967_v26  ;;  %12886 = vmatpush3.msra.mxu1 %v15744_v36 }
 0xaea   :  { %12887 = vmatprep.subr.mxu1 %v15750_v40 }
 0xaeb   :  { %12888 = vmatpush3.msra.mxu1 %v15756_v51 }
 0xaec   :  { %3283 = vmatpush1.bf16.msra.mxu0 %v13965_v10  ;;  %12889 = vmatprep.subr.mxu1 %v15762_v55 }
 0xaed   :  { %3284 = vmatprep.subr.bf16.mxu0 %v13970_v5  ;;  %12890 = vmatpush3.msra.mxu1 %v15768_v60 }
 0xaee   :  { %12891 = vmatprep.subr.mxu1 %v15774_v56 }
 0xaef   :  { %12892 = vmatpush3.msra.mxu1 %v15780_v61 }
 0xaf0   :  { %3285 = vmatpush1.bf16.msra.mxu0 %v13968_v29  ;;  %12893 = vmatprep.subr.mxu1 %v15786_v54 }
 0xaf1   :  { %3286 = vmatprep.subr.bf16.mxu0 %v13973_v3  ;;  %12894 = vmatpush3.msra.mxu1 %v15792_v17 }
 0xaf2   :  { %12895 = vmatprep.subr.mxu1 %v15798_v62 }
 0xaf3   :  { %12896 = vmatpush3.msra.mxu1 %v15804_v63 }
 0xaf4   :  { %3287 = vmatpush1.bf16.msra.mxu0 %v13971_v11  ;;  %12897 = vmatprep.subr.mxu1 %v15810_v42 }
 0xaf5   :  { %3288 = vmatprep.subr.bf16.mxu0 %v13976_v6  ;;  %12898 = vmatpush3.msra.mxu1 %v15816_v52 }
 0xaf6   :  { %12899 = vmatprep.subr.mxu1 %v15822_v44 }
 0xaf7   :  { %12900 = vmatpush3.msra.mxu1 %v15828_v46 }
 0xaf8   :  { %3289 = vmatpush1.bf16.msra.mxu0 %v13974_v32  ;;  %12901 = vmatprep.subr.mxu1 %v15834_v19 }
 0xaf9   :  { %3290 = vmatprep.subr.bf16.mxu0 %v13979_v33  ;;  %12902 = vmatpush3.msra.mxu1 %v15840_v20 }
 0xafa   :  { %12903 = vmatprep.subr.mxu1 %v15846_v21 }
 0xafb   :  { %12904 = vmatpush3.msra.mxu1 %v15852_v22 }
 0xafc   :  { %3291 = vmatpush1.bf16.msra.mxu0 %v13977_v12  ;;  %12905 = vmatprep.subr.mxu1 %v15858_v23 }
 0xafd   :  { %12906 = vmatpush3.msra.mxu1 %v15941_v31 }
 0xafe   :  { %12907 = vmatprep.subr.mxu1 %v15947_v15 }
 0xaff   :  { %12049 = vmatmul.mubr.msk.bf16.vlgmr.msra.gmra.mxu0 %vm243_vm1, %v15195_v35  ;;  %12908 = vmatpush3.msra.mxu1 %v15955_v14 }
 0xb00   :  { %12909 = vmatprep.subr.mxu1 %v15961_v58  ;;  %3470 = vmatprep.mubr.bf16.mxu0 %v17994_v39 }
 0xb01   :  { %12910 = vmatpush3.msra.mxu1 %v15968_v47 }
 0xb02   :  { %12911 = vmatprep.subr.mxu1 %v15974_v1 }
 0xb03   :  { %12912 = vmatpush3.msra.mxu1 %v15980_v13 }
 0xb9b   :  { %v3044_v27 = vpop.f32.mrf.mxu0  ;;  %v3085_v28 = vpop.f32.mrf.mxu1 }
 0xb9c   :  { %v16054_v41 = vadd.f32 %v3044_v27, %v15984_v43  ;;  %v16057_v0 = vadd.f32 %v3085_v28, %v15987_v25 }
 0xb9d   :  { %v3046_v4 = vpop.f32.mrf.mxu0  ;;  %v16059_v9 = vpop.f32.mrf.mxu1 }
 0xb9e   :  { %17995 = vst [vmem:[#allocation25_spill] sm:$0xff] %v16059_v9  ;;  %v16062_v26 = vadd.f32 %v3046_v4, %v15992_v49 }
 0xb9f   :  { %v3048_v10 = vpop.f32.mrf.mxu0  ;;  %v3089_v5 = vpop.f32.mrf.mxu1 }
 0xba0   :  { %v3193_v10 = vld [vmem:[#allocation4 + $0xe] sm:$0x3] }
 0xba1   :  { %v3049_v29 = vpop.f32.mrf.mxu0  ;;  %v3090_v3 = vpop.f32.mrf.mxu1  ;;  %v3198_v5 = vrot.slane %v3193_v10, %v15284_v7 }
 0xba2   :  { %v3202_v29 = vrot.slane %v3193_v10, %v15287_v8 }
 0xba3   :  { %v3126_v11 = vpop.f32.mrf.mxu0  ;;  %v3167_v6 = vpop.f32.mrf.mxu1 }
 0xba4   :  { %v16065_v32 = vadd.f32 %v3126_v11, %v15995_v34  ;;  %v16068_v43 = vadd.f32 %v3167_v6, %v15998_v2 }
 0xba5   :  { %v3128_v25 = vpop.f32.mrf.mxu0  ;;  %v13622_v33 = vpop.f32.mrf.mxu1 }
 0xba6   :  { %v16071_v12 = vadd.f32 %v3128_v25, %v16001_v24  ;;  %v13982_v24 = vld [vmem:[#allocation7 + $0x18c] ss:$28 sps:$4 sm:$0xff]   ;;  %v13985_v25 = vld [vmem:[#allocation7 + $0x194] ss:$28 sps:$4 sm:$0xff]  }
 0xba7   :  { %v3130_v27 = vpop.f32.mrf.mxu0  ;;  %v3170_v49 = vpop.f32.mrf.mxu1  ;;  %3452 = vmatprep.subr.bf16.mxu0 %v13982_v24  ;;  %3493 = vmatprep.subr.bf16.mxu1 %v13985_v25  ;;  %v13994_v24 = vld [vmem:[#allocation2 + $0x814] ss:$200 sps:$4 sm:$0xff]   ;;  %v13992_v25 = vld [vmem:[#allocation2 + $0x810] ss:$200 sps:$4 sm:$0xff]  }
 0xba8   :  { %v13980_v27 = vld [vmem:[#allocation7 + $0x188] ss:$28 sps:$4 sm:$0xff]   ;;  %v13983_v49 = vld [vmem:[#allocation7 + $0x190] ss:$28 sps:$4 sm:$0xff]  }
 0xba9   :  { %v3131_v28 = vpop.f32.mrf.mxu0  ;;  %v13623_v4 = vpop.f32.mrf.mxu1  ;;  %3453 = vmatpush1.bf16.msra.mxu0 %v13980_v27  ;;  %v13997_v27 = vld [vmem:[#allocation2 + $0x684] ss:$200 sps:$4 sm:$0xff]  }
 0xbaa   :  { %v13988_v28 = vld [vmem:[#allocation7 + $0x19c] ss:$28 sps:$4 sm:$0xff]  }
 0xbab   :  { %3534 = vmatprep.subr.bf16.mxu0 %v13988_v28  ;;  %v14000_v28 = vld [vmem:[#allocation2 + $0x4f4] ss:$200 sps:$4 sm:$0xff]  }
 0xbbf   :  { %v3310_v3 = vpop.f32.mrf.mxu0 }
 0xbc0   :  { %v3311_v34 = vadd.f32 %v3310_v3, %v3198_v5  ;;  %v13986_v3 = vld [vmem:[#allocation7 + $0x198] ss:$28 sps:$4 sm:$0xff]  }
 0xbc1   :  { %v3312_v11 = vpop.f32.mrf.mxu0 }
 0xbc2   :  { %v3313_v9 = vadd.f32 %v3312_v11, %v3202_v29  ;;  %v3317_v30 = vmax.f32 %v3311_v34, 0.0  ;;  %v3620_v29 = vld [vmem:[#allocation2 + $0x9a0] sm:$0x11]  ;;  %v13989_v34 = vld [vmem:[#allocation7 + $0x1a0] ss:$28 sps:$4 sm:$0xff]  }
 0xbc3   :  { %v3314_v2 = vpop.f32.mrf.mxu0 }
 0xbc4   :  { %v3318_v6 = vmax.f32 %v3313_v9, 0.0  ;;  %v12074_v2 = vcombine.high %v3620_v29, %v3620_v29 }
 0xbc5   :  { %v3315_v33 = vpop.f32.mrf.mxu0 }
 0xbc6   :  { %3383 = vmatprep.mubr.f32.mxu1 %v3318_v6  ;;  %v12073_v6 = vcombine.low %v3620_v29, %v3620_v29 }
 0xbc7   :  { %3384 = vmatmul.mubr.f32.vlgmr.msra.gmra.mxu1 %v3317_v30 }
 0xbc8   :  { %3511 = vmatprep.mubr.bf16.mxu1 %v17994_v39  ;;  %3494 = vmatpush1.bf16.msra.mxu1 %v13983_v49  ;;  %v3699_v33 = vsel %vm247_vm0, %v12073_v6, 0  ;;  %v13995_v49 = vld [vmem:[#allocation2 + $0x680] ss:$200 sps:$4 sm:$0xff]  }
 0xbc9   :  { %13624 = vmatprep.subr.bf16.mxu1 %v17990_v18 }
 0xc87   :  { %v12913_v4 = vpop.f32.mrf.mxu1 }
 0xc89   :  { %v12914_v9 = vpop.f32.mrf.mxu1 }
 0xc8a   :  { %v12915_v10 = vadd.f32 %v12914_v9, %v12913_v4  ;;  %v13998_v4 = vld [vmem:[#allocation2 + $0x4f0] ss:$200 sps:$4 sm:$0xff]  }
 0xc8c   :  { %v3386_v5 = vadd.f32 %v15895_v48, %v12915_v10  ;;  %v3621_v10 = vld [vmem:[#allocation4 + $0x10] sm:$0x3] }
 0xc8e   :  { %v3389_v30 = vmax.f32 %v3386_v5, 0.0  ;;  %v3626_v5 = vrot.slane %v3621_v10, %v15284_v7 }
 0xc90   :  { %v3390_v11 = vpack.c.bf16 %v3389_v30, %v3389_v30  ;;  %v3630_v30 = vrot.slane %v3621_v10, %v15287_v8  ;;  %v14033_v10 = vld [vmem:[#allocation2 + $0x36c] ss:$200 sps:$4 sm:$0xff]  }
 0xc92   :  { %12057 = vmatmul.mubr.msk.bf16.vlgmr.msra.gmra.mxu0 %vm671_vm2, %v3390_v11  ;;  %12058 = vmatmul.mubr.msk.bf16.vlgmr.msra.gmra.mxu1 %vm671_vm2, %v3390_v11 }
 0xc93   :  { %3535 = vmatpush1.bf16.msra.mxu0 %v13986_v3  ;;  %13625 = vmatpush3.bf16.msra.mxu1 %v13989_v34 }
 0xc94   :  { %3552 = vmatprep.mubr.bf16.mxu0 %v17994_v39  ;;  %13626 = vmatprep.mubr.msk.bf16.mxu1 %vm15056_vm3, %v17990_v18 }
 0xc95   :  { %12075 = vmatprep.subr.msk.bf16.mxu0 %vm247_vm0, %v12074_v2  ;;  %12918 = vmatprep.subr.mxu1 %v15907_v53 }
 0xc9a   :  { %12059 = vmatmul.mubr.msk.bf16.vlgmr.msra.gmra.mxu0 %vm671_vm2, %v3390_v11  ;;  %13627 = vmatmul.mubr.msk.bf16.vlgmr.msra.gmra.mxu1 %vm671_vm2, %v3390_v11 }
 0xc9b   :  { %3707 = vmatpush1.bf16.msra.mxu0 %v3699_v33  ;;  %3736 = vmatprep.mubr.bf16.mxu0 %v17994_v39  ;;  %v14015_v33 = vld [vmem:[#allocation7 + $0x1cc] ss:$28 sps:$4 sm:$0xff]  }
 0xc9c   :  { %3708 = vmatprep.subr.bf16.mxu0 %v13994_v24  ;;  %12919 = vmatpush3.msra.mxu1 %v15720_v37  ;;  %v14003_v37 = vld [vmem:[#allocation2 + $0x364] ss:$200 sps:$4 sm:$0xff]   ;;  %v14010_v24 = vld [vmem:[#allocation7 + $0x1c0] ss:$28 sps:$4 sm:$0xff]  }
 0xc9d   :  { %12920 = vmatprep.subr.mxu1 %v15726_v59  ;;  %v14001_v59 = vld [vmem:[#allocation2 + $0x360] ss:$200 sps:$4 sm:$0xff]  }
 0xc9e   :  { %12921 = vmatpush3.msra.mxu1 %v15732_v38  ;;  %v14006_v38 = vld [vmem:[#allocation2 + $0x1d4] ss:$200 sps:$4 sm:$0xff]  }
 0xc9f   :  { %3709 = vmatpush1.bf16.msra.mxu0 %v13992_v25  ;;  %12922 = vmatprep.subr.mxu1 %v15738_v45  ;;  %v14004_v45 = vld [vmem:[#allocation2 + $0x1d0] ss:$200 sps:$4 sm:$0xff]   ;;  %v14013_v25 = vld [vmem:[#allocation7 + $0x1c8] ss:$28 sps:$4 sm:$0xff]  }
 0xca0   :  { %3710 = vmatprep.subr.bf16.mxu0 %v13997_v27  ;;  %12923 = vmatpush3.msra.mxu1 %v15744_v36  ;;  %v14009_v36 = vld [vmem:[#allocation2 + $0x44] ss:$200 sps:$4 sm:$0xff]  }
 0xca1   :  { %12924 = vmatprep.subr.mxu1 %v15750_v40  ;;  %v14007_v40 = vld [vmem:[#allocation2 + $0x40] ss:$200 sps:$4 sm:$0xff]   ;;  %v14018_v27 = vld [vmem:[#allocation7 + $0x1d4] ss:$28 sps:$4 sm:$0xff]  }
 0xca2   :  { %12925 = vmatpush3.msra.mxu1 %v15756_v51 }
 0xca3   :  { %3711 = vmatpush1.bf16.msra.mxu0 %v13995_v49  ;;  %12926 = vmatprep.subr.mxu1 %v15762_v55 }
 0xca4   :  { %3712 = vmatprep.subr.bf16.mxu0 %v14000_v28  ;;  %12927 = vmatpush3.msra.mxu1 %v15768_v60 }
 0xca5   :  { %12928 = vmatprep.subr.mxu1 %v15774_v56 }
 0xca6   :  { %12929 = vmatpush3.msra.mxu1 %v15780_v61 }
 0xca7   :  { %3713 = vmatpush1.bf16.msra.mxu0 %v13998_v4  ;;  %12930 = vmatprep.subr.mxu1 %v15786_v54 }
 0xca8   :  { %3714 = vmatprep.subr.bf16.mxu0 %v14003_v37  ;;  %12931 = vmatpush3.msra.mxu1 %v15792_v17 }
 0xca9   :  { %12932 = vmatprep.subr.mxu1 %v15798_v62 }
 0xcaa   :  { %12933 = vmatpush3.msra.mxu1 %v15804_v63 }
 0xcab   :  { %3715 = vmatpush1.bf16.msra.mxu0 %v14001_v59  ;;  %12934 = vmatprep.subr.mxu1 %v15810_v42 }
 0xcac   :  { %3716 = vmatprep.subr.bf16.mxu0 %v14006_v38  ;;  %12935 = vmatpush3.msra.mxu1 %v15816_v52  ;;  %v4048_v38 = vld [vmem:[#allocation2 + $0x9a8] sm:$0x11] }
 0xcad   :  { %12936 = vmatprep.subr.mxu1 %v15822_v44 }
 0xcae   :  { %12937 = vmatpush3.msra.mxu1 %v15828_v46 }
 0xcaf   :  { %3717 = vmatpush1.bf16.msra.mxu0 %v14004_v45  ;;  %12938 = vmatprep.subr.mxu1 %v15834_v19  ;;  %v14016_v45 = vld [vmem:[#allocation7 + $0x1d0] ss:$28 sps:$4 sm:$0xff]  }
 0xcb0   :  { %3718 = vmatprep.subr.bf16.mxu0 %v14009_v36  ;;  %12939 = vmatpush3.msra.mxu1 %v15840_v20  ;;  %v14019_v36 = vld [vmem:[#allocation7 + $0x1d8] ss:$28 sps:$4 sm:$0xff]  }
 0xcb1   :  { %12940 = vmatprep.subr.mxu1 %v15846_v21 }
 0xcb2   :  { %12941 = vmatpush3.msra.mxu1 %v15852_v22 }
 0xcb3   :  { %3719 = vmatpush1.bf16.msra.mxu0 %v14007_v40  ;;  %12942 = vmatprep.subr.mxu1 %v15858_v23 }
 0xcb4   :  { %12943 = vmatpush3.msra.mxu1 %v15941_v31 }
 0xcb5   :  { %12944 = vmatprep.subr.mxu1 %v15947_v15 }
 0xcb6   :  { %12076 = vmatmul.mubr.msk.bf16.vlgmr.msra.gmra.mxu0 %vm243_vm1, %v15195_v35  ;;  %12945 = vmatpush3.msra.mxu1 %v15955_v14 }
 0xcb7   :  { %12946 = vmatprep.subr.mxu1 %v15961_v58  ;;  %3898 = vmatprep.mubr.bf16.mxu0 %v17994_v39 }
 0xcb8   :  { %12947 = vmatpush3.msra.mxu1 %v15968_v47 }
 0xcb9   :  { %12948 = vmatprep.subr.mxu1 %v15974_v1 }
 0xcba   :  { %12949 = vmatpush3.msra.mxu1 %v15980_v13 }
 0xcbb   :  { %3921 = vmatprep.subr.bf16.mxu1 %v14015_v33  ;;  %v14039_v33 = vld [vmem:[#allocation2 + $0x4c] ss:$200 sps:$4 sm:$0xff]  }
 0xd52   :  { %v3472_v51 = vpop.f32.mrf.mxu0  ;;  %v3513_v55 = vpop.f32.mrf.mxu1 }
 0xd53   :  { %v16124_v60 = vadd.f32 %v3472_v51, %v16054_v41  ;;  %v16127_v56 = vadd.f32 %v3513_v55, %v16057_v0  ;;  %v12101_v51 = vcombine.high %v4048_v38, %v4048_v38  ;;  %v12100_v55 = vcombine.low %v4048_v38, %v4048_v38  ;;  %v16300_v38 = vld [vmem:[%s17972_s3 + $0x98] sm:$0xff] }
 0xd54   :  { %v3474_v61 = vpop.f32.mrf.mxu0  ;;  %v16129_v54 = vpop.f32.mrf.mxu1 }
 0xd55   :  { %17996 = vst [vmem:[#allocation26_spill] sm:$0xff] %v16129_v54  ;;  %v16132_v17 = vadd.f32 %v3474_v61, %v16062_v26  ;;  %v14024_v61 = vld [vmem:[#allocation2 + $0x81c] ss:$200 sps:$4 sm:$0xff]  }
 0xd56   :  { %v3476_v62 = vpop.f32.mrf.mxu0  ;;  %v3517_v63 = vpop.f32.mrf.mxu1 }
 0xd57   :  { %v14022_v62 = vld [vmem:[#allocation2 + $0x818] ss:$200 sps:$4 sm:$0xff]   ;;  %v14027_v63 = vld [vmem:[#allocation2 + $0x68c] ss:$200 sps:$4 sm:$0xff]  }
 0xd58   :  { %v3477_v42 = vpop.f32.mrf.mxu0  ;;  %v3518_v52 = vpop.f32.mrf.mxu1 }
 0xd59   :  { %v16162_v42 = vld [vmem:[%s17972_s3 + $0x78] sm:$0xff]  ;;  %v16174_v52 = vld [vmem:[%s17972_s3 + $0x70] sm:$0xff] }
 0xd5a   :  { %v3554_v44 = vpop.f32.mrf.mxu0  ;;  %v3595_v46 = vpop.f32.mrf.mxu1 }
 0xd5b   :  { %v16135_v19 = vadd.f32 %v3554_v44, %v16065_v32  ;;  %v16138_v20 = vadd.f32 %v3595_v46, %v16068_v43  ;;  %v14025_v44 = vld [vmem:[#allocation2 + $0x688] ss:$200 sps:$4 sm:$0xff]  }
 0xd5c   :  { %v3556_v21 = vpop.f32.mrf.mxu0  ;;  %v13628_v22 = vpop.f32.mrf.mxu1  ;;  %v16180_v46 = vld [vmem:[%s17972_s3 + $0xe8] sm:$0xff] }
 0xd5d   :  { %v16141_v23 = vadd.f32 %v3556_v21, %v16071_v12  ;;  %v14012_v12 = vld [vmem:[#allocation7 + $0x1c4] ss:$28 sps:$4 sm:$0xff]   ;;  %v16186_v22 = vld [vmem:[%s17972_s3 + $0x68] sm:$0xff] }
 0xd5e   :  { %v3558_v41 = vpop.f32.mrf.mxu0  ;;  %v3598_v0 = vpop.f32.mrf.mxu1  ;;  %3880 = vmatprep.subr.bf16.mxu0 %v14012_v12  ;;  %v14030_v21 = vld [vmem:[#allocation2 + $0x4fc] ss:$200 sps:$4 sm:$0xff]  }
 0xd5f   :  { %3881 = vmatpush1.bf16.msra.mxu0 %v14010_v24  ;;  %v16192_v41 = vld [vmem:[%s17972_s3 + $0xe0] sm:$0xff]  ;;  %v16252_v12 = vld [vmem:[%s17972_s3 + $0xb8] sm:$0xff] }
 0xd60   :  { %v3559_v26 = vpop.f32.mrf.mxu0  ;;  %v13629_v9 = vpop.f32.mrf.mxu1  ;;  %3962 = vmatprep.subr.bf16.mxu0 %v14018_v27  ;;  %v16198_v0 = vld [vmem:[%s17972_s3 + $0x60] sm:$0xff]  ;;  %v16258_v24 = vld [vmem:[%s17972_s3 + $0x38] sm:$0xff]  ;;  %v16270_v27 = vld [vmem:[%s17972_s3 + $0x30] sm:$0xff] }
 0xd61   :  { %v14028_v26 = vld [vmem:[#allocation2 + $0x4f8] ss:$200 sps:$4 sm:$0xff]  }
 0xd62   :  { %v16204_v9 = vld [vmem:[%s17972_s3 + $0xd8] sm:$0xff] }
 0xd76   :  { %v3738_v29 = vpop.f32.mrf.mxu0 }
 0xd77   :  { %v3739_v32 = vadd.f32 %v3738_v29, %v3626_v5  ;;  %v16210_v5 = vld [vmem:[%s17972_s3 + $0x58] sm:$0xff]  ;;  %v16222_v29 = vld [vmem:[%s17972_s3 + $0x50] sm:$0xff] }
 0xd78   :  { %v3740_v3 = vpop.f32.mrf.mxu0 }
 0xd79   :  { %v3741_v34 = vadd.f32 %v3740_v3, %v3630_v30  ;;  %v3745_v2 = vmax.f32 %v3739_v32, 0.0  ;;  %v16216_v30 = vld [vmem:[%s17972_s3 + $0xd0] sm:$0xff]  ;;  %v16228_v3 = vld [vmem:[%s17972_s3 + $0xc8] sm:$0xff] }
 0xd7a   :  { %v3742_v43 = vpop.f32.mrf.mxu0  ;;  %v14031_v32 = vld [vmem:[#allocation2 + $0x368] ss:$200 sps:$4 sm:$0xff]  }
 0xd7b   :  { %v3746_v11 = vmax.f32 %v3741_v34, 0.0  ;;  %v14036_v34 = vld [vmem:[#allocation2 + $0x1dc] ss:$200 sps:$4 sm:$0xff]   ;;  %v16234_v43 = vld [vmem:[%s17972_s3 + $0x48] sm:$0xff] }
 0xd7c   :  { %v3743_v6 = vpop.f32.mrf.mxu0 }
 0xd7d   :  { %3811 = vmatprep.mubr.f32.mxu1 %v3746_v11  ;;  %v16240_v11 = vld [vmem:[%s17972_s3 + $0xc0] sm:$0xff] }
 0xd7e   :  { %3812 = vmatmul.mubr.f32.vlgmr.msra.gmra.mxu1 %v3745_v2  ;;  %v16246_v2 = vld [vmem:[%s17972_s3 + $0x40] sm:$0xff] }
 0xd7f   :  { %3939 = vmatprep.mubr.bf16.mxu1 %v17994_v39  ;;  %3922 = vmatpush1.bf16.msra.mxu1 %v14013_v25  ;;  %v14034_v6 = vld [vmem:[#allocation2 + $0x1d8] ss:$200 sps:$4 sm:$0xff]   ;;  %v16264_v25 = vld [vmem:[%s17972_s3 + $0xb0] sm:$0xff] }
 0xd80   :  { %13630 = vmatprep.subr.bf16.mxu1 %v17990_v18 }
 0xe3e   :  { %v12950_v49 = vpop.f32.mrf.mxu1 }
 0xe40   :  { %v12951_v28 = vpop.f32.mrf.mxu1 }
 0xe41   :  { %v12952_v4 = vadd.f32 %v12951_v28, %v12950_v49  ;;  %v14037_v49 = vld [vmem:[#allocation2 + $0x48] ss:$200 sps:$4 sm:$0xff]  }
 0xe42   :  { %v16276_v28 = vld [vmem:[%s17972_s3 + $0xa8] sm:$0xff] }
 0xe43   :  { %v3814_v37 = vadd.f32 %v15895_v48, %v12952_v4  ;;  %v4127_v48 = vsel %vm247_vm0, %v12100_v55, 0  ;;  %v16282_v4 = vld [vmem:[%s17972_s3 + $0x28] sm:$0xff] }
 0xe45   :  { %v3817_v59 = vmax.f32 %v3814_v37, 0.0  ;;  %v16288_v37 = vld [vmem:[%s17972_s3 + $0xa0] sm:$0xff] }
 0xe47   :  { %v3818_v40 = vpack.c.bf16 %v3817_v59, %v3817_v59  ;;  %v16294_v59 = vld [vmem:[%s17972_s3 + $0x20] sm:$0xff] }
 0xe49   :  { %12084 = vmatmul.mubr.msk.bf16.vlgmr.msra.gmra.mxu0 %vm671_vm2, %v3818_v40  ;;  %12085 = vmatmul.mubr.msk.bf16.vlgmr.msra.gmra.mxu1 %vm671_vm2, %v3818_v40 }
 0xe4a   :  { %3963 = vmatpush1.bf16.msra.mxu0 %v14016_v45  ;;  %13631 = vmatpush3.bf16.msra.mxu1 %v14019_v36 }
 0xe4b   :  { %3980 = vmatprep.mubr.bf16.mxu0 %v17994_v39  ;;  %13632 = vmatprep.mubr.msk.bf16.mxu1 %vm15056_vm3, %v17990_v18 }
 0xe4c   :  { %12102 = vmatprep.subr.msk.bf16.mxu0 %vm247_vm0, %v12101_v51  ;;  %12955 = vmatprep.subr.mxu1 %v15907_v53  ;;  %v16168_v53 = vld [vmem:[%s17972_s3 + $0xf0] sm:$0xff] }
 0xe51   :  { %12086 = vmatmul.mubr.msk.bf16.vlgmr.msra.gmra.mxu0 %vm671_vm2, %v3818_v40  ;;  %13633 = vmatmul.mubr.msk.bf16.vlgmr.msra.gmra.mxu1 %vm671_vm2, %v3818_v40 }
 0xe52   :  { %4135 = vmatpush1.bf16.msra.mxu0 %v4127_v48  ;;  %4164 = vmatprep.mubr.bf16.mxu0 %v17994_v39 }
 0xe53   :  { %4136 = vmatprep.subr.bf16.mxu0 %v14024_v61  ;;  %12956 = vmatpush3.msra.mxu1 %v16162_v42 }
 0xe54   :  { %12957 = vmatprep.subr.mxu1 %v16168_v53 }
 0xe55   :  { %12958 = vmatpush3.msra.mxu1 %v16174_v52 }
 0xe56   :  { %4137 = vmatpush1.bf16.msra.mxu0 %v14022_v62  ;;  %12959 = vmatprep.subr.mxu1 %v16180_v46 }
 0xe57   :  { %4138 = vmatprep.subr.bf16.mxu0 %v14027_v63  ;;  %12960 = vmatpush3.msra.mxu1 %v16186_v22 }
 0xe58   :  { %12961 = vmatprep.subr.mxu1 %v16192_v41 }
 0xe59   :  { %12962 = vmatpush3.msra.mxu1 %v16198_v0 }
 0xe5a   :  { %4139 = vmatpush1.bf16.msra.mxu0 %v14025_v44  ;;  %12963 = vmatprep.subr.mxu1 %v16204_v9 }
 0xe5b   :  { %4140 = vmatprep.subr.bf16.mxu0 %v14030_v21  ;;  %12964 = vmatpush3.msra.mxu1 %v16210_v5 }
 0xe5c   :  { %12965 = vmatprep.subr.mxu1 %v16216_v30 }
 0xe5d   :  { %12966 = vmatpush3.msra.mxu1 %v16222_v29 }
 0xe5e   :  { %4141 = vmatpush1.bf16.msra.mxu0 %v14028_v26  ;;  %12967 = vmatprep.subr.mxu1 %v16228_v3 }
 0xe5f   :  { %4142 = vmatprep.subr.bf16.mxu0 %v14033_v10  ;;  %12968 = vmatpush3.msra.mxu1 %v16234_v43  ;;  %v4049_v10 = vld [vmem:[#allocation4 + $0x12] sm:$0x3] }
 0xe60   :  { %12969 = vmatprep.subr.mxu1 %v16240_v11 }
 0xe61   :  { %12970 = vmatpush3.msra.mxu1 %v16246_v2 }
 0xe62   :  { %4143 = vmatpush1.bf16.msra.mxu0 %v14031_v32  ;;  %12971 = vmatprep.subr.mxu1 %v16252_v12  ;;  %v4054_v32 = vrot.slane %v4049_v10, %v15284_v7 }
 0xe63   :  { %4144 = vmatprep.subr.bf16.mxu0 %v14036_v34  ;;  %12972 = vmatpush3.msra.mxu1 %v16258_v24  ;;  %v4058_v34 = vrot.slane %v4049_v10, %v15287_v8  ;;  %v14049_v10 = vld [vmem:[#allocation7 + $0x210] ss:$28 sps:$4 sm:$0xff]  }
 0xe64   :  { %12973 = vmatprep.subr.mxu1 %v16264_v25 }
 0xe65   :  { %12974 = vmatpush3.msra.mxu1 %v16270_v27 }
 0xe66   :  { %4145 = vmatpush1.bf16.msra.mxu0 %v14034_v6  ;;  %12975 = vmatprep.subr.mxu1 %v16276_v28 }
 0xe67   :  { %4146 = vmatprep.subr.bf16.mxu0 %v14039_v33  ;;  %12976 = vmatpush3.msra.mxu1 %v16282_v4 }
 0xe68   :  { %12977 = vmatprep.subr.mxu1 %v16288_v37 }
 0xe69   :  { %12978 = vmatpush3.msra.mxu1 %v16294_v59 }
 0xe6a   :  { %4147 = vmatpush1.bf16.msra.mxu0 %v14037_v49  ;;  %12979 = vmatprep.subr.mxu1 %v16300_v38 }
 0xe6b   :  { %12980 = vmatpush3.msra.mxu1 %v15941_v31 }
 0xe6c   :  { %12981 = vmatprep.subr.mxu1 %v15947_v15 }
 0xe6d   :  { %12103 = vmatmul.mubr.msk.bf16.vlgmr.msra.gmra.mxu0 %vm243_vm1, %v15195_v35  ;;  %12982 = vmatpush3.msra.mxu1 %v15955_v14 }
 0xe6e   :  { %12983 = vmatprep.subr.mxu1 %v15961_v58  ;;  %4326 = vmatprep.mubr.bf16.mxu0 %v17994_v39 }
 0xe6f   :  { %12984 = vmatpush3.msra.mxu1 %v15968_v47 }
 0xe70   :  { %12985 = vmatprep.subr.mxu1 %v15974_v1 }
 0xe71   :  { %12986 = vmatpush3.msra.mxu1 %v15980_v13 }
 0xf09   :  { %v3900_v45 = vpop.f32.mrf.mxu0  ;;  %v3941_v36 = vpop.f32.mrf.mxu1 }
 0xf0a   :  { %v16314_v31 = vadd.f32 %v3900_v45, %v16124_v60  ;;  %v16317_v15 = vadd.f32 %v3941_v36, %v16127_v56 }
 0xf0b   :  { %v3902_v40 = vpop.f32.mrf.mxu0  ;;  %v16319_v14 = vpop.f32.mrf.mxu1 }
 0xf0c   :  { %17997 = vst [vmem:[#allocation27_spill] sm:$0xff] %v16319_v14  ;;  %v16322_v58 = vadd.f32 %v3902_v40, %v16132_v17 }
 0xf0d   :  { %v3904_v51 = vpop.f32.mrf.mxu0  ;;  %v3945_v47 = vpop.f32.mrf.mxu1 }
 0xf0e   :  { %v14045_v51 = vld [vmem:[#allocation7 + $0x204] ss:$28 sps:$4 sm:$0xff]   ;;  %v14040_v47 = vld [vmem:[#allocation7 + $0x1f8] ss:$28 sps:$4 sm:$0xff]  }
 0xf0f   :  { %v3905_v55 = vpop.f32.mrf.mxu0  ;;  %v3946_v1 = vpop.f32.mrf.mxu1  ;;  %4349 = vmatprep.subr.bf16.mxu1 %v14045_v51  ;;  %v14063_v51 = vld [vmem:[#allocation2 + $0x374] ss:$200 sps:$4 sm:$0xff]  }
 0xf10   :  { %v14043_v55 = vld [vmem:[#allocation7 + $0x200] ss:$28 sps:$4 sm:$0xff]   ;;  %v14048_v1 = vld [vmem:[#allocation7 + $0x20c] ss:$28 sps:$4 sm:$0xff]  }
 0xf11   :  { %v3982_v48 = vpop.f32.mrf.mxu0  ;;  %v4023_v13 = vpop.f32.mrf.mxu1 }
 0xf12   :  { %v16325_v61 = vadd.f32 %v3982_v48, %v16135_v19  ;;  %v16328_v60 = vadd.f32 %v4023_v13, %v16138_v20 }
 0xf13   :  { %v3984_v56 = vpop.f32.mrf.mxu0  ;;  %v13634_v62 = vpop.f32.mrf.mxu1 }
 0xf14   :  { %v16331_v63 = vadd.f32 %v3984_v56, %v16141_v23  ;;  %v14042_v23 = vld [vmem:[#allocation7 + $0x1fc] ss:$28 sps:$4 sm:$0xff]  }
 0xf15   :  { %v3986_v44 = vpop.f32.mrf.mxu0  ;;  %v4026_v17 = vpop.f32.mrf.mxu1  ;;  %4308 = vmatprep.subr.bf16.mxu0 %v14042_v23  ;;  %v16337_v62 = vld [vmem:[#allocation6] ss:$0 sm:$0xff]  ;;  %v14058_v23 = vld [vmem:[#allocation2 + $0x500] ss:$200 sps:$4 sm:$0xff]  }
 0xf16   :  { %4309 = vmatpush1.bf16.msra.mxu0 %v14040_v47  ;;  %v14061_v47 = vld [vmem:[#allocation2 + $0x370] ss:$200 sps:$4 sm:$0xff]  }
 0xf17   :  { %v3987_v21 = vpop.f32.mrf.mxu0  ;;  %v13635_v26 = vpop.f32.mrf.mxu1  ;;  %4390 = vmatprep.subr.bf16.mxu0 %v14048_v1  ;;  %v14064_v1 = vld [vmem:[#allocation2 + $0x1e0] ss:$200 sps:$4 sm:$0xff]  }
 0xf18   :  { %v4476_v21 = vld [vmem:[#allocation2 + $0x9b0] sm:$0x11]  ;;  %v14046_v26 = vld [vmem:[#allocation7 + $0x208] ss:$28 sps:$4 sm:$0xff]  }
 0xf2d   :  { %v4166_v6 = vpop.f32.mrf.mxu0 }
 0xf2e   :  { %v4167_v19 = vadd.f32 %v4166_v6, %v4054_v32  ;;  %v12127_v6 = vcombine.low %v4476_v21, %v4476_v21 }
 0xf2f   :  { %v4168_v33 = vpop.f32.mrf.mxu0 }
 0xf30   :  { %v4169_v49 = vadd.f32 %v4168_v33, %v4058_v34  ;;  %v4173_v36 = vmax.f32 %v4167_v19, 0.0  ;;  %v12128_v34 = vcombine.high %v4476_v21, %v4476_v21  ;;  %v16349_v19 = vld [vmem:[%s17972_s3 + $0xf8] sm:$0xff]  ;;  %v4555_v33 = vsel %vm247_vm0, %v12127_v6, 0  ;;  %v16403_v21 = vld [vmem:[%s17972_s3 + $0x88] sm:$0xff] }
 0xf31   :  { %v4170_v20 = vpop.f32.mrf.mxu0 }
 0xf32   :  { %v4174_v45 = vmax.f32 %v4169_v49, 0.0  ;;  %v14054_v49 = vld [vmem:[#allocation2 + $0x824] ss:$200 sps:$4 sm:$0xff]   ;;  %v14052_v20 = vld [vmem:[#allocation2 + $0x820] ss:$200 sps:$4 sm:$0xff]  }
 0xf33   :  { %v4171_v40 = vpop.f32.mrf.mxu0 }
 0xf34   :  { %4239 = vmatprep.mubr.f32.mxu1 %v4174_v45  ;;  %v14057_v45 = vld [vmem:[#allocation2 + $0x694] ss:$200 sps:$4 sm:$0xff]   ;;  %v14060_v40 = vld [vmem:[#allocation2 + $0x504] ss:$200 sps:$4 sm:$0xff]  }
 0xf35   :  { %4240 = vmatmul.mubr.f32.vlgmr.msra.gmra.mxu1 %v4173_v36  ;;  %v14055_v36 = vld [vmem:[#allocation2 + $0x690] ss:$200 sps:$4 sm:$0xff]  }
 0xf36   :  { %4367 = vmatprep.mubr.bf16.mxu1 %v17994_v39  ;;  %4350 = vmatpush1.bf16.msra.mxu1 %v14043_v55  ;;  %v14066_v55 = vld [vmem:[#allocation2 + $0x1e4] ss:$200 sps:$4 sm:$0xff]  }
 0xf37   :  { %13636 = vmatprep.subr.bf16.mxu1 %v17990_v18 }
 0xff5   :  { %v12987_v48 = vpop.f32.mrf.mxu1 }
 0xff7   :  { %v12988_v13 = vpop.f32.mrf.mxu1 }
 0xff8   :  { %v12989_v56 = vadd.f32 %v12988_v13, %v12987_v48  ;;  %v14069_v48 = vld [vmem:[#allocation2 + $0x54] ss:$200 sps:$4 sm:$0xff]   ;;  %v14067_v13 = vld [vmem:[#allocation2 + $0x50] ss:$200 sps:$4 sm:$0xff]  }
 0xffa   :  { %v4242_v44 = vadd.f32 %v16337_v62, %v12989_v56  ;;  %v16383_v56 = vld [vmem:[%s17972_s3 + $0x18] sm:$0xff] }
 0xffc   :  { %v4245_v17 = vmax.f32 %v4242_v44, 0.0  ;;  %v16389_v44 = vld [vmem:[%s17972_s3 + $0x90] sm:$0xff] }
 0xffe   :  { %v4246_v32 = vpack.c.bf16 %v4245_v17, %v4245_v17  ;;  %v16397_v17 = vld [vmem:[%s17972_s3 + $0x10] sm:$0xff] }
0x1000   :  { %12111 = vmatmul.mubr.msk.bf16.vlgmr.msra.gmra.mxu0 %vm671_vm2, %v4246_v32  ;;  %12112 = vmatmul.mubr.msk.bf16.vlgmr.msra.gmra.mxu1 %vm671_vm2, %v4246_v32 }
0x1001   :  { %4391 = vmatpush1.bf16.msra.mxu0 %v14046_v26  ;;  %13637 = vmatpush3.bf16.msra.mxu1 %v14049_v10  ;;  %v16410_v26 = vld [vmem:[%s17972_s3 + $0x8] sm:$0xff]  ;;  %v16416_v10 = vld [vmem:[%s17972_s3 + $0x80] sm:$0xff] }
0x1002   :  { %4408 = vmatprep.mubr.bf16.mxu0 %v17994_v39  ;;  %13638 = vmatprep.mubr.msk.bf16.mxu1 %vm15056_vm3, %v17990_v18 }
0x1003   :  { %12129 = vmatprep.subr.msk.bf16.mxu0 %vm247_vm0, %v12128_v34  ;;  %12992 = vmatprep.subr.mxu1 %v16349_v19 }
0x1008   :  { %12113 = vmatmul.mubr.msk.bf16.vlgmr.msra.gmra.mxu0 %vm671_vm2, %v4246_v32  ;;  %13639 = vmatmul.mubr.msk.bf16.vlgmr.msra.gmra.mxu1 %vm671_vm2, %v4246_v32  ;;  %v16422_v32 = vld [vmem:[%s17972_s3] sm:$0xff] }
0x1009   :  { %4563 = vmatpush1.bf16.msra.mxu0 %v4555_v33  ;;  %4592 = vmatprep.mubr.bf16.mxu0 %v17994_v39 }
0x100a   :  { %4564 = vmatprep.subr.bf16.mxu0 %v14054_v49  ;;  %12993 = vmatpush3.msra.mxu1 %v16162_v42 }
0x100b   :  { %12994 = vmatprep.subr.mxu1 %v16168_v53 }
0x100c   :  { %12995 = vmatpush3.msra.mxu1 %v16174_v52 }
0x100d   :  { %4565 = vmatpush1.bf16.msra.mxu0 %v14052_v20  ;;  %12996 = vmatprep.subr.mxu1 %v16180_v46 }
0x100e   :  { %4566 = vmatprep.subr.bf16.mxu0 %v14057_v45  ;;  %12997 = vmatpush3.msra.mxu1 %v16186_v22 }
0x100f   :  { %12998 = vmatprep.subr.mxu1 %v16192_v41 }
0x1010   :  { %12999 = vmatpush3.msra.mxu1 %v16198_v0 }
0x1011   :  { %4567 = vmatpush1.bf16.msra.mxu0 %v14055_v36  ;;  %13000 = vmatprep.subr.mxu1 %v16204_v9 }
0x1012   :  { %4568 = vmatprep.subr.bf16.mxu0 %v14060_v40  ;;  %13001 = vmatpush3.msra.mxu1 %v16210_v5 }
0x1013   :  { %13002 = vmatprep.subr.mxu1 %v16216_v30 }
0x1014   :  { %13003 = vmatpush3.msra.mxu1 %v16222_v29 }
0x1015   :  { %4569 = vmatpush1.bf16.msra.mxu0 %v14058_v23  ;;  %13004 = vmatprep.subr.mxu1 %v16228_v3 }
0x1016   :  { %4570 = vmatprep.subr.bf16.mxu0 %v14063_v51  ;;  %13005 = vmatpush3.msra.mxu1 %v16234_v43 }
0x1017   :  { %13006 = vmatprep.subr.mxu1 %v16240_v11 }
0x1018   :  { %13007 = vmatpush3.msra.mxu1 %v16246_v2 }
0x1019   :  { %4571 = vmatpush1.bf16.msra.mxu0 %v14061_v47  ;;  %13008 = vmatprep.subr.mxu1 %v16252_v12 }
0x101a   :  { %4572 = vmatprep.subr.bf16.mxu0 %v14066_v55  ;;  %13009 = vmatpush3.msra.mxu1 %v16258_v24 }
0x101b   :  { %13010 = vmatprep.subr.mxu1 %v16264_v25 }
0x101c   :  { %13011 = vmatpush3.msra.mxu1 %v16270_v27 }
0x101d   :  { %4573 = vmatpush1.bf16.msra.mxu0 %v14064_v1  ;;  %13012 = vmatprep.subr.mxu1 %v16276_v28 }
0x101e   :  { %4574 = vmatprep.subr.bf16.mxu0 %v14069_v48  ;;  %13013 = vmatpush3.msra.mxu1 %v16282_v4 }
0x101f   :  { %13014 = vmatprep.subr.mxu1 %v16288_v37 }
0x1020   :  { %13015 = vmatpush3.msra.mxu1 %v16294_v59 }
0x1021   :  { %4575 = vmatpush1.bf16.msra.mxu0 %v14067_v13  ;;  %13016 = vmatprep.subr.mxu1 %v16300_v38 }
0x1022   :  { %13017 = vmatpush3.msra.mxu1 %v16383_v56 }
0x1023   :  { %13018 = vmatprep.subr.mxu1 %v16389_v44 }
0x1024   :  { %12130 = vmatmul.mubr.msk.bf16.vlgmr.msra.gmra.mxu0 %vm243_vm1, %v15195_v35  ;;  %13019 = vmatpush3.msra.mxu1 %v16397_v17 }
0x1025   :  { %13020 = vmatprep.subr.mxu1 %v16403_v21  ;;  %4754 = vmatprep.mubr.bf16.mxu0 %v17994_v39 }
0x1026   :  { %13021 = vmatpush3.msra.mxu1 %v16410_v26 }
0x1027   :  { %13022 = vmatprep.subr.mxu1 %v16416_v10 }
0x1028   :  { %13023 = vmatpush3.msra.mxu1 %v16422_v32 }
0x10c0   :  { %v4328_v34 = vpop.f32.mrf.mxu0  ;;  %v4369_v6 = vpop.f32.mrf.mxu1 }
0x10c1   :  { %v16426_v33 = vadd.f32 %v4328_v34, %v16314_v31  ;;  %v16429_v49 = vadd.f32 %v4369_v6, %v16317_v15 }
0x10c2   :  { %v4330_v20 = vpop.f32.mrf.mxu0  ;;  %v16431_v45 = vpop.f32.mrf.mxu1 }
0x10c3   :  { %17998 = vst [vmem:[#allocation28_spill] sm:$0xff] %v16431_v45  ;;  %v16434_v36 = vadd.f32 %v4330_v20, %v16322_v58 }
0x10c4   :  { %v4332_v40 = vpop.f32.mrf.mxu0  ;;  %v4373_v23 = vpop.f32.mrf.mxu1 }
0x10c5   :  { %v4477_v23 = vld [vmem:[#allocation4 + $0x14] sm:$0x3] }
0x10c6   :  { %v4333_v51 = vpop.f32.mrf.mxu0  ;;  %v4374_v47 = vpop.f32.mrf.mxu1 }
0x10c7   :  { %v4482_v51 = vrot.slane %v4477_v23, %v15284_v7  ;;  %v4486_v47 = vrot.slane %v4477_v23, %v15287_v8 }
0x10c8   :  { %v4410_v55 = vpop.f32.mrf.mxu0  ;;  %v4451_v1 = vpop.f32.mrf.mxu1 }
0x10c9   :  { %v16437_v48 = vadd.f32 %v4410_v55, %v16325_v61  ;;  %v16440_v31 = vadd.f32 %v4451_v1, %v16328_v60 }
0x10ca   :  { %v4412_v15 = vpop.f32.mrf.mxu0  ;;  %v13640_v13 = vpop.f32.mrf.mxu1 }
0x10cb   :  { %v16443_v34 = vadd.f32 %v4412_v15, %v16331_v63  ;;  %v14072_v63 = vld [vmem:[#allocation7 + $0x234] ss:$28 sps:$4 sm:$0xff]   ;;  %v14075_v15 = vld [vmem:[#allocation7 + $0x23c] ss:$28 sps:$4 sm:$0xff]  }
0x10cc   :  { %v4414_v6 = vpop.f32.mrf.mxu0  ;;  %v4454_v58 = vpop.f32.mrf.mxu1  ;;  %4736 = vmatprep.subr.bf16.mxu0 %v14072_v63  ;;  %4777 = vmatprep.subr.bf16.mxu1 %v14075_v15  ;;  %v14084_v63 = vld [vmem:[#allocation2 + $0x82c] ss:$200 sps:$4 sm:$0xff]   ;;  %v14082_v15 = vld [vmem:[#allocation2 + $0x828] ss:$200 sps:$4 sm:$0xff]  }
0x10cd   :  { %v14070_v6 = vld [vmem:[#allocation7 + $0x230] ss:$28 sps:$4 sm:$0xff]   ;;  %v14073_v58 = vld [vmem:[#allocation7 + $0x238] ss:$28 sps:$4 sm:$0xff]  }
0x10ce   :  { %v4415_v20 = vpop.f32.mrf.mxu0  ;;  %v13641_v40 = vpop.f32.mrf.mxu1  ;;  %4737 = vmatpush1.bf16.msra.mxu0 %v14070_v6  ;;  %v14087_v6 = vld [vmem:[#allocation2 + $0x69c] ss:$200 sps:$4 sm:$0xff]  }
0x10cf   :  { %v14078_v20 = vld [vmem:[#allocation7 + $0x244] ss:$28 sps:$4 sm:$0xff]  }
0x10d0   :  { %4818 = vmatprep.subr.bf16.mxu0 %v14078_v20  ;;  %v14090_v20 = vld [vmem:[#allocation2 + $0x50c] ss:$200 sps:$4 sm:$0xff]  }
0x10e4   :  { %v4594_v45 = vpop.f32.mrf.mxu0 }
0x10e5   :  { %v4595_v61 = vadd.f32 %v4594_v45, %v4482_v51  ;;  %v4904_v51 = vld [vmem:[#allocation2 + $0x9b8] sm:$0x11] }
0x10e6   :  { %v4596_v55 = vpop.f32.mrf.mxu0 }
0x10e7   :  { %v4597_v14 = vadd.f32 %v4596_v55, %v4486_v47  ;;  %v4601_v54 = vmax.f32 %v4595_v61, 0.0  ;;  %v14076_v47 = vld [vmem:[#allocation7 + $0x240] ss:$28 sps:$4 sm:$0xff]   ;;  %v14079_v61 = vld [vmem:[#allocation7 + $0x248] ss:$28 sps:$4 sm:$0xff]  }
0x10e8   :  { %v4598_v60 = vpop.f32.mrf.mxu0 }
0x10e9   :  { %v4602_v1 = vmax.f32 %v4597_v14, 0.0  ;;  %v12155_v60 = vcombine.high %v4904_v51, %v4904_v51 }
0x10ea   :  { %v4599_v13 = vpop.f32.mrf.mxu0 }
0x10eb   :  { %4667 = vmatprep.mubr.f32.mxu1 %v4602_v1  ;;  %v12154_v1 = vcombine.low %v4904_v51, %v4904_v51  ;;  %v14099_v51 = vld [vmem:[#allocation2 + $0x5c] ss:$200 sps:$4 sm:$0xff]  }
0x10ec   :  { %4668 = vmatmul.mubr.f32.vlgmr.msra.gmra.mxu1 %v4601_v54 }
0x10ed   :  { %4795 = vmatprep.mubr.bf16.mxu1 %v17994_v39  ;;  %4778 = vmatpush1.bf16.msra.mxu1 %v14073_v58  ;;  %v4983_v13 = vsel %vm247_vm0, %v12154_v1, 0  ;;  %v14085_v58 = vld [vmem:[#allocation2 + $0x698] ss:$200 sps:$4 sm:$0xff]  }
0x10ee   :  { %13642 = vmatprep.subr.bf16.mxu1 %v17990_v18 }
0x11ac   :  { %v13024_v45 = vpop.f32.mrf.mxu1 }
0x11ae   :  { %v13025_v14 = vpop.f32.mrf.mxu1 }
0x11af   :  { %v13026_v40 = vadd.f32 %v13025_v14, %v13024_v45  ;;  %v14088_v45 = vld [vmem:[#allocation2 + $0x508] ss:$200 sps:$4 sm:$0xff]   ;;  %v14093_v14 = vld [vmem:[#allocation2 + $0x37c] ss:$200 sps:$4 sm:$0xff]  }
0x11b1   :  { %v4670_v23 = vadd.f32 %v16337_v62, %v13026_v40  ;;  %v14091_v40 = vld [vmem:[#allocation2 + $0x378] ss:$200 sps:$4 sm:$0xff]  }
0x11b3   :  { %v4673_v54 = vmax.f32 %v4670_v23, 0.0  ;;  %v14096_v23 = vld [vmem:[#allocation2 + $0x1ec] ss:$200 sps:$4 sm:$0xff]  }
0x11b5   :  { %v4674_v55 = vpack.c.bf16 %v4673_v54, %v4673_v54  ;;  %v14094_v54 = vld [vmem:[#allocation2 + $0x1e8] ss:$200 sps:$4 sm:$0xff]  }
0x11b7   :  { %12138 = vmatmul.mubr.msk.bf16.vlgmr.msra.gmra.mxu0 %vm671_vm2, %v4674_v55  ;;  %12139 = vmatmul.mubr.msk.bf16.vlgmr.msra.gmra.mxu1 %vm671_vm2, %v4674_v55 }
0x11b8   :  { %4819 = vmatpush1.bf16.msra.mxu0 %v14076_v47  ;;  %13643 = vmatpush3.bf16.msra.mxu1 %v14079_v61  ;;  %v14097_v47 = vld [vmem:[#allocation2 + $0x58] ss:$200 sps:$4 sm:$0xff]  }
0x11b9   :  { %4836 = vmatprep.mubr.bf16.mxu0 %v17994_v39  ;;  %13644 = vmatprep.mubr.msk.bf16.mxu1 %vm15056_vm3, %v17990_v18 }
0x11ba   :  { %12156 = vmatprep.subr.msk.bf16.mxu0 %vm247_vm0, %v12155_v60  ;;  %13029 = vmatprep.subr.mxu1 %v16349_v19 }
0x11bf   :  { %12140 = vmatmul.mubr.msk.bf16.vlgmr.msra.gmra.mxu0 %vm671_vm2, %v4674_v55  ;;  %13645 = vmatmul.mubr.msk.bf16.vlgmr.msra.gmra.mxu1 %vm671_vm2, %v4674_v55 }
0x11c0   :  { %4991 = vmatpush1.bf16.msra.mxu0 %v4983_v13  ;;  %5020 = vmatprep.mubr.bf16.mxu0 %v17994_v39 }
0x11c1   :  { %4992 = vmatprep.subr.bf16.mxu0 %v14084_v63  ;;  %13030 = vmatpush3.msra.mxu1 %v16162_v42 }
0x11c2   :  { %13031 = vmatprep.subr.mxu1 %v16168_v53 }
0x11c3   :  { %13032 = vmatpush3.msra.mxu1 %v16174_v52 }
0x11c4   :  { %4993 = vmatpush1.bf16.msra.mxu0 %v14082_v15  ;;  %13033 = vmatprep.subr.mxu1 %v16180_v46 }
0x11c5   :  { %4994 = vmatprep.subr.bf16.mxu0 %v14087_v6  ;;  %13034 = vmatpush3.msra.mxu1 %v16186_v22 }
0x11c6   :  { %13035 = vmatprep.subr.mxu1 %v16192_v41 }
0x11c7   :  { %13036 = vmatpush3.msra.mxu1 %v16198_v0 }
0x11c8   :  { %4995 = vmatpush1.bf16.msra.mxu0 %v14085_v58  ;;  %13037 = vmatprep.subr.mxu1 %v16204_v9 }
0x11c9   :  { %4996 = vmatprep.subr.bf16.mxu0 %v14090_v20  ;;  %13038 = vmatpush3.msra.mxu1 %v16210_v5 }
0x11ca   :  { %13039 = vmatprep.subr.mxu1 %v16216_v30 }
0x11cb   :  { %13040 = vmatpush3.msra.mxu1 %v16222_v29 }
0x11cc   :  { %4997 = vmatpush1.bf16.msra.mxu0 %v14088_v45  ;;  %13041 = vmatprep.subr.mxu1 %v16228_v3 }
0x11cd   :  { %4998 = vmatprep.subr.bf16.mxu0 %v14093_v14  ;;  %13042 = vmatpush3.msra.mxu1 %v16234_v43 }
0x11ce   :  { %13043 = vmatprep.subr.mxu1 %v16240_v11 }
0x11cf   :  { %13044 = vmatpush3.msra.mxu1 %v16246_v2 }
0x11d0   :  { %4999 = vmatpush1.bf16.msra.mxu0 %v14091_v40  ;;  %13045 = vmatprep.subr.mxu1 %v16252_v12 }
0x11d1   :  { %5000 = vmatprep.subr.bf16.mxu0 %v14096_v23  ;;  %13046 = vmatpush3.msra.mxu1 %v16258_v24 }
0x11d2   :  { %13047 = vmatprep.subr.mxu1 %v16264_v25 }
0x11d3   :  { %13048 = vmatpush3.msra.mxu1 %v16270_v27 }
0x11d4   :  { %5001 = vmatpush1.bf16.msra.mxu0 %v14094_v54  ;;  %13049 = vmatprep.subr.mxu1 %v16276_v28 }
0x11d5   :  { %5002 = vmatprep.subr.bf16.mxu0 %v14099_v51  ;;  %13050 = vmatpush3.msra.mxu1 %v16282_v4 }
0x11d6   :  { %13051 = vmatprep.subr.mxu1 %v16288_v37 }
0x11d7   :  { %13052 = vmatpush3.msra.mxu1 %v16294_v59 }
0x11d8   :  { %5003 = vmatpush1.bf16.msra.mxu0 %v14097_v47  ;;  %13053 = vmatprep.subr.mxu1 %v16300_v38 }
0x11d9   :  { %13054 = vmatpush3.msra.mxu1 %v16383_v56 }
0x11da   :  { %13055 = vmatprep.subr.mxu1 %v16389_v44 }
0x11db   :  { %12157 = vmatmul.mubr.msk.bf16.vlgmr.msra.gmra.mxu0 %vm243_vm1, %v15195_v35  ;;  %13056 = vmatpush3.msra.mxu1 %v16397_v17 }
0x11dc   :  { %13057 = vmatprep.subr.mxu1 %v16403_v21  ;;  %5182 = vmatprep.mubr.bf16.mxu0 %v17994_v39 }
0x11dd   :  { %13058 = vmatpush3.msra.mxu1 %v16410_v26 }
0x11de   :  { %13059 = vmatprep.subr.mxu1 %v16416_v10 }
0x11df   :  { %13060 = vmatpush3.msra.mxu1 %v16422_v32 }
0x1277   :  { %v4756_v61 = vpop.f32.mrf.mxu0  ;;  %v4797_v55 = vpop.f32.mrf.mxu1 }
0x1278   :  { %v16496_v60 = vadd.f32 %v4756_v61, %v16426_v33  ;;  %v16499_v1 = vadd.f32 %v4797_v55, %v16429_v49 }
0x1279   :  { %v4758_v13 = vpop.f32.mrf.mxu0  ;;  %v16501_v63 = vpop.f32.mrf.mxu1 }
0x127a   :  { %17999 = vst [vmem:[#allocation29_spill] sm:$0xff] %v16501_v63  ;;  %v16504_v15 = vadd.f32 %v4758_v13, %v16434_v36  ;;  %v4905_v13 = vld [vmem:[#allocation4 + $0x16] sm:$0x3] }
0x127b   :  { %v4760_v6 = vpop.f32.mrf.mxu0  ;;  %v4801_v58 = vpop.f32.mrf.mxu1 }
0x127c   :  { %v4910_v6 = vrot.slane %v4905_v13, %v15284_v7  ;;  %v4914_v58 = vrot.slane %v4905_v13, %v15287_v8 }
0x127d   :  { %v4761_v20 = vpop.f32.mrf.mxu0  ;;  %v4802_v45 = vpop.f32.mrf.mxu1 }
0x127f   :  { %v4838_v14 = vpop.f32.mrf.mxu0  ;;  %v4879_v40 = vpop.f32.mrf.mxu1 }
0x1280   :  { %v16507_v23 = vadd.f32 %v4838_v14, %v16437_v48  ;;  %v16510_v33 = vadd.f32 %v4879_v40, %v16440_v31 }
0x1281   :  { %v4840_v49 = vpop.f32.mrf.mxu0  ;;  %v13646_v54 = vpop.f32.mrf.mxu1 }
0x1282   :  { %v16513_v51 = vadd.f32 %v4840_v49, %v16443_v34  ;;  %v14102_v34 = vld [vmem:[#allocation7 + $0x26c] ss:$28 sps:$4 sm:$0xff]   ;;  %v14105_v49 = vld [vmem:[#allocation7 + $0x274] ss:$28 sps:$4 sm:$0xff]  }
0x1283   :  { %v4842_v47 = vpop.f32.mrf.mxu0  ;;  %v4882_v36 = vpop.f32.mrf.mxu1  ;;  %5164 = vmatprep.subr.bf16.mxu0 %v14102_v34  ;;  %5205 = vmatprep.subr.bf16.mxu1 %v14105_v49  ;;  %v14114_v34 = vld [vmem:[#allocation2 + $0x834] ss:$200 sps:$4 sm:$0xff]   ;;  %v14112_v49 = vld [vmem:[#allocation2 + $0x830] ss:$200 sps:$4 sm:$0xff]  }
0x1284   :  { %v14100_v47 = vld [vmem:[#allocation7 + $0x268] ss:$28 sps:$4 sm:$0xff]   ;;  %v14103_v36 = vld [vmem:[#allocation7 + $0x270] ss:$28 sps:$4 sm:$0xff]  }
0x1285   :  { %v4843_v61 = vpop.f32.mrf.mxu0  ;;  %v13647_v55 = vpop.f32.mrf.mxu1  ;;  %5165 = vmatpush1.bf16.msra.mxu0 %v14100_v47  ;;  %v14117_v47 = vld [vmem:[#allocation2 + $0x6a4] ss:$200 sps:$4 sm:$0xff]  }
0x1286   :  { %v14108_v61 = vld [vmem:[#allocation7 + $0x27c] ss:$28 sps:$4 sm:$0xff]  }
0x1287   :  { %5246 = vmatprep.subr.bf16.mxu0 %v14108_v61  ;;  %v14120_v61 = vld [vmem:[#allocation2 + $0x514] ss:$200 sps:$4 sm:$0xff]  }
0x129b   :  { %v5022_v20 = vpop.f32.mrf.mxu0 }
0x129c   :  { %v5023_v48 = vadd.f32 %v5022_v20, %v4910_v6  ;;  %v5332_v20 = vld [vmem:[#allocation2 + $0x9c0] sm:$0x11] }
0x129d   :  { %v5024_v45 = vpop.f32.mrf.mxu0 }
0x129e   :  { %v5025_v14 = vadd.f32 %v5024_v45, %v4914_v58  ;;  %v5029_v63 = vmax.f32 %v5023_v48, 0.0  ;;  %v14106_v48 = vld [vmem:[#allocation7 + $0x278] ss:$28 sps:$4 sm:$0xff]   ;;  %v14109_v45 = vld [vmem:[#allocation7 + $0x280] ss:$28 sps:$4 sm:$0xff]  }
0x129f   :  { %v5026_v31 = vpop.f32.mrf.mxu0 }
0x12a0   :  { %v5030_v40 = vmax.f32 %v5025_v14, 0.0  ;;  %v12182_v31 = vcombine.high %v5332_v20, %v5332_v20 }
0x12a1   :  { %v5027_v54 = vpop.f32.mrf.mxu0 }
0x12a2   :  { %5095 = vmatprep.mubr.f32.mxu1 %v5030_v40  ;;  %v12181_v40 = vcombine.low %v5332_v20, %v5332_v20 }
0x12a3   :  { %5096 = vmatmul.mubr.f32.vlgmr.msra.gmra.mxu1 %v5029_v63 }
0x12a4   :  { %5223 = vmatprep.mubr.bf16.mxu1 %v17994_v39  ;;  %5206 = vmatpush1.bf16.msra.mxu1 %v14103_v36  ;;  %v5411_v54 = vsel %vm247_vm0, %v12181_v40, 0  ;;  %v14115_v36 = vld [vmem:[#allocation2 + $0x6a0] ss:$200 sps:$4 sm:$0xff]  }
0x12a5   :  { %13648 = vmatprep.subr.bf16.mxu1 %v17990_v18 }
0x1363   :  { %v13061_v55 = vpop.f32.mrf.mxu1 }
0x1365   :  { %v13062_v13 = vpop.f32.mrf.mxu1 }
0x1366   :  { %v13063_v6 = vadd.f32 %v13062_v13, %v13061_v55  ;;  %v14118_v55 = vld [vmem:[#allocation2 + $0x510] ss:$200 sps:$4 sm:$0xff]  }
0x1368   :  { %v5098_v58 = vadd.f32 %v16337_v62, %v13063_v6  ;;  %v5333_v6 = vld [vmem:[#allocation4 + $0x18] sm:$0x3] }
0x136a   :  { %v5101_v63 = vmax.f32 %v5098_v58, 0.0  ;;  %v5338_v58 = vrot.slane %v5333_v6, %v15284_v7 }
0x136c   :  { %v5102_v14 = vpack.c.bf16 %v5101_v63, %v5101_v63  ;;  %v5342_v63 = vrot.slane %v5333_v6, %v15287_v8  ;;  %v14153_v6 = vld [vmem:[#allocation2 + $0x38c] ss:$200 sps:$4 sm:$0xff]  }
0x136e   :  { %12165 = vmatmul.mubr.msk.bf16.vlgmr.msra.gmra.mxu0 %vm671_vm2, %v5102_v14  ;;  %12166 = vmatmul.mubr.msk.bf16.vlgmr.msra.gmra.mxu1 %vm671_vm2, %v5102_v14 }
0x136f   :  { %5247 = vmatpush1.bf16.msra.mxu0 %v14106_v48  ;;  %13649 = vmatpush3.bf16.msra.mxu1 %v14109_v45 }
0x1370   :  { %5264 = vmatprep.mubr.bf16.mxu0 %v17994_v39  ;;  %13650 = vmatprep.mubr.msk.bf16.mxu1 %vm15056_vm3, %v17990_v18 }
0x1371   :  { %12183 = vmatprep.subr.msk.bf16.mxu0 %vm247_vm0, %v12182_v31  ;;  %13066 = vmatprep.subr.mxu1 %v16349_v19 }
0x1376   :  { %12167 = vmatmul.mubr.msk.bf16.vlgmr.msra.gmra.mxu0 %vm671_vm2, %v5102_v14  ;;  %13651 = vmatmul.mubr.msk.bf16.vlgmr.msra.gmra.mxu1 %vm671_vm2, %v5102_v14 }
0x1377   :  { %5419 = vmatpush1.bf16.msra.mxu0 %v5411_v54  ;;  %5448 = vmatprep.mubr.bf16.mxu0 %v17994_v39  ;;  %v14135_v54 = vld [vmem:[#allocation7 + $0x2ac] ss:$28 sps:$4 sm:$0xff]  }
0x1378   :  { %5420 = vmatprep.subr.bf16.mxu0 %v14114_v34  ;;  %13067 = vmatpush3.msra.mxu1 %v16162_v42  ;;  %v14123_v42 = vld [vmem:[#allocation2 + $0x384] ss:$200 sps:$4 sm:$0xff]   ;;  %v14130_v34 = vld [vmem:[#allocation7 + $0x2a0] ss:$28 sps:$4 sm:$0xff]  }
0x1379   :  { %13068 = vmatprep.subr.mxu1 %v16168_v53  ;;  %v14121_v53 = vld [vmem:[#allocation2 + $0x380] ss:$200 sps:$4 sm:$0xff]  }
0x137a   :  { %13069 = vmatpush3.msra.mxu1 %v16174_v52  ;;  %v14126_v52 = vld [vmem:[#allocation2 + $0x1f4] ss:$200 sps:$4 sm:$0xff]  }
0x137b   :  { %5421 = vmatpush1.bf16.msra.mxu0 %v14112_v49  ;;  %13070 = vmatprep.subr.mxu1 %v16180_v46  ;;  %v14124_v46 = vld [vmem:[#allocation2 + $0x1f0] ss:$200 sps:$4 sm:$0xff]   ;;  %v14133_v49 = vld [vmem:[#allocation7 + $0x2a8] ss:$28 sps:$4 sm:$0xff]  }
0x137c   :  { %5422 = vmatprep.subr.bf16.mxu0 %v14117_v47  ;;  %13071 = vmatpush3.msra.mxu1 %v16186_v22  ;;  %v14129_v22 = vld [vmem:[#allocation2 + $0x64] ss:$200 sps:$4 sm:$0xff]  }
0x137d   :  { %13072 = vmatprep.subr.mxu1 %v16192_v41  ;;  %v14127_v41 = vld [vmem:[#allocation2 + $0x60] ss:$200 sps:$4 sm:$0xff]   ;;  %v14138_v47 = vld [vmem:[#allocation7 + $0x2b4] ss:$28 sps:$4 sm:$0xff]  }
0x137e   :  { %13073 = vmatpush3.msra.mxu1 %v16198_v0 }
0x137f   :  { %5423 = vmatpush1.bf16.msra.mxu0 %v14115_v36  ;;  %13074 = vmatprep.subr.mxu1 %v16204_v9 }
0x1380   :  { %5424 = vmatprep.subr.bf16.mxu0 %v14120_v61  ;;  %13075 = vmatpush3.msra.mxu1 %v16210_v5 }
0x1381   :  { %13076 = vmatprep.subr.mxu1 %v16216_v30 }
0x1382   :  { %13077 = vmatpush3.msra.mxu1 %v16222_v29 }
0x1383   :  { %5425 = vmatpush1.bf16.msra.mxu0 %v14118_v55  ;;  %13078 = vmatprep.subr.mxu1 %v16228_v3 }
0x1384   :  { %5426 = vmatprep.subr.bf16.mxu0 %v14123_v42  ;;  %13079 = vmatpush3.msra.mxu1 %v16234_v43 }
0x1385   :  { %13080 = vmatprep.subr.mxu1 %v16240_v11 }
0x1386   :  { %13081 = vmatpush3.msra.mxu1 %v16246_v2 }
0x1387   :  { %5427 = vmatpush1.bf16.msra.mxu0 %v14121_v53  ;;  %13082 = vmatprep.subr.mxu1 %v16252_v12 }
0x1388   :  { %5428 = vmatprep.subr.bf16.mxu0 %v14126_v52  ;;  %13083 = vmatpush3.msra.mxu1 %v16258_v24  ;;  %v5760_v52 = vld [vmem:[#allocation2 + $0x9c8] sm:$0x11] }
0x1389   :  { %13084 = vmatprep.subr.mxu1 %v16264_v25 }
0x138a   :  { %13085 = vmatpush3.msra.mxu1 %v16270_v27 }
0x138b   :  { %5429 = vmatpush1.bf16.msra.mxu0 %v14124_v46  ;;  %13086 = vmatprep.subr.mxu1 %v16276_v28  ;;  %v14136_v46 = vld [vmem:[#allocation7 + $0x2b0] ss:$28 sps:$4 sm:$0xff]  }
0x138c   :  { %5430 = vmatprep.subr.bf16.mxu0 %v14129_v22  ;;  %13087 = vmatpush3.msra.mxu1 %v16282_v4  ;;  %v14139_v22 = vld [vmem:[#allocation7 + $0x2b8] ss:$28 sps:$4 sm:$0xff]  }
0x138d   :  { %13088 = vmatprep.subr.mxu1 %v16288_v37 }
0x138e   :  { %13089 = vmatpush3.msra.mxu1 %v16294_v59 }
0x138f   :  { %5431 = vmatpush1.bf16.msra.mxu0 %v14127_v41  ;;  %13090 = vmatprep.subr.mxu1 %v16300_v38 }
0x1390   :  { %13091 = vmatpush3.msra.mxu1 %v16383_v56 }
0x1391   :  { %13092 = vmatprep.subr.mxu1 %v16389_v44 }
0x1392   :  { %12184 = vmatmul.mubr.msk.bf16.vlgmr.msra.gmra.mxu0 %vm243_vm1, %v15195_v35  ;;  %13093 = vmatpush3.msra.mxu1 %v16397_v17 }
0x1393   :  { %13094 = vmatprep.subr.mxu1 %v16403_v21  ;;  %5610 = vmatprep.mubr.bf16.mxu0 %v17994_v39 }
0x1394   :  { %13095 = vmatpush3.msra.mxu1 %v16410_v26 }
0x1395   :  { %13096 = vmatprep.subr.mxu1 %v16416_v10 }
0x1396   :  { %13097 = vmatpush3.msra.mxu1 %v16422_v32 }
0x1397   :  { %5633 = vmatprep.subr.bf16.mxu1 %v14135_v54  ;;  %v14159_v54 = vld [vmem:[#allocation2 + $0x6c] ss:$200 sps:$4 sm:$0xff]  }
0x142e   :  { %v5184_v0 = vpop.f32.mrf.mxu0  ;;  %v5225_v9 = vpop.f32.mrf.mxu1 }
0x142f   :  { %v16566_v5 = vadd.f32 %v5184_v0, %v16496_v60  ;;  %v16569_v30 = vadd.f32 %v5225_v9, %v16499_v1  ;;  %v12209_v0 = vcombine.high %v5760_v52, %v5760_v52  ;;  %v12208_v9 = vcombine.low %v5760_v52, %v5760_v52  ;;  %v16742_v52 = vld [vmem:[%s17972_s3 + $0x98] sm:$0xff] }
0x1430   :  { %v5186_v29 = vpop.f32.mrf.mxu0  ;;  %v16571_v3 = vpop.f32.mrf.mxu1 }
0x1431   :  { %v16574_v43 = vadd.f32 %v5186_v29, %v16504_v15  ;;  %v14144_v29 = vld [vmem:[#allocation2 + $0x83c] ss:$200 sps:$4 sm:$0xff]  }
0x1432   :  { %v5188_v11 = vpop.f32.mrf.mxu0  ;;  %v5229_v2 = vpop.f32.mrf.mxu1 }
0x1433   :  { %v14142_v11 = vld [vmem:[#allocation2 + $0x838] ss:$200 sps:$4 sm:$0xff]   ;;  %v14147_v2 = vld [vmem:[#allocation2 + $0x6ac] ss:$200 sps:$4 sm:$0xff]  }
0x1434   :  { %v5189_v12 = vpop.f32.mrf.mxu0  ;;  %v5230_v24 = vpop.f32.mrf.mxu1 }
0x1435   :  { %v16604_v12 = vld [vmem:[%s17972_s3 + $0x78] sm:$0xff]  ;;  %v16616_v24 = vld [vmem:[%s17972_s3 + $0x70] sm:$0xff] }
0x1436   :  { %v5266_v25 = vpop.f32.mrf.mxu0  ;;  %v5307_v27 = vpop.f32.mrf.mxu1 }
0x1437   :  { %v16577_v28 = vadd.f32 %v5266_v25, %v16507_v23  ;;  %v16580_v4 = vadd.f32 %v5307_v27, %v16510_v33  ;;  %v14145_v25 = vld [vmem:[#allocation2 + $0x6a8] ss:$200 sps:$4 sm:$0xff]  }
0x1438   :  { %v5268_v37 = vpop.f32.mrf.mxu0  ;;  %v13652_v59 = vpop.f32.mrf.mxu1  ;;  %v16622_v27 = vld [vmem:[%s17972_s3 + $0xe8] sm:$0xff] }
0x1439   :  { %v16583_v38 = vadd.f32 %v5268_v37, %v16513_v51  ;;  %v14132_v51 = vld [vmem:[#allocation7 + $0x2a4] ss:$28 sps:$4 sm:$0xff]   ;;  %v16628_v59 = vld [vmem:[%s17972_s3 + $0x68] sm:$0xff] }
0x143a   :  { %v5270_v60 = vpop.f32.mrf.mxu0  ;;  %v5310_v1 = vpop.f32.mrf.mxu1  ;;  %5592 = vmatprep.subr.bf16.mxu0 %v14132_v51  ;;  %v14150_v37 = vld [vmem:[#allocation2 + $0x51c] ss:$200 sps:$4 sm:$0xff]  }
0x143b   :  { %5593 = vmatpush1.bf16.msra.mxu0 %v14130_v34  ;;  %v16634_v60 = vld [vmem:[%s17972_s3 + $0xe0] sm:$0xff]  ;;  %v16694_v51 = vld [vmem:[%s17972_s3 + $0xb8] sm:$0xff] }
0x143c   :  { %v5271_v15 = vpop.f32.mrf.mxu0  ;;  %v13653_v13 = vpop.f32.mrf.mxu1  ;;  %5674 = vmatprep.subr.bf16.mxu0 %v14138_v47  ;;  %v16640_v1 = vld [vmem:[%s17972_s3 + $0x60] sm:$0xff]  ;;  %v16700_v34 = vld [vmem:[%s17972_s3 + $0x38] sm:$0xff]  ;;  %v16712_v47 = vld [vmem:[%s17972_s3 + $0x30] sm:$0xff] }
0x143d   :  { %v14148_v15 = vld [vmem:[#allocation2 + $0x518] ss:$200 sps:$4 sm:$0xff]  }
0x143e   :  { %v16646_v13 = vld [vmem:[%s17972_s3 + $0xd8] sm:$0xff] }
0x1452   :  { %v5450_v20 = vpop.f32.mrf.mxu0 }
0x1453   :  { %v5451_v23 = vadd.f32 %v5450_v20, %v5338_v58  ;;  %v16652_v58 = vld [vmem:[%s17972_s3 + $0x58] sm:$0xff]  ;;  %v16664_v20 = vld [vmem:[%s17972_s3 + $0x50] sm:$0xff] }
0x1454   :  { %v5452_v48 = vpop.f32.mrf.mxu0 }
0x1455   :  { %v5453_v45 = vadd.f32 %v5452_v48, %v5342_v63  ;;  %v5457_v31 = vmax.f32 %v5451_v23, 0.0  ;;  %v16658_v63 = vld [vmem:[%s17972_s3 + $0xd0] sm:$0xff]  ;;  %v16670_v48 = vld [vmem:[%s17972_s3 + $0xc8] sm:$0xff] }
0x1456   :  { %v5454_v33 = vpop.f32.mrf.mxu0  ;;  %v14151_v23 = vld [vmem:[#allocation2 + $0x388] ss:$200 sps:$4 sm:$0xff]  }
0x1457   :  { %v5458_v14 = vmax.f32 %v5453_v45, 0.0  ;;  %v14156_v45 = vld [vmem:[#allocation2 + $0x1fc] ss:$200 sps:$4 sm:$0xff]   ;;  %v16676_v33 = vld [vmem:[%s17972_s3 + $0x48] sm:$0xff] }
0x1458   :  { %v5455_v40 = vpop.f32.mrf.mxu0 }
0x1459   :  { %5523 = vmatprep.mubr.f32.mxu1 %v5458_v14  ;;  %v16682_v14 = vld [vmem:[%s17972_s3 + $0xc0] sm:$0xff] }
0x145a   :  { %5524 = vmatmul.mubr.f32.vlgmr.msra.gmra.mxu1 %v5457_v31  ;;  %v16688_v31 = vld [vmem:[%s17972_s3 + $0x40] sm:$0xff] }
0x145b   :  { %5651 = vmatprep.mubr.bf16.mxu1 %v17994_v39  ;;  %5634 = vmatpush1.bf16.msra.mxu1 %v14133_v49  ;;  %v14154_v40 = vld [vmem:[#allocation2 + $0x1f8] ss:$200 sps:$4 sm:$0xff]   ;;  %v16706_v49 = vld [vmem:[%s17972_s3 + $0xb0] sm:$0xff] }
0x145c   :  { %13654 = vmatprep.subr.bf16.mxu1 %v17990_v18 }
0x151a   :  { %v13098_v36 = vpop.f32.mrf.mxu1 }
0x151c   :  { %v13099_v61 = vpop.f32.mrf.mxu1 }
0x151d   :  { %v13100_v55 = vadd.f32 %v13099_v61, %v13098_v36  ;;  %v14157_v36 = vld [vmem:[#allocation2 + $0x68] ss:$200 sps:$4 sm:$0xff]  }
0x151e   :  { %v16718_v61 = vld [vmem:[%s17972_s3 + $0xa8] sm:$0xff] }
0x151f   :  { %v5526_v42 = vadd.f32 %v16337_v62, %v13100_v55  ;;  %v5839_v62 = vsel %vm247_vm0, %v12208_v9, 0  ;;  %v16724_v55 = vld [vmem:[%s17972_s3 + $0x28] sm:$0xff] }
0x1521   :  { %v5529_v53 = vmax.f32 %v5526_v42, 0.0  ;;  %v16730_v42 = vld [vmem:[%s17972_s3 + $0xa0] sm:$0xff] }
0x1523   :  { %v5530_v41 = vpack.c.bf16 %v5529_v53, %v5529_v53  ;;  %v16736_v53 = vld [vmem:[%s17972_s3 + $0x20] sm:$0xff] }
0x1525   :  { %12192 = vmatmul.mubr.msk.bf16.vlgmr.msra.gmra.mxu0 %vm671_vm2, %v5530_v41  ;;  %12193 = vmatmul.mubr.msk.bf16.vlgmr.msra.gmra.mxu1 %vm671_vm2, %v5530_v41 }
0x1526   :  { %5675 = vmatpush1.bf16.msra.mxu0 %v14136_v46  ;;  %13655 = vmatpush3.bf16.msra.mxu1 %v14139_v22 }
0x1527   :  { %5692 = vmatprep.mubr.bf16.mxu0 %v17994_v39  ;;  %13656 = vmatprep.mubr.msk.bf16.mxu1 %vm15056_vm3, %v17990_v18 }
0x1528   :  { %12210 = vmatprep.subr.msk.bf16.mxu0 %vm247_vm0, %v12209_v0  ;;  %13103 = vmatprep.subr.mxu1 %v16349_v19  ;;  %v16610_v19 = vld [vmem:[%s17972_s3 + $0xf0] sm:$0xff] }
0x152d   :  { %12194 = vmatmul.mubr.msk.bf16.vlgmr.msra.gmra.mxu0 %vm671_vm2, %v5530_v41  ;;  %13657 = vmatmul.mubr.msk.bf16.vlgmr.msra.gmra.mxu1 %vm671_vm2, %v5530_v41 }
0x152e   :  { %5847 = vmatpush1.bf16.msra.mxu0 %v5839_v62  ;;  %5876 = vmatprep.mubr.bf16.mxu0 %v17994_v39 }
0x152f   :  { %5848 = vmatprep.subr.bf16.mxu0 %v14144_v29  ;;  %13104 = vmatpush3.msra.mxu1 %v16604_v12 }
0x1530   :  { %13105 = vmatprep.subr.mxu1 %v16610_v19 }
0x1531   :  { %13106 = vmatpush3.msra.mxu1 %v16616_v24 }
0x1532   :  { %5849 = vmatpush1.bf16.msra.mxu0 %v14142_v11  ;;  %13107 = vmatprep.subr.mxu1 %v16622_v27 }
0x1533   :  { %5850 = vmatprep.subr.bf16.mxu0 %v14147_v2  ;;  %13108 = vmatpush3.msra.mxu1 %v16628_v59 }
0x1534   :  { %13109 = vmatprep.subr.mxu1 %v16634_v60 }
0x1535   :  { %13110 = vmatpush3.msra.mxu1 %v16640_v1 }
0x1536   :  { %5851 = vmatpush1.bf16.msra.mxu0 %v14145_v25  ;;  %13111 = vmatprep.subr.mxu1 %v16646_v13 }
0x1537   :  { %5852 = vmatprep.subr.bf16.mxu0 %v14150_v37  ;;  %13112 = vmatpush3.msra.mxu1 %v16652_v58 }
0x1538   :  { %13113 = vmatprep.subr.mxu1 %v16658_v63 }
0x1539   :  { %13114 = vmatpush3.msra.mxu1 %v16664_v20 }
0x153a   :  { %5853 = vmatpush1.bf16.msra.mxu0 %v14148_v15  ;;  %13115 = vmatprep.subr.mxu1 %v16670_v48 }
0x153b   :  { %5854 = vmatprep.subr.bf16.mxu0 %v14153_v6  ;;  %13116 = vmatpush3.msra.mxu1 %v16676_v33  ;;  %v5761_v6 = vld [vmem:[#allocation4 + $0x1a] sm:$0x3] }
0x153c   :  { %13117 = vmatprep.subr.mxu1 %v16682_v14 }
0x153d   :  { %13118 = vmatpush3.msra.mxu1 %v16688_v31 }
0x153e   :  { %5855 = vmatpush1.bf16.msra.mxu0 %v14151_v23  ;;  %13119 = vmatprep.subr.mxu1 %v16694_v51  ;;  %v5766_v23 = vrot.slane %v5761_v6, %v15284_v7 }
0x153f   :  { %5856 = vmatprep.subr.bf16.mxu0 %v14156_v45  ;;  %13120 = vmatpush3.msra.mxu1 %v16700_v34  ;;  %v5770_v45 = vrot.slane %v5761_v6, %v15287_v8  ;;  %v14169_v6 = vld [vmem:[#allocation7 + $0x2f0] ss:$28 sps:$4 sm:$0xff]  }
0x1540   :  { %13121 = vmatprep.subr.mxu1 %v16706_v49 }
0x1541   :  { %13122 = vmatpush3.msra.mxu1 %v16712_v47 }
0x1542   :  { %5857 = vmatpush1.bf16.msra.mxu0 %v14154_v40  ;;  %13123 = vmatprep.subr.mxu1 %v16718_v61 }
0x1543   :  { %5858 = vmatprep.subr.bf16.mxu0 %v14159_v54  ;;  %13124 = vmatpush3.msra.mxu1 %v16724_v55 }
0x1544   :  { %13125 = vmatprep.subr.mxu1 %v16730_v42 }
0x1545   :  { %13126 = vmatpush3.msra.mxu1 %v16736_v53 }
0x1546   :  { %5859 = vmatpush1.bf16.msra.mxu0 %v14157_v36  ;;  %13127 = vmatprep.subr.mxu1 %v16742_v52 }
0x1547   :  { %13128 = vmatpush3.msra.mxu1 %v16383_v56 }
0x1548   :  { %13129 = vmatprep.subr.mxu1 %v16389_v44 }
0x1549   :  { %12211 = vmatmul.mubr.msk.bf16.vlgmr.msra.gmra.mxu0 %vm243_vm1, %v15195_v35  ;;  %13130 = vmatpush3.msra.mxu1 %v16397_v17 }
0x154a   :  { %13131 = vmatprep.subr.mxu1 %v16403_v21  ;;  %6038 = vmatprep.mubr.bf16.mxu0 %v17994_v39 }
0x154b   :  { %13132 = vmatpush3.msra.mxu1 %v16410_v26 }
0x154c   :  { %13133 = vmatprep.subr.mxu1 %v16416_v10 }
0x154d   :  { %13134 = vmatpush3.msra.mxu1 %v16422_v32 }
0x15e5   :  { %v5612_v46 = vpop.f32.mrf.mxu0  ;;  %v5653_v22 = vpop.f32.mrf.mxu1 }
0x15e6   :  { %v16756_v56 = vadd.f32 %v5612_v46, %v16566_v5  ;;  %v16759_v44 = vadd.f32 %v5653_v22, %v16569_v30 }
0x15e7   :  { %v5614_v41 = vpop.f32.mrf.mxu0  ;;  %v16761_v17 = vpop.f32.mrf.mxu1 }
0x15e8   :  { %v16764_v21 = vadd.f32 %v5614_v41, %v16574_v43 }
0x15e9   :  { %v5616_v0 = vpop.f32.mrf.mxu0  ;;  %v5657_v26 = vpop.f32.mrf.mxu1 }
0x15ea   :  { %v14165_v0 = vld [vmem:[#allocation7 + $0x2e4] ss:$28 sps:$4 sm:$0xff]   ;;  %v14160_v26 = vld [vmem:[#allocation7 + $0x2d8] ss:$28 sps:$4 sm:$0xff]  }
0x15eb   :  { %v5617_v9 = vpop.f32.mrf.mxu0  ;;  %v5658_v10 = vpop.f32.mrf.mxu1  ;;  %6061 = vmatprep.subr.bf16.mxu1 %v14165_v0  ;;  %v14183_v0 = vld [vmem:[#allocation2 + $0x394] ss:$200 sps:$4 sm:$0xff]  }
0x15ec   :  { %v14163_v9 = vld [vmem:[#allocation7 + $0x2e0] ss:$28 sps:$4 sm:$0xff]   ;;  %v14168_v10 = vld [vmem:[#allocation7 + $0x2ec] ss:$28 sps:$4 sm:$0xff]  }
0x15ed   :  { %v5694_v62 = vpop.f32.mrf.mxu0  ;;  %v5735_v32 = vpop.f32.mrf.mxu1 }
0x15ee   :  { %v16767_v29 = vadd.f32 %v5694_v62, %v16577_v28  ;;  %v16770_v5 = vadd.f32 %v5735_v32, %v16580_v4 }
0x15ef   :  { %v5696_v30 = vpop.f32.mrf.mxu0  ;;  %v13658_v11 = vpop.f32.mrf.mxu1 }
0x15f0   :  { %v16773_v2 = vadd.f32 %v5696_v30, %v16583_v38  ;;  %v14162_v38 = vld [vmem:[#allocation7 + $0x2dc] ss:$28 sps:$4 sm:$0xff]  }
0x15f1   :  { %v5698_v25 = vpop.f32.mrf.mxu0  ;;  %v5738_v43 = vpop.f32.mrf.mxu1  ;;  %6020 = vmatprep.subr.bf16.mxu0 %v14162_v38  ;;  %v16779_v11 = vld [vmem:[#allocation6] ss:$0 sm:$0xff]  ;;  %v14178_v38 = vld [vmem:[#allocation2 + $0x520] ss:$200 sps:$4 sm:$0xff]  }
0x15f2   :  { %6021 = vmatpush1.bf16.msra.mxu0 %v14160_v26  ;;  %v14181_v26 = vld [vmem:[#allocation2 + $0x390] ss:$200 sps:$4 sm:$0xff]  }
0x15f3   :  { %v5699_v37 = vpop.f32.mrf.mxu0  ;;  %v13659_v15 = vpop.f32.mrf.mxu1  ;;  %6102 = vmatprep.subr.bf16.mxu0 %v14168_v10  ;;  %v14184_v10 = vld [vmem:[#allocation2 + $0x200] ss:$200 sps:$4 sm:$0xff]  }
0x15f4   :  { %v6188_v37 = vld [vmem:[#allocation2 + $0x9d0] sm:$0x11]  ;;  %v14166_v15 = vld [vmem:[#allocation7 + $0x2e8] ss:$28 sps:$4 sm:$0xff]  }
0x1609   :  { %v5878_v40 = vpop.f32.mrf.mxu0 }
0x160a   :  { %v5879_v28 = vadd.f32 %v5878_v40, %v5766_v23  ;;  %v12235_v40 = vcombine.low %v6188_v37, %v6188_v37 }
0x160b   :  { %v5880_v54 = vpop.f32.mrf.mxu0 }
0x160c   :  { %v5881_v36 = vadd.f32 %v5880_v54, %v5770_v45  ;;  %v5885_v22 = vmax.f32 %v5879_v28, 0.0  ;;  %v12236_v45 = vcombine.high %v6188_v37, %v6188_v37  ;;  %v16791_v28 = vld [vmem:[%s17972_s3 + $0xf8] sm:$0xff]  ;;  %v6267_v54 = vsel %vm247_vm0, %v12235_v40, 0  ;;  %v16845_v37 = vld [vmem:[%s17972_s3 + $0x88] sm:$0xff] }
0x160d   :  { %v5882_v4 = vpop.f32.mrf.mxu0 }
0x160e   :  { %v5886_v46 = vmax.f32 %v5881_v36, 0.0  ;;  %v14174_v36 = vld [vmem:[#allocation2 + $0x844] ss:$200 sps:$4 sm:$0xff]   ;;  %v14172_v4 = vld [vmem:[#allocation2 + $0x840] ss:$200 sps:$4 sm:$0xff]  }
0x160f   :  { %v5883_v41 = vpop.f32.mrf.mxu0 }
0x1610   :  { %5951 = vmatprep.mubr.f32.mxu1 %v5886_v46  ;;  %v14177_v46 = vld [vmem:[#allocation2 + $0x6b4] ss:$200 sps:$4 sm:$0xff]   ;;  %v14180_v41 = vld [vmem:[#allocation2 + $0x524] ss:$200 sps:$4 sm:$0xff]  }
0x1611   :  { %5952 = vmatmul.mubr.f32.vlgmr.msra.gmra.mxu1 %v5885_v22  ;;  %v14175_v22 = vld [vmem:[#allocation2 + $0x6b0] ss:$200 sps:$4 sm:$0xff]  }
0x1612   :  { %6079 = vmatprep.mubr.bf16.mxu1 %v17994_v39  ;;  %6062 = vmatpush1.bf16.msra.mxu1 %v14163_v9  ;;  %v14186_v9 = vld [vmem:[#allocation2 + $0x204] ss:$200 sps:$4 sm:$0xff]  }
0x1613   :  { %13660 = vmatprep.subr.bf16.mxu1 %v17990_v18 }
0x16d1   :  { %v13135_v62 = vpop.f32.mrf.mxu1 }
0x16d3   :  { %v13136_v32 = vpop.f32.mrf.mxu1 }
0x16d4   :  { %v13137_v30 = vadd.f32 %v13136_v32, %v13135_v62  ;;  %v14189_v62 = vld [vmem:[#allocation2 + $0x74] ss:$200 sps:$4 sm:$0xff]   ;;  %v14187_v32 = vld [vmem:[#allocation2 + $0x70] ss:$200 sps:$4 sm:$0xff]  }
0x16d6   :  { %v5954_v25 = vadd.f32 %v16779_v11, %v13137_v30  ;;  %v16825_v30 = vld [vmem:[%s17972_s3 + $0x18] sm:$0xff] }
0x16d8   :  { %v5957_v43 = vmax.f32 %v5954_v25, 0.0  ;;  %v16831_v25 = vld [vmem:[%s17972_s3 + $0x90] sm:$0xff] }
0x16da   :  { %v5958_v23 = vpack.c.bf16 %v5957_v43, %v5957_v43  ;;  %v16839_v43 = vld [vmem:[%s17972_s3 + $0x10] sm:$0xff] }
0x16dc   :  { %12219 = vmatmul.mubr.msk.bf16.vlgmr.msra.gmra.mxu0 %vm671_vm2, %v5958_v23  ;;  %12220 = vmatmul.mubr.msk.bf16.vlgmr.msra.gmra.mxu1 %vm671_vm2, %v5958_v23 }
0x16dd   :  { %6103 = vmatpush1.bf16.msra.mxu0 %v14166_v15  ;;  %13661 = vmatpush3.bf16.msra.mxu1 %v14169_v6  ;;  %v16852_v15 = vld [vmem:[%s17972_s3 + $0x8] sm:$0xff]  ;;  %v16858_v6 = vld [vmem:[%s17972_s3 + $0x80] sm:$0xff] }
0x16de   :  { %6120 = vmatprep.mubr.bf16.mxu0 %v17994_v39  ;;  %13662 = vmatprep.mubr.msk.bf16.mxu1 %vm15056_vm3, %v17990_v18 }
0x16df   :  { %12237 = vmatprep.subr.msk.bf16.mxu0 %vm247_vm0, %v12236_v45  ;;  %13140 = vmatprep.subr.mxu1 %v16791_v28 }
0x16e4   :  { %12221 = vmatmul.mubr.msk.bf16.vlgmr.msra.gmra.mxu0 %vm671_vm2, %v5958_v23  ;;  %13663 = vmatmul.mubr.msk.bf16.vlgmr.msra.gmra.mxu1 %vm671_vm2, %v5958_v23  ;;  %v16864_v23 = vld [vmem:[%s17972_s3] sm:$0xff] }
0x16e5   :  { %6275 = vmatpush1.bf16.msra.mxu0 %v6267_v54  ;;  %6304 = vmatprep.mubr.bf16.mxu0 %v17994_v39  ;;  %18000 = vst [vmem:[#allocation30_spill] sm:$0xff] %v16864_v23 }
0x16e6   :  { %6276 = vmatprep.subr.bf16.mxu0 %v14174_v36  ;;  %13141 = vmatpush3.msra.mxu1 %v16604_v12 }
0x16e7   :  { %13142 = vmatprep.subr.mxu1 %v16610_v19 }
0x16e8   :  { %13143 = vmatpush3.msra.mxu1 %v16616_v24 }
0x16e9   :  { %6277 = vmatpush1.bf16.msra.mxu0 %v14172_v4  ;;  %13144 = vmatprep.subr.mxu1 %v16622_v27 }
0x16ea   :  { %6278 = vmatprep.subr.bf16.mxu0 %v14177_v46  ;;  %13145 = vmatpush3.msra.mxu1 %v16628_v59 }
0x16eb   :  { %13146 = vmatprep.subr.mxu1 %v16634_v60 }
0x16ec   :  { %13147 = vmatpush3.msra.mxu1 %v16640_v1 }
0x16ed   :  { %6279 = vmatpush1.bf16.msra.mxu0 %v14175_v22  ;;  %13148 = vmatprep.subr.mxu1 %v16646_v13 }
0x16ee   :  { %6280 = vmatprep.subr.bf16.mxu0 %v14180_v41  ;;  %13149 = vmatpush3.msra.mxu1 %v16652_v58 }
0x16ef   :  { %13150 = vmatprep.subr.mxu1 %v16658_v63 }
0x16f0   :  { %13151 = vmatpush3.msra.mxu1 %v16664_v20 }
0x16f1   :  { %6281 = vmatpush1.bf16.msra.mxu0 %v14178_v38  ;;  %13152 = vmatprep.subr.mxu1 %v16670_v48 }
0x16f2   :  { %6282 = vmatprep.subr.bf16.mxu0 %v14183_v0  ;;  %13153 = vmatpush3.msra.mxu1 %v16676_v33 }
0x16f3   :  { %13154 = vmatprep.subr.mxu1 %v16682_v14 }
0x16f4   :  { %13155 = vmatpush3.msra.mxu1 %v16688_v31 }
0x16f5   :  { %6283 = vmatpush1.bf16.msra.mxu0 %v14181_v26  ;;  %13156 = vmatprep.subr.mxu1 %v16694_v51 }
0x16f6   :  { %6284 = vmatprep.subr.bf16.mxu0 %v14186_v9  ;;  %13157 = vmatpush3.msra.mxu1 %v16700_v34 }
0x16f7   :  { %13158 = vmatprep.subr.mxu1 %v16706_v49 }
0x16f8   :  { %13159 = vmatpush3.msra.mxu1 %v16712_v47 }
0x16f9   :  { %6285 = vmatpush1.bf16.msra.mxu0 %v14184_v10  ;;  %13160 = vmatprep.subr.mxu1 %v16718_v61 }
0x16fa   :  { %6286 = vmatprep.subr.bf16.mxu0 %v14189_v62  ;;  %13161 = vmatpush3.msra.mxu1 %v16724_v55 }
0x16fb   :  { %13162 = vmatprep.subr.mxu1 %v16730_v42 }
0x16fc   :  { %13163 = vmatpush3.msra.mxu1 %v16736_v53 }
0x16fd   :  { %6287 = vmatpush1.bf16.msra.mxu0 %v14187_v32  ;;  %13164 = vmatprep.subr.mxu1 %v16742_v52 }
0x16fe   :  { %13165 = vmatpush3.msra.mxu1 %v16825_v30 }
0x16ff   :  { %13166 = vmatprep.subr.mxu1 %v16831_v25 }
0x1700   :  { %12238 = vmatmul.mubr.msk.bf16.vlgmr.msra.gmra.mxu0 %vm243_vm1, %v15195_v35  ;;  %13167 = vmatpush3.msra.mxu1 %v16839_v43 }
0x1701   :  { %13168 = vmatprep.subr.mxu1 %v16845_v37  ;;  %6466 = vmatprep.mubr.bf16.mxu0 %v17994_v39 }
0x1702   :  { %13169 = vmatpush3.msra.mxu1 %v16852_v15 }
0x1703   :  { %13170 = vmatprep.subr.mxu1 %v16858_v6 }
0x1704   :  { %13171 = vmatpush3.msra.mxu1 %v16864_v23 }
0x179c   :  { %v6040_v45 = vpop.f32.mrf.mxu0  ;;  %v6081_v40 = vpop.f32.mrf.mxu1 }
0x179d   :  { %v16868_v54 = vadd.f32 %v6040_v45, %v16756_v56  ;;  %v16871_v36 = vadd.f32 %v6081_v40, %v16759_v44 }
0x179e   :  { %v6042_v4 = vpop.f32.mrf.mxu0  ;;  %v16873_v46 = vpop.f32.mrf.mxu1 }
0x179f   :  { %v16876_v22 = vadd.f32 %v6042_v4, %v16764_v21 }
0x17a0   :  { %v6044_v41 = vpop.f32.mrf.mxu0  ;;  %v6085_v38 = vpop.f32.mrf.mxu1 }
0x17a1   :  { %18001 = vst [vmem:[#allocation31_spill] sm:$0xff] %v16876_v22  ;;  %v6189_v38 = vld [vmem:[#allocation4 + $0x1c] sm:$0x3] }
0x17a2   :  { %v6045_v0 = vpop.f32.mrf.mxu0  ;;  %v6086_v26 = vpop.f32.mrf.mxu1 }
0x17a3   :  { %v6194_v0 = vrot.slane %v6189_v38, %v15284_v7  ;;  %v6198_v26 = vrot.slane %v6189_v38, %v15287_v8 }
0x17a4   :  { %v6122_v9 = vpop.f32.mrf.mxu0  ;;  %v6163_v10 = vpop.f32.mrf.mxu1 }
0x17a5   :  { %v16879_v62 = vadd.f32 %v6122_v9, %v16767_v29  ;;  %v16882_v56 = vadd.f32 %v6163_v10, %v16770_v5 }
0x17a6   :  { %v6124_v44 = vpop.f32.mrf.mxu0  ;;  %v13664_v32 = vpop.f32.mrf.mxu1 }
0x17a7   :  { %18002 = vst [vmem:[#allocation32_spill] sm:$0xff] %v16879_v62  ;;  %18003 = vst [vmem:[#allocation33_spill] sm:$0xff] %v16882_v56  ;;  %v16885_v45 = vadd.f32 %v6124_v44, %v16773_v2  ;;  %v14192_v2 = vld [vmem:[#allocation7 + $0x314] ss:$28 sps:$4 sm:$0xff]   ;;  %v14195_v44 = vld [vmem:[#allocation7 + $0x31c] ss:$28 sps:$4 sm:$0xff]  }
0x17a8   :  { %v6126_v40 = vpop.f32.mrf.mxu0  ;;  %v6166_v21 = vpop.f32.mrf.mxu1  ;;  %6448 = vmatprep.subr.bf16.mxu0 %v14192_v2  ;;  %6489 = vmatprep.subr.bf16.mxu1 %v14195_v44  ;;  %v14204_v2 = vld [vmem:[#allocation2 + $0x84c] ss:$200 sps:$4 sm:$0xff]   ;;  %v14202_v44 = vld [vmem:[#allocation2 + $0x848] ss:$200 sps:$4 sm:$0xff]  }
0x17a9   :  { %v14190_v40 = vld [vmem:[#allocation7 + $0x310] ss:$28 sps:$4 sm:$0xff]   ;;  %v14193_v21 = vld [vmem:[#allocation7 + $0x318] ss:$28 sps:$4 sm:$0xff]  }
0x17aa   :  { %v6127_v4 = vpop.f32.mrf.mxu0  ;;  %v13665_v41 = vpop.f32.mrf.mxu1  ;;  %6449 = vmatpush1.bf16.msra.mxu0 %v14190_v40  ;;  %v14207_v40 = vld [vmem:[#allocation2 + $0x6bc] ss:$200 sps:$4 sm:$0xff]  }
0x17ab   :  { %v14198_v4 = vld [vmem:[#allocation7 + $0x324] ss:$28 sps:$4 sm:$0xff]  }
0x17ac   :  { %6530 = vmatprep.subr.bf16.mxu0 %v14198_v4  ;;  %v14210_v4 = vld [vmem:[#allocation2 + $0x52c] ss:$200 sps:$4 sm:$0xff]  }
0x17c0   :  { %v6306_v22 = vpop.f32.mrf.mxu0 }
0x17c1   :  { %v6307_v29 = vadd.f32 %v6306_v22, %v6194_v0  ;;  %v6616_v0 = vld [vmem:[#allocation2 + $0x9d8] sm:$0x11] }
0x17c2   :  { %v6308_v9 = vpop.f32.mrf.mxu0 }
0x17c3   :  { %v6309_v62 = vadd.f32 %v6308_v9, %v6198_v26  ;;  %v6313_v56 = vmax.f32 %v6307_v29, 0.0  ;;  %v14196_v26 = vld [vmem:[#allocation7 + $0x320] ss:$28 sps:$4 sm:$0xff]   ;;  %v14199_v29 = vld [vmem:[#allocation7 + $0x328] ss:$28 sps:$4 sm:$0xff]  }
0x17c4   :  { %v6310_v5 = vpop.f32.mrf.mxu0 }
0x17c5   :  { %v6314_v10 = vmax.f32 %v6309_v62, 0.0  ;;  %v12263_v5 = vcombine.high %v6616_v0, %v6616_v0 }
0x17c6   :  { %v6311_v32 = vpop.f32.mrf.mxu0 }
0x17c7   :  { %6379 = vmatprep.mubr.f32.mxu1 %v6314_v10  ;;  %v12262_v10 = vcombine.low %v6616_v0, %v6616_v0  ;;  %v14219_v0 = vld [vmem:[#allocation2 + $0x7c] ss:$200 sps:$4 sm:$0xff]  }
0x17c8   :  { %6380 = vmatmul.mubr.f32.vlgmr.msra.gmra.mxu1 %v6313_v56 }
0x17c9   :  { %6507 = vmatprep.mubr.bf16.mxu1 %v17994_v39  ;;  %6490 = vmatpush1.bf16.msra.mxu1 %v14193_v21  ;;  %v6695_v32 = vsel %vm247_vm0, %v12262_v10, 0  ;;  %v14205_v21 = vld [vmem:[#allocation2 + $0x6b8] ss:$200 sps:$4 sm:$0xff]  }
0x17ca   :  { %13666 = vmatprep.subr.bf16.mxu1 %v17990_v18 }
0x1888   :  { %v13172_v22 = vpop.f32.mrf.mxu1 }
0x188a   :  { %v13173_v62 = vpop.f32.mrf.mxu1 }
0x188b   :  { %v13174_v41 = vadd.f32 %v13173_v62, %v13172_v22  ;;  %v14208_v22 = vld [vmem:[#allocation2 + $0x528] ss:$200 sps:$4 sm:$0xff]   ;;  %v14213_v62 = vld [vmem:[#allocation2 + $0x39c] ss:$200 sps:$4 sm:$0xff]  }
0x188d   :  { %v6382_v38 = vadd.f32 %v16779_v11, %v13174_v41  ;;  %v14211_v41 = vld [vmem:[#allocation2 + $0x398] ss:$200 sps:$4 sm:$0xff]  }
0x188f   :  { %v6385_v56 = vmax.f32 %v6382_v38, 0.0  ;;  %v14216_v38 = vld [vmem:[#allocation2 + $0x20c] ss:$200 sps:$4 sm:$0xff]  }
0x1891   :  { %v6386_v9 = vpack.c.bf16 %v6385_v56, %v6385_v56  ;;  %v14214_v56 = vld [vmem:[#allocation2 + $0x208] ss:$200 sps:$4 sm:$0xff]  }
0x1893   :  { %12246 = vmatmul.mubr.msk.bf16.vlgmr.msra.gmra.mxu0 %vm671_vm2, %v6386_v9  ;;  %12247 = vmatmul.mubr.msk.bf16.vlgmr.msra.gmra.mxu1 %vm671_vm2, %v6386_v9 }
0x1894   :  { %6531 = vmatpush1.bf16.msra.mxu0 %v14196_v26  ;;  %13667 = vmatpush3.bf16.msra.mxu1 %v14199_v29  ;;  %v14217_v26 = vld [vmem:[#allocation2 + $0x78] ss:$200 sps:$4 sm:$0xff]   ;;  %v955_v29 = vadd.f32 %v15557_v16, %v15547_v50 }
0x1895   :  { %6548 = vmatprep.mubr.bf16.mxu0 %v17994_v39  ;;  %13668 = vmatprep.mubr.msk.bf16.mxu1 %vm15056_vm3, %v17990_v18 }
0x1896   :  { %12264 = vmatprep.subr.msk.bf16.mxu0 %vm247_vm0, %v12263_v5  ;;  %13177 = vmatprep.subr.mxu1 %v16791_v28  ;;  %v18004_v5 = vld [vmem:[#allocation22_spill] sm:$0xff] }
0x189b   :  { %12248 = vmatmul.mubr.msk.bf16.vlgmr.msra.gmra.mxu0 %vm671_vm2, %v6386_v9  ;;  %13669 = vmatmul.mubr.msk.bf16.vlgmr.msra.gmra.mxu1 %vm671_vm2, %v6386_v9  ;;  %v1464_v9 = vadd.f32 %v15617_v57, %v955_v29 }
0x189c   :  { %6703 = vmatpush1.bf16.msra.mxu0 %v6695_v32  ;;  %6732 = vmatprep.mubr.bf16.mxu0 %v17994_v39  ;;  %v18005_v32 = vld [vmem:[#allocation23_spill] sm:$0xff] }
0x189d   :  { %6704 = vmatprep.subr.bf16.mxu0 %v14204_v2  ;;  %13178 = vmatpush3.msra.mxu1 %v16604_v12  ;;  %v1892_v10 = vadd.f32 %v18004_v5, %v1464_v9 }
0x189e   :  { %13179 = vmatprep.subr.mxu1 %v16610_v19 }
0x189f   :  { %13180 = vmatpush3.msra.mxu1 %v16616_v24  ;;  %v2320_v2 = vadd.f32 %v18005_v32, %v1892_v10 }
0x18a0   :  { %6705 = vmatpush1.bf16.msra.mxu0 %v14202_v44  ;;  %13181 = vmatprep.subr.mxu1 %v16622_v27  ;;  %v18006_v44 = vld [vmem:[#allocation24_spill] sm:$0xff] }
0x18a1   :  { %6706 = vmatprep.subr.bf16.mxu0 %v14207_v40  ;;  %13182 = vmatpush3.msra.mxu1 %v16628_v59  ;;  %v2748_v40 = vadd.f32 %v18006_v44, %v2320_v2  ;;  %v18012_v44 = vld [vmem:[#allocation31_spill] sm:$0xff] }
0x18a2   :  { %13183 = vmatprep.subr.mxu1 %v16634_v60 }
0x18a3   :  { %13184 = vmatpush3.msra.mxu1 %v16640_v1 }
0x18a4   :  { %6707 = vmatpush1.bf16.msra.mxu0 %v14205_v21  ;;  %13185 = vmatprep.subr.mxu1 %v16646_v13  ;;  %v18007_v21 = vld [vmem:[#allocation25_spill] sm:$0xff] }
0x18a5   :  { %6708 = vmatprep.subr.bf16.mxu0 %v14210_v4  ;;  %13186 = vmatpush3.msra.mxu1 %v16652_v58  ;;  %v3176_v4 = vadd.f32 %v18007_v21, %v2748_v40 }
0x18a6   :  { %13187 = vmatprep.subr.mxu1 %v16658_v63 }
0x18a7   :  { %13188 = vmatpush3.msra.mxu1 %v16664_v20 }
0x18a8   :  { %6709 = vmatpush1.bf16.msra.mxu0 %v14208_v22  ;;  %13189 = vmatprep.subr.mxu1 %v16670_v48  ;;  %v18008_v22 = vld [vmem:[#allocation26_spill] sm:$0xff] }
0x18a9   :  { %6710 = vmatprep.subr.bf16.mxu0 %v14213_v62  ;;  %13190 = vmatpush3.msra.mxu1 %v16676_v33  ;;  %v3604_v62 = vadd.f32 %v18008_v22, %v3176_v4 }
0x18aa   :  { %13191 = vmatprep.subr.mxu1 %v16682_v14 }
0x18ab   :  { %13192 = vmatpush3.msra.mxu1 %v16688_v31 }
0x18ac   :  { %6711 = vmatpush1.bf16.msra.mxu0 %v14211_v41  ;;  %13193 = vmatprep.subr.mxu1 %v16694_v51  ;;  %v18009_v41 = vld [vmem:[#allocation27_spill] sm:$0xff] }
0x18ad   :  { %6712 = vmatprep.subr.bf16.mxu0 %v14216_v38  ;;  %13194 = vmatpush3.msra.mxu1 %v16700_v34  ;;  %v4032_v38 = vadd.f32 %v18009_v41, %v3604_v62 }
0x18ae   :  { %13195 = vmatprep.subr.mxu1 %v16706_v49 }
0x18af   :  { %13196 = vmatpush3.msra.mxu1 %v16712_v47 }
0x18b0   :  { %6713 = vmatpush1.bf16.msra.mxu0 %v14214_v56  ;;  %13197 = vmatprep.subr.mxu1 %v16718_v61  ;;  %v18010_v56 = vld [vmem:[#allocation28_spill] sm:$0xff] }
0x18b1   :  { %6714 = vmatprep.subr.bf16.mxu0 %v14219_v0  ;;  %13198 = vmatpush3.msra.mxu1 %v16724_v55  ;;  %v4460_v0 = vadd.f32 %v18010_v56, %v4032_v38 }
0x18b2   :  { %13199 = vmatprep.subr.mxu1 %v16730_v42 }
0x18b3   :  { %13200 = vmatpush3.msra.mxu1 %v16736_v53 }
0x18b4   :  { %6715 = vmatpush1.bf16.msra.mxu0 %v14217_v26  ;;  %13201 = vmatprep.subr.mxu1 %v16742_v52  ;;  %v18011_v26 = vld [vmem:[#allocation29_spill] sm:$0xff] }
0x18b5   :  { %13202 = vmatpush3.msra.mxu1 %v16825_v30 }
0x18b6   :  { %13203 = vmatprep.subr.mxu1 %v16831_v25 }
0x18b7   :  { %12265 = vmatmul.mubr.msk.bf16.vlgmr.msra.gmra.mxu0 %vm243_vm1, %v15195_v35  ;;  %13204 = vmatpush3.msra.mxu1 %v16839_v43 }
0x18b8   :  { %13205 = vmatprep.subr.mxu1 %v16845_v37  ;;  %6894 = vmatprep.mubr.bf16.mxu0 %v17994_v39 }
0x18b9   :  { %13206 = vmatpush3.msra.mxu1 %v16852_v15 }
0x18ba   :  { %13207 = vmatprep.subr.mxu1 %v16858_v6 }
0x18bb   :  { %13208 = vmatpush3.msra.mxu1 %v16864_v23  ;;  %v4888_v23 = vadd.f32 %v18011_v26, %v4460_v0 }
0x18bd   :  { %v5316_v50 = vadd.f32 %v16571_v3, %v4888_v23 }
0x18bf   :  { %v5744_v16 = vadd.f32 %v16761_v17, %v5316_v50 }
0x18c1   :  { %v6172_v9 = vadd.f32 %v16873_v46, %v5744_v16  ;;  %v18013_v46 = vld [vmem:[#allocation32_spill] sm:$0xff] }
0x1953   :  { %v6468_v57 = vpop.f32.mrf.mxu0  ;;  %v6509_v29 = vpop.f32.mrf.mxu1 }
0x1954   :  { %v16952_v5 = vadd.f32 %v6468_v57, %v16868_v54  ;;  %v16955_v10 = vadd.f32 %v6509_v29, %v16871_v36  ;;  %v18014_v54 = vld [vmem:[#allocation33_spill] sm:$0xff] }
0x1955   :  { %v6470_v32 = vpop.f32.mrf.mxu0  ;;  %v6511_v2 = vpop.f32.mrf.mxu1  ;;  %v6617_v29 = vld [vmem:[#allocation4 + $0x1e] sm:$0x3] }
0x1956   :  { %v16958_v40 = vadd.f32 %v6470_v32, %v18012_v44  ;;  %v16960_v21 = vadd.f32 %v6511_v2, %v6172_v9  ;;  %v6622_v9 = vrot.slane %v6617_v29, %v15284_v7  ;;  %v6626_v32 = vrot.slane %v6617_v29, %v15287_v8 }
0x1957   :  { %v6472_v3 = vpop.f32.mrf.mxu0  ;;  %v6513_v23 = vpop.f32.mrf.mxu1 }
0x1959   :  { %v6473_v17 = vpop.f32.mrf.mxu0  ;;  %v6514_v4 = vpop.f32.mrf.mxu1 }
0x195b   :  { %v6550_v22 = vpop.f32.mrf.mxu0  ;;  %v6591_v62 = vpop.f32.mrf.mxu1 }
0x195c   :  { %v16963_v41 = vadd.f32 %v6550_v22, %v18013_v46  ;;  %v16966_v38 = vadd.f32 %v6591_v62, %v18014_v54  ;;  %v14225_v46 = vld [vmem:[#allocation7 + $0x354] ss:$28 sps:$4 sm:$0xff]   ;;  %v14220_v54 = vld [vmem:[#allocation7 + $0x348] ss:$28 sps:$4 sm:$0xff]  }
0x195d   :  { %v6552_v36 = vpop.f32.mrf.mxu0  ;;  %v13670_v56 = vpop.f32.mrf.mxu1  ;;  %6917 = vmatprep.subr.bf16.mxu1 %v14225_v46  ;;  %v14240_v46 = vld [vmem:[#allocation2 + $0x534] ss:$200 sps:$4 sm:$0xff]  }
0x195e   :  { %v16969_v0 = vadd.f32 %v6552_v36, %v16885_v45  ;;  %v14222_v45 = vld [vmem:[#allocation7 + $0x34c] ss:$28 sps:$4 sm:$0xff]   ;;  %v14228_v56 = vld [vmem:[#allocation7 + $0x35c] ss:$28 sps:$4 sm:$0xff]  }
0x195f   :  { %v6554_v26 = vpop.f32.mrf.mxu0  ;;  %v6594_v50 = vpop.f32.mrf.mxu1  ;;  %v14223_v36 = vld [vmem:[#allocation7 + $0x350] ss:$28 sps:$4 sm:$0xff]   ;;  %6876 = vmatprep.subr.bf16.mxu0 %v14222_v45 }
0x1960   :  { %6877 = vmatpush1.bf16.msra.mxu0 %v14220_v54  ;;  %v14235_v45 = vld [vmem:[#allocation2 + $0x6c0] ss:$200 sps:$4 sm:$0xff]   ;;  %v14238_v54 = vld [vmem:[#allocation2 + $0x530] ss:$200 sps:$4 sm:$0xff]  }
0x1961   :  { %v6555_v16 = vpop.f32.mrf.mxu0  ;;  %v13671_v57 = vpop.f32.mrf.mxu1  ;;  %6958 = vmatprep.subr.bf16.mxu0 %v14228_v56 }
0x1977   :  { %v6734_v2 = vpop.f32.mrf.mxu0 }
0x1978   :  { %v6735_v44 = vadd.f32 %v6734_v2, %v6622_v9  ;;  %v7044_v9 = vld [vmem:[#allocation2 + $0x9e0] sm:$0x11]  ;;  %v14229_v2 = vld [vmem:[#allocation7 + $0x360] ss:$28 sps:$4 sm:$0xff]  }
0x1979   :  { %v6736_v3 = vpop.f32.mrf.mxu0 }
0x197a   :  { %v6737_v23 = vadd.f32 %v6736_v3, %v6626_v32  ;;  %v6741_v22 = vmax.f32 %v6735_v44, 0.0  ;;  %v14226_v32 = vld [vmem:[#allocation7 + $0x358] ss:$28 sps:$4 sm:$0xff]   ;;  %v12290_v3 = vcombine.high %v7044_v9, %v7044_v9 }
0x197b   :  { %v6738_v17 = vpop.f32.mrf.mxu0 }
0x197c   :  { %v6742_v4 = vmax.f32 %v6737_v23, 0.0  ;;  %v12289_v23 = vcombine.low %v7044_v9, %v7044_v9 }
0x197d   :  { %v6739_v62 = vpop.f32.mrf.mxu0 }
0x197e   :  { %6807 = vmatprep.mubr.f32.mxu1 %v6742_v4  ;;  %v7123_v17 = vsel %vm247_vm0, %v12289_v23, 0  ;;  %v14234_v4 = vld [vmem:[#allocation2 + $0x854] ss:$200 sps:$4 sm:$0xff]   ;;  %v14237_v62 = vld [vmem:[#allocation2 + $0x6c4] ss:$200 sps:$4 sm:$0xff]  }
0x197f   :  { %6808 = vmatmul.mubr.f32.vlgmr.msra.gmra.mxu1 %v6741_v22  ;;  %v14232_v22 = vld [vmem:[#allocation2 + $0x850] ss:$200 sps:$4 sm:$0xff]  }
0x1980   :  { %6935 = vmatprep.mubr.bf16.mxu1 %v17994_v39  ;;  %6918 = vmatpush1.bf16.msra.mxu1 %v14223_v36  ;;  %v14250_v23 = vld [vmem:[#allocation7 + $0x380] ss:$28 sps:$4 sm:$0xff]  }
0x1981   :  { %13672 = vmatprep.subr.bf16.mxu1 %v17990_v18 }
0x1a3f   :  { %v13209_v26 = vpop.f32.mrf.mxu1 }
0x1a41   :  { %v13210_v50 = vpop.f32.mrf.mxu1 }
0x1a42   :  { %v13211_v16 = vadd.f32 %v13210_v50, %v13209_v26  ;;  %v7045_v26 = vld [vmem:[#allocation4 + $0x20] sm:$0x3] }
0x1a43   :  { %v7050_v50 = vrot.slane %v7045_v26, %v15284_v7 }
0x1a44   :  { %v6810_v57 = vadd.f32 %v16779_v11, %v13211_v16  ;;  %v7054_v16 = vrot.slane %v7045_v26, %v15287_v8  ;;  %v17121_v26 = vld [vmem:[%s17972_s3 + $0x50] sm:$0xff] }
0x1a46   :  { %v6813_v29 = vmax.f32 %v6810_v57, 0.0 }
0x1a48   :  { %v6814_v44 = vpack.c.bf16 %v6813_v29, %v6813_v29 }
0x1a4a   :  { %12273 = vmatmul.mubr.msk.bf16.vlgmr.msra.gmra.mxu0 %vm671_vm2, %v6814_v44  ;;  %12274 = vmatmul.mubr.msk.bf16.vlgmr.msra.gmra.mxu1 %vm671_vm2, %v6814_v44 }
0x1a4b   :  { %6959 = vmatpush1.bf16.msra.mxu0 %v14226_v32  ;;  %13673 = vmatpush3.bf16.msra.mxu1 %v14229_v2 }
0x1a4c   :  { %6976 = vmatprep.mubr.bf16.mxu0 %v17994_v39  ;;  %13674 = vmatprep.mubr.msk.bf16.mxu1 %vm15056_vm3, %v17990_v18 }
0x1a4d   :  { %12291 = vmatprep.subr.msk.bf16.mxu0 %vm247_vm0, %v12290_v3  ;;  %13214 = vmatprep.subr.mxu1 %v16791_v28  ;;  %v14255_v3 = vld [vmem:[#allocation7 + $0x38c] ss:$28 sps:$4 sm:$0xff]  }
0x1a52   :  { %12275 = vmatmul.mubr.msk.bf16.vlgmr.msra.gmra.mxu0 %vm671_vm2, %v6814_v44  ;;  %13675 = vmatmul.mubr.msk.bf16.vlgmr.msra.gmra.mxu1 %vm671_vm2, %v6814_v44 }
0x1a53   :  { %7131 = vmatpush1.bf16.msra.mxu0 %v7123_v17  ;;  %7160 = vmatprep.mubr.bf16.mxu0 %v17994_v39  ;;  %v14253_v17 = vld [vmem:[#allocation7 + $0x388] ss:$28 sps:$4 sm:$0xff]  }
0x1a54   :  { %7132 = vmatprep.subr.bf16.mxu0 %v14234_v4  ;;  %13215 = vmatpush3.msra.mxu1 %v16604_v12  ;;  %v14243_v12 = vld [vmem:[#allocation2 + $0x3a4] ss:$200 sps:$4 sm:$0xff]  }
0x1a55   :  { %13216 = vmatprep.subr.mxu1 %v16610_v19  ;;  %v14241_v19 = vld [vmem:[#allocation2 + $0x3a0] ss:$200 sps:$4 sm:$0xff]   ;;  %v14258_v4 = vld [vmem:[#allocation7 + $0x394] ss:$28 sps:$4 sm:$0xff]  }
0x1a56   :  { %13217 = vmatpush3.msra.mxu1 %v16616_v24  ;;  %v14246_v24 = vld [vmem:[#allocation2 + $0x214] ss:$200 sps:$4 sm:$0xff]  }
0x1a57   :  { %7133 = vmatpush1.bf16.msra.mxu0 %v14232_v22  ;;  %13218 = vmatprep.subr.mxu1 %v16622_v27  ;;  %v14244_v27 = vld [vmem:[#allocation2 + $0x210] ss:$200 sps:$4 sm:$0xff]  }
0x1a58   :  { %7134 = vmatprep.subr.bf16.mxu0 %v14237_v62  ;;  %13219 = vmatpush3.msra.mxu1 %v16628_v59  ;;  %v14249_v59 = vld [vmem:[#allocation2 + $0x84] ss:$200 sps:$4 sm:$0xff]  }
0x1a59   :  { %13220 = vmatprep.subr.mxu1 %v16634_v60  ;;  %v14247_v60 = vld [vmem:[#allocation2 + $0x80] ss:$200 sps:$4 sm:$0xff]  }
0x1a5a   :  { %13221 = vmatpush3.msra.mxu1 %v16640_v1  ;;  %v18015_v1 = vld [vmem:[#allocation30_spill] sm:$0xff] }
0x1a5b   :  { %7135 = vmatpush1.bf16.msra.mxu0 %v14235_v45  ;;  %13222 = vmatprep.subr.mxu1 %v16646_v13 }
0x1a5c   :  { %7136 = vmatprep.subr.bf16.mxu0 %v14240_v46  ;;  %13223 = vmatpush3.msra.mxu1 %v16652_v58 }
0x1a5d   :  { %13224 = vmatprep.subr.mxu1 %v16658_v63 }
0x1a5e   :  { %13225 = vmatpush3.msra.mxu1 %v16664_v20 }
0x1a5f   :  { %7137 = vmatpush1.bf16.msra.mxu0 %v14238_v54  ;;  %13226 = vmatprep.subr.mxu1 %v16670_v48 }
0x1a60   :  { %7138 = vmatprep.subr.bf16.mxu0 %v14243_v12  ;;  %13227 = vmatpush3.msra.mxu1 %v16676_v33  ;;  %v7472_v12 = vld [vmem:[#allocation2 + $0x9e8] sm:$0x11] }
0x1a61   :  { %13228 = vmatprep.subr.mxu1 %v16682_v14 }
0x1a62   :  { %13229 = vmatpush3.msra.mxu1 %v16688_v31 }
0x1a63   :  { %7139 = vmatpush1.bf16.msra.mxu0 %v14241_v19  ;;  %13230 = vmatprep.subr.mxu1 %v16694_v51  ;;  %v14256_v19 = vld [vmem:[#allocation7 + $0x390] ss:$28 sps:$4 sm:$0xff]  }
0x1a64   :  { %7140 = vmatprep.subr.bf16.mxu0 %v14246_v24  ;;  %13231 = vmatpush3.msra.mxu1 %v16700_v34  ;;  %v14259_v24 = vld [vmem:[#allocation7 + $0x398] ss:$28 sps:$4 sm:$0xff]  }
0x1a65   :  { %13232 = vmatprep.subr.mxu1 %v16706_v49 }
0x1a66   :  { %13233 = vmatpush3.msra.mxu1 %v16712_v47 }
0x1a67   :  { %7141 = vmatpush1.bf16.msra.mxu0 %v14244_v27  ;;  %13234 = vmatprep.subr.mxu1 %v16718_v61 }
0x1a68   :  { %7142 = vmatprep.subr.bf16.mxu0 %v14249_v59  ;;  %13235 = vmatpush3.msra.mxu1 %v16724_v55  ;;  %v12317_v59 = vcombine.high %v7472_v12, %v7472_v12 }
0x1a69   :  { %13236 = vmatprep.subr.mxu1 %v16730_v42 }
0x1a6a   :  { %13237 = vmatpush3.msra.mxu1 %v16736_v53 }
0x1a6b   :  { %7143 = vmatpush1.bf16.msra.mxu0 %v14247_v60  ;;  %13238 = vmatprep.subr.mxu1 %v16742_v52  ;;  %v12316_v60 = vcombine.low %v7472_v12, %v7472_v12 }
0x1a6c   :  { %13239 = vmatpush3.msra.mxu1 %v16825_v30 }
0x1a6d   :  { %13240 = vmatprep.subr.mxu1 %v16831_v25 }
0x1a6e   :  { %12292 = vmatmul.mubr.msk.bf16.vlgmr.msra.gmra.mxu0 %vm243_vm1, %v15195_v35  ;;  %13241 = vmatpush3.msra.mxu1 %v16839_v43 }
0x1a6f   :  { %13242 = vmatprep.subr.mxu1 %v16845_v37  ;;  %7322 = vmatprep.mubr.bf16.mxu0 %v17994_v39 }
0x1a70   :  { %13243 = vmatpush3.msra.mxu1 %v16852_v15 }
0x1a71   :  { %13244 = vmatprep.subr.mxu1 %v16858_v6 }
0x1a72   :  { %13245 = vmatpush3.msra.mxu1 %v18015_v1 }
0x1a73   :  { %7345 = vmatprep.subr.bf16.mxu1 %v14255_v3  ;;  %v17169_v3 = vld [vmem:[%s17972_s3 + $0x30] sm:$0xff] }
0x1b0a   :  { %v6896_v13 = vpop.f32.mrf.mxu0  ;;  %v6937_v58 = vpop.f32.mrf.mxu1 }
0x1b0b   :  { %v17022_v63 = vadd.f32 %v6896_v13, %v16952_v5  ;;  %v17025_v20 = vadd.f32 %v6937_v58, %v16955_v10  ;;  %v14264_v13 = vld [vmem:[#allocation2 + $0x85c] ss:$200 sps:$4 sm:$0xff]   ;;  %v14262_v58 = vld [vmem:[#allocation2 + $0x858] ss:$200 sps:$4 sm:$0xff]  }
0x1b0c   :  { %v6898_v48 = vpop.f32.mrf.mxu0  ;;  %v6939_v33 = vpop.f32.mrf.mxu1 }
0x1b0d   :  { %v17028_v14 = vadd.f32 %v6898_v48, %v16958_v40  ;;  %v17031_v31 = vadd.f32 %v6939_v33, %v16960_v21  ;;  %v14267_v48 = vld [vmem:[#allocation2 + $0x6cc] ss:$200 sps:$4 sm:$0xff]   ;;  %v17061_v33 = vld [vmem:[%s17972_s3 + $0x78] sm:$0xff] }
0x1b0e   :  { %v6900_v51 = vpop.f32.mrf.mxu0  ;;  %v6941_v34 = vpop.f32.mrf.mxu1 }
0x1b0f   :  { %v17073_v51 = vld [vmem:[%s17972_s3 + $0x70] sm:$0xff] }
0x1b10   :  { %v6901_v49 = vpop.f32.mrf.mxu0  ;;  %v6942_v47 = vpop.f32.mrf.mxu1  ;;  %v14265_v34 = vld [vmem:[#allocation2 + $0x6c8] ss:$200 sps:$4 sm:$0xff]  }
0x1b11   :  { %v17079_v49 = vld [vmem:[%s17972_s3 + $0xe8] sm:$0xff]  ;;  %v14270_v47 = vld [vmem:[#allocation2 + $0x53c] ss:$200 sps:$4 sm:$0xff]  }
0x1b12   :  { %v6978_v61 = vpop.f32.mrf.mxu0  ;;  %v7019_v55 = vpop.f32.mrf.mxu1 }
0x1b13   :  { %v17034_v42 = vadd.f32 %v6978_v61, %v16963_v41  ;;  %v17037_v53 = vadd.f32 %v7019_v55, %v16966_v38  ;;  %v17085_v61 = vld [vmem:[%s17972_s3 + $0x68] sm:$0xff]  ;;  %v17091_v55 = vld [vmem:[%s17972_s3 + $0xe0] sm:$0xff] }
0x1b14   :  { %v6980_v52 = vpop.f32.mrf.mxu0  ;;  %v13676_v5 = vpop.f32.mrf.mxu1 }
0x1b15   :  { %v17040_v10 = vadd.f32 %v6980_v52, %v16969_v0  ;;  %v14252_v0 = vld [vmem:[#allocation7 + $0x384] ss:$28 sps:$4 sm:$0xff]  }
0x1b16   :  { %v6982_v40 = vpop.f32.mrf.mxu0  ;;  %v7022_v21 = vpop.f32.mrf.mxu1  ;;  %7304 = vmatprep.subr.bf16.mxu0 %v14252_v0  ;;  %v17097_v52 = vld [vmem:[%s17972_s3 + $0x60] sm:$0xff]  ;;  %v17163_v0 = vld [vmem:[%s17972_s3 + $0xb0] sm:$0xff] }
0x1b17   :  { %7305 = vmatpush1.bf16.msra.mxu0 %v14250_v23  ;;  %v14268_v5 = vld [vmem:[#allocation2 + $0x538] ss:$200 sps:$4 sm:$0xff]   ;;  %v14273_v21 = vld [vmem:[#allocation2 + $0x3ac] ss:$200 sps:$4 sm:$0xff]   ;;  %v14277_v23 = vld [vmem:[#allocation2 + $0x88] ss:$200 sps:$4 sm:$0xff]  }
0x1b18   :  { %v6983_v36 = vpop.f32.mrf.mxu0  ;;  %v13677_v56 = vpop.f32.mrf.mxu1  ;;  %7386 = vmatprep.subr.bf16.mxu0 %v14258_v4  ;;  %v17103_v40 = vld [vmem:[%s17972_s3 + $0xd8] sm:$0xff]  ;;  %v17181_v4 = vld [vmem:[%s17972_s3 + $0x28] sm:$0xff] }
0x1b19   :  { %v17109_v36 = vld [vmem:[%s17972_s3 + $0x58] sm:$0xff]  ;;  %v17115_v56 = vld [vmem:[%s17972_s3 + $0xd0] sm:$0xff] }
0x1b2e   :  { %v7162_v57 = vpop.f32.mrf.mxu0 }
0x1b2f   :  { %v7163_v41 = vadd.f32 %v7162_v57, %v7050_v50  ;;  %v14271_v50 = vld [vmem:[#allocation2 + $0x3a8] ss:$200 sps:$4 sm:$0xff]   ;;  %v14276_v57 = vld [vmem:[#allocation2 + $0x21c] ss:$200 sps:$4 sm:$0xff]  }
0x1b30   :  { %v7164_v29 = vpop.f32.mrf.mxu0 }
0x1b31   :  { %v7165_v9 = vadd.f32 %v7164_v29, %v7054_v16  ;;  %v7169_v2 = vmax.f32 %v7163_v41, 0.0  ;;  %v17127_v16 = vld [vmem:[%s17972_s3 + $0xc8] sm:$0xff]  ;;  %v17139_v29 = vld [vmem:[%s17972_s3 + $0xc0] sm:$0xff] }
0x1b32   :  { %v7166_v38 = vpop.f32.mrf.mxu0  ;;  %v17133_v41 = vld [vmem:[%s17972_s3 + $0x48] sm:$0xff] }
0x1b33   :  { %v7170_v32 = vmax.f32 %v7165_v9, 0.0  ;;  %v17145_v9 = vld [vmem:[%s17972_s3 + $0x40] sm:$0xff] }
0x1b34   :  { %v7167_v44 = vpop.f32.mrf.mxu0  ;;  %v14274_v38 = vld [vmem:[#allocation2 + $0x218] ss:$200 sps:$4 sm:$0xff]  }
0x1b35   :  { %7235 = vmatprep.mubr.f32.mxu1 %v7170_v32  ;;  %v17151_v32 = vld [vmem:[%s17972_s3 + $0xb8] sm:$0xff] }
0x1b36   :  { %7236 = vmatmul.mubr.f32.vlgmr.msra.gmra.mxu1 %v7169_v2  ;;  %v14279_v2 = vld [vmem:[#allocation2 + $0x8c] ss:$200 sps:$4 sm:$0xff]   ;;  %v17157_v44 = vld [vmem:[%s17972_s3 + $0x38] sm:$0xff] }
0x1b37   :  { %7363 = vmatprep.mubr.bf16.mxu1 %v17994_v39  ;;  %7346 = vmatpush1.bf16.msra.mxu1 %v14253_v17  ;;  %v17175_v17 = vld [vmem:[%s17972_s3 + $0xa8] sm:$0xff] }
0x1b38   :  { %13678 = vmatprep.subr.bf16.mxu1 %v17990_v18 }
0x1bf6   :  { %v13246_v22 = vpop.f32.mrf.mxu1 }
0x1bf8   :  { %v13247_v62 = vpop.f32.mrf.mxu1 }
0x1bf9   :  { %v13248_v45 = vadd.f32 %v13247_v62, %v13246_v22  ;;  %v17187_v22 = vld [vmem:[%s17972_s3 + $0xa0] sm:$0xff] }
0x1bfa   :  { %v17193_v62 = vld [vmem:[%s17972_s3 + $0x20] sm:$0xff] }
0x1bfb   :  { %v7238_v46 = vadd.f32 %v16779_v11, %v13248_v45  ;;  %v7551_v11 = vsel %vm247_vm0, %v12316_v60, 0  ;;  %v17199_v45 = vld [vmem:[%s17972_s3 + $0x98] sm:$0xff] }
0x1bfd   :  { %v7241_v54 = vmax.f32 %v7238_v46, 0.0 }
0x1bff   :  { %v7242_v27 = vpack.c.bf16 %v7241_v54, %v7241_v54 }
0x1c01   :  { %12300 = vmatmul.mubr.msk.bf16.vlgmr.msra.gmra.mxu0 %vm671_vm2, %v7242_v27  ;;  %12301 = vmatmul.mubr.msk.bf16.vlgmr.msra.gmra.mxu1 %vm671_vm2, %v7242_v27 }
0x1c02   :  { %7387 = vmatpush1.bf16.msra.mxu0 %v14256_v19  ;;  %13679 = vmatpush3.bf16.msra.mxu1 %v14259_v24 }
0x1c03   :  { %7404 = vmatprep.mubr.bf16.mxu0 %v17994_v39  ;;  %13680 = vmatprep.mubr.msk.bf16.mxu1 %vm15056_vm3, %v17990_v18 }
0x1c04   :  { %12318 = vmatprep.subr.msk.bf16.mxu0 %vm247_vm0, %v12317_v59  ;;  %13251 = vmatprep.subr.mxu1 %v16791_v28  ;;  %v17067_v28 = vld [vmem:[%s17972_s3 + $0xf0] sm:$0xff] }
0x1c09   :  { %12302 = vmatmul.mubr.msk.bf16.vlgmr.msra.gmra.mxu0 %vm671_vm2, %v7242_v27  ;;  %13681 = vmatmul.mubr.msk.bf16.vlgmr.msra.gmra.mxu1 %vm671_vm2, %v7242_v27 }
0x1c0a   :  { %7559 = vmatpush1.bf16.msra.mxu0 %v7551_v11  ;;  %7588 = vmatprep.mubr.bf16.mxu0 %v17994_v39 }
0x1c0b   :  { %7560 = vmatprep.subr.bf16.mxu0 %v14264_v13  ;;  %13252 = vmatpush3.msra.mxu1 %v17061_v33 }
0x1c0c   :  { %13253 = vmatprep.subr.mxu1 %v17067_v28 }
0x1c0d   :  { %13254 = vmatpush3.msra.mxu1 %v17073_v51 }
0x1c0e   :  { %7561 = vmatpush1.bf16.msra.mxu0 %v14262_v58  ;;  %13255 = vmatprep.subr.mxu1 %v17079_v49 }
0x1c0f   :  { %7562 = vmatprep.subr.bf16.mxu0 %v14267_v48  ;;  %13256 = vmatpush3.msra.mxu1 %v17085_v61 }
0x1c10   :  { %13257 = vmatprep.subr.mxu1 %v17091_v55 }
0x1c11   :  { %13258 = vmatpush3.msra.mxu1 %v17097_v52 }
0x1c12   :  { %7563 = vmatpush1.bf16.msra.mxu0 %v14265_v34  ;;  %13259 = vmatprep.subr.mxu1 %v17103_v40  ;;  %v7473_v34 = vld [vmem:[#allocation4 + $0x22] sm:$0x3] }
0x1c13   :  { %7564 = vmatprep.subr.bf16.mxu0 %v14270_v47  ;;  %13260 = vmatpush3.msra.mxu1 %v17109_v36  ;;  %v7478_v47 = vrot.slane %v7473_v34, %v15284_v7 }
0x1c14   :  { %13261 = vmatprep.subr.mxu1 %v17115_v56 }
0x1c15   :  { %13262 = vmatpush3.msra.mxu1 %v17121_v26 }
0x1c16   :  { %7565 = vmatpush1.bf16.msra.mxu0 %v14268_v5  ;;  %13263 = vmatprep.subr.mxu1 %v17127_v16  ;;  %v7482_v5 = vrot.slane %v7473_v34, %v15287_v8  ;;  %v17249_v34 = vld [vmem:[%s17972_s3 + $0xf8] sm:$0xff] }
0x1c17   :  { %7566 = vmatprep.subr.bf16.mxu0 %v14273_v21  ;;  %13264 = vmatpush3.msra.mxu1 %v17133_v41 }
0x1c18   :  { %13265 = vmatprep.subr.mxu1 %v17139_v29 }
0x1c19   :  { %13266 = vmatpush3.msra.mxu1 %v17145_v9 }
0x1c1a   :  { %7567 = vmatpush1.bf16.msra.mxu0 %v14271_v50  ;;  %13267 = vmatprep.subr.mxu1 %v17151_v32 }
0x1c1b   :  { %7568 = vmatprep.subr.bf16.mxu0 %v14276_v57  ;;  %13268 = vmatpush3.msra.mxu1 %v17157_v44 }
0x1c1c   :  { %13269 = vmatprep.subr.mxu1 %v17163_v0 }
0x1c1d   :  { %13270 = vmatpush3.msra.mxu1 %v17169_v3 }
0x1c1e   :  { %7569 = vmatpush1.bf16.msra.mxu0 %v14274_v38  ;;  %13271 = vmatprep.subr.mxu1 %v17175_v17 }
0x1c1f   :  { %7570 = vmatprep.subr.bf16.mxu0 %v14279_v2  ;;  %13272 = vmatpush3.msra.mxu1 %v17181_v4 }
0x1c20   :  { %13273 = vmatprep.subr.mxu1 %v17187_v22 }
0x1c21   :  { %13274 = vmatpush3.msra.mxu1 %v17193_v62 }
0x1c22   :  { %7571 = vmatpush1.bf16.msra.mxu0 %v14277_v23  ;;  %13275 = vmatprep.subr.mxu1 %v17199_v45 }
0x1c23   :  { %13276 = vmatpush3.msra.mxu1 %v16825_v30 }
0x1c24   :  { %13277 = vmatprep.subr.mxu1 %v16831_v25 }
0x1c25   :  { %12319 = vmatmul.mubr.msk.bf16.vlgmr.msra.gmra.mxu0 %vm243_vm1, %v15195_v35  ;;  %13278 = vmatpush3.msra.mxu1 %v16839_v43 }
0x1c26   :  { %13279 = vmatprep.subr.mxu1 %v16845_v37  ;;  %7750 = vmatprep.mubr.bf16.mxu0 %v17994_v39 }
0x1c27   :  { %13280 = vmatpush3.msra.mxu1 %v16852_v15 }
0x1c28   :  { %13281 = vmatprep.subr.mxu1 %v16858_v6 }
0x1c29   :  { %13282 = vmatpush3.msra.mxu1 %v18015_v1 }
0x1cc1   :  { %v7324_v46 = vpop.f32.mrf.mxu0  ;;  %v7365_v54 = vpop.f32.mrf.mxu1 }
0x1cc2   :  { %v17213_v30 = vadd.f32 %v7324_v46, %v17022_v63  ;;  %v17216_v25 = vadd.f32 %v7365_v54, %v17025_v20  ;;  %v14285_v46 = vld [vmem:[#allocation7 + $0x3c4] ss:$28 sps:$4 sm:$0xff]   ;;  %v14280_v54 = vld [vmem:[#allocation7 + $0x3b8] ss:$28 sps:$4 sm:$0xff]  }
0x1cc3   :  { %v7326_v12 = vpop.f32.mrf.mxu0  ;;  %v7367_v43 = vpop.f32.mrf.mxu1  ;;  %7773 = vmatprep.subr.bf16.mxu1 %v14285_v46  ;;  %v14309_v46 = vld [vmem:[#allocation2 + $0x94] ss:$200 sps:$4 sm:$0xff]  }
0x1cc4   :  { %v17219_v37 = vadd.f32 %v7326_v12, %v17028_v14  ;;  %v17222_v19 = vadd.f32 %v7367_v43, %v17031_v31  ;;  %v14283_v12 = vld [vmem:[#allocation7 + $0x3c0] ss:$28 sps:$4 sm:$0xff]   ;;  %v14288_v43 = vld [vmem:[#allocation7 + $0x3cc] ss:$28 sps:$4 sm:$0xff]  }
0x1cc5   :  { %v7328_v15 = vpop.f32.mrf.mxu0  ;;  %v7369_v6 = vpop.f32.mrf.mxu1 }
0x1cc7   :  { %v7329_v24 = vpop.f32.mrf.mxu0  ;;  %v7370_v1 = vpop.f32.mrf.mxu1 }
0x1cc8   :  { %v17237_v1 = vld [vmem:[#allocation6] ss:$0 sm:$0xff] }
0x1cc9   :  { %v7406_v27 = vpop.f32.mrf.mxu0  ;;  %v7447_v59 = vpop.f32.mrf.mxu1 }
0x1cca   :  { %v17225_v63 = vadd.f32 %v7406_v27, %v17034_v42  ;;  %v17228_v20 = vadd.f32 %v7447_v59, %v17037_v53 }
0x1ccb   :  { %v7408_v60 = vpop.f32.mrf.mxu0  ;;  %v13682_v11 = vpop.f32.mrf.mxu1 }
0x1ccc   :  { %v17231_v14 = vadd.f32 %v7408_v60, %v17040_v10  ;;  %v14282_v10 = vld [vmem:[#allocation7 + $0x3bc] ss:$28 sps:$4 sm:$0xff]   ;;  %v14286_v11 = vld [vmem:[#allocation7 + $0x3c8] ss:$28 sps:$4 sm:$0xff]  }
0x1ccd   :  { %v7410_v13 = vpop.f32.mrf.mxu0  ;;  %v7450_v31 = vpop.f32.mrf.mxu1  ;;  %7732 = vmatprep.subr.bf16.mxu0 %v14282_v10  ;;  %v7900_v60 = vld [vmem:[#allocation2 + $0x9f0] sm:$0x11]  ;;  %v14304_v10 = vld [vmem:[#allocation2 + $0x220] ss:$200 sps:$4 sm:$0xff]  }
0x1cce   :  { %7733 = vmatpush1.bf16.msra.mxu0 %v14280_v54  ;;  %v14289_v13 = vld [vmem:[#allocation7 + $0x3d0] ss:$28 sps:$4 sm:$0xff]   ;;  %v14307_v54 = vld [vmem:[#allocation2 + $0x90] ss:$200 sps:$4 sm:$0xff]  }
0x1ccf   :  { %v7411_v58 = vpop.f32.mrf.mxu0  ;;  %v13683_v48 = vpop.f32.mrf.mxu1  ;;  %7814 = vmatprep.subr.bf16.mxu0 %v14288_v43  ;;  %v17289_v43 = vld [vmem:[%s17972_s3 + $0x90] sm:$0xff] }
0x1cd0   :  { %v12344_v58 = vcombine.high %v7900_v60, %v7900_v60  ;;  %v12343_v48 = vcombine.low %v7900_v60, %v7900_v60 }
0x1ce5   :  { %v7590_v21 = vpop.f32.mrf.mxu0 }
0x1ce6   :  { %v7591_v42 = vadd.f32 %v7590_v21, %v7478_v47  ;;  %v7979_v47 = vsel %vm247_vm0, %v12343_v48, 0  ;;  %v14292_v21 = vld [vmem:[#allocation2 + $0x860] ss:$200 sps:$4 sm:$0xff]  }
0x1ce7   :  { %v7592_v50 = vpop.f32.mrf.mxu0 }
0x1ce8   :  { %v7593_v57 = vadd.f32 %v7592_v50, %v7482_v5  ;;  %v7597_v2 = vmax.f32 %v7591_v42, 0.0  ;;  %v14294_v5 = vld [vmem:[#allocation2 + $0x864] ss:$200 sps:$4 sm:$0xff]   ;;  %v14297_v42 = vld [vmem:[#allocation2 + $0x6d4] ss:$200 sps:$4 sm:$0xff]  }
0x1ce9   :  { %v7594_v53 = vpop.f32.mrf.mxu0  ;;  %v14295_v50 = vld [vmem:[#allocation2 + $0x6d0] ss:$200 sps:$4 sm:$0xff]  }
0x1cea   :  { %v7598_v38 = vmax.f32 %v7593_v57, 0.0  ;;  %v14300_v57 = vld [vmem:[#allocation2 + $0x544] ss:$200 sps:$4 sm:$0xff]   ;;  %v14298_v53 = vld [vmem:[#allocation2 + $0x540] ss:$200 sps:$4 sm:$0xff]  }
0x1ceb   :  { %v7595_v23 = vpop.f32.mrf.mxu0 }
0x1cec   :  { %7663 = vmatprep.mubr.f32.mxu1 %v7598_v38  ;;  %v14303_v38 = vld [vmem:[#allocation2 + $0x3b4] ss:$200 sps:$4 sm:$0xff]   ;;  %v14306_v23 = vld [vmem:[#allocation2 + $0x224] ss:$200 sps:$4 sm:$0xff]  }
0x1ced   :  { %7664 = vmatmul.mubr.f32.vlgmr.msra.gmra.mxu1 %v7597_v2  ;;  %v14301_v2 = vld [vmem:[#allocation2 + $0x3b0] ss:$200 sps:$4 sm:$0xff]  }
0x1cee   :  { %7791 = vmatprep.mubr.bf16.mxu1 %v17994_v39  ;;  %7774 = vmatpush1.bf16.msra.mxu1 %v14283_v12  ;;  %v17283_v12 = vld [vmem:[%s17972_s3 + $0x18] sm:$0xff] }
0x1cef   :  { %13684 = vmatprep.subr.bf16.mxu1 %v17990_v18 }
0x1dad   :  { %v13283_v15 = vpop.f32.mrf.mxu1 }
0x1daf   :  { %v13284_v6 = vpop.f32.mrf.mxu1 }
0x1db0   :  { %v13285_v24 = vadd.f32 %v13284_v6, %v13283_v15  ;;  %v17297_v15 = vld [vmem:[%s17972_s3 + $0x10] sm:$0xff]  ;;  %v17303_v6 = vld [vmem:[%s17972_s3 + $0x88] sm:$0xff] }
0x1db2   :  { %v7666_v27 = vadd.f32 %v17237_v1, %v13285_v24  ;;  %v17310_v24 = vld [vmem:[%s17972_s3 + $0x8] sm:$0xff] }
0x1db4   :  { %v7669_v59 = vmax.f32 %v7666_v27, 0.0  ;;  %v17316_v27 = vld [vmem:[%s17972_s3 + $0x80] sm:$0xff] }
0x1db6   :  { %v7670_v31 = vpack.c.bf16 %v7669_v59, %v7669_v59  ;;  %v17322_v59 = vld [vmem:[%s17972_s3] sm:$0xff] }
0x1db8   :  { %12327 = vmatmul.mubr.msk.bf16.vlgmr.msra.gmra.mxu0 %vm671_vm2, %v7670_v31  ;;  %12328 = vmatmul.mubr.msk.bf16.vlgmr.msra.gmra.mxu1 %vm671_vm2, %v7670_v31 }
0x1db9   :  { %7815 = vmatpush1.bf16.msra.mxu0 %v14286_v11  ;;  %13685 = vmatpush3.bf16.msra.mxu1 %v14289_v13 }
0x1dba   :  { %7832 = vmatprep.mubr.bf16.mxu0 %v17994_v39  ;;  %13686 = vmatprep.mubr.msk.bf16.mxu1 %vm15056_vm3, %v17990_v18 }
0x1dbb   :  { %12345 = vmatprep.subr.msk.bf16.mxu0 %vm247_vm0, %v12344_v58  ;;  %13288 = vmatprep.subr.mxu1 %v17249_v34 }
0x1dc0   :  { %12329 = vmatmul.mubr.msk.bf16.vlgmr.msra.gmra.mxu0 %vm671_vm2, %v7670_v31  ;;  %13687 = vmatmul.mubr.msk.bf16.vlgmr.msra.gmra.mxu1 %vm671_vm2, %v7670_v31 }
0x1dc1   :  { %7987 = vmatpush1.bf16.msra.mxu0 %v7979_v47  ;;  %8016 = vmatprep.mubr.bf16.mxu0 %v17994_v39 }
0x1dc2   :  { %7988 = vmatprep.subr.bf16.mxu0 %v14294_v5  ;;  %13289 = vmatpush3.msra.mxu1 %v17061_v33 }
0x1dc3   :  { %13290 = vmatprep.subr.mxu1 %v17067_v28 }
0x1dc4   :  { %13291 = vmatpush3.msra.mxu1 %v17073_v51 }
0x1dc5   :  { %7989 = vmatpush1.bf16.msra.mxu0 %v14292_v21  ;;  %13292 = vmatprep.subr.mxu1 %v17079_v49 }
0x1dc6   :  { %7990 = vmatprep.subr.bf16.mxu0 %v14297_v42  ;;  %13293 = vmatpush3.msra.mxu1 %v17085_v61 }
0x1dc7   :  { %13294 = vmatprep.subr.mxu1 %v17091_v55 }
0x1dc8   :  { %13295 = vmatpush3.msra.mxu1 %v17097_v52 }
0x1dc9   :  { %7991 = vmatpush1.bf16.msra.mxu0 %v14295_v50  ;;  %13296 = vmatprep.subr.mxu1 %v17103_v40 }
0x1dca   :  { %7992 = vmatprep.subr.bf16.mxu0 %v14300_v57  ;;  %13297 = vmatpush3.msra.mxu1 %v17109_v36 }
0x1dcb   :  { %13298 = vmatprep.subr.mxu1 %v17115_v56 }
0x1dcc   :  { %13299 = vmatpush3.msra.mxu1 %v17121_v26 }
0x1dcd   :  { %7993 = vmatpush1.bf16.msra.mxu0 %v14298_v53  ;;  %13300 = vmatprep.subr.mxu1 %v17127_v16 }
0x1dce   :  { %7994 = vmatprep.subr.bf16.mxu0 %v14303_v38  ;;  %13301 = vmatpush3.msra.mxu1 %v17133_v41 }
0x1dcf   :  { %13302 = vmatprep.subr.mxu1 %v17139_v29 }
0x1dd0   :  { %13303 = vmatpush3.msra.mxu1 %v17145_v9 }
0x1dd1   :  { %7995 = vmatpush1.bf16.msra.mxu0 %v14301_v2  ;;  %13304 = vmatprep.subr.mxu1 %v17151_v32 }
0x1dd2   :  { %7996 = vmatprep.subr.bf16.mxu0 %v14306_v23  ;;  %13305 = vmatpush3.msra.mxu1 %v17157_v44 }
0x1dd3   :  { %13306 = vmatprep.subr.mxu1 %v17163_v0 }
0x1dd4   :  { %13307 = vmatpush3.msra.mxu1 %v17169_v3 }
0x1dd5   :  { %7997 = vmatpush1.bf16.msra.mxu0 %v14304_v10  ;;  %13308 = vmatprep.subr.mxu1 %v17175_v17 }
0x1dd6   :  { %7998 = vmatprep.subr.bf16.mxu0 %v14309_v46  ;;  %13309 = vmatpush3.msra.mxu1 %v17181_v4 }
0x1dd7   :  { %13310 = vmatprep.subr.mxu1 %v17187_v22 }
0x1dd8   :  { %13311 = vmatpush3.msra.mxu1 %v17193_v62 }
0x1dd9   :  { %7999 = vmatpush1.bf16.msra.mxu0 %v14307_v54  ;;  %13312 = vmatprep.subr.mxu1 %v17199_v45 }
0x1dda   :  { %13313 = vmatpush3.msra.mxu1 %v17283_v12 }
0x1ddb   :  { %13314 = vmatprep.subr.mxu1 %v17289_v43 }
0x1ddc   :  { %12346 = vmatmul.mubr.msk.bf16.vlgmr.msra.gmra.mxu0 %vm243_vm1, %v15195_v35  ;;  %13315 = vmatpush3.msra.mxu1 %v17297_v15 }
0x1ddd   :  { %13316 = vmatprep.subr.mxu1 %v17303_v6  ;;  %8178 = vmatprep.mubr.bf16.mxu0 %v17994_v39 }
0x1dde   :  { %13317 = vmatpush3.msra.mxu1 %v17310_v24 }
0x1ddf   :  { %13318 = vmatprep.subr.mxu1 %v17316_v27 }
0x1de0   :  { %13319 = vmatpush3.msra.mxu1 %v17322_v59 }
0x1e78   :  { %v7752_v60 = vpop.f32.mrf.mxu0  ;;  %v7793_v11 = vpop.f32.mrf.mxu1 }
0x1e79   :  { %v17326_v13 = vadd.f32 %v7752_v60, %v17213_v30  ;;  %v17329_v31 = vadd.f32 %v7793_v11, %v17216_v25  ;;  %v7901_v60 = vld [vmem:[#allocation4 + $0x24] sm:$0x3] }
0x1e7a   :  { %v7754_v58 = vpop.f32.mrf.mxu0  ;;  %v7795_v48 = vpop.f32.mrf.mxu1  ;;  %v7906_v11 = vrot.slane %v7901_v60, %v15284_v7 }
0x1e7b   :  { %v17332_v47 = vadd.f32 %v7754_v58, %v17219_v37  ;;  %v17335_v5 = vadd.f32 %v7795_v48, %v17222_v19  ;;  %v7910_v58 = vrot.slane %v7901_v60, %v15287_v8 }
0x1e7c   :  { %v7756_v21 = vpop.f32.mrf.mxu0  ;;  %v7797_v42 = vpop.f32.mrf.mxu1 }
0x1e7e   :  { %v7757_v50 = vpop.f32.mrf.mxu0  ;;  %v7798_v57 = vpop.f32.mrf.mxu1 }
0x1e80   :  { %v7834_v53 = vpop.f32.mrf.mxu0  ;;  %v7875_v38 = vpop.f32.mrf.mxu1 }
0x1e81   :  { %v17338_v30 = vadd.f32 %v7834_v53, %v17225_v63  ;;  %v17341_v25 = vadd.f32 %v7875_v38, %v17228_v20  ;;  %v14315_v38 = vld [vmem:[#allocation7 + $0x3fc] ss:$28 sps:$4 sm:$0xff]  }
0x1e82   :  { %v7836_v2 = vpop.f32.mrf.mxu0  ;;  %v13688_v23 = vpop.f32.mrf.mxu1  ;;  %8201 = vmatprep.subr.bf16.mxu1 %v14315_v38  ;;  %v14325_v38 = vld [vmem:[#allocation2 + $0x6d8] ss:$200 sps:$4 sm:$0xff]  }
0x1e83   :  { %v17344_v37 = vadd.f32 %v7836_v2, %v17231_v14  ;;  %v14312_v14 = vld [vmem:[#allocation7 + $0x3f4] ss:$28 sps:$4 sm:$0xff]  }
0x1e84   :  { %v7838_v10 = vpop.f32.mrf.mxu0  ;;  %v7878_v19 = vpop.f32.mrf.mxu1  ;;  %v14310_v2 = vld [vmem:[#allocation7 + $0x3f0] ss:$28 sps:$4 sm:$0xff]   ;;  %v14313_v23 = vld [vmem:[#allocation7 + $0x3f8] ss:$28 sps:$4 sm:$0xff]   ;;  %8160 = vmatprep.subr.bf16.mxu0 %v14312_v14  ;;  %v14327_v14 = vld [vmem:[#allocation2 + $0x6dc] ss:$200 sps:$4 sm:$0xff]  }
0x1e85   :  { %8161 = vmatpush1.bf16.msra.mxu0 %v14310_v2  ;;  %v14318_v10 = vld [vmem:[#allocation7 + $0x404] ss:$28 sps:$4 sm:$0xff]   ;;  %v14330_v2 = vld [vmem:[#allocation2 + $0x54c] ss:$200 sps:$4 sm:$0xff]  }
0x1e86   :  { %v7839_v46 = vpop.f32.mrf.mxu0  ;;  %v13689_v54 = vpop.f32.mrf.mxu1  ;;  %8242 = vmatprep.subr.bf16.mxu0 %v14318_v10  ;;  %v14333_v10 = vld [vmem:[#allocation2 + $0x3bc] ss:$200 sps:$4 sm:$0xff]  }
0x1e9c   :  { %v8018_v48 = vpop.f32.mrf.mxu0 }
0x1e9d   :  { %v8019_v63 = vadd.f32 %v8018_v48, %v7906_v11  ;;  %v14316_v48 = vld [vmem:[#allocation7 + $0x400] ss:$28 sps:$4 sm:$0xff]  }
0x1e9e   :  { %v8020_v21 = vpop.f32.mrf.mxu0 }
0x1e9f   :  { %v8021_v42 = vadd.f32 %v8020_v21, %v7910_v58  ;;  %v8025_v57 = vmax.f32 %v8019_v63, 0.0  ;;  %v8328_v58 = vld [vmem:[#allocation2 + $0x9f8] sm:$0x11]  ;;  %v14319_v63 = vld [vmem:[#allocation7 + $0x408] ss:$28 sps:$4 sm:$0xff]  }
0x1ea0   :  { %v8022_v20 = vpop.f32.mrf.mxu0 }
0x1ea1   :  { %v8026_v50 = vmax.f32 %v8021_v42, 0.0  ;;  %v12371_v42 = vcombine.high %v8328_v58, %v8328_v58  ;;  %v12370_v20 = vcombine.low %v8328_v58, %v8328_v58 }
0x1ea2   :  { %v8023_v53 = vpop.f32.mrf.mxu0 }
0x1ea3   :  { %8091 = vmatprep.mubr.f32.mxu1 %v8026_v50  ;;  %v8407_v50 = vsel %vm247_vm0, %v12370_v20, 0  ;;  %v14322_v53 = vld [vmem:[#allocation2 + $0x868] ss:$200 sps:$4 sm:$0xff]  }
0x1ea4   :  { %8092 = vmatmul.mubr.f32.vlgmr.msra.gmra.mxu1 %v8025_v57  ;;  %v14324_v57 = vld [vmem:[#allocation2 + $0x86c] ss:$200 sps:$4 sm:$0xff]  }
0x1ea5   :  { %8219 = vmatprep.mubr.bf16.mxu1 %v17994_v39  ;;  %8202 = vmatpush1.bf16.msra.mxu1 %v14313_v23  ;;  %v14328_v23 = vld [vmem:[#allocation2 + $0x548] ss:$200 sps:$4 sm:$0xff]  }
0x1ea6   :  { %13690 = vmatprep.subr.bf16.mxu1 %v17990_v18 }
0x1f64   :  { %v13320_v19 = vpop.f32.mrf.mxu1 }
0x1f66   :  { %v13321_v46 = vpop.f32.mrf.mxu1 }
0x1f67   :  { %v13322_v54 = vadd.f32 %v13321_v46, %v13320_v19  ;;  %v14331_v19 = vld [vmem:[#allocation2 + $0x3b8] ss:$200 sps:$4 sm:$0xff]   ;;  %v14336_v46 = vld [vmem:[#allocation2 + $0x22c] ss:$200 sps:$4 sm:$0xff]  }
0x1f69   :  { %v8094_v60 = vadd.f32 %v17237_v1, %v13322_v54  ;;  %v14334_v54 = vld [vmem:[#allocation2 + $0x228] ss:$200 sps:$4 sm:$0xff]  }
0x1f6b   :  { %v8097_v11 = vmax.f32 %v8094_v60, 0.0  ;;  %v14339_v60 = vld [vmem:[#allocation2 + $0x9c] ss:$200 sps:$4 sm:$0xff]  }
0x1f6d   :  { %v8098_v21 = vpack.c.bf16 %v8097_v11, %v8097_v11  ;;  %v14337_v11 = vld [vmem:[#allocation2 + $0x98] ss:$200 sps:$4 sm:$0xff]  }
0x1f6f   :  { %12354 = vmatmul.mubr.msk.bf16.vlgmr.msra.gmra.mxu0 %vm671_vm2, %v8098_v21  ;;  %12355 = vmatmul.mubr.msk.bf16.vlgmr.msra.gmra.mxu1 %vm671_vm2, %v8098_v21 }
0x1f70   :  { %8243 = vmatpush1.bf16.msra.mxu0 %v14316_v48  ;;  %13691 = vmatpush3.bf16.msra.mxu1 %v14319_v63 }
0x1f71   :  { %8260 = vmatprep.mubr.bf16.mxu0 %v17994_v39  ;;  %13692 = vmatprep.mubr.msk.bf16.mxu1 %vm15056_vm3, %v17990_v18 }
0x1f72   :  { %12372 = vmatprep.subr.msk.bf16.mxu0 %vm247_vm0, %v12371_v42  ;;  %13325 = vmatprep.subr.mxu1 %v17249_v34 }
0x1f77   :  { %12356 = vmatmul.mubr.msk.bf16.vlgmr.msra.gmra.mxu0 %vm671_vm2, %v8098_v21  ;;  %13693 = vmatmul.mubr.msk.bf16.vlgmr.msra.gmra.mxu1 %vm671_vm2, %v8098_v21 }
0x1f78   :  { %8415 = vmatpush1.bf16.msra.mxu0 %v8407_v50  ;;  %8444 = vmatprep.mubr.bf16.mxu0 %v17994_v39 }
0x1f79   :  { %8416 = vmatprep.subr.bf16.mxu0 %v14324_v57  ;;  %13326 = vmatpush3.msra.mxu1 %v17061_v33 }
0x1f7a   :  { %13327 = vmatprep.subr.mxu1 %v17067_v28 }
0x1f7b   :  { %13328 = vmatpush3.msra.mxu1 %v17073_v51 }
0x1f7c   :  { %8417 = vmatpush1.bf16.msra.mxu0 %v14322_v53  ;;  %13329 = vmatprep.subr.mxu1 %v17079_v49 }
0x1f7d   :  { %8418 = vmatprep.subr.bf16.mxu0 %v14327_v14  ;;  %13330 = vmatpush3.msra.mxu1 %v17085_v61 }
0x1f7e   :  { %13331 = vmatprep.subr.mxu1 %v17091_v55 }
0x1f7f   :  { %13332 = vmatpush3.msra.mxu1 %v17097_v52 }
0x1f80   :  { %8419 = vmatpush1.bf16.msra.mxu0 %v14325_v38  ;;  %13333 = vmatprep.subr.mxu1 %v17103_v40 }
0x1f81   :  { %8420 = vmatprep.subr.bf16.mxu0 %v14330_v2  ;;  %13334 = vmatpush3.msra.mxu1 %v17109_v36 }
0x1f82   :  { %13335 = vmatprep.subr.mxu1 %v17115_v56 }
0x1f83   :  { %13336 = vmatpush3.msra.mxu1 %v17121_v26 }
0x1f84   :  { %8421 = vmatpush1.bf16.msra.mxu0 %v14328_v23  ;;  %13337 = vmatprep.subr.mxu1 %v17127_v16 }
0x1f85   :  { %8422 = vmatprep.subr.bf16.mxu0 %v14333_v10  ;;  %13338 = vmatpush3.msra.mxu1 %v17133_v41 }
0x1f86   :  { %13339 = vmatprep.subr.mxu1 %v17139_v29 }
0x1f87   :  { %13340 = vmatpush3.msra.mxu1 %v17145_v9 }
0x1f88   :  { %8423 = vmatpush1.bf16.msra.mxu0 %v14331_v19  ;;  %13341 = vmatprep.subr.mxu1 %v17151_v32 }
0x1f89   :  { %8424 = vmatprep.subr.bf16.mxu0 %v14336_v46  ;;  %13342 = vmatpush3.msra.mxu1 %v17157_v44 }
0x1f8a   :  { %13343 = vmatprep.subr.mxu1 %v17163_v0 }
0x1f8b   :  { %13344 = vmatpush3.msra.mxu1 %v17169_v3 }
0x1f8c   :  { %8425 = vmatpush1.bf16.msra.mxu0 %v14334_v54  ;;  %13345 = vmatprep.subr.mxu1 %v17175_v17 }
0x1f8d   :  { %8426 = vmatprep.subr.bf16.mxu0 %v14339_v60  ;;  %13346 = vmatpush3.msra.mxu1 %v17181_v4 }
0x1f8e   :  { %13347 = vmatprep.subr.mxu1 %v17187_v22 }
0x1f8f   :  { %13348 = vmatpush3.msra.mxu1 %v17193_v62 }
0x1f90   :  { %8427 = vmatpush1.bf16.msra.mxu0 %v14337_v11  ;;  %13349 = vmatprep.subr.mxu1 %v17199_v45 }
0x1f91   :  { %13350 = vmatpush3.msra.mxu1 %v17283_v12 }
0x1f92   :  { %13351 = vmatprep.subr.mxu1 %v17289_v43 }
0x1f93   :  { %12373 = vmatmul.mubr.msk.bf16.vlgmr.msra.gmra.mxu0 %vm243_vm1, %v15195_v35  ;;  %13352 = vmatpush3.msra.mxu1 %v17297_v15 }
0x1f94   :  { %13353 = vmatprep.subr.mxu1 %v17303_v6  ;;  %8606 = vmatprep.mubr.bf16.mxu0 %v17994_v39 }
0x1f95   :  { %13354 = vmatpush3.msra.mxu1 %v17310_v24 }
0x1f96   :  { %13355 = vmatprep.subr.mxu1 %v17316_v27 }
0x1f97   :  { %13356 = vmatpush3.msra.mxu1 %v17322_v59 }
0x202f   :  { %v8180_v58 = vpop.f32.mrf.mxu0  ;;  %v8221_v48 = vpop.f32.mrf.mxu1 }
0x2030   :  { %v17397_v63 = vadd.f32 %v8180_v58, %v17326_v13  ;;  %v17400_v21 = vadd.f32 %v8221_v48, %v17329_v31  ;;  %v8329_v58 = vld [vmem:[#allocation4 + $0x26] sm:$0x3] }
0x2031   :  { %v8182_v42 = vpop.f32.mrf.mxu0  ;;  %v8223_v20 = vpop.f32.mrf.mxu1  ;;  %v8334_v48 = vrot.slane %v8329_v58, %v15284_v7 }
0x2032   :  { %v17403_v50 = vadd.f32 %v8182_v42, %v17332_v47  ;;  %v17406_v57 = vadd.f32 %v8223_v20, %v17335_v5  ;;  %v8338_v42 = vrot.slane %v8329_v58, %v15287_v8 }
0x2033   :  { %v8184_v53 = vpop.f32.mrf.mxu0  ;;  %v8225_v14 = vpop.f32.mrf.mxu1 }
0x2035   :  { %v8185_v38 = vpop.f32.mrf.mxu0  ;;  %v8226_v2 = vpop.f32.mrf.mxu1 }
0x2037   :  { %v8262_v23 = vpop.f32.mrf.mxu0  ;;  %v8303_v10 = vpop.f32.mrf.mxu1 }
0x2038   :  { %v17409_v13 = vadd.f32 %v8262_v23, %v17338_v30  ;;  %v17412_v31 = vadd.f32 %v8303_v10, %v17341_v25  ;;  %v14345_v10 = vld [vmem:[#allocation7 + $0x434] ss:$28 sps:$4 sm:$0xff]  }
0x2039   :  { %v8264_v19 = vpop.f32.mrf.mxu0  ;;  %v13694_v46 = vpop.f32.mrf.mxu1  ;;  %8629 = vmatprep.subr.bf16.mxu1 %v14345_v10  ;;  %v14355_v10 = vld [vmem:[#allocation2 + $0x6e0] ss:$200 sps:$4 sm:$0xff]  }
0x203a   :  { %v17415_v47 = vadd.f32 %v8264_v19, %v17344_v37  ;;  %v14342_v37 = vld [vmem:[#allocation7 + $0x42c] ss:$28 sps:$4 sm:$0xff]  }
0x203b   :  { %v8266_v54 = vpop.f32.mrf.mxu0  ;;  %v8306_v5 = vpop.f32.mrf.mxu1  ;;  %v14340_v19 = vld [vmem:[#allocation7 + $0x428] ss:$28 sps:$4 sm:$0xff]   ;;  %v14343_v46 = vld [vmem:[#allocation7 + $0x430] ss:$28 sps:$4 sm:$0xff]   ;;  %8588 = vmatprep.subr.bf16.mxu0 %v14342_v37 }
0x203c   :  { %8589 = vmatpush1.bf16.msra.mxu0 %v14340_v19  ;;  %v14348_v54 = vld [vmem:[#allocation7 + $0x43c] ss:$28 sps:$4 sm:$0xff]   ;;  %v14357_v37 = vld [vmem:[#allocation2 + $0x6e4] ss:$200 sps:$4 sm:$0xff]  }
0x203d   :  { %v8267_v60 = vpop.f32.mrf.mxu0  ;;  %v13695_v11 = vpop.f32.mrf.mxu1  ;;  %8670 = vmatprep.subr.bf16.mxu0 %v14348_v54  ;;  %v14360_v19 = vld [vmem:[#allocation2 + $0x554] ss:$200 sps:$4 sm:$0xff]  }
0x2053   :  { %v8446_v20 = vpop.f32.mrf.mxu0 }
0x2054   :  { %v8447_v30 = vadd.f32 %v8446_v20, %v8334_v48  ;;  %v14346_v20 = vld [vmem:[#allocation7 + $0x438] ss:$28 sps:$4 sm:$0xff]  }
0x2055   :  { %v8448_v53 = vpop.f32.mrf.mxu0 }
0x2056   :  { %v8449_v14 = vadd.f32 %v8448_v53, %v8338_v42  ;;  %v8453_v2 = vmax.f32 %v8447_v30, 0.0  ;;  %v8756_v42 = vld [vmem:[#allocation2 + $0xa00] sm:$0x11]  ;;  %v14349_v30 = vld [vmem:[#allocation7 + $0x440] ss:$28 sps:$4 sm:$0xff]  }
0x2057   :  { %v8450_v25 = vpop.f32.mrf.mxu0 }
0x2058   :  { %v8454_v38 = vmax.f32 %v8449_v14, 0.0  ;;  %v12398_v14 = vcombine.high %v8756_v42, %v8756_v42  ;;  %v12397_v25 = vcombine.low %v8756_v42, %v8756_v42 }
0x2059   :  { %v8451_v23 = vpop.f32.mrf.mxu0 }
0x205a   :  { %8519 = vmatprep.mubr.f32.mxu1 %v8454_v38  ;;  %v8835_v38 = vsel %vm247_vm0, %v12397_v25, 0  ;;  %v14352_v23 = vld [vmem:[#allocation2 + $0x870] ss:$200 sps:$4 sm:$0xff]  }
0x205b   :  { %8520 = vmatmul.mubr.f32.vlgmr.msra.gmra.mxu1 %v8453_v2  ;;  %v14354_v2 = vld [vmem:[#allocation2 + $0x874] ss:$200 sps:$4 sm:$0xff]  }
0x205c   :  { %8647 = vmatprep.mubr.bf16.mxu1 %v17994_v39  ;;  %8630 = vmatpush1.bf16.msra.mxu1 %v14343_v46  ;;  %v14358_v46 = vld [vmem:[#allocation2 + $0x550] ss:$200 sps:$4 sm:$0xff]  }
0x205d   :  { %13696 = vmatprep.subr.bf16.mxu1 %v17990_v18  ;;  %v14370_v25 = vld [vmem:[#allocation7 + $0x460] ss:$28 sps:$4 sm:$0xff]  }
0x211b   :  { %v13357_v5 = vpop.f32.mrf.mxu1 }
0x211d   :  { %v13358_v60 = vpop.f32.mrf.mxu1 }
0x211e   :  { %v13359_v11 = vadd.f32 %v13358_v60, %v13357_v5  ;;  %v8757_v5 = vld [vmem:[#allocation4 + $0x28] sm:$0x3] }
0x211f   :  { %v8762_v60 = vrot.slane %v8757_v5, %v15284_v7 }
0x2120   :  { %v8522_v58 = vadd.f32 %v17237_v1, %v13359_v11  ;;  %v8766_v11 = vrot.slane %v8757_v5, %v15287_v8  ;;  %v17567_v5 = vld [vmem:[%s17972_s3 + $0x50] sm:$0xff] }
0x2122   :  { %v8525_v48 = vmax.f32 %v8522_v58, 0.0 }
0x2124   :  { %v8526_v53 = vpack.c.bf16 %v8525_v48, %v8525_v48 }
0x2126   :  { %12381 = vmatmul.mubr.msk.bf16.vlgmr.msra.gmra.mxu0 %vm671_vm2, %v8526_v53  ;;  %12382 = vmatmul.mubr.msk.bf16.vlgmr.msra.gmra.mxu1 %vm671_vm2, %v8526_v53 }
0x2127   :  { %8671 = vmatpush1.bf16.msra.mxu0 %v14346_v20  ;;  %13697 = vmatpush3.bf16.msra.mxu1 %v14349_v30 }
0x2128   :  { %8688 = vmatprep.mubr.bf16.mxu0 %v17994_v39  ;;  %13698 = vmatprep.mubr.msk.bf16.mxu1 %vm15056_vm3, %v17990_v18 }
0x2129   :  { %12399 = vmatprep.subr.msk.bf16.mxu0 %vm247_vm0, %v12398_v14  ;;  %13362 = vmatprep.subr.mxu1 %v17249_v34  ;;  %v14375_v14 = vld [vmem:[#allocation7 + $0x46c] ss:$28 sps:$4 sm:$0xff]  }
0x212e   :  { %12383 = vmatmul.mubr.msk.bf16.vlgmr.msra.gmra.mxu0 %vm671_vm2, %v8526_v53  ;;  %13699 = vmatmul.mubr.msk.bf16.vlgmr.msra.gmra.mxu1 %vm671_vm2, %v8526_v53 }
0x212f   :  { %8843 = vmatpush1.bf16.msra.mxu0 %v8835_v38  ;;  %8872 = vmatprep.mubr.bf16.mxu0 %v17994_v39  ;;  %v14373_v38 = vld [vmem:[#allocation7 + $0x468] ss:$28 sps:$4 sm:$0xff]  }
0x2130   :  { %8844 = vmatprep.subr.bf16.mxu0 %v14354_v2  ;;  %13363 = vmatpush3.msra.mxu1 %v17061_v33  ;;  %v14363_v33 = vld [vmem:[#allocation2 + $0x3c4] ss:$200 sps:$4 sm:$0xff]  }
0x2131   :  { %13364 = vmatprep.subr.mxu1 %v17067_v28  ;;  %v14361_v28 = vld [vmem:[#allocation2 + $0x3c0] ss:$200 sps:$4 sm:$0xff]   ;;  %v14378_v2 = vld [vmem:[#allocation7 + $0x474] ss:$28 sps:$4 sm:$0xff]  }
0x2132   :  { %13365 = vmatpush3.msra.mxu1 %v17073_v51  ;;  %v14366_v51 = vld [vmem:[#allocation2 + $0x234] ss:$200 sps:$4 sm:$0xff]  }
0x2133   :  { %8845 = vmatpush1.bf16.msra.mxu0 %v14352_v23  ;;  %13366 = vmatprep.subr.mxu1 %v17079_v49  ;;  %v14364_v49 = vld [vmem:[#allocation2 + $0x230] ss:$200 sps:$4 sm:$0xff]  }
0x2134   :  { %8846 = vmatprep.subr.bf16.mxu0 %v14357_v37  ;;  %13367 = vmatpush3.msra.mxu1 %v17085_v61  ;;  %v14369_v61 = vld [vmem:[#allocation2 + $0xa4] ss:$200 sps:$4 sm:$0xff]  }
0x2135   :  { %13368 = vmatprep.subr.mxu1 %v17091_v55  ;;  %v14367_v55 = vld [vmem:[#allocation2 + $0xa0] ss:$200 sps:$4 sm:$0xff]  }
0x2136   :  { %13369 = vmatpush3.msra.mxu1 %v17097_v52 }
0x2137   :  { %8847 = vmatpush1.bf16.msra.mxu0 %v14355_v10  ;;  %13370 = vmatprep.subr.mxu1 %v17103_v40 }
0x2138   :  { %8848 = vmatprep.subr.bf16.mxu0 %v14360_v19  ;;  %13371 = vmatpush3.msra.mxu1 %v17109_v36 }
0x2139   :  { %13372 = vmatprep.subr.mxu1 %v17115_v56 }
0x213a   :  { %13373 = vmatpush3.msra.mxu1 %v17121_v26 }
0x213b   :  { %8849 = vmatpush1.bf16.msra.mxu0 %v14358_v46  ;;  %13374 = vmatprep.subr.mxu1 %v17127_v16 }
0x213c   :  { %8850 = vmatprep.subr.bf16.mxu0 %v14363_v33  ;;  %13375 = vmatpush3.msra.mxu1 %v17133_v41  ;;  %v9184_v33 = vld [vmem:[#allocation2 + $0xa08] sm:$0x11] }
0x213d   :  { %13376 = vmatprep.subr.mxu1 %v17139_v29 }
0x213e   :  { %13377 = vmatpush3.msra.mxu1 %v17145_v9 }
0x213f   :  { %8851 = vmatpush1.bf16.msra.mxu0 %v14361_v28  ;;  %13378 = vmatprep.subr.mxu1 %v17151_v32  ;;  %v14376_v28 = vld [vmem:[#allocation7 + $0x470] ss:$28 sps:$4 sm:$0xff]  }
0x2140   :  { %8852 = vmatprep.subr.bf16.mxu0 %v14366_v51  ;;  %13379 = vmatpush3.msra.mxu1 %v17157_v44  ;;  %v14379_v51 = vld [vmem:[#allocation7 + $0x478] ss:$28 sps:$4 sm:$0xff]  }
0x2141   :  { %13380 = vmatprep.subr.mxu1 %v17163_v0 }
0x2142   :  { %13381 = vmatpush3.msra.mxu1 %v17169_v3 }
0x2143   :  { %8853 = vmatpush1.bf16.msra.mxu0 %v14364_v49  ;;  %13382 = vmatprep.subr.mxu1 %v17175_v17 }
0x2144   :  { %8854 = vmatprep.subr.bf16.mxu0 %v14369_v61  ;;  %13383 = vmatpush3.msra.mxu1 %v17181_v4  ;;  %v12425_v61 = vcombine.high %v9184_v33, %v9184_v33 }
0x2145   :  { %13384 = vmatprep.subr.mxu1 %v17187_v22 }
0x2146   :  { %13385 = vmatpush3.msra.mxu1 %v17193_v62 }
0x2147   :  { %8855 = vmatpush1.bf16.msra.mxu0 %v14367_v55  ;;  %13386 = vmatprep.subr.mxu1 %v17199_v45  ;;  %v12424_v55 = vcombine.low %v9184_v33, %v9184_v33 }
0x2148   :  { %13387 = vmatpush3.msra.mxu1 %v17283_v12 }
0x2149   :  { %13388 = vmatprep.subr.mxu1 %v17289_v43 }
0x214a   :  { %12400 = vmatmul.mubr.msk.bf16.vlgmr.msra.gmra.mxu0 %vm243_vm1, %v15195_v35  ;;  %13389 = vmatpush3.msra.mxu1 %v17297_v15 }
0x214b   :  { %13390 = vmatprep.subr.mxu1 %v17303_v6  ;;  %9034 = vmatprep.mubr.bf16.mxu0 %v17994_v39 }
0x214c   :  { %13391 = vmatpush3.msra.mxu1 %v17310_v24 }
0x214d   :  { %13392 = vmatprep.subr.mxu1 %v17316_v27 }
0x214e   :  { %13393 = vmatpush3.msra.mxu1 %v17322_v59 }
0x214f   :  { %9057 = vmatprep.subr.bf16.mxu1 %v14375_v14  ;;  %v17615_v14 = vld [vmem:[%s17972_s3 + $0x30] sm:$0xff] }
0x21e6   :  { %v8608_v52 = vpop.f32.mrf.mxu0  ;;  %v8649_v40 = vpop.f32.mrf.mxu1 }
0x21e7   :  { %v17468_v36 = vadd.f32 %v8608_v52, %v17397_v63  ;;  %v17471_v56 = vadd.f32 %v8649_v40, %v17400_v21  ;;  %v14384_v52 = vld [vmem:[#allocation2 + $0x87c] ss:$200 sps:$4 sm:$0xff]   ;;  %v14382_v40 = vld [vmem:[#allocation2 + $0x878] ss:$200 sps:$4 sm:$0xff]  }
0x21e8   :  { %v8610_v26 = vpop.f32.mrf.mxu0  ;;  %v8651_v16 = vpop.f32.mrf.mxu1 }
0x21e9   :  { %v17474_v41 = vadd.f32 %v8610_v26, %v17403_v50  ;;  %v17477_v29 = vadd.f32 %v8651_v16, %v17406_v57  ;;  %v14387_v26 = vld [vmem:[#allocation2 + $0x6ec] ss:$200 sps:$4 sm:$0xff]   ;;  %v17507_v16 = vld [vmem:[%s17972_s3 + $0x78] sm:$0xff] }
0x21ea   :  { %v8612_v9 = vpop.f32.mrf.mxu0  ;;  %v8653_v32 = vpop.f32.mrf.mxu1 }
0x21eb   :  { %v17519_v9 = vld [vmem:[%s17972_s3 + $0x70] sm:$0xff] }
0x21ec   :  { %v8613_v44 = vpop.f32.mrf.mxu0  ;;  %v8654_v0 = vpop.f32.mrf.mxu1  ;;  %v14385_v32 = vld [vmem:[#allocation2 + $0x6e8] ss:$200 sps:$4 sm:$0xff]  }
0x21ed   :  { %v17525_v44 = vld [vmem:[%s17972_s3 + $0xe8] sm:$0xff]  ;;  %v14390_v0 = vld [vmem:[#allocation2 + $0x55c] ss:$200 sps:$4 sm:$0xff]  }
0x21ee   :  { %v8690_v3 = vpop.f32.mrf.mxu0  ;;  %v8731_v17 = vpop.f32.mrf.mxu1 }
0x21ef   :  { %v17480_v4 = vadd.f32 %v8690_v3, %v17409_v13  ;;  %v17483_v22 = vadd.f32 %v8731_v17, %v17412_v31  ;;  %v17531_v3 = vld [vmem:[%s17972_s3 + $0x68] sm:$0xff]  ;;  %v17537_v17 = vld [vmem:[%s17972_s3 + $0xe0] sm:$0xff] }
0x21f0   :  { %v8692_v62 = vpop.f32.mrf.mxu0  ;;  %v13700_v45 = vpop.f32.mrf.mxu1 }
0x21f1   :  { %v17486_v63 = vadd.f32 %v8692_v62, %v17415_v47  ;;  %v14372_v47 = vld [vmem:[#allocation7 + $0x464] ss:$28 sps:$4 sm:$0xff]  }
0x21f2   :  { %v8694_v21 = vpop.f32.mrf.mxu0  ;;  %v8734_v50 = vpop.f32.mrf.mxu1  ;;  %9016 = vmatprep.subr.bf16.mxu0 %v14372_v47  ;;  %v17543_v62 = vld [vmem:[%s17972_s3 + $0x60] sm:$0xff]  ;;  %v17609_v47 = vld [vmem:[%s17972_s3 + $0xb0] sm:$0xff] }
0x21f3   :  { %9017 = vmatpush1.bf16.msra.mxu0 %v14370_v25  ;;  %v14388_v45 = vld [vmem:[#allocation2 + $0x558] ss:$200 sps:$4 sm:$0xff]   ;;  %v14393_v50 = vld [vmem:[#allocation2 + $0x3cc] ss:$200 sps:$4 sm:$0xff]   ;;  %v14397_v25 = vld [vmem:[#allocation2 + $0xa8] ss:$200 sps:$4 sm:$0xff]  }
0x21f4   :  { %v8695_v57 = vpop.f32.mrf.mxu0  ;;  %v13701_v54 = vpop.f32.mrf.mxu1  ;;  %9098 = vmatprep.subr.bf16.mxu0 %v14378_v2  ;;  %v17549_v21 = vld [vmem:[%s17972_s3 + $0xd8] sm:$0xff]  ;;  %v17627_v2 = vld [vmem:[%s17972_s3 + $0x28] sm:$0xff] }
0x21f5   :  { %v17555_v57 = vld [vmem:[%s17972_s3 + $0x58] sm:$0xff]  ;;  %v17561_v54 = vld [vmem:[%s17972_s3 + $0xd0] sm:$0xff] }
0x220a   :  { %v8874_v58 = vpop.f32.mrf.mxu0 }
0x220b   :  { %v8875_v13 = vadd.f32 %v8874_v58, %v8762_v60  ;;  %v14391_v60 = vld [vmem:[#allocation2 + $0x3c8] ss:$200 sps:$4 sm:$0xff]   ;;  %v14396_v58 = vld [vmem:[#allocation2 + $0x23c] ss:$200 sps:$4 sm:$0xff]  }
0x220c   :  { %v8876_v48 = vpop.f32.mrf.mxu0 }
0x220d   :  { %v8877_v42 = vadd.f32 %v8876_v48, %v8766_v11  ;;  %v8881_v30 = vmax.f32 %v8875_v13, 0.0  ;;  %v17573_v11 = vld [vmem:[%s17972_s3 + $0xc8] sm:$0xff]  ;;  %v17585_v48 = vld [vmem:[%s17972_s3 + $0xc0] sm:$0xff] }
0x220e   :  { %v8878_v31 = vpop.f32.mrf.mxu0  ;;  %v17579_v13 = vld [vmem:[%s17972_s3 + $0x48] sm:$0xff] }
0x220f   :  { %v8882_v20 = vmax.f32 %v8877_v42, 0.0  ;;  %v17591_v42 = vld [vmem:[%s17972_s3 + $0x40] sm:$0xff] }
0x2210   :  { %v8879_v53 = vpop.f32.mrf.mxu0  ;;  %v14394_v31 = vld [vmem:[#allocation2 + $0x238] ss:$200 sps:$4 sm:$0xff]  }
0x2211   :  { %8947 = vmatprep.mubr.f32.mxu1 %v8882_v20  ;;  %v17597_v20 = vld [vmem:[%s17972_s3 + $0xb8] sm:$0xff] }
0x2212   :  { %8948 = vmatmul.mubr.f32.vlgmr.msra.gmra.mxu1 %v8881_v30  ;;  %v14399_v30 = vld [vmem:[#allocation2 + $0xac] ss:$200 sps:$4 sm:$0xff]   ;;  %v17603_v53 = vld [vmem:[%s17972_s3 + $0x38] sm:$0xff] }
0x2213   :  { %9075 = vmatprep.mubr.bf16.mxu1 %v17994_v39  ;;  %9058 = vmatpush1.bf16.msra.mxu1 %v14373_v38  ;;  %v17621_v38 = vld [vmem:[%s17972_s3 + $0xa8] sm:$0xff] }
0x2214   :  { %13702 = vmatprep.subr.bf16.mxu1 %v17990_v18 }
0x22d2   :  { %v13394_v23 = vpop.f32.mrf.mxu1 }
0x22d4   :  { %v13395_v37 = vpop.f32.mrf.mxu1 }
0x22d5   :  { %v13396_v10 = vadd.f32 %v13395_v37, %v13394_v23  ;;  %v17633_v23 = vld [vmem:[%s17972_s3 + $0xa0] sm:$0xff] }
0x22d6   :  { %v17639_v37 = vld [vmem:[%s17972_s3 + $0x20] sm:$0xff] }
0x22d7   :  { %v8950_v19 = vadd.f32 %v17237_v1, %v13396_v10  ;;  %v9263_v1 = vsel %vm247_vm0, %v12424_v55, 0  ;;  %v17645_v10 = vld [vmem:[%s17972_s3 + $0x98] sm:$0xff] }
0x22d9   :  { %v8953_v46 = vmax.f32 %v8950_v19, 0.0 }
0x22db   :  { %v8954_v49 = vpack.c.bf16 %v8953_v46, %v8953_v46 }
0x22dd   :  { %12408 = vmatmul.mubr.msk.bf16.vlgmr.msra.gmra.mxu0 %vm671_vm2, %v8954_v49  ;;  %12409 = vmatmul.mubr.msk.bf16.vlgmr.msra.gmra.mxu1 %vm671_vm2, %v8954_v49 }
0x22de   :  { %9099 = vmatpush1.bf16.msra.mxu0 %v14376_v28  ;;  %13703 = vmatpush3.bf16.msra.mxu1 %v14379_v51 }
0x22df   :  { %9116 = vmatprep.mubr.bf16.mxu0 %v17994_v39  ;;  %13704 = vmatprep.mubr.msk.bf16.mxu1 %vm15056_vm3, %v17990_v18 }
0x22e0   :  { %12426 = vmatprep.subr.msk.bf16.mxu0 %vm247_vm0, %v12425_v61  ;;  %13399 = vmatprep.subr.mxu1 %v17249_v34  ;;  %v17513_v34 = vld [vmem:[%s17972_s3 + $0xf0] sm:$0xff] }
0x22e5   :  { %12410 = vmatmul.mubr.msk.bf16.vlgmr.msra.gmra.mxu0 %vm671_vm2, %v8954_v49  ;;  %13705 = vmatmul.mubr.msk.bf16.vlgmr.msra.gmra.mxu1 %vm671_vm2, %v8954_v49 }
0x22e6   :  { %9271 = vmatpush1.bf16.msra.mxu0 %v9263_v1  ;;  %9300 = vmatprep.mubr.bf16.mxu0 %v17994_v39 }
0x22e7   :  { %9272 = vmatprep.subr.bf16.mxu0 %v14384_v52  ;;  %13400 = vmatpush3.msra.mxu1 %v17507_v16 }
0x22e8   :  { %13401 = vmatprep.subr.mxu1 %v17513_v34 }
0x22e9   :  { %13402 = vmatpush3.msra.mxu1 %v17519_v9 }
0x22ea   :  { %9273 = vmatpush1.bf16.msra.mxu0 %v14382_v40  ;;  %13403 = vmatprep.subr.mxu1 %v17525_v44 }
0x22eb   :  { %9274 = vmatprep.subr.bf16.mxu0 %v14387_v26  ;;  %13404 = vmatpush3.msra.mxu1 %v17531_v3 }
0x22ec   :  { %13405 = vmatprep.subr.mxu1 %v17537_v17 }
0x22ed   :  { %13406 = vmatpush3.msra.mxu1 %v17543_v62 }
0x22ee   :  { %9275 = vmatpush1.bf16.msra.mxu0 %v14385_v32  ;;  %13407 = vmatprep.subr.mxu1 %v17549_v21  ;;  %v9185_v32 = vld [vmem:[#allocation4 + $0x2a] sm:$0x3] }
0x22ef   :  { %9276 = vmatprep.subr.bf16.mxu0 %v14390_v0  ;;  %13408 = vmatpush3.msra.mxu1 %v17555_v57  ;;  %v9190_v0 = vrot.slane %v9185_v32, %v15284_v7 }
0x22f0   :  { %13409 = vmatprep.subr.mxu1 %v17561_v54 }
0x22f1   :  { %13410 = vmatpush3.msra.mxu1 %v17567_v5 }
0x22f2   :  { %9277 = vmatpush1.bf16.msra.mxu0 %v14388_v45  ;;  %13411 = vmatprep.subr.mxu1 %v17573_v11  ;;  %v9194_v45 = vrot.slane %v9185_v32, %v15287_v8  ;;  %v17695_v32 = vld [vmem:[%s17972_s3 + $0xf8] sm:$0xff] }
0x22f3   :  { %9278 = vmatprep.subr.bf16.mxu0 %v14393_v50  ;;  %13412 = vmatpush3.msra.mxu1 %v17579_v13 }
0x22f4   :  { %13413 = vmatprep.subr.mxu1 %v17585_v48 }
0x22f5   :  { %13414 = vmatpush3.msra.mxu1 %v17591_v42 }
0x22f6   :  { %9279 = vmatpush1.bf16.msra.mxu0 %v14391_v60  ;;  %13415 = vmatprep.subr.mxu1 %v17597_v20 }
0x22f7   :  { %9280 = vmatprep.subr.bf16.mxu0 %v14396_v58  ;;  %13416 = vmatpush3.msra.mxu1 %v17603_v53 }
0x22f8   :  { %13417 = vmatprep.subr.mxu1 %v17609_v47 }
0x22f9   :  { %13418 = vmatpush3.msra.mxu1 %v17615_v14 }
0x22fa   :  { %9281 = vmatpush1.bf16.msra.mxu0 %v14394_v31  ;;  %13419 = vmatprep.subr.mxu1 %v17621_v38 }
0x22fb   :  { %9282 = vmatprep.subr.bf16.mxu0 %v14399_v30  ;;  %13420 = vmatpush3.msra.mxu1 %v17627_v2 }
0x22fc   :  { %13421 = vmatprep.subr.mxu1 %v17633_v23 }
0x22fd   :  { %13422 = vmatpush3.msra.mxu1 %v17639_v37 }
0x22fe   :  { %9283 = vmatpush1.bf16.msra.mxu0 %v14397_v25  ;;  %13423 = vmatprep.subr.mxu1 %v17645_v10 }
0x22ff   :  { %13424 = vmatpush3.msra.mxu1 %v17283_v12 }
0x2300   :  { %13425 = vmatprep.subr.mxu1 %v17289_v43 }
0x2301   :  { %12427 = vmatmul.mubr.msk.bf16.vlgmr.msra.gmra.mxu0 %vm243_vm1, %v15195_v35  ;;  %13426 = vmatpush3.msra.mxu1 %v17297_v15 }
0x2302   :  { %13427 = vmatprep.subr.mxu1 %v17303_v6  ;;  %9462 = vmatprep.mubr.bf16.mxu0 %v17994_v39 }
0x2303   :  { %13428 = vmatpush3.msra.mxu1 %v17310_v24 }
0x2304   :  { %13429 = vmatprep.subr.mxu1 %v17316_v27 }
0x2305   :  { %13430 = vmatpush3.msra.mxu1 %v17322_v59 }
0x239d   :  { %v9036_v19 = vpop.f32.mrf.mxu0  ;;  %v9077_v46 = vpop.f32.mrf.mxu1 }
0x239e   :  { %v17659_v12 = vadd.f32 %v9036_v19, %v17468_v36  ;;  %v17662_v43 = vadd.f32 %v9077_v46, %v17471_v56  ;;  %v14405_v19 = vld [vmem:[#allocation7 + $0x4a4] ss:$28 sps:$4 sm:$0xff]   ;;  %v14400_v46 = vld [vmem:[#allocation7 + $0x498] ss:$28 sps:$4 sm:$0xff]  }
0x239f   :  { %v9038_v33 = vpop.f32.mrf.mxu0  ;;  %v9079_v15 = vpop.f32.mrf.mxu1  ;;  %9485 = vmatprep.subr.bf16.mxu1 %v14405_v19  ;;  %v14429_v19 = vld [vmem:[#allocation2 + $0xb4] ss:$200 sps:$4 sm:$0xff]  }
0x23a0   :  { %v17665_v6 = vadd.f32 %v9038_v33, %v17474_v41  ;;  %v17668_v28 = vadd.f32 %v9079_v15, %v17477_v29  ;;  %v14403_v33 = vld [vmem:[#allocation7 + $0x4a0] ss:$28 sps:$4 sm:$0xff]   ;;  %v14408_v15 = vld [vmem:[#allocation7 + $0x4ac] ss:$28 sps:$4 sm:$0xff]  }
0x23a1   :  { %v9040_v24 = vpop.f32.mrf.mxu0  ;;  %v9081_v27 = vpop.f32.mrf.mxu1 }
0x23a3   :  { %v9041_v51 = vpop.f32.mrf.mxu0  ;;  %v9082_v59 = vpop.f32.mrf.mxu1 }
0x23a4   :  { %v17683_v59 = vld [vmem:[#allocation6] ss:$0 sm:$0xff] }
0x23a5   :  { %v9118_v49 = vpop.f32.mrf.mxu0  ;;  %v9159_v61 = vpop.f32.mrf.mxu1 }
0x23a6   :  { %v17671_v36 = vadd.f32 %v9118_v49, %v17480_v4  ;;  %v17674_v56 = vadd.f32 %v9159_v61, %v17483_v22 }
0x23a7   :  { %v9120_v55 = vpop.f32.mrf.mxu0  ;;  %v13706_v1 = vpop.f32.mrf.mxu1 }
0x23a8   :  { %v17677_v41 = vadd.f32 %v9120_v55, %v17486_v63  ;;  %v14402_v63 = vld [vmem:[#allocation7 + $0x49c] ss:$28 sps:$4 sm:$0xff]   ;;  %v14406_v1 = vld [vmem:[#allocation7 + $0x4a8] ss:$28 sps:$4 sm:$0xff]  }
0x23a9   :  { %v9122_v52 = vpop.f32.mrf.mxu0  ;;  %v9162_v29 = vpop.f32.mrf.mxu1  ;;  %9444 = vmatprep.subr.bf16.mxu0 %v14402_v63  ;;  %v9612_v55 = vld [vmem:[#allocation2 + $0xa10] sm:$0x11]  ;;  %v14424_v63 = vld [vmem:[#allocation2 + $0x240] ss:$200 sps:$4 sm:$0xff]  }
0x23aa   :  { %9445 = vmatpush1.bf16.msra.mxu0 %v14400_v46  ;;  %v14409_v52 = vld [vmem:[#allocation7 + $0x4b0] ss:$28 sps:$4 sm:$0xff]   ;;  %v14427_v46 = vld [vmem:[#allocation2 + $0xb0] ss:$200 sps:$4 sm:$0xff]  }
0x23ab   :  { %v9123_v40 = vpop.f32.mrf.mxu0  ;;  %v13707_v26 = vpop.f32.mrf.mxu1  ;;  %9526 = vmatprep.subr.bf16.mxu0 %v14408_v15  ;;  %v17735_v15 = vld [vmem:[%s17972_s3 + $0x90] sm:$0xff] }
0x23ac   :  { %v12452_v40 = vcombine.high %v9612_v55, %v9612_v55  ;;  %v12451_v26 = vcombine.low %v9612_v55, %v9612_v55 }
0x23c1   :  { %v9302_v50 = vpop.f32.mrf.mxu0 }
0x23c2   :  { %v9303_v4 = vadd.f32 %v9302_v50, %v9190_v0  ;;  %v9691_v0 = vsel %vm247_vm0, %v12451_v26, 0  ;;  %v14412_v50 = vld [vmem:[#allocation2 + $0x880] ss:$200 sps:$4 sm:$0xff]  }
0x23c3   :  { %v9304_v60 = vpop.f32.mrf.mxu0 }
0x23c4   :  { %v9305_v58 = vadd.f32 %v9304_v60, %v9194_v45  ;;  %v9309_v30 = vmax.f32 %v9303_v4, 0.0  ;;  %v14414_v45 = vld [vmem:[#allocation2 + $0x884] ss:$200 sps:$4 sm:$0xff]   ;;  %v14417_v4 = vld [vmem:[#allocation2 + $0x6f4] ss:$200 sps:$4 sm:$0xff]  }
0x23c5   :  { %v9306_v22 = vpop.f32.mrf.mxu0  ;;  %v14415_v60 = vld [vmem:[#allocation2 + $0x6f0] ss:$200 sps:$4 sm:$0xff]  }
0x23c6   :  { %v9310_v31 = vmax.f32 %v9305_v58, 0.0  ;;  %v14420_v58 = vld [vmem:[#allocation2 + $0x564] ss:$200 sps:$4 sm:$0xff]   ;;  %v14418_v22 = vld [vmem:[#allocation2 + $0x560] ss:$200 sps:$4 sm:$0xff]  }
0x23c7   :  { %v9307_v25 = vpop.f32.mrf.mxu0 }
0x23c8   :  { %9375 = vmatprep.mubr.f32.mxu1 %v9310_v31  ;;  %v14423_v31 = vld [vmem:[#allocation2 + $0x3d4] ss:$200 sps:$4 sm:$0xff]   ;;  %v14426_v25 = vld [vmem:[#allocation2 + $0x244] ss:$200 sps:$4 sm:$0xff]  }
0x23c9   :  { %9376 = vmatmul.mubr.f32.vlgmr.msra.gmra.mxu1 %v9309_v30  ;;  %v14421_v30 = vld [vmem:[#allocation2 + $0x3d0] ss:$200 sps:$4 sm:$0xff]  }
0x23ca   :  { %9503 = vmatprep.mubr.bf16.mxu1 %v17994_v39  ;;  %9486 = vmatpush1.bf16.msra.mxu1 %v14403_v33  ;;  %v17729_v33 = vld [vmem:[%s17972_s3 + $0x18] sm:$0xff] }
0x23cb   :  { %13708 = vmatprep.subr.bf16.mxu1 %v17990_v18 }
0x2489   :  { %v13431_v24 = vpop.f32.mrf.mxu1 }
0x248b   :  { %v13432_v27 = vpop.f32.mrf.mxu1 }
0x248c   :  { %v13433_v51 = vadd.f32 %v13432_v27, %v13431_v24  ;;  %v17743_v24 = vld [vmem:[%s17972_s3 + $0x10] sm:$0xff]  ;;  %v17749_v27 = vld [vmem:[%s17972_s3 + $0x88] sm:$0xff] }
0x248e   :  { %v9378_v49 = vadd.f32 %v17683_v59, %v13433_v51  ;;  %v17756_v51 = vld [vmem:[%s17972_s3 + $0x8] sm:$0xff] }
0x2490   :  { %v9381_v61 = vmax.f32 %v9378_v49, 0.0  ;;  %v17762_v49 = vld [vmem:[%s17972_s3 + $0x80] sm:$0xff] }
0x2492   :  { %v9382_v29 = vpack.c.bf16 %v9381_v61, %v9381_v61  ;;  %v17768_v61 = vld [vmem:[%s17972_s3] sm:$0xff] }
0x2494   :  { %12435 = vmatmul.mubr.msk.bf16.vlgmr.msra.gmra.mxu0 %vm671_vm2, %v9382_v29  ;;  %12436 = vmatmul.mubr.msk.bf16.vlgmr.msra.gmra.mxu1 %vm671_vm2, %v9382_v29 }
0x2495   :  { %9527 = vmatpush1.bf16.msra.mxu0 %v14406_v1  ;;  %13709 = vmatpush3.bf16.msra.mxu1 %v14409_v52 }
0x2496   :  { %9544 = vmatprep.mubr.bf16.mxu0 %v17994_v39  ;;  %13710 = vmatprep.mubr.msk.bf16.mxu1 %vm15056_vm3, %v17990_v18 }
0x2497   :  { %12453 = vmatprep.subr.msk.bf16.mxu0 %vm247_vm0, %v12452_v40  ;;  %13436 = vmatprep.subr.mxu1 %v17695_v32 }
0x249c   :  { %12437 = vmatmul.mubr.msk.bf16.vlgmr.msra.gmra.mxu0 %vm671_vm2, %v9382_v29  ;;  %13711 = vmatmul.mubr.msk.bf16.vlgmr.msra.gmra.mxu1 %vm671_vm2, %v9382_v29 }
0x249d   :  { %9699 = vmatpush1.bf16.msra.mxu0 %v9691_v0  ;;  %9728 = vmatprep.mubr.bf16.mxu0 %v17994_v39 }
0x249e   :  { %9700 = vmatprep.subr.bf16.mxu0 %v14414_v45  ;;  %13437 = vmatpush3.msra.mxu1 %v17507_v16 }
0x249f   :  { %13438 = vmatprep.subr.mxu1 %v17513_v34 }
0x24a0   :  { %13439 = vmatpush3.msra.mxu1 %v17519_v9 }
0x24a1   :  { %9701 = vmatpush1.bf16.msra.mxu0 %v14412_v50  ;;  %13440 = vmatprep.subr.mxu1 %v17525_v44 }
0x24a2   :  { %9702 = vmatprep.subr.bf16.mxu0 %v14417_v4  ;;  %13441 = vmatpush3.msra.mxu1 %v17531_v3 }
0x24a3   :  { %13442 = vmatprep.subr.mxu1 %v17537_v17 }
0x24a4   :  { %13443 = vmatpush3.msra.mxu1 %v17543_v62 }
0x24a5   :  { %9703 = vmatpush1.bf16.msra.mxu0 %v14415_v60  ;;  %13444 = vmatprep.subr.mxu1 %v17549_v21 }
0x24a6   :  { %9704 = vmatprep.subr.bf16.mxu0 %v14420_v58  ;;  %13445 = vmatpush3.msra.mxu1 %v17555_v57 }
0x24a7   :  { %13446 = vmatprep.subr.mxu1 %v17561_v54 }
0x24a8   :  { %13447 = vmatpush3.msra.mxu1 %v17567_v5 }
0x24a9   :  { %9705 = vmatpush1.bf16.msra.mxu0 %v14418_v22  ;;  %13448 = vmatprep.subr.mxu1 %v17573_v11 }
0x24aa   :  { %9706 = vmatprep.subr.bf16.mxu0 %v14423_v31  ;;  %13449 = vmatpush3.msra.mxu1 %v17579_v13 }
0x24ab   :  { %13450 = vmatprep.subr.mxu1 %v17585_v48 }
0x24ac   :  { %13451 = vmatpush3.msra.mxu1 %v17591_v42 }
0x24ad   :  { %9707 = vmatpush1.bf16.msra.mxu0 %v14421_v30  ;;  %13452 = vmatprep.subr.mxu1 %v17597_v20 }
0x24ae   :  { %9708 = vmatprep.subr.bf16.mxu0 %v14426_v25  ;;  %13453 = vmatpush3.msra.mxu1 %v17603_v53 }
0x24af   :  { %13454 = vmatprep.subr.mxu1 %v17609_v47 }
0x24b0   :  { %13455 = vmatpush3.msra.mxu1 %v17615_v14 }
0x24b1   :  { %9709 = vmatpush1.bf16.msra.mxu0 %v14424_v63  ;;  %13456 = vmatprep.subr.mxu1 %v17621_v38 }
0x24b2   :  { %9710 = vmatprep.subr.bf16.mxu0 %v14429_v19  ;;  %13457 = vmatpush3.msra.mxu1 %v17627_v2 }
0x24b3   :  { %13458 = vmatprep.subr.mxu1 %v17633_v23 }
0x24b4   :  { %13459 = vmatpush3.msra.mxu1 %v17639_v37 }
0x24b5   :  { %9711 = vmatpush1.bf16.msra.mxu0 %v14427_v46  ;;  %13460 = vmatprep.subr.mxu1 %v17645_v10 }
0x24b6   :  { %13461 = vmatpush3.msra.mxu1 %v17729_v33 }
0x24b7   :  { %13462 = vmatprep.subr.mxu1 %v17735_v15 }
0x24b8   :  { %12454 = vmatmul.mubr.msk.bf16.vlgmr.msra.gmra.mxu0 %vm243_vm1, %v15195_v35  ;;  %13463 = vmatpush3.msra.mxu1 %v17743_v24 }
0x24b9   :  { %13464 = vmatprep.subr.mxu1 %v17749_v27  ;;  %9890 = vmatprep.mubr.bf16.mxu0 %v17994_v39 }
0x24ba   :  { %13465 = vmatpush3.msra.mxu1 %v17756_v51 }
0x24bb   :  { %13466 = vmatprep.subr.mxu1 %v17762_v49 }
0x24bc   :  { %13467 = vmatpush3.msra.mxu1 %v17768_v61 }
0x2554   :  { %v9464_v55 = vpop.f32.mrf.mxu0  ;;  %v9505_v1 = vpop.f32.mrf.mxu1 }
0x2555   :  { %v17772_v52 = vadd.f32 %v9464_v55, %v17659_v12  ;;  %v17775_v29 = vadd.f32 %v9505_v1, %v17662_v43  ;;  %v9613_v55 = vld [vmem:[#allocation4 + $0x2c] sm:$0x3] }
0x2556   :  { %v9466_v40 = vpop.f32.mrf.mxu0  ;;  %v9507_v26 = vpop.f32.mrf.mxu1  ;;  %v9618_v1 = vrot.slane %v9613_v55, %v15284_v7 }
0x2557   :  { %v17778_v0 = vadd.f32 %v9466_v40, %v17665_v6  ;;  %v17781_v45 = vadd.f32 %v9507_v26, %v17668_v28  ;;  %v9622_v40 = vrot.slane %v9613_v55, %v15287_v8 }
0x2558   :  { %v9468_v50 = vpop.f32.mrf.mxu0  ;;  %v9509_v4 = vpop.f32.mrf.mxu1 }
0x255a   :  { %v9469_v60 = vpop.f32.mrf.mxu0  ;;  %v9510_v58 = vpop.f32.mrf.mxu1 }
0x255c   :  { %v9546_v22 = vpop.f32.mrf.mxu0  ;;  %v9587_v31 = vpop.f32.mrf.mxu1 }
0x255d   :  { %v17784_v12 = vadd.f32 %v9546_v22, %v17671_v36  ;;  %v17787_v43 = vadd.f32 %v9587_v31, %v17674_v56  ;;  %v14435_v31 = vld [vmem:[#allocation7 + $0x4dc] ss:$28 sps:$4 sm:$0xff]  }
0x255e   :  { %v9548_v30 = vpop.f32.mrf.mxu0  ;;  %v13712_v25 = vpop.f32.mrf.mxu1  ;;  %9913 = vmatprep.subr.bf16.mxu1 %v14435_v31  ;;  %v14445_v31 = vld [vmem:[#allocation2 + $0x6f8] ss:$200 sps:$4 sm:$0xff]  }
0x255f   :  { %v17790_v6 = vadd.f32 %v9548_v30, %v17677_v41  ;;  %v14432_v41 = vld [vmem:[#allocation7 + $0x4d4] ss:$28 sps:$4 sm:$0xff]  }
0x2560   :  { %v9550_v63 = vpop.f32.mrf.mxu0  ;;  %v9590_v28 = vpop.f32.mrf.mxu1  ;;  %v14430_v30 = vld [vmem:[#allocation7 + $0x4d0] ss:$28 sps:$4 sm:$0xff]   ;;  %v14433_v25 = vld [vmem:[#allocation7 + $0x4d8] ss:$28 sps:$4 sm:$0xff]   ;;  %9872 = vmatprep.subr.bf16.mxu0 %v14432_v41  ;;  %v14447_v41 = vld [vmem:[#allocation2 + $0x6fc] ss:$200 sps:$4 sm:$0xff]  }
0x2561   :  { %9873 = vmatpush1.bf16.msra.mxu0 %v14430_v30  ;;  %v14438_v63 = vld [vmem:[#allocation7 + $0x4e4] ss:$28 sps:$4 sm:$0xff]   ;;  %v14450_v30 = vld [vmem:[#allocation2 + $0x56c] ss:$200 sps:$4 sm:$0xff]  }
0x2562   :  { %v9551_v19 = vpop.f32.mrf.mxu0  ;;  %v13713_v46 = vpop.f32.mrf.mxu1  ;;  %9954 = vmatprep.subr.bf16.mxu0 %v14438_v63  ;;  %v14453_v63 = vld [vmem:[#allocation2 + $0x3dc] ss:$200 sps:$4 sm:$0xff]  }
0x2578   :  { %v9730_v26 = vpop.f32.mrf.mxu0 }
0x2579   :  { %v9731_v36 = vadd.f32 %v9730_v26, %v9618_v1  ;;  %v14436_v26 = vld [vmem:[#allocation7 + $0x4e0] ss:$28 sps:$4 sm:$0xff]  }
0x257a   :  { %v9732_v50 = vpop.f32.mrf.mxu0 }
0x257b   :  { %v9733_v4 = vadd.f32 %v9732_v50, %v9622_v40  ;;  %v9737_v58 = vmax.f32 %v9731_v36, 0.0  ;;  %v10040_v40 = vld [vmem:[#allocation2 + $0xa18] sm:$0x11]  ;;  %v14439_v36 = vld [vmem:[#allocation7 + $0x4e8] ss:$28 sps:$4 sm:$0xff]  }
0x257c   :  { %v9734_v56 = vpop.f32.mrf.mxu0 }
0x257d   :  { %v9738_v60 = vmax.f32 %v9733_v4, 0.0  ;;  %v12479_v4 = vcombine.high %v10040_v40, %v10040_v40  ;;  %v12478_v56 = vcombine.low %v10040_v40, %v10040_v40 }
0x257e   :  { %v9735_v22 = vpop.f32.mrf.mxu0 }
0x257f   :  { %9803 = vmatprep.mubr.f32.mxu1 %v9738_v60  ;;  %v10119_v60 = vsel %vm247_vm0, %v12478_v56, 0  ;;  %v14442_v22 = vld [vmem:[#allocation2 + $0x888] ss:$200 sps:$4 sm:$0xff]  }
0x2580   :  { %9804 = vmatmul.mubr.f32.vlgmr.msra.gmra.mxu1 %v9737_v58  ;;  %v14444_v58 = vld [vmem:[#allocation2 + $0x88c] ss:$200 sps:$4 sm:$0xff]  }
0x2581   :  { %9931 = vmatprep.mubr.bf16.mxu1 %v17994_v39  ;;  %9914 = vmatpush1.bf16.msra.mxu1 %v14433_v25  ;;  %v14448_v25 = vld [vmem:[#allocation2 + $0x568] ss:$200 sps:$4 sm:$0xff]  }
0x2582   :  { %13714 = vmatprep.subr.bf16.mxu1 %v17990_v18 }
0x2640   :  { %v13468_v28 = vpop.f32.mrf.mxu1 }
0x2642   :  { %v13469_v19 = vpop.f32.mrf.mxu1 }
0x2643   :  { %v13470_v46 = vadd.f32 %v13469_v19, %v13468_v28  ;;  %v14451_v28 = vld [vmem:[#allocation2 + $0x3d8] ss:$200 sps:$4 sm:$0xff]   ;;  %v14456_v19 = vld [vmem:[#allocation2 + $0x24c] ss:$200 sps:$4 sm:$0xff]  }
0x2645   :  { %v9806_v55 = vadd.f32 %v17683_v59, %v13470_v46  ;;  %v14454_v46 = vld [vmem:[#allocation2 + $0x248] ss:$200 sps:$4 sm:$0xff]  }
0x2647   :  { %v9809_v1 = vmax.f32 %v9806_v55, 0.0  ;;  %v14459_v55 = vld [vmem:[#allocation2 + $0xbc] ss:$200 sps:$4 sm:$0xff]  }
0x2649   :  { %v9810_v50 = vpack.c.bf16 %v9809_v1, %v9809_v1  ;;  %v14457_v1 = vld [vmem:[#allocation2 + $0xb8] ss:$200 sps:$4 sm:$0xff]  }
0x264b   :  { %12462 = vmatmul.mubr.msk.bf16.vlgmr.msra.gmra.mxu0 %vm671_vm2, %v9810_v50  ;;  %12463 = vmatmul.mubr.msk.bf16.vlgmr.msra.gmra.mxu1 %vm671_vm2, %v9810_v50 }
0x264c   :  { %9955 = vmatpush1.bf16.msra.mxu0 %v14436_v26  ;;  %13715 = vmatpush3.bf16.msra.mxu1 %v14439_v36 }
0x264d   :  { %9972 = vmatprep.mubr.bf16.mxu0 %v17994_v39  ;;  %13716 = vmatprep.mubr.msk.bf16.mxu1 %vm15056_vm3, %v17990_v18 }
0x264e   :  { %12480 = vmatprep.subr.msk.bf16.mxu0 %vm247_vm0, %v12479_v4  ;;  %13473 = vmatprep.subr.mxu1 %v17695_v32 }
0x2653   :  { %12464 = vmatmul.mubr.msk.bf16.vlgmr.msra.gmra.mxu0 %vm671_vm2, %v9810_v50  ;;  %13717 = vmatmul.mubr.msk.bf16.vlgmr.msra.gmra.mxu1 %vm671_vm2, %v9810_v50 }
0x2654   :  { %10127 = vmatpush1.bf16.msra.mxu0 %v10119_v60  ;;  %10156 = vmatprep.mubr.bf16.mxu0 %v17994_v39 }
0x2655   :  { %10128 = vmatprep.subr.bf16.mxu0 %v14444_v58  ;;  %13474 = vmatpush3.msra.mxu1 %v17507_v16 }
0x2656   :  { %13475 = vmatprep.subr.mxu1 %v17513_v34 }
0x2657   :  { %13476 = vmatpush3.msra.mxu1 %v17519_v9 }
0x2658   :  { %10129 = vmatpush1.bf16.msra.mxu0 %v14442_v22  ;;  %13477 = vmatprep.subr.mxu1 %v17525_v44 }
0x2659   :  { %10130 = vmatprep.subr.bf16.mxu0 %v14447_v41  ;;  %13478 = vmatpush3.msra.mxu1 %v17531_v3 }
0x265a   :  { %13479 = vmatprep.subr.mxu1 %v17537_v17 }
0x265b   :  { %13480 = vmatpush3.msra.mxu1 %v17543_v62 }
0x265c   :  { %10131 = vmatpush1.bf16.msra.mxu0 %v14445_v31  ;;  %13481 = vmatprep.subr.mxu1 %v17549_v21 }
0x265d   :  { %10132 = vmatprep.subr.bf16.mxu0 %v14450_v30  ;;  %13482 = vmatpush3.msra.mxu1 %v17555_v57 }
0x265e   :  { %13483 = vmatprep.subr.mxu1 %v17561_v54 }
0x265f   :  { %13484 = vmatpush3.msra.mxu1 %v17567_v5 }
0x2660   :  { %10133 = vmatpush1.bf16.msra.mxu0 %v14448_v25  ;;  %13485 = vmatprep.subr.mxu1 %v17573_v11 }
0x2661   :  { %10134 = vmatprep.subr.bf16.mxu0 %v14453_v63  ;;  %13486 = vmatpush3.msra.mxu1 %v17579_v13 }
0x2662   :  { %13487 = vmatprep.subr.mxu1 %v17585_v48 }
0x2663   :  { %13488 = vmatpush3.msra.mxu1 %v17591_v42 }
0x2664   :  { %10135 = vmatpush1.bf16.msra.mxu0 %v14451_v28  ;;  %13489 = vmatprep.subr.mxu1 %v17597_v20 }
0x2665   :  { %10136 = vmatprep.subr.bf16.mxu0 %v14456_v19  ;;  %13490 = vmatpush3.msra.mxu1 %v17603_v53 }
0x2666   :  { %13491 = vmatprep.subr.mxu1 %v17609_v47 }
0x2667   :  { %13492 = vmatpush3.msra.mxu1 %v17615_v14 }
0x2668   :  { %10137 = vmatpush1.bf16.msra.mxu0 %v14454_v46  ;;  %13493 = vmatprep.subr.mxu1 %v17621_v38 }
0x2669   :  { %10138 = vmatprep.subr.bf16.mxu0 %v14459_v55  ;;  %13494 = vmatpush3.msra.mxu1 %v17627_v2 }
0x266a   :  { %13495 = vmatprep.subr.mxu1 %v17633_v23 }
0x266b   :  { %13496 = vmatpush3.msra.mxu1 %v17639_v37 }
0x266c   :  { %10139 = vmatpush1.bf16.msra.mxu0 %v14457_v1  ;;  %13497 = vmatprep.subr.mxu1 %v17645_v10 }
0x266d   :  { %13498 = vmatpush3.msra.mxu1 %v17729_v33 }
0x266e   :  { %13499 = vmatprep.subr.mxu1 %v17735_v15 }
0x266f   :  { %12481 = vmatmul.mubr.msk.bf16.vlgmr.msra.gmra.mxu0 %vm243_vm1, %v15195_v35  ;;  %13500 = vmatpush3.msra.mxu1 %v17743_v24 }
0x2670   :  { %13501 = vmatprep.subr.mxu1 %v17749_v27  ;;  %10318 = vmatprep.mubr.bf16.mxu0 %v17994_v39 }
0x2671   :  { %13502 = vmatpush3.msra.mxu1 %v17756_v51 }
0x2672   :  { %13503 = vmatprep.subr.mxu1 %v17762_v49 }
0x2673   :  { %13504 = vmatpush3.msra.mxu1 %v17768_v61 }
0x270b   :  { %v9892_v40 = vpop.f32.mrf.mxu0  ;;  %v9933_v26 = vpop.f32.mrf.mxu1 }
0x270c   :  { %v17843_v36 = vadd.f32 %v9892_v40, %v17772_v52  ;;  %v17846_v50 = vadd.f32 %v9933_v26, %v17775_v29  ;;  %v10041_v40 = vld [vmem:[#allocation4 + $0x2e] sm:$0x3] }
0x270d   :  { %v9894_v4 = vpop.f32.mrf.mxu0  ;;  %v9935_v56 = vpop.f32.mrf.mxu1  ;;  %v10046_v26 = vrot.slane %v10041_v40, %v15284_v7 }
0x270e   :  { %v17849_v60 = vadd.f32 %v9894_v4, %v17778_v0  ;;  %v17852_v58 = vadd.f32 %v9935_v56, %v17781_v45  ;;  %v10050_v4 = vrot.slane %v10041_v40, %v15287_v8 }
0x270f   :  { %v9896_v22 = vpop.f32.mrf.mxu0  ;;  %v9937_v41 = vpop.f32.mrf.mxu1 }
0x2711   :  { %v9897_v31 = vpop.f32.mrf.mxu0  ;;  %v9938_v30 = vpop.f32.mrf.mxu1 }
0x2713   :  { %v9974_v25 = vpop.f32.mrf.mxu0  ;;  %v10015_v63 = vpop.f32.mrf.mxu1 }
0x2714   :  { %v17855_v52 = vadd.f32 %v9974_v25, %v17784_v12  ;;  %v17858_v29 = vadd.f32 %v10015_v63, %v17787_v43  ;;  %v14465_v63 = vld [vmem:[#allocation7 + $0x514] ss:$28 sps:$4 sm:$0xff]  }
0x2715   :  { %v9976_v28 = vpop.f32.mrf.mxu0  ;;  %v13718_v19 = vpop.f32.mrf.mxu1  ;;  %10341 = vmatprep.subr.bf16.mxu1 %v14465_v63  ;;  %v14480_v63 = vld [vmem:[#allocation2 + $0x574] ss:$200 sps:$4 sm:$0xff]  }
0x2716   :  { %v17861_v0 = vadd.f32 %v9976_v28, %v17790_v6  ;;  %v14462_v6 = vld [vmem:[#allocation7 + $0x50c] ss:$28 sps:$4 sm:$0xff]  }
0x2717   :  { %v9978_v46 = vpop.f32.mrf.mxu0  ;;  %v10018_v45 = vpop.f32.mrf.mxu1  ;;  %v14460_v28 = vld [vmem:[#allocation7 + $0x508] ss:$28 sps:$4 sm:$0xff]   ;;  %v14463_v19 = vld [vmem:[#allocation7 + $0x510] ss:$28 sps:$4 sm:$0xff]   ;;  %10300 = vmatprep.subr.bf16.mxu0 %v14462_v6 }
0x2718   :  { %10301 = vmatpush1.bf16.msra.mxu0 %v14460_v28  ;;  %v14468_v46 = vld [vmem:[#allocation7 + $0x51c] ss:$28 sps:$4 sm:$0xff]   ;;  %v14477_v6 = vld [vmem:[#allocation2 + $0x704] ss:$200 sps:$4 sm:$0xff]  }
0x2719   :  { %v9979_v55 = vpop.f32.mrf.mxu0  ;;  %v13719_v1 = vpop.f32.mrf.mxu1  ;;  %10382 = vmatprep.subr.bf16.mxu0 %v14468_v46  ;;  %v14478_v28 = vld [vmem:[#allocation2 + $0x570] ss:$200 sps:$4 sm:$0xff]  }
0x272f   :  { %v10158_v56 = vpop.f32.mrf.mxu0 }
0x2730   :  { %v10159_v12 = vadd.f32 %v10158_v56, %v10046_v26  ;;  %v14466_v56 = vld [vmem:[#allocation7 + $0x518] ss:$28 sps:$4 sm:$0xff]  }
0x2731   :  { %v10160_v22 = vpop.f32.mrf.mxu0 }
0x2732   :  { %v10161_v41 = vadd.f32 %v10160_v22, %v10050_v4  ;;  %v10165_v30 = vmax.f32 %v10159_v12, 0.0  ;;  %v10468_v4 = vld [vmem:[#allocation2 + $0xa20] sm:$0x11]  ;;  %v14469_v12 = vld [vmem:[#allocation7 + $0x520] ss:$28 sps:$4 sm:$0xff]  }
0x2733   :  { %v10162_v43 = vpop.f32.mrf.mxu0 }
0x2734   :  { %v10166_v31 = vmax.f32 %v10161_v41, 0.0  ;;  %v12506_v41 = vcombine.high %v10468_v4, %v10468_v4  ;;  %v12505_v43 = vcombine.low %v10468_v4, %v10468_v4 }
0x2735   :  { %v10163_v25 = vpop.f32.mrf.mxu0 }
0x2736   :  { %10231 = vmatprep.mubr.f32.mxu1 %v10166_v31  ;;  %v10547_v31 = vsel %vm247_vm0, %v12505_v43, 0  ;;  %v14472_v25 = vld [vmem:[#allocation2 + $0x890] ss:$200 sps:$4 sm:$0xff]  }
0x2737   :  { %10232 = vmatmul.mubr.f32.vlgmr.msra.gmra.mxu1 %v10165_v30  ;;  %v14474_v30 = vld [vmem:[#allocation2 + $0x894] ss:$200 sps:$4 sm:$0xff]  }
0x2738   :  { %10359 = vmatprep.mubr.bf16.mxu1 %v17994_v39  ;;  %10342 = vmatpush1.bf16.msra.mxu1 %v14463_v19  ;;  %v14499_v43 = vld [vmem:[#allocation7 + $0x558] ss:$28 sps:$4 sm:$0xff]  }
0x2739   :  { %13720 = vmatprep.subr.bf16.mxu1 %v17990_v18 }
0x27f7   :  { %v13505_v45 = vpop.f32.mrf.mxu1 }
0x27f9   :  { %v13506_v55 = vpop.f32.mrf.mxu1 }
0x27fa   :  { %v13507_v1 = vadd.f32 %v13506_v55, %v13505_v45  ;;  %v14495_v45 = vld [vmem:[#allocation7 + $0x54c] ss:$28 sps:$4 sm:$0xff]   ;;  %v14490_v55 = vld [vmem:[#allocation7 + $0x540] ss:$28 sps:$4 sm:$0xff]  }
0x27fc   :  { %v10234_v40 = vadd.f32 %v17683_v59, %v13507_v1  ;;  %v14493_v1 = vld [vmem:[#allocation7 + $0x548] ss:$28 sps:$4 sm:$0xff]  }
0x27fe   :  { %v10237_v26 = vmax.f32 %v10234_v40, 0.0  ;;  %v14498_v40 = vld [vmem:[#allocation7 + $0x554] ss:$28 sps:$4 sm:$0xff]  }
0x2800   :  { %v10238_v22 = vpack.c.bf16 %v10237_v26, %v10237_v26 }
0x2802   :  { %12489 = vmatmul.mubr.msk.bf16.vlgmr.msra.gmra.mxu0 %vm671_vm2, %v10238_v22  ;;  %12490 = vmatmul.mubr.msk.bf16.vlgmr.msra.gmra.mxu1 %vm671_vm2, %v10238_v22 }
0x2803   :  { %10383 = vmatpush1.bf16.msra.mxu0 %v14466_v56  ;;  %13721 = vmatpush3.bf16.msra.mxu1 %v14469_v12 }
0x2804   :  { %10400 = vmatprep.mubr.bf16.mxu0 %v17994_v39  ;;  %13722 = vmatprep.mubr.msk.bf16.mxu1 %vm15056_vm3, %v17990_v18 }
0x2805   :  { %12507 = vmatprep.subr.msk.bf16.mxu0 %vm247_vm0, %v12506_v41  ;;  %13510 = vmatprep.subr.mxu1 %v17695_v32  ;;  %v14475_v32 = vld [vmem:[#allocation2 + $0x700] ss:$200 sps:$4 sm:$0xff]  }
0x2806   :  { %v14496_v41 = vld [vmem:[#allocation7 + $0x550] ss:$28 sps:$4 sm:$0xff]  }
0x280a   :  { %12491 = vmatmul.mubr.msk.bf16.vlgmr.msra.gmra.mxu0 %vm671_vm2, %v10238_v22  ;;  %13723 = vmatmul.mubr.msk.bf16.vlgmr.msra.gmra.mxu1 %vm671_vm2, %v10238_v22 }
0x280b   :  { %10555 = vmatpush1.bf16.msra.mxu0 %v10547_v31  ;;  %10584 = vmatprep.mubr.bf16.mxu0 %v17994_v39 }
0x280c   :  { %10556 = vmatprep.subr.bf16.mxu0 %v14474_v30  ;;  %13511 = vmatpush3.msra.mxu1 %v17507_v16  ;;  %v14483_v16 = vld [vmem:[#allocation2 + $0x3e4] ss:$200 sps:$4 sm:$0xff]   ;;  %v14502_v30 = vld [vmem:[#allocation10 + $0x74] ss:$8 sps:$4 sm:$0xff]  }
0x280d   :  { %13512 = vmatprep.subr.mxu1 %v17513_v34  ;;  %v14481_v34 = vld [vmem:[#allocation2 + $0x3e0] ss:$200 sps:$4 sm:$0xff]  }
0x280e   :  { %13513 = vmatpush3.msra.mxu1 %v17519_v9  ;;  %v14486_v9 = vld [vmem:[#allocation2 + $0x254] ss:$200 sps:$4 sm:$0xff]  }
0x280f   :  { %10557 = vmatpush1.bf16.msra.mxu0 %v14472_v25  ;;  %13514 = vmatprep.subr.mxu1 %v17525_v44  ;;  %v14484_v44 = vld [vmem:[#allocation2 + $0x250] ss:$200 sps:$4 sm:$0xff]  }
0x2810   :  { %10558 = vmatprep.subr.bf16.mxu0 %v14477_v6  ;;  %13515 = vmatpush3.msra.mxu1 %v17531_v3  ;;  %v14489_v3 = vld [vmem:[#allocation2 + $0xc4] ss:$200 sps:$4 sm:$0xff]   ;;  %v14505_v25 = vld [vmem:[#allocation10 + $0x174] ss:$8 sps:$4 sm:$0xff]  }
0x2811   :  { %13516 = vmatprep.subr.mxu1 %v17537_v17  ;;  %v14487_v17 = vld [vmem:[#allocation2 + $0xc0] ss:$200 sps:$4 sm:$0xff]   ;;  %v14503_v6 = vld [vmem:[#allocation10 + $0x170] ss:$8 sps:$4 sm:$0xff]  }
0x2812   :  { %13517 = vmatpush3.msra.mxu1 %v17543_v62 }
0x2813   :  { %10559 = vmatpush1.bf16.msra.mxu0 %v14475_v32  ;;  %13518 = vmatprep.subr.mxu1 %v17549_v21  ;;  %v14508_v32 = vld [vmem:[#allocation10 + $0x64] ss:$8 sps:$4 sm:$0xff]  }
0x2814   :  { %10560 = vmatprep.subr.bf16.mxu0 %v14480_v63  ;;  %13519 = vmatpush3.msra.mxu1 %v17555_v57  ;;  %v14511_v63 = vld [vmem:[#allocation10 + $0x164] ss:$8 sps:$4 sm:$0xff]  }
0x2815   :  { %13520 = vmatprep.subr.mxu1 %v17561_v54 }
0x2816   :  { %13521 = vmatpush3.msra.mxu1 %v17567_v5 }
0x2817   :  { %10561 = vmatpush1.bf16.msra.mxu0 %v14478_v28  ;;  %13522 = vmatprep.subr.mxu1 %v17573_v11  ;;  %v14506_v28 = vld [vmem:[#allocation10 + $0x60] ss:$8 sps:$4 sm:$0xff]  }
0x2818   :  { %10562 = vmatprep.subr.bf16.mxu0 %v14483_v16  ;;  %13523 = vmatpush3.msra.mxu1 %v17579_v13  ;;  %v14509_v16 = vld [vmem:[#allocation10 + $0x160] ss:$8 sps:$4 sm:$0xff]  }
0x2819   :  { %13524 = vmatprep.subr.mxu1 %v17585_v48 }
0x281a   :  { %13525 = vmatpush3.msra.mxu1 %v17591_v42 }
0x281b   :  { %10563 = vmatpush1.bf16.msra.mxu0 %v14481_v34  ;;  %13526 = vmatprep.subr.mxu1 %v17597_v20  ;;  %v14514_v34 = vld [vmem:[#allocation10 + $0x54] ss:$8 sps:$4 sm:$0xff]  }
0x281c   :  { %10564 = vmatprep.subr.bf16.mxu0 %v14486_v9  ;;  %13527 = vmatpush3.msra.mxu1 %v17603_v53  ;;  %v14517_v9 = vld [vmem:[#allocation10 + $0x154] ss:$8 sps:$4 sm:$0xff]  }
0x281d   :  { %13528 = vmatprep.subr.mxu1 %v17609_v47 }
0x281e   :  { %13529 = vmatpush3.msra.mxu1 %v17615_v14 }
0x281f   :  { %10565 = vmatpush1.bf16.msra.mxu0 %v14484_v44  ;;  %13530 = vmatprep.subr.mxu1 %v17621_v38  ;;  %v14515_v44 = vld [vmem:[#allocation10 + $0x150] ss:$8 sps:$4 sm:$0xff]  }
0x2820   :  { %10566 = vmatprep.subr.bf16.mxu0 %v14489_v3  ;;  %13531 = vmatpush3.msra.mxu1 %v17627_v2  ;;  %v14520_v3 = vld [vmem:[#allocation10 + $0x44] ss:$8 sps:$4 sm:$0xff]  }
0x2821   :  { %13532 = vmatprep.subr.mxu1 %v17633_v23 }
0x2822   :  { %13533 = vmatpush3.msra.mxu1 %v17639_v37 }
0x2823   :  { %10567 = vmatpush1.bf16.msra.mxu0 %v14487_v17  ;;  %13534 = vmatprep.subr.mxu1 %v17645_v10  ;;  %v14523_v17 = vld [vmem:[#allocation10 + $0x144] ss:$8 sps:$4 sm:$0xff]  }
0x2824   :  { %13535 = vmatpush3.msra.mxu1 %v17729_v33 }
0x2825   :  { %13536 = vmatprep.subr.mxu1 %v17735_v15 }
0x2826   :  { %12508 = vmatmul.mubr.msk.bf16.vlgmr.msra.gmra.mxu0 %vm243_vm1, %v15195_v35  ;;  %13537 = vmatpush3.msra.mxu1 %v17743_v24 }
0x2827   :  { %13538 = vmatprep.subr.mxu1 %v17749_v27  ;;  %10746 = vmatprep.mubr.bf16.mxu0 %v17994_v39 }
0x2828   :  { %13539 = vmatpush3.msra.mxu1 %v17756_v51  ;;  %v10469_v51 = vld [vmem:[#allocation4 + $0x30] sm:$0x3] }
0x2829   :  { %13540 = vmatprep.subr.mxu1 %v17762_v49  ;;  %v10474_v49 = vrot.slane %v10469_v51, %v15284_v7 }
0x282a   :  { %13541 = vmatpush3.msra.mxu1 %v17768_v61  ;;  %v10478_v61 = vrot.slane %v10469_v51, %v15287_v8  ;;  %v14542_v51 = vld [vmem:[#allocation10] ss:$8 sps:$4 sm:$0xff]  }
0x282b   :  { %10769 = vmatprep.subr.bf16.mxu1 %v14495_v45  ;;  %v14560_v45 = vld [vmem:[#allocation10 + $0xd0] ss:$8 sps:$4 sm:$0xff]  }
0x28c2   :  { %v10320_v62 = vpop.f32.mrf.mxu0  ;;  %v10361_v21 = vpop.f32.mrf.mxu1 }
0x28c3   :  { %v17914_v57 = vadd.f32 %v10320_v62, %v17843_v36  ;;  %v17917_v54 = vadd.f32 %v10361_v21, %v17846_v50  ;;  %v14518_v62 = vld [vmem:[#allocation10 + $0x40] ss:$8 sps:$4 sm:$0xff]  }
0x28c4   :  { %v10322_v35 = vpop.f32.mrf.mxu0  ;;  %v10363_v5 = vpop.f32.mrf.mxu1  ;;  %v14521_v21 = vld [vmem:[#allocation10 + $0x140] ss:$8 sps:$4 sm:$0xff]  }
0x28c5   :  { %v17920_v11 = vadd.f32 %v10322_v35, %v17849_v60  ;;  %v17923_v13 = vadd.f32 %v10363_v5, %v17852_v58  ;;  %v14526_v35 = vld [vmem:[#allocation10 + $0x34] ss:$8 sps:$4 sm:$0xff]  }
0x28c6   :  { %v10324_v48 = vpop.f32.mrf.mxu0  ;;  %v10365_v42 = vpop.f32.mrf.mxu1  ;;  %v14529_v5 = vld [vmem:[#allocation10 + $0x134] ss:$8 sps:$4 sm:$0xff]  }
0x28c7   :  { %v14524_v48 = vld [vmem:[#allocation10 + $0x30] ss:$8 sps:$4 sm:$0xff]  }
0x28c8   :  { %v10325_v20 = vpop.f32.mrf.mxu0  ;;  %v10366_v53 = vpop.f32.mrf.mxu1  ;;  %v14527_v42 = vld [vmem:[#allocation10 + $0x130] ss:$8 sps:$4 sm:$0xff]  }
0x28c9   :  { %v14532_v20 = vld [vmem:[#allocation10 + $0x24] ss:$8 sps:$4 sm:$0xff]  }
0x28ca   :  { %v10402_v47 = vpop.f32.mrf.mxu0  ;;  %v10443_v14 = vpop.f32.mrf.mxu1  ;;  %v14535_v53 = vld [vmem:[#allocation10 + $0x124] ss:$8 sps:$4 sm:$0xff]  }
0x28cb   :  { %v17926_v38 = vadd.f32 %v10402_v47, %v17855_v52  ;;  %v17929_v2 = vadd.f32 %v10443_v14, %v17858_v29  ;;  %v14530_v47 = vld [vmem:[#allocation10 + $0x20] ss:$8 sps:$4 sm:$0xff]  }
0x28cc   :  { %v10404_v23 = vpop.f32.mrf.mxu0  ;;  %v13724_v37 = vpop.f32.mrf.mxu1  ;;  %v14533_v14 = vld [vmem:[#allocation10 + $0x120] ss:$8 sps:$4 sm:$0xff]  }
0x28cd   :  { %v17932_v10 = vadd.f32 %v10404_v23, %v17861_v0  ;;  %v14492_v0 = vld [vmem:[#allocation7 + $0x544] ss:$28 sps:$4 sm:$0xff]   ;;  %v14538_v23 = vld [vmem:[#allocation10 + $0x14] ss:$8 sps:$4 sm:$0xff]  }
0x28ce   :  { %v10406_v33 = vpop.f32.mrf.mxu0  ;;  %v10446_v15 = vpop.f32.mrf.mxu1  ;;  %10728 = vmatprep.subr.bf16.mxu0 %v14492_v0  ;;  %v14541_v37 = vld [vmem:[#allocation10 + $0x114] ss:$8 sps:$4 sm:$0xff]  }
0x28cf   :  { %10729 = vmatpush1.bf16.msra.mxu0 %v14490_v55  ;;  %v14536_v33 = vld [vmem:[#allocation10 + $0x10] ss:$8 sps:$4 sm:$0xff]   ;;  %v14565_v0 = vld [vmem:[#allocation10 + $0x1d4] ss:$8 sps:$4 sm:$0xff]  }
0x28d0   :  { %v10407_v24 = vpop.f32.mrf.mxu0  ;;  %v13725_v27 = vpop.f32.mrf.mxu1  ;;  %10810 = vmatprep.subr.bf16.mxu0 %v14498_v40  ;;  %v14539_v15 = vld [vmem:[#allocation10 + $0x110] ss:$8 sps:$4 sm:$0xff]   ;;  %v14571_v40 = vld [vmem:[#allocation10 + $0x1c4] ss:$8 sps:$4 sm:$0xff]  }
0x28d1   :  { %v14544_v24 = vld [vmem:[#allocation10 + $0x4] ss:$8 sps:$4 sm:$0xff]   ;;  %v14563_v55 = vld [vmem:[#allocation10 + $0x1d0] ss:$8 sps:$4 sm:$0xff]  }
0x28d2   :  { %v14547_v27 = vld [vmem:[#allocation10 + $0x104] ss:$8 sps:$4 sm:$0xff]  }
0x28e6   :  { %v10586_v36 = vpop.f32.mrf.mxu0 }
0x28e7   :  { %v10587_v50 = vadd.f32 %v10586_v36, %v10474_v49  ;;  %v14545_v49 = vld [vmem:[#allocation10 + $0x100] ss:$8 sps:$4 sm:$0xff]   ;;  %v14553_v36 = vld [vmem:[#allocation10 + $0x1f4] ss:$8 sps:$4 sm:$0xff]  }
0x28e8   :  { %v10588_v60 = vpop.f32.mrf.mxu0 }
0x28e9   :  { %v10589_v58 = vadd.f32 %v10588_v60, %v10478_v61  ;;  %v10593_v19 = vmax.f32 %v10587_v50, 0.0  ;;  %v14550_v61 = vld [vmem:[#allocation10 + $0xf4] ss:$8 sps:$4 sm:$0xff]   ;;  %v14548_v50 = vld [vmem:[#allocation10 + $0xf0] ss:$8 sps:$4 sm:$0xff]  }
0x28ea   :  { %v10590_v52 = vpop.f32.mrf.mxu0  ;;  %v14551_v60 = vld [vmem:[#allocation10 + $0x1f0] ss:$8 sps:$4 sm:$0xff]  }
0x28eb   :  { %v10594_v29 = vmax.f32 %v10589_v58, 0.0  ;;  %v14556_v58 = vld [vmem:[#allocation10 + $0xe4] ss:$8 sps:$4 sm:$0xff]  }
0x28ec   :  { %v10591_v46 = vpop.f32.mrf.mxu0  ;;  %v14559_v52 = vld [vmem:[#allocation10 + $0x1e4] ss:$8 sps:$4 sm:$0xff]  }
0x28ed   :  { %10659 = vmatprep.mubr.f32.mxu1 %v10594_v29  ;;  %v14554_v29 = vld [vmem:[#allocation10 + $0xe0] ss:$8 sps:$4 sm:$0xff]   ;;  %v14562_v46 = vld [vmem:[#allocation10 + $0xd4] ss:$8 sps:$4 sm:$0xff]  }
0x28ee   :  { %10660 = vmatmul.mubr.f32.vlgmr.msra.gmra.mxu1 %v10593_v19  ;;  %v14557_v19 = vld [vmem:[#allocation10 + $0x1e0] ss:$8 sps:$4 sm:$0xff]  }
0x28ef   :  { %10787 = vmatprep.mubr.bf16.mxu1 %v17994_v39  ;;  %10770 = vmatpush1.bf16.msra.mxu1 %v14493_v1  ;;  %v14568_v1 = vld [vmem:[#allocation10 + $0xc4] ss:$8 sps:$4 sm:$0xff]  }
0x28f0   :  { %13726 = vmatprep.subr.bf16.mxu1 %v17990_v18 }
0x29ae   :  { %v13542_v26 = vpop.f32.mrf.mxu1 }
0x29b0   :  { %v13543_v4 = vpop.f32.mrf.mxu1 }
0x29b1   :  { %v13544_v56 = vadd.f32 %v13543_v4, %v13542_v26  ;;  %v14566_v26 = vld [vmem:[#allocation10 + $0xc0] ss:$8 sps:$4 sm:$0xff]  }
0x29b2   :  { %v14569_v4 = vld [vmem:[#allocation10 + $0x1c0] ss:$8 sps:$4 sm:$0xff]  }
0x29b3   :  { %v10662_v12 = vadd.f32 %v17683_v59, %v13544_v56  ;;  %v14500_v59 = vld [vmem:[#allocation10 + $0x70] ss:$8 sps:$4 sm:$0xff]   ;;  %v14574_v56 = vld [vmem:[#allocation10 + $0xb4] ss:$8 sps:$4 sm:$0xff]  }
0x29b5   :  { %v10665_v22 = vmax.f32 %v10662_v12, 0.0  ;;  %v14577_v12 = vld [vmem:[#allocation10 + $0x1b4] ss:$8 sps:$4 sm:$0xff]  }
0x29b7   :  { %v10666_v31 = vpack.c.bf16 %v10665_v22, %v10665_v22  ;;  %v14572_v22 = vld [vmem:[#allocation10 + $0xb0] ss:$8 sps:$4 sm:$0xff]  }
0x29b9   :  { %12516 = vmatmul.mubr.msk.bf16.vlgmr.msra.gmra.mxu0 %vm671_vm2, %v10666_v31  ;;  %12517 = vmatmul.mubr.msk.bf16.vlgmr.msra.gmra.mxu1 %vm671_vm2, %v10666_v31 }
0x29ba   :  { %10811 = vmatpush1.bf16.msra.mxu0 %v14496_v41  ;;  %13727 = vmatpush3.bf16.msra.mxu1 %v14499_v43  ;;  %v14575_v41 = vld [vmem:[#allocation10 + $0x1b0] ss:$8 sps:$4 sm:$0xff]   ;;  %v14580_v43 = vld [vmem:[#allocation10 + $0xa4] ss:$8 sps:$4 sm:$0xff]  }
0x29bb   :  { %10828 = vmatprep.mubr.bf16.mxu0 %v17994_v39  ;;  %13728 = vmatprep.mubr.msk.bf16.mxu1 %vm15056_vm3, %v17990_v18  ;;  %v14512_v18 = vld [vmem:[#allocation10 + $0x50] ss:$8 sps:$4 sm:$0xff]  }
0x29bc   :  { %11558 = vmatprep.subr.bf16.mxu0 %v14502_v30  ;;  %11599 = vmatprep.subr.bf16.mxu1 %v14505_v25  ;;  %v14583_v30 = vld [vmem:[#allocation10 + $0x1a4] ss:$8 sps:$4 sm:$0xff]   ;;  %v14581_v25 = vld [vmem:[#allocation10 + $0x1a0] ss:$8 sps:$4 sm:$0xff]  }
0x29c1   :  { %12518 = vmatmul.mubr.msk.bf16.vlgmr.msra.gmra.mxu0 %vm671_vm2, %v10666_v31  ;;  %13729 = vmatmul.mubr.msk.bf16.vlgmr.msra.gmra.mxu1 %vm671_vm2, %v10666_v31  ;;  %v14578_v31 = vld [vmem:[#allocation10 + $0xa0] ss:$8 sps:$4 sm:$0xff]  }
0x29c2   :  { %11559 = vmatpush1.bf16.msra.mxu0 %v14500_v59  ;;  %11600 = vmatpush1.bf16.msra.mxu1 %v14503_v6  ;;  %v14586_v59 = vld [vmem:[#allocation10 + $0x94] ss:$8 sps:$4 sm:$0xff]   ;;  %v14584_v6 = vld [vmem:[#allocation10 + $0x90] ss:$8 sps:$4 sm:$0xff]  }
0x29c3   :  { %11560 = vmatprep.subr.bf16.mxu0 %v14508_v32  ;;  %11601 = vmatprep.subr.bf16.mxu1 %v14511_v63  ;;  %v14589_v32 = vld [vmem:[#allocation10 + $0x194] ss:$8 sps:$4 sm:$0xff]   ;;  %v14587_v63 = vld [vmem:[#allocation10 + $0x190] ss:$8 sps:$4 sm:$0xff]  }
0x29c6   :  { %11561 = vmatpush1.bf16.msra.mxu0 %v14506_v28  ;;  %11602 = vmatpush1.bf16.msra.mxu1 %v14509_v16  ;;  %v14592_v28 = vld [vmem:[#allocation10 + $0x84] ss:$8 sps:$4 sm:$0xff]   ;;  %v14590_v16 = vld [vmem:[#allocation10 + $0x80] ss:$8 sps:$4 sm:$0xff]  }
0x29c7   :  { %11562 = vmatprep.subr.bf16.mxu0 %v14514_v34  ;;  %11603 = vmatprep.subr.bf16.mxu1 %v14517_v9  ;;  %v14595_v34 = vld [vmem:[#allocation10 + $0x184] ss:$8 sps:$4 sm:$0xff]   ;;  %v14593_v9 = vld [vmem:[#allocation10 + $0x180] ss:$8 sps:$4 sm:$0xff]  }
0x29ca   :  { %11563 = vmatpush1.bf16.msra.mxu0 %v14512_v18  ;;  %11604 = vmatpush1.bf16.msra.mxu1 %v14515_v44  ;;  %v14598_v18 = vld [vmem:[#allocation10 + $0x274] ss:$8 sps:$4 sm:$0xff]  }
0x29cb   :  { %11564 = vmatprep.subr.bf16.mxu0 %v14520_v3  ;;  %11605 = vmatprep.subr.bf16.mxu1 %v14523_v17  ;;  %v14601_v44 = vld [vmem:[#allocation10 + $0x314] ss:$8 sps:$4 sm:$0xff]   ;;  %v18016_v3 = vld [vmem:[#allocation21_spill] sm:$0xff] }
0x29cc   :  { %v10896_v17 = vsub.s32 2, %v18016_v3 }
0x29ce   :  { %11565 = vmatpush1.bf16.msra.mxu0 %v14518_v62  ;;  %11606 = vmatpush1.bf16.msra.mxu1 %v14521_v21  ;;  %v10884_v62 = vld [vmem:[#allocation9] sm:$0x7f]  ;;  %v10900_v21 = vsub.s32 3, %v18016_v3 }
0x29cf   :  { %11566 = vmatprep.subr.bf16.mxu0 %v14526_v35  ;;  %11607 = vmatprep.subr.bf16.mxu1 %v14529_v5  ;;  %v10889_v35 = vrot.slane %v10884_v62, %v15284_v7  ;;  %v10897_v5 = vrot.slane %v10884_v62, %v10896_v17  ;;  %v14608_v17 = vld [vmem:[#allocation10 + $0x250] ss:$8 sps:$4 sm:$0xff]  }
0x29d2   :  { %11567 = vmatpush1.bf16.msra.mxu0 %v14524_v48  ;;  %11608 = vmatpush1.bf16.msra.mxu1 %v14527_v42 }
0x29d3   :  { %11568 = vmatprep.subr.bf16.mxu0 %v14532_v20  ;;  %11609 = vmatprep.subr.bf16.mxu1 %v14535_v53 }
0x29d6   :  { %11569 = vmatpush1.bf16.msra.mxu0 %v14530_v47  ;;  %11610 = vmatpush1.bf16.msra.mxu1 %v14533_v14  ;;  %v10893_v47 = vrot.slane %v10884_v62, %v15287_v8  ;;  %v10901_v14 = vrot.slane %v10884_v62, %v10900_v21  ;;  %v14613_v21 = vld [vmem:[#allocation10 + $0x244] ss:$8 sps:$4 sm:$0xff]  }
0x29d7   :  { %11570 = vmatprep.subr.bf16.mxu0 %v14538_v23  ;;  %11611 = vmatprep.subr.bf16.mxu1 %v14541_v37 }
0x29da   :  { %11571 = vmatpush1.bf16.msra.mxu0 %v14536_v33  ;;  %11612 = vmatpush1.bf16.msra.mxu1 %v14539_v15  ;;  %v10904_v33 = vsub.s32 4, %v18016_v3  ;;  %v10912_v15 = vsub.s32 6, %v18016_v3 }
0x29db   :  { %11572 = vmatprep.subr.bf16.mxu0 %v14544_v24  ;;  %11613 = vmatprep.subr.bf16.mxu1 %v14547_v27 }
0x29de   :  { %11573 = vmatpush1.bf16.msra.mxu0 %v14542_v51  ;;  %11614 = vmatpush1.bf16.msra.mxu1 %v14545_v49 }
0x29df   :  { %11574 = vmatprep.subr.bf16.mxu0 %v14550_v61  ;;  %11615 = vmatprep.subr.bf16.mxu1 %v14553_v36 }
0x29e2   :  { %11575 = vmatpush2.bf16.msra.mxu0 %v14548_v50  ;;  %11616 = vmatpush2.bf16.msra.mxu1 %v14551_v60 }
0x29e3   :  { %11576 = vmatprep.subr.bf16.mxu0 %v14556_v58  ;;  %11617 = vmatprep.subr.bf16.mxu1 %v14559_v52 }
0x29e6   :  { %11577 = vmatpush2.bf16.msra.mxu0 %v14554_v29  ;;  %11618 = vmatpush2.bf16.msra.mxu1 %v14557_v19 }
0x29e7   :  { %11578 = vmatprep.subr.bf16.mxu0 %v14562_v46  ;;  %11619 = vmatprep.subr.bf16.mxu1 %v14565_v0  ;;  %v10905_v0 = vrot.slane %v10884_v62, %v10904_v33  ;;  %v14631_v33 = vld [vmem:[#allocation10 + $0x2e4] ss:$8 sps:$4 sm:$0xff]  }
0x29ea   :  { %11579 = vmatpush2.bf16.msra.mxu0 %v14560_v45  ;;  %11620 = vmatpush2.bf16.msra.mxu1 %v14563_v55  ;;  %v10913_v45 = vrot.slane %v10884_v62, %v10912_v15  ;;  %v14629_v15 = vld [vmem:[#allocation10 + $0x2e0] ss:$8 sps:$4 sm:$0xff]  }
0x29eb   :  { %11580 = vmatprep.subr.bf16.mxu0 %v14568_v1  ;;  %11621 = vmatprep.subr.bf16.mxu1 %v14571_v40 }
0x29ee   :  { %11581 = vmatpush2.bf16.msra.mxu0 %v14566_v26  ;;  %11622 = vmatpush2.bf16.msra.mxu1 %v14569_v4 }
0x29ef   :  { %11582 = vmatprep.subr.bf16.mxu0 %v14574_v56  ;;  %11623 = vmatprep.subr.bf16.mxu1 %v14577_v12  ;;  %v14596_v56 = vld [vmem:[#allocation10 + $0x270] ss:$8 sps:$4 sm:$0xff]  }
0x29f0   :  { %v14599_v12 = vld [vmem:[#allocation10 + $0x310] ss:$8 sps:$4 sm:$0xff]  }
0x29f2   :  { %11583 = vmatpush2.bf16.msra.mxu0 %v14572_v22  ;;  %11624 = vmatpush2.bf16.msra.mxu1 %v14575_v41 }
0x29f3   :  { %11584 = vmatprep.subr.bf16.mxu0 %v14580_v43  ;;  %11625 = vmatprep.subr.bf16.mxu1 %v14583_v30  ;;  %v14604_v30 = vld [vmem:[#allocation10 + $0x264] ss:$8 sps:$4 sm:$0xff]  }
0x29f6   :  { %11585 = vmatpush2.bf16.msra.mxu0 %v14578_v31  ;;  %11626 = vmatpush2.bf16.msra.mxu1 %v14581_v25  ;;  %v14607_v25 = vld [vmem:[#allocation10 + $0x304] ss:$8 sps:$4 sm:$0xff]  }
0x29f7   :  { %11586 = vmatprep.subr.bf16.mxu0 %v14586_v59  ;;  %11627 = vmatprep.subr.bf16.mxu1 %v14589_v32 }
0x29fa   :  { %11587 = vmatpush2.bf16.msra.mxu0 %v14584_v6  ;;  %11628 = vmatpush2.bf16.msra.mxu1 %v14587_v63 }
0x29fb   :  { %11588 = vmatprep.subr.bf16.mxu0 %v14592_v28  ;;  %11629 = vmatprep.subr.bf16.mxu1 %v14595_v34 }
0x29fe   :  { %11589 = vmatpush2.bf16.msra.mxu0 %v14590_v16  ;;  %11630 = vmatpush2.bf16.msra.mxu1 %v14593_v9  ;;  %v14605_v16 = vld [vmem:[#allocation10 + $0x300] ss:$8 sps:$4 sm:$0xff]  }
0x29ff   :  { %11640 = vmatprep.subr.bf16.mxu0 %v14598_v18  ;;  %11693 = vmatprep.subr.bf16.mxu1 %v14601_v44  ;;  %v14610_v44 = vld [vmem:[#allocation10 + $0x254] ss:$8 sps:$4 sm:$0xff]  }
0x2a79   :  { %v10748_v48 = vpop.f32.mrf.mxu0  ;;  %v10789_v42 = vpop.f32.mrf.mxu1 }
0x2a7a   :  { %v10877_v20 = vadd.f32 %v10748_v48, %v17914_v57  ;;  %v10879_v53 = vadd.f32 %v10789_v42, %v17917_v54  ;;  %v10908_v57 = vsub.s32 5, %v18016_v3  ;;  %v14614_v48 = vld [vmem:[#allocation10 + $0x230] ss:$8 sps:$4 sm:$0xff]   ;;  %v14619_v42 = vld [vmem:[#allocation10 + $0x224] ss:$8 sps:$4 sm:$0xff]  }
0x2a7b   :  { %v10750_v23 = vpop.f32.mrf.mxu0  ;;  %v10791_v37 = vpop.f32.mrf.mxu1 }
0x2a7c   :  { %v10921_v24 = vadd.f32 %v10889_v35, %v10877_v20  ;;  %v10923_v27 = vadd.f32 %v10897_v5, %v10879_v53  ;;  %v10878_v51 = vadd.f32 %v10750_v23, %v17920_v11  ;;  %v10880_v49 = vadd.f32 %v10791_v37, %v17923_v13  ;;  %v14611_v35 = vld [vmem:[#allocation10 + $0x240] ss:$8 sps:$4 sm:$0xff]   ;;  %v14616_v5 = vld [vmem:[#allocation10 + $0x234] ss:$8 sps:$4 sm:$0xff]   ;;  %v14620_v53 = vld [vmem:[#allocation10 + $0x210] ss:$8 sps:$4 sm:$0xff]  }
0x2a7d   :  { %v10752_v61 = vpop.f32.mrf.mxu0  ;;  %v10793_v36 = vpop.f32.mrf.mxu1  ;;  %v10909_v40 = vrot.slane %v10884_v62, %v10908_v57  ;;  %v14622_v20 = vld [vmem:[#allocation10 + $0x214] ss:$8 sps:$4 sm:$0xff]   ;;  %v14626_v37 = vld [vmem:[#allocation10 + $0x2f0] ss:$8 sps:$4 sm:$0xff]   ;;  %v14643_v57 = vld [vmem:[#allocation10 + $0x2a4] ss:$8 sps:$4 sm:$0xff]  }
0x2a7e   :  { %v10922_v54 = vadd.f32 %v10893_v47, %v10878_v51  ;;  %v10924_v50 = vadd.f32 %v10901_v14, %v10880_v49  ;;  %v10928_v60 = vmax.f32 %v10921_v24, 0.0  ;;  %v10930_v58 = vmax.f32 %v10923_v27, 0.0  ;;  %v14625_v47 = vld [vmem:[#allocation10 + $0x204] ss:$8 sps:$4 sm:$0xff]   ;;  %v14623_v14 = vld [vmem:[#allocation10 + $0x200] ss:$8 sps:$4 sm:$0xff]  }
0x2a7f   :  { %v10753_v52 = vpop.f32.mrf.mxu0  ;;  %v10794_v29 = vpop.f32.mrf.mxu1  ;;  %v14628_v23 = vld [vmem:[#allocation10 + $0x2f4] ss:$8 sps:$4 sm:$0xff]   ;;  %v14632_v27 = vld [vmem:[#allocation10 + $0x2d0] ss:$8 sps:$4 sm:$0xff]   ;;  %v14637_v51 = vld [vmem:[#allocation10 + $0x2c4] ss:$8 sps:$4 sm:$0xff]  }
0x2a80   :  { %v10929_v19 = vmax.f32 %v10922_v54, 0.0  ;;  %v10931_v46 = vmax.f32 %v10924_v50, 0.0  ;;  %v10935_v22 = vpack.c.bf16 %v10928_v60, %v10928_v60  ;;  %v10937_v41 = vpack.c.bf16 %v10930_v58, %v10930_v58  ;;  %v14634_v24 = vld [vmem:[#allocation10 + $0x2d4] ss:$8 sps:$4 sm:$0xff]   ;;  %v14635_v49 = vld [vmem:[#allocation10 + $0x2c0] ss:$8 sps:$4 sm:$0xff]  }
0x2a81   :  { %v10830_v55 = vpop.f32.mrf.mxu0  ;;  %v10871_v1 = vpop.f32.mrf.mxu1  ;;  %v14640_v61 = vld [vmem:[#allocation10 + $0x2b4] ss:$8 sps:$4 sm:$0xff]   ;;  %v14638_v36 = vld [vmem:[#allocation10 + $0x2b0] ss:$8 sps:$4 sm:$0xff]   ;;  %v14641_v54 = vld [vmem:[#allocation10 + $0x2a0] ss:$8 sps:$4 sm:$0xff]  }
0x2a82   :  { %v10936_v11 = vpack.c.bf16 %v10929_v19, %v10929_v19  ;;  %v10938_v26 = vpack.c.bf16 %v10931_v46, %v10931_v46  ;;  %v10881_v13 = vadd.f32 %v10830_v55, %v17926_v38  ;;  %v10883_v4 = vadd.f32 %v10871_v1, %v17929_v2  ;;  %v14602_v2 = vld [vmem:[#allocation10 + $0x260] ss:$8 sps:$4 sm:$0xff]   ;;  %v14646_v50 = vld [vmem:[#allocation10 + $0x294] ss:$8 sps:$4 sm:$0xff]   ;;  %v14644_v60 = vld [vmem:[#allocation10 + $0x290] ss:$8 sps:$4 sm:$0xff]  }
0x2a83   :  { %v10832_v43 = vpop.f32.mrf.mxu0  ;;  %v13730_v31 = vpop.f32.mrf.mxu1  ;;  %v14649_v58 = vld [vmem:[#allocation10 + $0x284] ss:$8 sps:$4 sm:$0xff]   ;;  %v14647_v52 = vld [vmem:[#allocation10 + $0x280] ss:$8 sps:$4 sm:$0xff]   ;;  %v11738_v55 = vld [vmem:[#allocation13 + $0x70] sm:$0xff] }
0x2a84   :  { %v17959_v59 = vadd.f32 %v10905_v0, %v10881_v13  ;;  %v10927_v6 = vadd.f32 %v10913_v45, %v10883_v4  ;;  %v10882_v32 = vadd.f32 %v10832_v43, %v17932_v10  ;;  %11590 = vmatprep.mubr.bf16.mxu0 %v10936_v11  ;;  %11631 = vmatprep.mubr.bf16.mxu1 %v10938_v26  ;;  %v11755_v46 = vld [vmem:[#allocation13 + $0xf8] sm:$0xff]  ;;  %v11754_v45 = vld [vmem:[#allocation13 + $0xf0] sm:$0xff]  ;;  %v11753_v1 = vld [vmem:[#allocation13 + $0xe8] sm:$0xff] }
0x2a85   :  { %v10834_v63 = vpop.f32.mrf.mxu0  ;;  %v10874_v28 = vpop.f32.mrf.mxu1  ;;  %11591 = vmatmul.mubr.bf16.vlgmr.msra.gmra.mxu0 %v10935_v22  ;;  %11632 = vmatmul.mubr.bf16.vlgmr.msra.gmra.mxu1 %v10937_v41  ;;  %v11739_v0 = vld [vmem:[#allocation13 + $0x78] sm:$0xff]  ;;  %v11752_v11 = vld [vmem:[#allocation13 + $0xe0] sm:$0xff]  ;;  %v11749_v22 = vld [vmem:[#allocation13 + $0xc8] sm:$0xff] }
0x2a86   :  { %v10926_v38 = vadd.f32 %v10909_v40, %v10882_v32  ;;  %11641 = vmatpush1.bf16.msra.mxu0 %v14596_v56  ;;  %11694 = vmatpush1.bf16.msra.mxu1 %v14599_v12  ;;  %v10934_v34 = vmax.f32 %v10927_v6, 0.0  ;;  %v10932_v29 = vmax.f32 %v17959_v59, 0.0  ;;  %v11737_v40 = vld [vmem:[#allocation13 + $0x68] sm:$0xff]  ;;  %v11736_v26 = vld [vmem:[#allocation13 + $0x60] sm:$0xff]  ;;  %v11751_v13 = vld [vmem:[#allocation13 + $0xd8] sm:$0xff] }
0x2a87   :  { %v10835_v9 = vpop.f32.mrf.mxu0  ;;  %v13731_v18 = vpop.f32.mrf.mxu1  ;;  %11642 = vmatprep.subr.bf16.mxu0 %v14604_v30  ;;  %11695 = vmatprep.subr.bf16.mxu1 %v14607_v25  ;;  %v11735_v4 = vld [vmem:[#allocation13 + $0x58] sm:$0xff]  ;;  %v11750_v56 = vld [vmem:[#allocation13 + $0xd0] sm:$0xff]  ;;  %v11733_v41 = vld [vmem:[#allocation13 + $0x48] sm:$0xff] }
0x2a88   :  { %v10933_v3 = vmax.f32 %v10926_v38, 0.0  ;;  %11713 = vmatprep.mubr.bf16.mxu1 %v17994_v39  ;;  %v10941_v62 = vpack.c.bf16 %v10934_v34, %v10934_v34  ;;  %v14617_v39 = vld [vmem:[#allocation10 + $0x220] ss:$8 sps:$4 sm:$0xff]   ;;  %v10939_v19 = vpack.c.bf16 %v10932_v29, %v10932_v29  ;;  %v11734_v12 = vld [vmem:[#allocation13 + $0x50] sm:$0xff] }
0x2a89   :  { %v11748_v43 = vld [vmem:[#allocation13 + $0xc0] sm:$0xff]  ;;  %v11747_v30 = vld [vmem:[#allocation13 + $0xb8] sm:$0xff]  ;;  %v11746_v59 = vld [vmem:[#allocation13 + $0xb0] sm:$0xff] }
0x2a8a   :  { %v10940_v10 = vpack.c.bf16 %v10933_v3, %v10933_v3  ;;  %11643 = vmatpush1.bf16.msra.mxu0 %v14602_v2  ;;  %11696 = vmatpush1.bf16.msra.mxu1 %v14605_v16  ;;  %v11732_v31 = vld [vmem:[#allocation13 + $0x40] sm:$0xff]  ;;  %v11731_v25 = vld [vmem:[#allocation13 + $0x38] sm:$0xff]  ;;  %v11730_v6 = vld [vmem:[#allocation13 + $0x30] sm:$0xff] }
0x2a8b   :  { %11644 = vmatprep.subr.bf16.mxu0 %v14610_v44  ;;  %13547 = vmatprep.subr.mxu1 %v11755_v46  ;;  %v11745_v32 = vld [vmem:[#allocation13 + $0xa8] sm:$0xff]  ;;  %v11744_v28 = vld [vmem:[#allocation13 + $0xa0] sm:$0xff]  ;;  %v11743_v2 = vld [vmem:[#allocation13 + $0x98] sm:$0xff] }
0x2a8c   :  { %11672 = vmatprep.mubr.bf16.mxu0 %v10940_v10  ;;  %v11729_v63 = vld [vmem:[#allocation13 + $0x28] sm:$0xff]  ;;  %v11728_v38 = vld [vmem:[#allocation13 + $0x20] sm:$0xff]  ;;  %v11727_v16 = vld [vmem:[#allocation13 + $0x18] sm:$0xff] }
0x2a8d   :  { %12620 = vmatmul.mubr.msk.bf16.vlgmr.msra.gmra.mxu1 %vm11554_vm4, %v10941_v62  ;;  %v11742_v34 = vld [vmem:[#allocation13 + $0x90] sm:$0xff]  ;;  %v11741_v18 = vld [vmem:[#allocation13 + $0x88] sm:$0xff]  ;;  %v11740_v3 = vld [vmem:[#allocation13 + $0x80] sm:$0xff] }
0x2a8e   :  { %11645 = vmatpush1.bf16.msra.mxu0 %v14608_v17  ;;  %13548 = vmatpush3.msra.mxu1 %v11739_v0  ;;  %v11726_v9 = vld [vmem:[#allocation13 + $0x10] sm:$0xff]  ;;  %v11725_v44 = vld [vmem:[#allocation13 + $0x8] sm:$0xff]  ;;  %v11724_v10 = vld [vmem:[#allocation13] sm:$0xff] }
0x2a8f   :  { %11646 = vmatprep.subr.bf16.mxu0 %v14613_v21  ;;  %13549 = vmatprep.subr.mxu1 %v11754_v45 }
0x2a90   :  { %13550 = vmatpush3.msra.mxu1 %v11738_v55 }
0x2a91   :  { %13551 = vmatprep.subr.mxu1 %v11753_v1 }
0x2a92   :  { %11647 = vmatpush1.bf16.msra.mxu0 %v14611_v35  ;;  %13552 = vmatpush3.msra.mxu1 %v11737_v40 }
0x2a93   :  { %11648 = vmatprep.subr.bf16.mxu0 %v14616_v5  ;;  %13553 = vmatprep.subr.mxu1 %v11752_v11 }
0x2a94   :  { %13554 = vmatpush3.msra.mxu1 %v11736_v26 }
0x2a95   :  { %13555 = vmatprep.subr.mxu1 %v11751_v13 }
0x2a96   :  { %11649 = vmatpush1.bf16.msra.mxu0 %v14614_v48  ;;  %13556 = vmatpush3.msra.mxu1 %v11735_v4 }
0x2a97   :  { %11650 = vmatprep.subr.bf16.mxu0 %v14619_v42  ;;  %13557 = vmatprep.subr.mxu1 %v11750_v56 }
0x2a98   :  { %13558 = vmatpush3.msra.mxu1 %v11734_v12 }
0x2a99   :  { %13559 = vmatprep.subr.mxu1 %v11749_v22 }
0x2a9a   :  { %11651 = vmatpush1.bf16.msra.mxu0 %v14617_v39  ;;  %13560 = vmatpush3.msra.mxu1 %v11733_v41 }
0x2a9b   :  { %11652 = vmatprep.subr.bf16.mxu0 %v14622_v20  ;;  %13561 = vmatprep.subr.mxu1 %v11748_v43 }
0x2a9c   :  { %13562 = vmatpush3.msra.mxu1 %v11732_v31 }
0x2a9d   :  { %13563 = vmatprep.subr.mxu1 %v11747_v30 }
0x2a9e   :  { %11653 = vmatpush1.bf16.msra.mxu0 %v14620_v53  ;;  %13564 = vmatpush3.msra.mxu1 %v11731_v25 }
0x2a9f   :  { %11654 = vmatprep.subr.bf16.mxu0 %v14625_v47  ;;  %13565 = vmatprep.subr.mxu1 %v11746_v59 }
0x2aa0   :  { %13566 = vmatpush3.msra.mxu1 %v11730_v6 }
0x2aa1   :  { %13567 = vmatprep.subr.mxu1 %v11745_v32 }
0x2aa2   :  { %11655 = vmatpush1.bf16.msra.mxu0 %v14623_v14  ;;  %13568 = vmatpush3.msra.mxu1 %v11729_v63 }
0x2aa3   :  { %11656 = vmatprep.subr.bf16.mxu0 %v14628_v23  ;;  %13569 = vmatprep.subr.mxu1 %v11744_v28  ;;  %v11042_v23 = vld [vmem:[#allocation12] sm:$0x3] }
0x2aa4   :  { %13570 = vmatpush3.msra.mxu1 %v11728_v38 }
0x2aa5   :  { %13571 = vmatprep.subr.mxu1 %v11743_v2 }
0x2aa6   :  { %11657 = vmatpush2.bf16.msra.mxu0 %v14626_v37  ;;  %13572 = vmatpush3.msra.mxu1 %v11727_v16  ;;  %v11047_v37 = vrot.slane %v11042_v23, %v15284_v7  ;;  %v12621_v7 = vld [vmem:[#allocation15] ss:$0 sm:$0xff] }
0x2aa7   :  { %11658 = vmatprep.subr.bf16.mxu0 %v14631_v33  ;;  %13573 = vmatprep.subr.mxu1 %v11742_v34  ;;  %v11051_v33 = vrot.slane %v11042_v23, %v15287_v8 }
0x2aa8   :  { %13574 = vmatpush3.msra.mxu1 %v11726_v9 }
0x2aa9   :  { %13575 = vmatprep.subr.mxu1 %v11741_v18 }
0x2aaa   :  { %11659 = vmatpush2.bf16.msra.mxu0 %v14629_v15  ;;  %13576 = vmatpush3.msra.mxu1 %v11725_v44 }
0x2aab   :  { %11660 = vmatprep.subr.bf16.mxu0 %v14634_v24  ;;  %13577 = vmatprep.subr.mxu1 %v11740_v3 }
0x2aac   :  { %13578 = vmatpush3.msra.mxu1 %v11724_v10 }
0x2aae   :  { %11661 = vmatpush2.bf16.msra.mxu0 %v14632_v27 }
0x2aaf   :  { %11662 = vmatprep.subr.bf16.mxu0 %v14637_v51 }
0x2ab2   :  { %11663 = vmatpush2.bf16.msra.mxu0 %v14635_v49 }
0x2ab3   :  { %11664 = vmatprep.subr.bf16.mxu0 %v14640_v61 }
0x2ab6   :  { %11665 = vmatpush2.bf16.msra.mxu0 %v14638_v36 }
0x2ab7   :  { %11666 = vmatprep.subr.bf16.mxu0 %v14643_v57 }
0x2aba   :  { %11667 = vmatpush2.bf16.msra.mxu0 %v14641_v54 }
0x2abb   :  { %11668 = vmatprep.subr.bf16.mxu0 %v14646_v50 }
0x2abe   :  { %11669 = vmatpush2.bf16.msra.mxu0 %v14644_v60 }
0x2abf   :  { %11670 = vmatprep.subr.bf16.mxu0 %v14649_v58 }
0x2ac2   :  { %11671 = vmatpush2.bf16.msra.mxu0 %v14647_v52 }
0x2ac5   :  { %11673 = vmatmul.mubr.bf16.vlgmr.msra.gmra.mxu0 %v10939_v19 }
0x2b45   :  { %v11592_v17 = vpop.f32.mrf.mxu0  ;;  %v11633_v62 = vpop.f32.mrf.mxu1 }
0x2b46   :  { %v11593_v15 = vadd.f32 %v11592_v17, %v11047_v37 }
0x2b47   :  { %v11594_v21 = vpop.f32.mrf.mxu0  ;;  %v11635_v35 = vpop.f32.mrf.mxu1 }
0x2b48   :  { %v11595_v24 = vadd.f32 %v11594_v21, %v11051_v33  ;;  %v11634_v27 = vadd.f32 %v11633_v62, %v11593_v15 }
0x2b49   :  { %v11596_v5 = vpop.f32.mrf.mxu0  ;;  %v11637_v48 = vpop.f32.mrf.mxu1 }
0x2b4a   :  { %v11636_v49 = vadd.f32 %v11635_v35, %v11595_v24 }
0x2b4b   :  { %v11597_v42 = vpop.f32.mrf.mxu0  ;;  %v11638_v39 = vpop.f32.mrf.mxu1 }
0x2b4d   :  { %v11715_v20 = vpop.f32.mrf.mxu1 }
0x2b4f   :  { %v11717_v53 = vpop.f32.mrf.mxu1 }
0x2b51   :  { %v11719_v47 = vpop.f32.mrf.mxu1 }
0x2b53   :  { %v11720_v14 = vpop.f32.mrf.mxu1 }
0x2b85   :  { %v11674_v51 = vpop.f32.mrf.mxu0 }
0x2b86   :  { %v11675_v61 = vadd.f32 %v11674_v51, %v11634_v27 }
0x2b87   :  { %v11676_v36 = vpop.f32.mrf.mxu0 }
0x2b88   :  { %v11677_v57 = vadd.f32 %v11676_v36, %v11636_v49  ;;  %v11716_v54 = vadd.f32 %v11715_v20, %v11675_v61 }
0x2b89   :  { %v11678_v50 = vpop.f32.mrf.mxu0 }
0x2b8a   :  { %v11718_v60 = vadd.f32 %v11717_v53, %v11677_v57  ;;  %v11722_v29 = vmax.f32 %v11716_v54, 0.0 }
0x2b8b   :  { %v11679_v58 = vpop.f32.mrf.mxu0 }
0x2b8c   :  { %v11723_v52 = vmax.f32 %v11718_v60, 0.0 }
0x2b8e   :  { %11827 = vmatprep.mubr.f32.mxu1 %v11723_v52 }
0x2b8f   :  { %11828 = vmatmul.mubr.f32.vlgmr.msra.gmra.mxu1 %v11722_v29 }
0x2c4f   :  { %v13579_v19 = vpop.f32.mrf.mxu1 }
0x2c51   :  { %v13580_v46 = vpop.f32.mrf.mxu1 }
0x2c52   :  { %v13581_v8 = vadd.f32 %v13580_v46, %v13579_v19 }
0x2c54   :  { %v11830_v0 = vadd.f32 %v13581_v8, %v12621_v7 }
0x2c56   :  { %14650 = vtanh.f32 %v11830_v0 }
0x2c63   :  { %v14651_v45 = vpop.eup %14650 }
0x2c64   :  { %11834 = vst [vmem:[%s17980_s11] sm:$0x3] %v14651_v45 }
0x2c65   :  { %11839 = vsyncpa [#allocation3], 1 }
0x2c66   :  { %11840 = vsyncpa [#allocation5], 1 }
0x2c67   :  { %11841 = vsyncpa [#allocation8], 1 }
0x2c68   :  { %11842 = vsyncpa [#allocation11], 1 }
0x2c69   :  { %11843 = vsyncpa [#allocation14], 1 }

</bundles_post_ra>
